<compile_context>
chip_gen: v6e
topology: v6e:2x2x1
jax: 0.10.0
libtpu: 0.0.40
codegen_flags: <defaults>
</compile_context>

<pallas_src>
import math
from functools import partial

import jax
import jax.numpy as jnp
from jax.experimental import pallas as pl
from jax.experimental.pallas import tpu as pltpu


COORD_DIM = 2
CLASS_EMBED_DIM = 16
FEAT_RAW = COORD_DIM + CLASS_EMBED_DIM + COORD_DIM   # [coords | class_emb | rel_coords]
FEAT_PAD = 32                                        # padded feature width (zero rows in W)


# ----------------------------- in-kernel math helpers -----------------------------

def _layernorm(x, w, b, eps=1e-5):
    mu = jnp.mean(x, axis=-1, keepdims=True)
    xc = x - mu
    var = jnp.mean(xc * xc, axis=-1, keepdims=True)
    return xc * jax.lax.rsqrt(var + eps) * w + b


def _gelu_tanh(x):
    # TODO(synk): nn.GELU default is the exact erf form; the tanh approximation is
    # used here because tanh maps cleanly onto the TPU EUP.
    c = math.sqrt(2.0 / math.pi)
    return 0.5 * x * (1.0 + jnp.tanh(c * (x + 0.044715 * x * x * x)))


# ----------------------------- fused embedding + positional add -----------------------------

def _embed_pos_kernel(feats_ref, w_ref, b_ref, pos_ref, o_ref):
    # feats_ref: (B, S, F)   w_ref: (F, D)   b_ref: (1, D)   pos_ref: (S, D)
    B, S, F = feats_ref.shape
    D = w_ref.shape[1]
    flat = feats_ref[...].reshape(B * S, F)
    y = jnp.dot(flat, w_ref[...], preferred_element_type=jnp.float32) + b_ref[...]
    o_ref[...] = y.reshape(B, S, D) + pos_ref[...]          # (S, D) broadcasts over batch


def embed_with_pos(feats, w, b, pos_embedding):
    B, S, F = feats.shape
    D = w.shape[1]
    max_len = pos_embedding.shape[1]
    if S > max_len:
        raise ValueError(f"seq_len {S} exceeds positional-embedding max_len {max_len}")
    return pl.pallas_call(
        _embed_pos_kernel,
        out_shape=jax.ShapeDtypeStruct((B, S, D), jnp.float32),
        grid=(1,),
        in_specs=[
            pl.BlockSpec((B, S, F), lambda i: (0, 0, 0)),
            pl.BlockSpec((F, D), lambda i: (0, 0)),
            pl.BlockSpec((1, D), lambda i: (0, 0)),
            # Window into the (1, max_len, D) table: only the first S rows are DMA'd,
            # no wrapper-side slice is materialized; leading size-1 dim squeezed.
            pl.BlockSpec((None, S, D), lambda i: (0, 0, 0)),
        ],
        out_specs=pl.BlockSpec((B, S, D), lambda i: (0, 0, 0)),
        compiler_params=pltpu.CompilerParams(dimension_semantics=("arbitrary",)),
    )(feats, w, b, pos_embedding)


# ----------------------------- fused Graphormer transformer layer -----------------------------

def _graphormer_layer_kernel(num_heads,
                             x_ref, ln1w_ref, ln1b_ref, wqkv_ref, bqkv_ref, wo_ref, bo_ref,
                             ln2w_ref, ln2b_ref, w1_ref, b1_ref, w2_ref, b2_ref,
                             wa1_ref, ba1_ref, wa2_ref, ba2_ref,
                             o_ref):
    B, S, D = x_ref.shape
    H = num_heads
    dh = D // H
    scale = 1.0 / math.sqrt(dh)

    x = x_ref[...].reshape(B * S, D)

    # --- attention sub-block: x = x + out_proj(MHA(LN1(x))) ---
    h = _layernorm(x, ln1w_ref[...], ln1b_ref[...])
    qkv = jnp.dot(h, wqkv_ref[...], preferred_element_type=jnp.float32) + bqkv_ref[...]

    ctx_rows = []
    for b in range(B):                       # static loops: B and H are tiny
        r0 = b * S
        heads = []
        for hh in range(H):
            c0 = hh * dh
            q = qkv[r0:r0 + S, c0:c0 + dh]
            k = qkv[r0:r0 + S, D + c0:D + c0 + dh]
            v = qkv[r0:r0 + S, 2 * D + c0:2 * D + c0 + dh]
            s = jax.lax.dot_general(q, k, (((1,), (1,)), ((), ())),
                                    preferred_element_type=jnp.float32) * scale
            s = s - jnp.max(s, axis=-1, keepdims=True)
            p = jnp.exp(s)
            p = p / jnp.sum(p, axis=-1, keepdims=True)
            heads.append(jnp.dot(p, v, preferred_element_type=jnp.float32))
        ctx_rows.append(jnp.concatenate(heads, axis=-1))
    ctx = jnp.concatenate(ctx_rows, axis=0)                            # (B*S, D)

    attn_out = jnp.dot(ctx, wo_ref[...], preferred_element_type=jnp.float32) + bo_ref[...]
    x = x + attn_out

    # --- FFN sub-block: x = x + (FFN(LN2(x)) + Adapter(FFN(LN2(x)))) ---
    h2 = _layernorm(x, ln2w_ref[...], ln2b_ref[...])
    f = jnp.dot(h2, w1_ref[...], preferred_element_type=jnp.float32) + b1_ref[...]
    f = _gelu_tanh(f)
    f = jnp.dot(f, w2_ref[...], preferred_element_type=jnp.float32) + b2_ref[...]
    a = jnp.maximum(jnp.dot(f, wa1_ref[...], preferred_element_type=jnp.float32) + ba1_ref[...], 0.0)
    a = jnp.dot(a, wa2_ref[...], preferred_element_type=jnp.float32) + ba2_ref[...]
    f = f + a

    o_ref[...] = (x + f).reshape(B, S, D)


def graphormer_layer(x, p, num_heads):
    B, S, D = x.shape
    kernel = partial(_graphormer_layer_kernel, num_heads)
    return pl.pallas_call(
        kernel,
        out_shape=jax.ShapeDtypeStruct((B, S, D), jnp.float32),
        input_output_aliases={0: 0},           # output reuses x's HBM buffer
    )(x, p["ln1_w"], p["ln1_b"], p["w_qkv"], p["b_qkv"], p["w_o"], p["b_o"],
      p["ln2_w"], p["ln2_b"], p["w_ffn1"], p["b_ffn1"], p["w_ffn2"], p["b_ffn2"],
      p["w_ad1"], p["b_ad1"], p["w_ad2"], p["b_ad2"])


# ----------------------------- stage projection (Linear + ReLU) -----------------------------

def _proj_relu_kernel(x_ref, w_ref, b_ref, o_ref):
    B, S, Din = x_ref.shape
    Dout = w_ref.shape[1]
    flat = x_ref[...].reshape(B * S, Din)
    y = jnp.dot(flat, w_ref[...], preferred_element_type=jnp.float32) + b_ref[...]
    o_ref[...] = jnp.maximum(y, 0.0).reshape(B, S, Dout)


def proj_relu(x, w, b):
    B, S, _ = x.shape
    Dout = w.shape[1]
    return pl.pallas_call(
        _proj_relu_kernel,
        out_shape=jax.ShapeDtypeStruct((B, S, Dout), jnp.float32),
    )(x, w, b)


# ----------------------------- pooling head (mean -> LayerNorm -> Linear) -----------------------------

def _head_kernel(x_ref, nw_ref, nb_ref, wf_ref, bf_ref, o_ref):
    m = jnp.mean(x_ref[...], axis=1)                                   # (B, D)
    h = _layernorm(m, nw_ref[...], nb_ref[...])
    o_ref[...] = jnp.dot(h, wf_ref[...], preferred_element_type=jnp.float32) + bf_ref[...]


def head(x, norm_w, norm_b, fc_w, fc_b):
    B = x.shape[0]
    nf = fc_w.shape[1]
    return pl.pallas_call(
        _head_kernel,
        out_shape=jax.ShapeDtypeStruct((B, nf), jnp.float32),
    )(x, norm_w, norm_b, fc_w, fc_b)


# ----------------------------- full forward pass -----------------------------

def hft_forward(params, coords, class_tokens, *, num_heads):
    B, S, _ = coords.shape

    # Glue (tiny O(B*S) work): embedding gather, relative coords, feature concat.
    class_raw = jnp.take(params["class_embedding"], class_tokens, axis=0)      # (B, S, 16)
    center = jnp.mean(coords, axis=1, keepdims=True)
    rel = coords - center
    feats = jnp.zeros((B, S, FEAT_PAD), jnp.float32)
    feats = feats.at[:, :, 0:COORD_DIM].set(coords)
    feats = feats.at[:, :, COORD_DIM:COORD_DIM + CLASS_EMBED_DIM].set(class_raw)
    feats = feats.at[:, :, COORD_DIM + CLASS_EMBED_DIM:FEAT_RAW].set(rel)

    # coord_fc ⊕ class_fc ⊕ rel_fc (block-diagonal weight) + learnable positional add.
    x = embed_with_pos(feats, params["w_fused"], params["b_fused"], params["pos_embedding"])

    # TODO(synk): compute_edge_bias(coords) is computed in the PyTorch forward but its
    # result is never consumed (attn_mask is always None inside the layers) -> skipped.

    for p in params["stage1"]:
        x = graphormer_layer(x, p, num_heads)
    x = proj_relu(x, params["proj2_w"], params["proj2_b"])
    for p in params["stage2"]:
        x = graphormer_layer(x, p, num_heads)
    x = proj_relu(x, params["proj3_w"], params["proj3_b"])
    for p in params["stage3"]:
        x = graphormer_layer(x, p, num_heads)

    return head(x, params["norm_w"], params["norm_b"], params["fc_w"], params["fc_b"])


# ----------------------------- parameter init -----------------------------

def init_params(key, *, class_vocab_size=10, stage_dims=(256, 128, 128),
                num_layers=(1, 1, 1), num_formations=10, adapter_dim=64, max_len=5000):
    d0, d1, d2 = stage_dims
    dim_coord = d0 // 3
    dim_class = d0 // 3
    dim_rel = d0 - dim_coord - dim_class

    keys = iter(jax.random.split(key, 128))

    def dense(din, dout):
        w = jax.random.normal(next(keys), (din, dout), jnp.float32) / math.sqrt(din)
        b = 0.01 * jax.random.normal(next(keys), (1, dout), jnp.float32)
        return w, b

    # Block-diagonal fused input projection == concat(coord_fc, class_fc, rel_fc).
    wc, bc = dense(COORD_DIM, dim_coord)
    wk, bk = dense(CLASS_EMBED_DIM, dim_class)
    wr, br = dense(COORD_DIM, dim_rel)
    w_fused = jnp.zeros((FEAT_PAD, d0), jnp.float32)
    w_fused = w_fused.at[0:COORD_DIM, 0:dim_coord].set(wc)
    w_fused = w_fused.at[COORD_DIM:COORD_DIM + CLASS_EMBED_DIM,
                         dim_coord:dim_coord + dim_class].set(wk)
    w_fused = w_fused.at[COORD_DIM + CLASS_EMBED_DIM:FEAT_RAW,
                         dim_coord + dim_class:d0].set(wr)
    b_fused = jnp.concatenate([bc, bk, br], axis=-1)

    def layer_params(d):
        w_qkv, b_qkv = dense(d, 3 * d)
        w_o, b_o = dense(d, d)
        w1, b1 = dense(d, 4 * d)
        w2, b2 = dense(4 * d, d)
        wa1, ba1 = dense(d, adapter_dim)
        wa2, ba2 = dense(adapter_dim, d)
        return dict(
            ln1_w=jnp.ones((1, d), jnp.float32), ln1_b=jnp.zeros((1, d), jnp.float32),
            w_qkv=w_qkv, b_qkv=b_qkv, w_o=w_o, b_o=b_o,
            ln2_w=jnp.ones((1, d), jnp.float32), ln2_b=jnp.zeros((1, d), jnp.float32),
            w_ffn1=w1, b_ffn1=b1, w_ffn2=w2, b_ffn2=b2,
            w_ad1=wa1, b_ad1=ba1, w_ad2=wa2, b_ad2=ba2,
        )

    proj2_w, proj2_b = dense(d0, d1)
    proj3_w, proj3_b = dense(d1, d2)
    fc_w, fc_b = dense(d2, num_formations)

    return dict(
        class_embedding=jax.random.normal(next(keys), (class_vocab_size, CLASS_EMBED_DIM), jnp.float32),
        pos_embedding=jax.random.normal(next(keys), (1, max_len, d0), jnp.float32),
        w_fused=w_fused, b_fused=b_fused,
        stage1=[layer_params(d0) for _ in range(num_layers[0])],
        stage2=[layer_params(d1) for _ in range(num_layers[1])],
        stage3=[layer_params(d2) for _ in range(num_layers[2])],
        proj2_w=proj2_w, proj2_b=proj2_b,
        proj3_w=proj3_w, proj3_b=proj3_b,
        norm_w=jnp.ones((1, d2), jnp.float32), norm_b=jnp.zeros((1, d2), jnp.float32),
        fc_w=fc_w, fc_b=fc_b,
    )


# ----------------------------- pure-JAX reference (same semantics) -----------------------------

def _ref_layer(x, p, num_heads):
    B, S, D = x.shape
    dh = D // num_heads
    h = _layernorm(x, p["ln1_w"], p["ln1_b"])
    qkv = h @ p["w_qkv"] + p["b_qkv"]
    q, k, v = qkv[..., :D], qkv[..., D:2 * D], qkv[..., 2 * D:]
    q = q.reshape(B, S, num_heads, dh).transpose(0, 2, 1, 3)
    k = k.reshape(B, S, num_heads, dh).transpose(0, 2, 1, 3)
    v = v.reshape(B, S, num_heads, dh).transpose(0, 2, 1, 3)
    s = jnp.einsum("bhqd,bhkd->bhqk", q, k) / math.sqrt(dh)
    attn = jax.nn.softmax(s, axis=-1)
    ctx = jnp.einsum("bhqk,bhkd->bhqd", attn, v).transpose(0, 2, 1, 3).reshape(B, S, D)
    x = x + ctx @ p["w_o"] + p["b_o"]
    h2 = _layernorm(x, p["ln2_w"], p["ln2_b"])
    f = _gelu_tanh(h2 @ p["w_ffn1"] + p["b_ffn1"]) @ p["w_ffn2"] + p["b_ffn2"]
    a = jnp.maximum(f @ p["w_ad1"] + p["b_ad1"], 0.0) @ p["w_ad2"] + p["b_ad2"]
    return x + f + a


def reference_forward(params, coords, class_tokens, *, num_heads):
    B, S, _ = coords.shape
    class_raw = jnp.take(params["class_embedding"], class_tokens, axis=0)
    rel = coords - jnp.mean(coords, axis=1, keepdims=True)
    feats = jnp.zeros((B, S, FEAT_PAD), jnp.float32)
    feats = feats.at[:, :, 0:COORD_DIM].set(coords)
    feats = feats.at[:, :, COORD_DIM:COORD_DIM + CLASS_EMBED_DIM].set(class_raw)
    feats = feats.at[:, :, COORD_DIM + CLASS_EMBED_DIM:FEAT_RAW].set(rel)
    x = feats @ params["w_fused"] + params["b_fused"] + params["pos_embedding"][:, :S, :]
    for p in params["stage1"]:
        x = _ref_layer(x, p, num_heads)
    x = jnp.maximum(x @ params["proj2_w"] + params["proj2_b"], 0.0)
    for p in params["stage2"]:
        x = _ref_layer(x, p, num_heads)
    x = jnp.maximum(x @ params["proj3_w"] + params["proj3_b"], 0.0)
    for p in params["stage3"]:
        x = _ref_layer(x, p, num_heads)
    m = jnp.mean(x, axis=1)
    h = _layernorm(m, params["norm_w"], params["norm_b"])
    return h @ params["fc_w"] + params["fc_b"]


# ----------------------------- demo / self-check -----------------------------

if __name__ == "__main__":
    B, S = 2, 8
    num_heads = 2
    num_formations = 10

    key = jax.random.PRNGKey(0)
    k_params, k_coords, k_tokens = jax.random.split(key, 3)

    params = init_params(k_params, num_formations=num_formations)
    coords = jax.random.normal(k_coords, (B, S, COORD_DIM), jnp.float32)
    class_tokens = jax.random.randint(k_tokens, (B, S), 0, 10)

    fwd = jax.jit(partial(hft_forward, num_heads=num_heads))
    out = jax.block_until_ready(fwd(params, coords, class_tokens))

    ref = jax.block_until_ready(
        reference_forward(params, coords, class_tokens, num_heads=num_heads))

    assert out.shape == (B, num_formations), f"bad output shape {out.shape}"
    assert bool(jnp.all(jnp.isfinite(out))), "non-finite values in output"
    assert jnp.allclose(out, ref, atol=5e-2, rtol=5e-2), "mismatch vs pure-JAX reference"

    print("KERNEL_OK")
</pallas_src>

<mosaic_0001>
module attributes {stable_mosaic.version = 11 : i64} {
  func.func @_embed_pos_kernel(%arg0: i32, %arg1: memref<2x8x32xf32, #tpu.memory_space<vmem>>, %arg2: memref<32x256xf32, #tpu.memory_space<vmem>>, %arg3: memref<1x256xf32, #tpu.memory_space<vmem>>, %arg4: memref<1x8x256xf32, #tpu.memory_space<vmem>>, %arg5: memref<2x8x256xf32, #tpu.memory_space<vmem>>) attributes {dimension_semantics = [#tpu.dimension_semantics<arbitrary>], iteration_bounds = array<i64: 1>, scalar_prefetch = 0 : i64, scratch_operands = 0 : i64, tpu.core_type = #tpu.core_type<tc>, window_params = [{pipeline_mode = #tpu.pipeline_mode<synchronous>, transform_indices = @transform_0, window_bounds = array<i64: 2, 8, 32>}, {pipeline_mode = #tpu.pipeline_mode<synchronous>, transform_indices = @transform_1, window_bounds = array<i64: 32, 256>}, {pipeline_mode = #tpu.pipeline_mode<synchronous>, transform_indices = @transform_2, window_bounds = array<i64: 1, 256>}, {transform_indices = @transform_3, window_bounds = array<i64: 1, 8, 256>}, {pipeline_mode = #tpu.pipeline_mode<synchronous>, transform_indices = @transform_4, window_bounds = array<i64: 2, 8, 256>}]} {
    %c0 = arith.constant 0 : index
    %c0_0 = arith.constant 0 : index
    %c0_1 = arith.constant 0 : index
    %0 = vector.load %arg1[%c0, %c0_0, %c0_1] : memref<2x8x32xf32, #tpu.memory_space<vmem>>, vector<2x8x32xf32>
    %1 = vector.shape_cast %0 : vector<2x8x32xf32> to vector<16x32xf32>
    %c0_2 = arith.constant 0 : index
    %c0_3 = arith.constant 0 : index
    %2 = vector.load %arg2[%c0_2, %c0_3] : memref<32x256xf32, #tpu.memory_space<vmem>>, vector<32x256xf32>
    %cst = arith.constant dense<0.000000e+00> : vector<16x256xf32>
    %3 = tpu.matmul %1, %2, %cst {dimension_numbers = #tpu.dot_dimension_numbers<[1], [0], [0], [1], [0, 0, 1, 1], [], []>} : vector<16x32xf32>, vector<32x256xf32>, vector<16x256xf32> -> vector<16x256xf32>
    %c0_4 = arith.constant 0 : index
    %c0_5 = arith.constant 0 : index
    %4 = vector.load %arg3[%c0_4, %c0_5] : memref<1x256xf32, #tpu.memory_space<vmem>>, vector<1x256xf32>
    %5 = vector.broadcast %4 : vector<1x256xf32> to vector<16x256xf32>
    %6 = arith.addf %3, %5 : vector<16x256xf32>
    %7 = vector.shape_cast %6 : vector<16x256xf32> to vector<2x8x256xf32>
    %c0_6 = arith.constant 0 : index
    %c0_7 = arith.constant 0 : index
    %c0_8 = arith.constant 0 : index
    %8 = vector.load %arg4[%c0_6, %c0_7, %c0_8] : memref<1x8x256xf32, #tpu.memory_space<vmem>>, vector<1x8x256xf32>
    %9 = vector.shape_cast %8 : vector<1x8x256xf32> to vector<8x256xf32>
    %10 = vector.shape_cast %9 : vector<8x256xf32> to vector<1x8x256xf32>
    %11 = vector.broadcast %10 : vector<1x8x256xf32> to vector<2x8x256xf32>
    %12 = arith.addf %7, %11 : vector<2x8x256xf32>
    %c0_9 = arith.constant 0 : index
    %c0_10 = arith.constant 0 : index
    %c0_11 = arith.constant 0 : index
    %13 = vector.load %arg5[%c0_9, %c0_10, %c0_11] : memref<2x8x256xf32, #tpu.memory_space<vmem>>, vector<2x8x256xf32>
    tpu.vector_store %arg5[%c0_9, %c0_10, %c0_11], %12 {strides = array<i32>} : memref<2x8x256xf32, #tpu.memory_space<vmem>>, vector<2x8x256xf32>,
    return
  }
  func.func @transform_0(%arg0: i32) -> (i32, i32, i32) {
    %c0_i32 = arith.constant 0 : i32
    %c0_i32_0 = arith.constant 0 : i32
    %c0_i32_1 = arith.constant 0 : i32
    %c0_i32_2 = arith.constant 0 : i32
    return %c0_i32, %c0_i32_0, %c0_i32_1 : i32, i32, i32
  }
  func.func @transform_1(%arg0: i32) -> (i32, i32) {
    %c0_i32 = arith.constant 0 : i32
    %c0_i32_0 = arith.constant 0 : i32
    %c0_i32_1 = arith.constant 0 : i32
    return %c0_i32, %c0_i32_0 : i32, i32
  }
  func.func @transform_2(%arg0: i32) -> (i32, i32) {
    %c0_i32 = arith.constant 0 : i32
    %c0_i32_0 = arith.constant 0 : i32
    %c0_i32_1 = arith.constant 0 : i32
    return %c0_i32, %c0_i32_0 : i32, i32
  }
  func.func @transform_3(%arg0: i32) -> (i32, i32, i32) {
    %c0_i32 = arith.constant 0 : i32
    %c0_i32_0 = arith.constant 0 : i32
    %c0_i32_1 = arith.constant 0 : i32
    %c0_i32_2 = arith.constant 0 : i32
    return %c0_i32, %c0_i32_0, %c0_i32_1 : i32, i32, i32
  }
  func.func @transform_4(%arg0: i32) -> (i32, i32, i32) {
    %c0_i32 = arith.constant 0 : i32
    %c0_i32_0 = arith.constant 0 : i32
    %c0_i32_1 = arith.constant 0 : i32
    %c0_i32_2 = arith.constant 0 : i32
    return %c0_i32, %c0_i32_0, %c0_i32_1 : i32, i32, i32
  }
}

module attributes {stable_mosaic.version = 11 : i64} {
  func.func @_graphormer_layer_kernel(%arg0: memref<2x8x256xf32, #tpu.memory_space<vmem>>, %arg1: memref<1x256xf32, #tpu.memory_space<vmem>>, %arg2: memref<1x256xf32, #tpu.memory_space<vmem>>, %arg3: memref<256x768xf32, #tpu.memory_space<vmem>>, %arg4: memref<1x768xf32, #tpu.memory_space<vmem>>, %arg5: memref<256x256xf32, #tpu.memory_space<vmem>>, %arg6: memref<1x256xf32, #tpu.memory_space<vmem>>, %arg7: memref<1x256xf32, #tpu.memory_space<vmem>>, %arg8: memref<1x256xf32, #tpu.memory_space<vmem>>, %arg9: memref<256x1024xf32, #tpu.memory_space<vmem>>, %arg10: memref<1x1024xf32, #tpu.memory_space<vmem>>, %arg11: memref<1024x256xf32, #tpu.memory_space<vmem>>, %arg12: memref<1x256xf32, #tpu.memory_space<vmem>>, %arg13: memref<256x64xf32, #tpu.memory_space<vmem>>, %arg14: memref<1x64xf32, #tpu.memory_space<vmem>>, %arg15: memref<64x256xf32, #tpu.memory_space<vmem>>, %arg16: memref<1x256xf32, #tpu.memory_space<vmem>>, %arg17: memref<2x8x256xf32, #tpu.memory_space<vmem>>) attributes {dimension_semantics = [], scalar_prefetch = 0 : i64, scratch_operands = 0 : i64, tpu.core_type = #tpu.core_type<tc>} {
    %c0 = arith.constant 0 : index
    %c0_0 = arith.constant 0 : index
    %c0_1 = arith.constant 0 : index
    %0 = vector.load %arg0[%c0, %c0_0, %c0_1] : memref<2x8x256xf32, #tpu.memory_space<vmem>>, vector<2x8x256xf32>
    %1 = vector.shape_cast %0 : vector<2x8x256xf32> to vector<16x256xf32>
    %c0_2 = arith.constant 0 : index
    %c0_3 = arith.constant 0 : index
    %2 = vector.load %arg1[%c0_2, %c0_3] : memref<1x256xf32, #tpu.memory_space<vmem>>, vector<1x256xf32>
    %c0_4 = arith.constant 0 : index
    %c0_5 = arith.constant 0 : index
    %3 = vector.load %arg2[%c0_4, %c0_5] : memref<1x256xf32, #tpu.memory_space<vmem>>, vector<1x256xf32>
    %cst = arith.constant dense<0.000000e+00> : vector<16xf32>
    %4 = vector.multi_reduction <add>, %1, %cst [1] : vector<16x256xf32> to vector<16xf32>
    %5 = vector.shape_cast %4 : vector<16xf32> to vector<16x1xf32>
    %cst_6 = arith.constant 2.560000e+02 : f32
    %6 = vector.broadcast %cst_6 : f32 to vector<16x1xf32>
    %7 = arith.divf %5, %6 : vector<16x1xf32>
    %8 = vector.broadcast %7 : vector<16x1xf32> to vector<16x256xf32>
    %9 = arith.subf %1, %8 : vector<16x256xf32>
    %10 = arith.mulf %9, %9 : vector<16x256xf32>
    %cst_7 = arith.constant dense<0.000000e+00> : vector<16xf32>
    %11 = vector.multi_reduction <add>, %10, %cst_7 [1] : vector<16x256xf32> to vector<16xf32>
    %12 = vector.shape_cast %11 : vector<16xf32> to vector<16x1xf32>
    %cst_8 = arith.constant 2.560000e+02 : f32
    %13 = vector.broadcast %cst_8 : f32 to vector<16x1xf32>
    %14 = arith.divf %12, %13 : vector<16x1xf32>
    %cst_9 = arith.constant 9.99999974E-6 : f32
    %15 = vector.broadcast %cst_9 : f32 to vector<16x1xf32>
    %16 = arith.addf %14, %15 : vector<16x1xf32>
    %17 = math.rsqrt %16 : vector<16x1xf32>
    %18 = vector.broadcast %17 : vector<16x1xf32> to vector<16x256xf32>
    %19 = arith.mulf %9, %18 : vector<16x256xf32>
    %20 = vector.broadcast %2 : vector<1x256xf32> to vector<16x256xf32>
    %21 = arith.mulf %19, %20 : vector<16x256xf32>
    %22 = vector.broadcast %3 : vector<1x256xf32> to vector<16x256xf32>
    %23 = arith.addf %21, %22 : vector<16x256xf32>
    %c0_10 = arith.constant 0 : index
    %c0_11 = arith.constant 0 : index
    %24 = vector.load %arg3[%c0_10, %c0_11] : memref<256x768xf32, #tpu.memory_space<vmem>>, vector<256x768xf32>
    %cst_12 = arith.constant dense<0.000000e+00> : vector<16x768xf32>
    %25 = tpu.matmul %23, %24, %cst_12 {dimension_numbers = #tpu.dot_dimension_numbers<[1], [0], [0], [1], [0, 0, 1, 1], [], []>} : vector<16x256xf32>, vector<256x768xf32>, vector<16x768xf32> -> vector<16x768xf32>
    %c0_13 = arith.constant 0 : index
    %c0_14 = arith.constant 0 : index
    %26 = vector.load %arg4[%c0_13, %c0_14] : memref<1x768xf32, #tpu.memory_space<vmem>>, vector<1x768xf32>
    %27 = vector.broadcast %26 : vector<1x768xf32> to vector<16x768xf32>
    %28 = arith.addf %25, %27 : vector<16x768xf32>
    %29 = vector.extract_strided_slice %28 {offsets = [0, 0], sizes = [8, 128], strides = [1, 1]} : vector<16x768xf32> to vector<8x128xf32>
    %30 = vector.extract_strided_slice %28 {offsets = [0, 256], sizes = [8, 128], strides = [1, 1]} : vector<16x768xf32> to vector<8x128xf32>
    %31 = vector.extract_strided_slice %28 {offsets = [0, 512], sizes = [8, 128], strides = [1, 1]} : vector<16x768xf32> to vector<8x128xf32>
    %cst_15 = arith.constant dense<0.000000e+00> : vector<8x8xf32>
    %32 = tpu.matmul %29, %30, %cst_15 {dimension_numbers = #tpu.dot_dimension_numbers<[1], [1], [0], [0], [0, 0, 1, 0], [], []>} : vector<8x128xf32>, vector<8x128xf32>, vector<8x8xf32> -> vector<8x8xf32>
    %cst_16 = arith.constant 0.0883883461 : f32
    %33 = vector.broadcast %cst_16 : f32 to vector<8x8xf32>
    %34 = arith.mulf %32, %33 : vector<8x8xf32>
    %cst_17 = arith.constant dense<0xFF800000> : vector<8xf32>
    %35 = vector.multi_reduction <maximumf>, %34, %cst_17 [1] : vector<8x8xf32> to vector<8xf32>
    %36 = vector.shape_cast %35 : vector<8xf32> to vector<8x1xf32>
    %37 = vector.broadcast %36 : vector<8x1xf32> to vector<8x8xf32>
    %38 = arith.subf %34, %37 : vector<8x8xf32>
    %39 = math.exp %38 : vector<8x8xf32>
    %cst_18 = arith.constant dense<0.000000e+00> : vector<8xf32>
    %40 = vector.multi_reduction <add>, %39, %cst_18 [1] : vector<8x8xf32> to vector<8xf32>
    %41 = vector.shape_cast %40 : vector<8xf32> to vector<8x1xf32>
    %42 = vector.broadcast %41 : vector<8x1xf32> to vector<8x8xf32>
    %43 = arith.divf %39, %42 : vector<8x8xf32>
    %cst_19 = arith.constant dense<0.000000e+00> : vector<8x128xf32>
    %44 = tpu.matmul %43, %31, %cst_19 {dimension_numbers = #tpu.dot_dimension_numbers<[1], [0], [0], [1], [0, 0, 1, 1], [], []>} : vector<8x8xf32>, vector<8x128xf32>, vector<8x128xf32> -> vector<8x128xf32>
    %45 = vector.extract_strided_slice %28 {offsets = [0, 128], sizes = [8, 128], strides = [1, 1]} : vector<16x768xf32> to vector<8x128xf32>
    %46 = vector.extract_strided_slice %28 {offsets = [0, 384], sizes = [8, 128], strides = [1, 1]} : vector<16x768xf32> to vector<8x128xf32>
    %47 = vector.extract_strided_slice %28 {offsets = [0, 640], sizes = [8, 128], strides = [1, 1]} : vector<16x768xf32> to vector<8x128xf32>
    %cst_20 = arith.constant dense<0.000000e+00> : vector<8x8xf32>
    %48 = tpu.matmul %45, %46, %cst_20 {dimension_numbers = #tpu.dot_dimension_numbers<[1], [1], [0], [0], [0, 0, 1, 0], [], []>} : vector<8x128xf32>, vector<8x128xf32>, vector<8x8xf32> -> vector<8x8xf32>
    %cst_21 = arith.constant 0.0883883461 : f32
    %49 = vector.broadcast %cst_21 : f32 to vector<8x8xf32>
    %50 = arith.mulf %48, %49 : vector<8x8xf32>
    %cst_22 = arith.constant dense<0xFF800000> : vector<8xf32>
    %51 = vector.multi_reduction <maximumf>, %50, %cst_22 [1] : vector<8x8xf32> to vector<8xf32>
    %52 = vector.shape_cast %51 : vector<8xf32> to vector<8x1xf32>
    %53 = vector.broadcast %52 : vector<8x1xf32> to vector<8x8xf32>
    %54 = arith.subf %50, %53 : vector<8x8xf32>
    %55 = math.exp %54 : vector<8x8xf32>
    %cst_23 = arith.constant dense<0.000000e+00> : vector<8xf32>
    %56 = vector.multi_reduction <add>, %55, %cst_23 [1] : vector<8x8xf32> to vector<8xf32>
    %57 = vector.shape_cast %56 : vector<8xf32> to vector<8x1xf32>
    %58 = vector.broadcast %57 : vector<8x1xf32> to vector<8x8xf32>
    %59 = arith.divf %55, %58 : vector<8x8xf32>
    %cst_24 = arith.constant dense<0.000000e+00> : vector<8x128xf32>
    %60 = tpu.matmul %59, %47, %cst_24 {dimension_numbers = #tpu.dot_dimension_numbers<[1], [0], [0], [1], [0, 0, 1, 1], [], []>} : vector<8x8xf32>, vector<8x128xf32>, vector<8x128xf32> -> vector<8x128xf32>
    %61 = tpu.concatenate %44, %60 in 1 : vector<8x128xf32>, vector<8x128xf32> -> vector<8x256xf32>
    %62 = vector.extract_strided_slice %28 {offsets = [8, 0], sizes = [8, 128], strides = [1, 1]} : vector<16x768xf32> to vector<8x128xf32>
    %63 = vector.extract_strided_slice %28 {offsets = [8, 256], sizes = [8, 128], strides = [1, 1]} : vector<16x768xf32> to vector<8x128xf32>
    %64 = vector.extract_strided_slice %28 {offsets = [8, 512], sizes = [8, 128], strides = [1, 1]} : vector<16x768xf32> to vector<8x128xf32>
    %cst_25 = arith.constant dense<0.000000e+00> : vector<8x8xf32>
    %65 = tpu.matmul %62, %63, %cst_25 {dimension_numbers = #tpu.dot_dimension_numbers<[1], [1], [0], [0], [0, 0, 1, 0], [], []>} : vector<8x128xf32>, vector<8x128xf32>, vector<8x8xf32> -> vector<8x8xf32>
    %cst_26 = arith.constant 0.0883883461 : f32
    %66 = vector.broadcast %cst_26 : f32 to vector<8x8xf32>
    %67 = arith.mulf %65, %66 : vector<8x8xf32>
    %cst_27 = arith.constant dense<0xFF800000> : vector<8xf32>
    %68 = vector.multi_reduction <maximumf>, %67, %cst_27 [1] : vector<8x8xf32> to vector<8xf32>
    %69 = vector.shape_cast %68 : vector<8xf32> to vector<8x1xf32>
    %70 = vector.broadcast %69 : vector<8x1xf32> to vector<8x8xf32>
    %71 = arith.subf %67, %70 : vector<8x8xf32>
    %72 = math.exp %71 : vector<8x8xf32>
    %cst_28 = arith.constant dense<0.000000e+00> : vector<8xf32>
    %73 = vector.multi_reduction <add>, %72, %cst_28 [1] : vector<8x8xf32> to vector<8xf32>
    %74 = vector.shape_cast %73 : vector<8xf32> to vector<8x1xf32>
    %75 = vector.broadcast %74 : vector<8x1xf32> to vector<8x8xf32>
    %76 = arith.divf %72, %75 : vector<8x8xf32>
    %cst_29 = arith.constant dense<0.000000e+00> : vector<8x128xf32>
    %77 = tpu.matmul %76, %64, %cst_29 {dimension_numbers = #tpu.dot_dimension_numbers<[1], [0], [0], [1], [0, 0, 1, 1], [], []>} : vector<8x8xf32>, vector<8x128xf32>, vector<8x128xf32> -> vector<8x128xf32>
    %78 = vector.extract_strided_slice %28 {offsets = [8, 128], sizes = [8, 128], strides = [1, 1]} : vector<16x768xf32> to vector<8x128xf32>
    %79 = vector.extract_strided_slice %28 {offsets = [8, 384], sizes = [8, 128], strides = [1, 1]} : vector<16x768xf32> to vector<8x128xf32>
    %80 = vector.extract_strided_slice %28 {offsets = [8, 640], sizes = [8, 128], strides = [1, 1]} : vector<16x768xf32> to vector<8x128xf32>
    %cst_30 = arith.constant dense<0.000000e+00> : vector<8x8xf32>
    %81 = tpu.matmul %78, %79, %cst_30 {dimension_numbers = #tpu.dot_dimension_numbers<[1], [1], [0], [0], [0, 0, 1, 0], [], []>} : vector<8x128xf32>, vector<8x128xf32>, vector<8x8xf32> -> vector<8x8xf32>
    %cst_31 = arith.constant 0.0883883461 : f32
    %82 = vector.broadcast %cst_31 : f32 to vector<8x8xf32>
    %83 = arith.mulf %81, %82 : vector<8x8xf32>
    %cst_32 = arith.constant dense<0xFF800000> : vector<8xf32>
    %84 = vector.multi_reduction <maximumf>, %83, %cst_32 [1] : vector<8x8xf32> to vector<8xf32>
    %85 = vector.shape_cast %84 : vector<8xf32> to vector<8x1xf32>
    %86 = vector.broadcast %85 : vector<8x1xf32> to vector<8x8xf32>
    %87 = arith.subf %83, %86 : vector<8x8xf32>
    %88 = math.exp %87 : vector<8x8xf32>
    %cst_33 = arith.constant dense<0.000000e+00> : vector<8xf32>
    %89 = vector.multi_reduction <add>, %88, %cst_33 [1] : vector<8x8xf32> to vector<8xf32>
    %90 = vector.shape_cast %89 : vector<8xf32> to vector<8x1xf32>
    %91 = vector.broadcast %90 : vector<8x1xf32> to vector<8x8xf32>
    %92 = arith.divf %88, %91 : vector<8x8xf32>
    %cst_34 = arith.constant dense<0.000000e+00> : vector<8x128xf32>
    %93 = tpu.matmul %92, %80, %cst_34 {dimension_numbers = #tpu.dot_dimension_numbers<[1], [0], [0], [1], [0, 0, 1, 1], [], []>} : vector<8x8xf32>, vector<8x128xf32>, vector<8x128xf32> -> vector<8x128xf32>
    %94 = tpu.concatenate %77, %93 in 1 : vector<8x128xf32>, vector<8x128xf32> -> vector<8x256xf32>
    %95 = tpu.concatenate %61, %94 in 0 : vector<8x256xf32>, vector<8x256xf32> -> vector<16x256xf32>
    %c0_35 = arith.constant 0 : index
    %c0_36 = arith.constant 0 : index
    %96 = vector.load %arg5[%c0_35, %c0_36] : memref<256x256xf32, #tpu.memory_space<vmem>>, vector<256x256xf32>
    %cst_37 = arith.constant dense<0.000000e+00> : vector<16x256xf32>
    %97 = tpu.matmul %95, %96, %cst_37 {dimension_numbers = #tpu.dot_dimension_numbers<[1], [0], [0], [1], [0, 0, 1, 1], [], []>} : vector<16x256xf32>, vector<256x256xf32>, vector<16x256xf32> -> vector<16x256xf32>
    %c0_38 = arith.constant 0 : index
    %c0_39 = arith.constant 0 : index
    %98 = vector.load %arg6[%c0_38, %c0_39] : memref<1x256xf32, #tpu.memory_space<vmem>>, vector<1x256xf32>
    %99 = vector.broadcast %98 : vector<1x256xf32> to vector<16x256xf32>
    %100 = arith.addf %97, %99 : vector<16x256xf32>
    %101 = arith.addf %1, %100 : vector<16x256xf32>
    %c0_40 = arith.constant 0 : index
    %c0_41 = arith.constant 0 : index
    %102 = vector.load %arg7[%c0_40, %c0_41] : memref<1x256xf32, #tpu.memory_space<vmem>>, vector<1x256xf32>
    %c0_42 = arith.constant 0 : index
    %c0_43 = arith.constant 0 : index
    %103 = vector.load %arg8[%c0_42, %c0_43] : memref<1x256xf32, #tpu.memory_space<vmem>>, vector<1x256xf32>
    %cst_44 = arith.constant dense<0.000000e+00> : vector<16xf32>
    %104 = vector.multi_reduction <add>, %101, %cst_44 [1] : vector<16x256xf32> to vector<16xf32>
    %105 = vector.shape_cast %104 : vector<16xf32> to vector<16x1xf32>
    %cst_45 = arith.constant 2.560000e+02 : f32
    %106 = vector.broadcast %cst_45 : f32 to vector<16x1xf32>
    %107 = arith.divf %105, %106 : vector<16x1xf32>
    %108 = vector.broadcast %107 : vector<16x1xf32> to vector<16x256xf32>
    %109 = arith.subf %101, %108 : vector<16x256xf32>
    %110 = arith.mulf %109, %109 : vector<16x256xf32>
    %cst_46 = arith.constant dense<0.000000e+00> : vector<16xf32>
    %111 = vector.multi_reduction <add>, %110, %cst_46 [1] : vector<16x256xf32> to vector<16xf32>
    %112 = vector.shape_cast %111 : vector<16xf32> to vector<16x1xf32>
    %cst_47 = arith.constant 2.560000e+02 : f32
    %113 = vector.broadcast %cst_47 : f32 to vector<16x1xf32>
    %114 = arith.divf %112, %113 : vector<16x1xf32>
    %cst_48 = arith.constant 9.99999974E-6 : f32
    %115 = vector.broadcast %cst_48 : f32 to vector<16x1xf32>
    %116 = arith.addf %114, %115 : vector<16x1xf32>
    %117 = math.rsqrt %116 : vector<16x1xf32>
    %118 = vector.broadcast %117 : vector<16x1xf32> to vector<16x256xf32>
    %119 = arith.mulf %109, %118 : vector<16x256xf32>
    %120 = vector.broadcast %102 : vector<1x256xf32> to vector<16x256xf32>
    %121 = arith.mulf %119, %120 : vector<16x256xf32>
    %122 = vector.broadcast %103 : vector<1x256xf32> to vector<16x256xf32>
    %123 = arith.addf %121, %122 : vector<16x256xf32>
    %c0_49 = arith.constant 0 : index
    %c0_50 = arith.constant 0 : index
    %124 = vector.load %arg9[%c0_49, %c0_50] : memref<256x1024xf32, #tpu.memory_space<vmem>>, vector<256x1024xf32>
    %cst_51 = arith.constant dense<0.000000e+00> : vector<16x1024xf32>
    %125 = tpu.matmul %123, %124, %cst_51 {dimension_numbers = #tpu.dot_dimension_numbers<[1], [0], [0], [1], [0, 0, 1, 1], [], []>} : vector<16x256xf32>, vector<256x1024xf32>, vector<16x1024xf32> -> vector<16x1024xf32>
    %c0_52 = arith.constant 0 : index
    %c0_53 = arith.constant 0 : index
    %126 = vector.load %arg10[%c0_52, %c0_53] : memref<1x1024xf32, #tpu.memory_space<vmem>>, vector<1x1024xf32>
    %127 = vector.broadcast %126 : vector<1x1024xf32> to vector<16x1024xf32>
    %128 = arith.addf %125, %127 : vector<16x1024xf32>
    %cst_54 = arith.constant 5.000000e-01 : f32
    %129 = vector.broadcast %cst_54 : f32 to vector<16x1024xf32>
    %130 = arith.mulf %129, %128 : vector<16x1024xf32>
    %cst_55 = arith.constant 4.471500e-02 : f32
    %131 = vector.broadcast %cst_55 : f32 to vector<16x1024xf32>
    %132 = arith.mulf %131, %128 : vector<16x1024xf32>
    %133 = arith.mulf %132, %128 : vector<16x1024xf32>
    %134 = arith.mulf %133, %128 : vector<16x1024xf32>
    %135 = arith.addf %128, %134 : vector<16x1024xf32>
    %cst_56 = arith.constant 0.797884583 : f32
    %136 = vector.broadcast %cst_56 : f32 to vector<16x1024xf32>
    %137 = arith.mulf %136, %135 : vector<16x1024xf32>
    %138 = math.tanh %137 : vector<16x1024xf32>
    %cst_57 = arith.constant 1.000000e+00 : f32
    %139 = vector.broadcast %cst_57 : f32 to vector<16x1024xf32>
    %140 = arith.addf %139, %138 : vector<16x1024xf32>
    %141 = arith.mulf %130, %140 : vector<16x1024xf32>
    %c0_58 = arith.constant 0 : index
    %c0_59 = arith.constant 0 : index
    %142 = vector.load %arg11[%c0_58, %c0_59] : memref<1024x256xf32, #tpu.memory_space<vmem>>, vector<1024x256xf32>
    %cst_60 = arith.constant dense<0.000000e+00> : vector<16x256xf32>
    %143 = tpu.matmul %141, %142, %cst_60 {dimension_numbers = #tpu.dot_dimension_numbers<[1], [0], [0], [1], [0, 0, 1, 1], [], []>} : vector<16x1024xf32>, vector<1024x256xf32>, vector<16x256xf32> -> vector<16x256xf32>
    %c0_61 = arith.constant 0 : index
    %c0_62 = arith.constant 0 : index
    %144 = vector.load %arg12[%c0_61, %c0_62] : memref<1x256xf32, #tpu.memory_space<vmem>>, vector<1x256xf32>
    %145 = vector.broadcast %144 : vector<1x256xf32> to vector<16x256xf32>
    %146 = arith.addf %143, %145 : vector<16x256xf32>
    %c0_63 = arith.constant 0 : index
    %c0_64 = arith.constant 0 : index
    %147 = vector.load %arg13[%c0_63, %c0_64] : memref<256x64xf32, #tpu.memory_space<vmem>>, vector<256x64xf32>
    %cst_65 = arith.constant dense<0.000000e+00> : vector<16x64xf32>
    %148 = tpu.matmul %146, %147, %cst_65 {dimension_numbers = #tpu.dot_dimension_numbers<[1], [0], [0], [1], [0, 0, 1, 1], [], []>} : vector<16x256xf32>, vector<256x64xf32>, vector<16x64xf32> -> vector<16x64xf32>
    %c0_66 = arith.constant 0 : index
    %c0_67 = arith.constant 0 : index
    %149 = vector.load %arg14[%c0_66, %c0_67] : memref<1x64xf32, #tpu.memory_space<vmem>>, vector<1x64xf32>
    %150 = vector.broadcast %149 : vector<1x64xf32> to vector<16x64xf32>
    %151 = arith.addf %148, %150 : vector<16x64xf32>
    %cst_68 = arith.constant 0.000000e+00 : f32
    %152 = vector.broadcast %cst_68 : f32 to vector<16x64xf32>
    %153 = arith.maximumf %151, %152 : vector<16x64xf32>
    %c0_69 = arith.constant 0 : index
    %c0_70 = arith.constant 0 : index
    %154 = vector.load %arg15[%c0_69, %c0_70] : memref<64x256xf32, #tpu.memory_space<vmem>>, vector<64x256xf32>
    %cst_71 = arith.constant dense<0.000000e+00> : vector<16x256xf32>
    %155 = tpu.matmul %153, %154, %cst_71 {dimension_numbers = #tpu.dot_dimension_numbers<[1], [0], [0], [1], [0, 0, 1, 1], [], []>} : vector<16x64xf32>, vector<64x256xf32>, vector<16x256xf32> -> vector<16x256xf32>
    %c0_72 = arith.constant 0 : index
    %c0_73 = arith.constant 0 : index
    %156 = vector.load %arg16[%c0_72, %c0_73] : memref<1x256xf32, #tpu.memory_space<vmem>>, vector<1x256xf32>
    %157 = vector.broadcast %156 : vector<1x256xf32> to vector<16x256xf32>
    %158 = arith.addf %155, %157 : vector<16x256xf32>
    %159 = arith.addf %146, %158 : vector<16x256xf32>
    %160 = arith.addf %101, %159 : vector<16x256xf32>
    %161 = vector.shape_cast %160 : vector<16x256xf32> to vector<2x8x256xf32>
    %c0_74 = arith.constant 0 : index
    %c0_75 = arith.constant 0 : index
    %c0_76 = arith.constant 0 : index
    %162 = vector.load %arg17[%c0_74, %c0_75, %c0_76] : memref<2x8x256xf32, #tpu.memory_space<vmem>>, vector<2x8x256xf32>
    tpu.vector_store %arg17[%c0_74, %c0_75, %c0_76], %161 {strides = array<i32>} : memref<2x8x256xf32, #tpu.memory_space<vmem>>, vector<2x8x256xf32>,
    return
  }
}

module attributes {stable_mosaic.version = 11 : i64} {
  func.func @_proj_relu_kernel(%arg0: memref<2x8x256xf32, #tpu.memory_space<vmem>>, %arg1: memref<256x128xf32, #tpu.memory_space<vmem>>, %arg2: memref<1x128xf32, #tpu.memory_space<vmem>>, %arg3: memref<2x8x128xf32, #tpu.memory_space<vmem>>) attributes {dimension_semantics = [], scalar_prefetch = 0 : i64, scratch_operands = 0 : i64, tpu.core_type = #tpu.core_type<tc>} {
    %c0 = arith.constant 0 : index
    %c0_0 = arith.constant 0 : index
    %c0_1 = arith.constant 0 : index
    %0 = vector.load %arg0[%c0, %c0_0, %c0_1] : memref<2x8x256xf32, #tpu.memory_space<vmem>>, vector<2x8x256xf32>
    %1 = vector.shape_cast %0 : vector<2x8x256xf32> to vector<16x256xf32>
    %c0_2 = arith.constant 0 : index
    %c0_3 = arith.constant 0 : index
    %2 = vector.load %arg1[%c0_2, %c0_3] : memref<256x128xf32, #tpu.memory_space<vmem>>, vector<256x128xf32>
    %cst = arith.constant dense<0.000000e+00> : vector<16x128xf32>
    %3 = tpu.matmul %1, %2, %cst {dimension_numbers = #tpu.dot_dimension_numbers<[1], [0], [0], [1], [0, 0, 1, 1], [], []>} : vector<16x256xf32>, vector<256x128xf32>, vector<16x128xf32> -> vector<16x128xf32>
    %c0_4 = arith.constant 0 : index
    %c0_5 = arith.constant 0 : index
    %4 = vector.load %arg2[%c0_4, %c0_5] : memref<1x128xf32, #tpu.memory_space<vmem>>, vector<1x128xf32>
    %5 = vector.broadcast %4 : vector<1x128xf32> to vector<16x128xf32>
    %6 = arith.addf %3, %5 : vector<16x128xf32>
    %cst_6 = arith.constant 0.000000e+00 : f32
    %7 = vector.broadcast %cst_6 : f32 to vector<16x128xf32>
    %8 = arith.maximumf %6, %7 : vector<16x128xf32>
    %9 = vector.shape_cast %8 : vector<16x128xf32> to vector<2x8x128xf32>
    %c0_7 = arith.constant 0 : index
    %c0_8 = arith.constant 0 : index
    %c0_9 = arith.constant 0 : index
    %10 = vector.load %arg3[%c0_7, %c0_8, %c0_9] : memref<2x8x128xf32, #tpu.memory_space<vmem>>, vector<2x8x128xf32>
    tpu.vector_store %arg3[%c0_7, %c0_8, %c0_9], %9 {strides = array<i32>} : memref<2x8x128xf32, #tpu.memory_space<vmem>>, vector<2x8x128xf32>,
    return
  }
}

module attributes {stable_mosaic.version = 11 : i64} {
  func.func @_proj_relu_kernel(%arg0: memref<2x8x128xf32, #tpu.memory_space<vmem>>, %arg1: memref<128x128xf32, #tpu.memory_space<vmem>>, %arg2: memref<1x128xf32, #tpu.memory_space<vmem>>, %arg3: memref<2x8x128xf32, #tpu.memory_space<vmem>>) attributes {dimension_semantics = [], scalar_prefetch = 0 : i64, scratch_operands = 0 : i64, tpu.core_type = #tpu.core_type<tc>} {
    %c0 = arith.constant 0 : index
    %c0_0 = arith.constant 0 : index
    %c0_1 = arith.constant 0 : index
    %0 = vector.load %arg0[%c0, %c0_0, %c0_1] : memref<2x8x128xf32, #tpu.memory_space<vmem>>, vector<2x8x128xf32>
    %1 = vector.shape_cast %0 : vector<2x8x128xf32> to vector<16x128xf32>
    %c0_2 = arith.constant 0 : index
    %c0_3 = arith.constant 0 : index
    %2 = vector.load %arg1[%c0_2, %c0_3] : memref<128x128xf32, #tpu.memory_space<vmem>>, vector<128x128xf32>
    %cst = arith.constant dense<0.000000e+00> : vector<16x128xf32>
    %3 = tpu.matmul %1, %2, %cst {dimension_numbers = #tpu.dot_dimension_numbers<[1], [0], [0], [1], [0, 0, 1, 1], [], []>} : vector<16x128xf32>, vector<128x128xf32>, vector<16x128xf32> -> vector<16x128xf32>
    %c0_4 = arith.constant 0 : index
    %c0_5 = arith.constant 0 : index
    %4 = vector.load %arg2[%c0_4, %c0_5] : memref<1x128xf32, #tpu.memory_space<vmem>>, vector<1x128xf32>
    %5 = vector.broadcast %4 : vector<1x128xf32> to vector<16x128xf32>
    %6 = arith.addf %3, %5 : vector<16x128xf32>
    %cst_6 = arith.constant 0.000000e+00 : f32
    %7 = vector.broadcast %cst_6 : f32 to vector<16x128xf32>
    %8 = arith.maximumf %6, %7 : vector<16x128xf32>
    %9 = vector.shape_cast %8 : vector<16x128xf32> to vector<2x8x128xf32>
    %c0_7 = arith.constant 0 : index
    %c0_8 = arith.constant 0 : index
    %c0_9 = arith.constant 0 : index
    %10 = vector.load %arg3[%c0_7, %c0_8, %c0_9] : memref<2x8x128xf32, #tpu.memory_space<vmem>>, vector<2x8x128xf32>
    tpu.vector_store %arg3[%c0_7, %c0_8, %c0_9], %9 {strides = array<i32>} : memref<2x8x128xf32, #tpu.memory_space<vmem>>, vector<2x8x128xf32>,
    return
  }
}

module attributes {stable_mosaic.version = 11 : i64} {
  func.func @_graphormer_layer_kernel(%arg0: memref<2x8x128xf32, #tpu.memory_space<vmem>>, %arg1: memref<1x128xf32, #tpu.memory_space<vmem>>, %arg2: memref<1x128xf32, #tpu.memory_space<vmem>>, %arg3: memref<128x384xf32, #tpu.memory_space<vmem>>, %arg4: memref<1x384xf32, #tpu.memory_space<vmem>>, %arg5: memref<128x128xf32, #tpu.memory_space<vmem>>, %arg6: memref<1x128xf32, #tpu.memory_space<vmem>>, %arg7: memref<1x128xf32, #tpu.memory_space<vmem>>, %arg8: memref<1x128xf32, #tpu.memory_space<vmem>>, %arg9: memref<128x512xf32, #tpu.memory_space<vmem>>, %arg10: memref<1x512xf32, #tpu.memory_space<vmem>>, %arg11: memref<512x128xf32, #tpu.memory_space<vmem>>, %arg12: memref<1x128xf32, #tpu.memory_space<vmem>>, %arg13: memref<128x64xf32, #tpu.memory_space<vmem>>, %arg14: memref<1x64xf32, #tpu.memory_space<vmem>>, %arg15: memref<64x128xf32, #tpu.memory_space<vmem>>, %arg16: memref<1x128xf32, #tpu.memory_space<vmem>>, %arg17: memref<2x8x128xf32, #tpu.memory_space<vmem>>) attributes {dimension_semantics = [], scalar_prefetch = 0 : i64, scratch_operands = 0 : i64, tpu.core_type = #tpu.core_type<tc>} {
    %c0 = arith.constant 0 : index
    %c0_0 = arith.constant 0 : index
    %c0_1 = arith.constant 0 : index
    %0 = vector.load %arg0[%c0, %c0_0, %c0_1] : memref<2x8x128xf32, #tpu.memory_space<vmem>>, vector<2x8x128xf32>
    %1 = vector.shape_cast %0 : vector<2x8x128xf32> to vector<16x128xf32>
    %c0_2 = arith.constant 0 : index
    %c0_3 = arith.constant 0 : index
    %2 = vector.load %arg1[%c0_2, %c0_3] : memref<1x128xf32, #tpu.memory_space<vmem>>, vector<1x128xf32>
    %c0_4 = arith.constant 0 : index
    %c0_5 = arith.constant 0 : index
    %3 = vector.load %arg2[%c0_4, %c0_5] : memref<1x128xf32, #tpu.memory_space<vmem>>, vector<1x128xf32>
    %cst = arith.constant dense<0.000000e+00> : vector<16xf32>
    %4 = vector.multi_reduction <add>, %1, %cst [1] : vector<16x128xf32> to vector<16xf32>
    %5 = vector.shape_cast %4 : vector<16xf32> to vector<16x1xf32>
    %cst_6 = arith.constant 1.280000e+02 : f32
    %6 = vector.broadcast %cst_6 : f32 to vector<16x1xf32>
    %7 = arith.divf %5, %6 : vector<16x1xf32>
    %8 = vector.broadcast %7 : vector<16x1xf32> to vector<16x128xf32>
    %9 = arith.subf %1, %8 : vector<16x128xf32>
    %10 = arith.mulf %9, %9 : vector<16x128xf32>
    %cst_7 = arith.constant dense<0.000000e+00> : vector<16xf32>
    %11 = vector.multi_reduction <add>, %10, %cst_7 [1] : vector<16x128xf32> to vector<16xf32>
    %12 = vector.shape_cast %11 : vector<16xf32> to vector<16x1xf32>
    %cst_8 = arith.constant 1.280000e+02 : f32
    %13 = vector.broadcast %cst_8 : f32 to vector<16x1xf32>
    %14 = arith.divf %12, %13 : vector<16x1xf32>
    %cst_9 = arith.constant 9.99999974E-6 : f32
    %15 = vector.broadcast %cst_9 : f32 to vector<16x1xf32>
    %16 = arith.addf %14, %15 : vector<16x1xf32>
    %17 = math.rsqrt %16 : vector<16x1xf32>
    %18 = vector.broadcast %17 : vector<16x1xf32> to vector<16x128xf32>
    %19 = arith.mulf %9, %18 : vector<16x128xf32>
    %20 = vector.broadcast %2 : vector<1x128xf32> to vector<16x128xf32>
    %21 = arith.mulf %19, %20 : vector<16x128xf32>
    %22 = vector.broadcast %3 : vector<1x128xf32> to vector<16x128xf32>
    %23 = arith.addf %21, %22 : vector<16x128xf32>
    %c0_10 = arith.constant 0 : index
    %c0_11 = arith.constant 0 : index
    %24 = vector.load %arg3[%c0_10, %c0_11] : memref<128x384xf32, #tpu.memory_space<vmem>>, vector<128x384xf32>
    %cst_12 = arith.constant dense<0.000000e+00> : vector<16x384xf32>
    %25 = tpu.matmul %23, %24, %cst_12 {dimension_numbers = #tpu.dot_dimension_numbers<[1], [0], [0], [1], [0, 0, 1, 1], [], []>} : vector<16x128xf32>, vector<128x384xf32>, vector<16x384xf32> -> vector<16x384xf32>
    %c0_13 = arith.constant 0 : index
    %c0_14 = arith.constant 0 : index
    %26 = vector.load %arg4[%c0_13, %c0_14] : memref<1x384xf32, #tpu.memory_space<vmem>>, vector<1x384xf32>
    %27 = vector.broadcast %26 : vector<1x384xf32> to vector<16x384xf32>
    %28 = arith.addf %25, %27 : vector<16x384xf32>
    %29 = vector.extract_strided_slice %28 {offsets = [0, 0], sizes = [8, 64], strides = [1, 1]} : vector<16x384xf32> to vector<8x64xf32>
    %30 = vector.extract_strided_slice %28 {offsets = [0, 128], sizes = [8, 64], strides = [1, 1]} : vector<16x384xf32> to vector<8x64xf32>
    %31 = vector.extract_strided_slice %28 {offsets = [0, 256], sizes = [8, 64], strides = [1, 1]} : vector<16x384xf32> to vector<8x64xf32>
    %cst_15 = arith.constant dense<0.000000e+00> : vector<8x8xf32>
    %32 = tpu.matmul %29, %30, %cst_15 {dimension_numbers = #tpu.dot_dimension_numbers<[1], [1], [0], [0], [0, 0, 1, 0], [], []>} : vector<8x64xf32>, vector<8x64xf32>, vector<8x8xf32> -> vector<8x8xf32>
    %cst_16 = arith.constant 1.250000e-01 : f32
    %33 = vector.broadcast %cst_16 : f32 to vector<8x8xf32>
    %34 = arith.mulf %32, %33 : vector<8x8xf32>
    %cst_17 = arith.constant dense<0xFF800000> : vector<8xf32>
    %35 = vector.multi_reduction <maximumf>, %34, %cst_17 [1] : vector<8x8xf32> to vector<8xf32>
    %36 = vector.shape_cast %35 : vector<8xf32> to vector<8x1xf32>
    %37 = vector.broadcast %36 : vector<8x1xf32> to vector<8x8xf32>
    %38 = arith.subf %34, %37 : vector<8x8xf32>
    %39 = math.exp %38 : vector<8x8xf32>
    %cst_18 = arith.constant dense<0.000000e+00> : vector<8xf32>
    %40 = vector.multi_reduction <add>, %39, %cst_18 [1] : vector<8x8xf32> to vector<8xf32>
    %41 = vector.shape_cast %40 : vector<8xf32> to vector<8x1xf32>
    %42 = vector.broadcast %41 : vector<8x1xf32> to vector<8x8xf32>
    %43 = arith.divf %39, %42 : vector<8x8xf32>
    %cst_19 = arith.constant dense<0.000000e+00> : vector<8x64xf32>
    %44 = tpu.matmul %43, %31, %cst_19 {dimension_numbers = #tpu.dot_dimension_numbers<[1], [0], [0], [1], [0, 0, 1, 1], [], []>} : vector<8x8xf32>, vector<8x64xf32>, vector<8x64xf32> -> vector<8x64xf32>
    %45 = vector.extract_strided_slice %28 {offsets = [0, 64], sizes = [8, 64], strides = [1, 1]} : vector<16x384xf32> to vector<8x64xf32>
    %46 = vector.extract_strided_slice %28 {offsets = [0, 192], sizes = [8, 64], strides = [1, 1]} : vector<16x384xf32> to vector<8x64xf32>
    %47 = vector.extract_strided_slice %28 {offsets = [0, 320], sizes = [8, 64], strides = [1, 1]} : vector<16x384xf32> to vector<8x64xf32>
    %cst_20 = arith.constant dense<0.000000e+00> : vector<8x8xf32>
    %48 = tpu.matmul %45, %46, %cst_20 {dimension_numbers = #tpu.dot_dimension_numbers<[1], [1], [0], [0], [0, 0, 1, 0], [], []>} : vector<8x64xf32>, vector<8x64xf32>, vector<8x8xf32> -> vector<8x8xf32>
    %cst_21 = arith.constant 1.250000e-01 : f32
    %49 = vector.broadcast %cst_21 : f32 to vector<8x8xf32>
    %50 = arith.mulf %48, %49 : vector<8x8xf32>
    %cst_22 = arith.constant dense<0xFF800000> : vector<8xf32>
    %51 = vector.multi_reduction <maximumf>, %50, %cst_22 [1] : vector<8x8xf32> to vector<8xf32>
    %52 = vector.shape_cast %51 : vector<8xf32> to vector<8x1xf32>
    %53 = vector.broadcast %52 : vector<8x1xf32> to vector<8x8xf32>
    %54 = arith.subf %50, %53 : vector<8x8xf32>
    %55 = math.exp %54 : vector<8x8xf32>
    %cst_23 = arith.constant dense<0.000000e+00> : vector<8xf32>
    %56 = vector.multi_reduction <add>, %55, %cst_23 [1] : vector<8x8xf32> to vector<8xf32>
    %57 = vector.shape_cast %56 : vector<8xf32> to vector<8x1xf32>
    %58 = vector.broadcast %57 : vector<8x1xf32> to vector<8x8xf32>
    %59 = arith.divf %55, %58 : vector<8x8xf32>
    %cst_24 = arith.constant dense<0.000000e+00> : vector<8x64xf32>
    %60 = tpu.matmul %59, %47, %cst_24 {dimension_numbers = #tpu.dot_dimension_numbers<[1], [0], [0], [1], [0, 0, 1, 1], [], []>} : vector<8x8xf32>, vector<8x64xf32>, vector<8x64xf32> -> vector<8x64xf32>
    %61 = tpu.concatenate %44, %60 in 1 : vector<8x64xf32>, vector<8x64xf32> -> vector<8x128xf32>
    %62 = vector.extract_strided_slice %28 {offsets = [8, 0], sizes = [8, 64], strides = [1, 1]} : vector<16x384xf32> to vector<8x64xf32>
    %63 = vector.extract_strided_slice %28 {offsets = [8, 128], sizes = [8, 64], strides = [1, 1]} : vector<16x384xf32> to vector<8x64xf32>
    %64 = vector.extract_strided_slice %28 {offsets = [8, 256], sizes = [8, 64], strides = [1, 1]} : vector<16x384xf32> to vector<8x64xf32>
    %cst_25 = arith.constant dense<0.000000e+00> : vector<8x8xf32>
    %65 = tpu.matmul %62, %63, %cst_25 {dimension_numbers = #tpu.dot_dimension_numbers<[1], [1], [0], [0], [0, 0, 1, 0], [], []>} : vector<8x64xf32>, vector<8x64xf32>, vector<8x8xf32> -> vector<8x8xf32>
    %cst_26 = arith.constant 1.250000e-01 : f32
    %66 = vector.broadcast %cst_26 : f32 to vector<8x8xf32>
    %67 = arith.mulf %65, %66 : vector<8x8xf32>
    %cst_27 = arith.constant dense<0xFF800000> : vector<8xf32>
    %68 = vector.multi_reduction <maximumf>, %67, %cst_27 [1] : vector<8x8xf32> to vector<8xf32>
    %69 = vector.shape_cast %68 : vector<8xf32> to vector<8x1xf32>
    %70 = vector.broadcast %69 : vector<8x1xf32> to vector<8x8xf32>
    %71 = arith.subf %67, %70 : vector<8x8xf32>
    %72 = math.exp %71 : vector<8x8xf32>
    %cst_28 = arith.constant dense<0.000000e+00> : vector<8xf32>
    %73 = vector.multi_reduction <add>, %72, %cst_28 [1] : vector<8x8xf32> to vector<8xf32>
    %74 = vector.shape_cast %73 : vector<8xf32> to vector<8x1xf32>
    %75 = vector.broadcast %74 : vector<8x1xf32> to vector<8x8xf32>
    %76 = arith.divf %72, %75 : vector<8x8xf32>
    %cst_29 = arith.constant dense<0.000000e+00> : vector<8x64xf32>
    %77 = tpu.matmul %76, %64, %cst_29 {dimension_numbers = #tpu.dot_dimension_numbers<[1], [0], [0], [1], [0, 0, 1, 1], [], []>} : vector<8x8xf32>, vector<8x64xf32>, vector<8x64xf32> -> vector<8x64xf32>
    %78 = vector.extract_strided_slice %28 {offsets = [8, 64], sizes = [8, 64], strides = [1, 1]} : vector<16x384xf32> to vector<8x64xf32>
    %79 = vector.extract_strided_slice %28 {offsets = [8, 192], sizes = [8, 64], strides = [1, 1]} : vector<16x384xf32> to vector<8x64xf32>
    %80 = vector.extract_strided_slice %28 {offsets = [8, 320], sizes = [8, 64], strides = [1, 1]} : vector<16x384xf32> to vector<8x64xf32>
    %cst_30 = arith.constant dense<0.000000e+00> : vector<8x8xf32>
    %81 = tpu.matmul %78, %79, %cst_30 {dimension_numbers = #tpu.dot_dimension_numbers<[1], [1], [0], [0], [0, 0, 1, 0], [], []>} : vector<8x64xf32>, vector<8x64xf32>, vector<8x8xf32> -> vector<8x8xf32>
    %cst_31 = arith.constant 1.250000e-01 : f32
    %82 = vector.broadcast %cst_31 : f32 to vector<8x8xf32>
    %83 = arith.mulf %81, %82 : vector<8x8xf32>
    %cst_32 = arith.constant dense<0xFF800000> : vector<8xf32>
    %84 = vector.multi_reduction <maximumf>, %83, %cst_32 [1] : vector<8x8xf32> to vector<8xf32>
    %85 = vector.shape_cast %84 : vector<8xf32> to vector<8x1xf32>
    %86 = vector.broadcast %85 : vector<8x1xf32> to vector<8x8xf32>
    %87 = arith.subf %83, %86 : vector<8x8xf32>
    %88 = math.exp %87 : vector<8x8xf32>
    %cst_33 = arith.constant dense<0.000000e+00> : vector<8xf32>
    %89 = vector.multi_reduction <add>, %88, %cst_33 [1] : vector<8x8xf32> to vector<8xf32>
    %90 = vector.shape_cast %89 : vector<8xf32> to vector<8x1xf32>
    %91 = vector.broadcast %90 : vector<8x1xf32> to vector<8x8xf32>
    %92 = arith.divf %88, %91 : vector<8x8xf32>
    %cst_34 = arith.constant dense<0.000000e+00> : vector<8x64xf32>
    %93 = tpu.matmul %92, %80, %cst_34 {dimension_numbers = #tpu.dot_dimension_numbers<[1], [0], [0], [1], [0, 0, 1, 1], [], []>} : vector<8x8xf32>, vector<8x64xf32>, vector<8x64xf32> -> vector<8x64xf32>
    %94 = tpu.concatenate %77, %93 in 1 : vector<8x64xf32>, vector<8x64xf32> -> vector<8x128xf32>
    %95 = tpu.concatenate %61, %94 in 0 : vector<8x128xf32>, vector<8x128xf32> -> vector<16x128xf32>
    %c0_35 = arith.constant 0 : index
    %c0_36 = arith.constant 0 : index
    %96 = vector.load %arg5[%c0_35, %c0_36] : memref<128x128xf32, #tpu.memory_space<vmem>>, vector<128x128xf32>
    %cst_37 = arith.constant dense<0.000000e+00> : vector<16x128xf32>
    %97 = tpu.matmul %95, %96, %cst_37 {dimension_numbers = #tpu.dot_dimension_numbers<[1], [0], [0], [1], [0, 0, 1, 1], [], []>} : vector<16x128xf32>, vector<128x128xf32>, vector<16x128xf32> -> vector<16x128xf32>
    %c0_38 = arith.constant 0 : index
    %c0_39 = arith.constant 0 : index
    %98 = vector.load %arg6[%c0_38, %c0_39] : memref<1x128xf32, #tpu.memory_space<vmem>>, vector<1x128xf32>
    %99 = vector.broadcast %98 : vector<1x128xf32> to vector<16x128xf32>
    %100 = arith.addf %97, %99 : vector<16x128xf32>
    %101 = arith.addf %1, %100 : vector<16x128xf32>
    %c0_40 = arith.constant 0 : index
    %c0_41 = arith.constant 0 : index
    %102 = vector.load %arg7[%c0_40, %c0_41] : memref<1x128xf32, #tpu.memory_space<vmem>>, vector<1x128xf32>
    %c0_42 = arith.constant 0 : index
    %c0_43 = arith.constant 0 : index
    %103 = vector.load %arg8[%c0_42, %c0_43] : memref<1x128xf32, #tpu.memory_space<vmem>>, vector<1x128xf32>
    %cst_44 = arith.constant dense<0.000000e+00> : vector<16xf32>
    %104 = vector.multi_reduction <add>, %101, %cst_44 [1] : vector<16x128xf32> to vector<16xf32>
    %105 = vector.shape_cast %104 : vector<16xf32> to vector<16x1xf32>
    %cst_45 = arith.constant 1.280000e+02 : f32
    %106 = vector.broadcast %cst_45 : f32 to vector<16x1xf32>
    %107 = arith.divf %105, %106 : vector<16x1xf32>
    %108 = vector.broadcast %107 : vector<16x1xf32> to vector<16x128xf32>
    %109 = arith.subf %101, %108 : vector<16x128xf32>
    %110 = arith.mulf %109, %109 : vector<16x128xf32>
    %cst_46 = arith.constant dense<0.000000e+00> : vector<16xf32>
    %111 = vector.multi_reduction <add>, %110, %cst_46 [1] : vector<16x128xf32> to vector<16xf32>
    %112 = vector.shape_cast %111 : vector<16xf32> to vector<16x1xf32>
    %cst_47 = arith.constant 1.280000e+02 : f32
    %113 = vector.broadcast %cst_47 : f32 to vector<16x1xf32>
    %114 = arith.divf %112, %113 : vector<16x1xf32>
    %cst_48 = arith.constant 9.99999974E-6 : f32
    %115 = vector.broadcast %cst_48 : f32 to vector<16x1xf32>
    %116 = arith.addf %114, %115 : vector<16x1xf32>
    %117 = math.rsqrt %116 : vector<16x1xf32>
    %118 = vector.broadcast %117 : vector<16x1xf32> to vector<16x128xf32>
    %119 = arith.mulf %109, %118 : vector<16x128xf32>
    %120 = vector.broadcast %102 : vector<1x128xf32> to vector<16x128xf32>
    %121 = arith.mulf %119, %120 : vector<16x128xf32>
    %122 = vector.broadcast %103 : vector<1x128xf32> to vector<16x128xf32>
    %123 = arith.addf %121, %122 : vector<16x128xf32>
    %c0_49 = arith.constant 0 : index
    %c0_50 = arith.constant 0 : index
    %124 = vector.load %arg9[%c0_49, %c0_50] : memref<128x512xf32, #tpu.memory_space<vmem>>, vector<128x512xf32>
    %cst_51 = arith.constant dense<0.000000e+00> : vector<16x512xf32>
    %125 = tpu.matmul %123, %124, %cst_51 {dimension_numbers = #tpu.dot_dimension_numbers<[1], [0], [0], [1], [0, 0, 1, 1], [], []>} : vector<16x128xf32>, vector<128x512xf32>, vector<16x512xf32> -> vector<16x512xf32>
    %c0_52 = arith.constant 0 : index
    %c0_53 = arith.constant 0 : index
    %126 = vector.load %arg10[%c0_52, %c0_53] : memref<1x512xf32, #tpu.memory_space<vmem>>, vector<1x512xf32>
    %127 = vector.broadcast %126 : vector<1x512xf32> to vector<16x512xf32>
    %128 = arith.addf %125, %127 : vector<16x512xf32>
    %cst_54 = arith.constant 5.000000e-01 : f32
    %129 = vector.broadcast %cst_54 : f32 to vector<16x512xf32>
    %130 = arith.mulf %129, %128 : vector<16x512xf32>
    %cst_55 = arith.constant 4.471500e-02 : f32
    %131 = vector.broadcast %cst_55 : f32 to vector<16x512xf32>
    %132 = arith.mulf %131, %128 : vector<16x512xf32>
    %133 = arith.mulf %132, %128 : vector<16x512xf32>
    %134 = arith.mulf %133, %128 : vector<16x512xf32>
    %135 = arith.addf %128, %134 : vector<16x512xf32>
    %cst_56 = arith.constant 0.797884583 : f32
    %136 = vector.broadcast %cst_56 : f32 to vector<16x512xf32>
    %137 = arith.mulf %136, %135 : vector<16x512xf32>
    %138 = math.tanh %137 : vector<16x512xf32>
    %cst_57 = arith.constant 1.000000e+00 : f32
    %139 = vector.broadcast %cst_57 : f32 to vector<16x512xf32>
    %140 = arith.addf %139, %138 : vector<16x512xf32>
    %141 = arith.mulf %130, %140 : vector<16x512xf32>
    %c0_58 = arith.constant 0 : index
    %c0_59 = arith.constant 0 : index
    %142 = vector.load %arg11[%c0_58, %c0_59] : memref<512x128xf32, #tpu.memory_space<vmem>>, vector<512x128xf32>
    %cst_60 = arith.constant dense<0.000000e+00> : vector<16x128xf32>
    %143 = tpu.matmul %141, %142, %cst_60 {dimension_numbers = #tpu.dot_dimension_numbers<[1], [0], [0], [1], [0, 0, 1, 1], [], []>} : vector<16x512xf32>, vector<512x128xf32>, vector<16x128xf32> -> vector<16x128xf32>
    %c0_61 = arith.constant 0 : index
    %c0_62 = arith.constant 0 : index
    %144 = vector.load %arg12[%c0_61, %c0_62] : memref<1x128xf32, #tpu.memory_space<vmem>>, vector<1x128xf32>
    %145 = vector.broadcast %144 : vector<1x128xf32> to vector<16x128xf32>
    %146 = arith.addf %143, %145 : vector<16x128xf32>
    %c0_63 = arith.constant 0 : index
    %c0_64 = arith.constant 0 : index
    %147 = vector.load %arg13[%c0_63, %c0_64] : memref<128x64xf32, #tpu.memory_space<vmem>>, vector<128x64xf32>
    %cst_65 = arith.constant dense<0.000000e+00> : vector<16x64xf32>
    %148 = tpu.matmul %146, %147, %cst_65 {dimension_numbers = #tpu.dot_dimension_numbers<[1], [0], [0], [1], [0, 0, 1, 1], [], []>} : vector<16x128xf32>, vector<128x64xf32>, vector<16x64xf32> -> vector<16x64xf32>
    %c0_66 = arith.constant 0 : index
    %c0_67 = arith.constant 0 : index
    %149 = vector.load %arg14[%c0_66, %c0_67] : memref<1x64xf32, #tpu.memory_space<vmem>>, vector<1x64xf32>
    %150 = vector.broadcast %149 : vector<1x64xf32> to vector<16x64xf32>
    %151 = arith.addf %148, %150 : vector<16x64xf32>
    %cst_68 = arith.constant 0.000000e+00 : f32
    %152 = vector.broadcast %cst_68 : f32 to vector<16x64xf32>
    %153 = arith.maximumf %151, %152 : vector<16x64xf32>
    %c0_69 = arith.constant 0 : index
    %c0_70 = arith.constant 0 : index
    %154 = vector.load %arg15[%c0_69, %c0_70] : memref<64x128xf32, #tpu.memory_space<vmem>>, vector<64x128xf32>
    %cst_71 = arith.constant dense<0.000000e+00> : vector<16x128xf32>
    %155 = tpu.matmul %153, %154, %cst_71 {dimension_numbers = #tpu.dot_dimension_numbers<[1], [0], [0], [1], [0, 0, 1, 1], [], []>} : vector<16x64xf32>, vector<64x128xf32>, vector<16x128xf32> -> vector<16x128xf32>
    %c0_72 = arith.constant 0 : index
    %c0_73 = arith.constant 0 : index
    %156 = vector.load %arg16[%c0_72, %c0_73] : memref<1x128xf32, #tpu.memory_space<vmem>>, vector<1x128xf32>
    %157 = vector.broadcast %156 : vector<1x128xf32> to vector<16x128xf32>
    %158 = arith.addf %155, %157 : vector<16x128xf32>
    %159 = arith.addf %146, %158 : vector<16x128xf32>
    %160 = arith.addf %101, %159 : vector<16x128xf32>
    %161 = vector.shape_cast %160 : vector<16x128xf32> to vector<2x8x128xf32>
    %c0_74 = arith.constant 0 : index
    %c0_75 = arith.constant 0 : index
    %c0_76 = arith.constant 0 : index
    %162 = vector.load %arg17[%c0_74, %c0_75, %c0_76] : memref<2x8x128xf32, #tpu.memory_space<vmem>>, vector<2x8x128xf32>
    tpu.vector_store %arg17[%c0_74, %c0_75, %c0_76], %161 {strides = array<i32>} : memref<2x8x128xf32, #tpu.memory_space<vmem>>, vector<2x8x128xf32>,
    return
  }
}

module attributes {stable_mosaic.version = 11 : i64} {
  func.func @_graphormer_layer_kernel(%arg0: memref<2x8x128xf32, #tpu.memory_space<vmem>>, %arg1: memref<1x128xf32, #tpu.memory_space<vmem>>, %arg2: memref<1x128xf32, #tpu.memory_space<vmem>>, %arg3: memref<128x384xf32, #tpu.memory_space<vmem>>, %arg4: memref<1x384xf32, #tpu.memory_space<vmem>>, %arg5: memref<128x128xf32, #tpu.memory_space<vmem>>, %arg6: memref<1x128xf32, #tpu.memory_space<vmem>>, %arg7: memref<1x128xf32, #tpu.memory_space<vmem>>, %arg8: memref<1x128xf32, #tpu.memory_space<vmem>>, %arg9: memref<128x512xf32, #tpu.memory_space<vmem>>, %arg10: memref<1x512xf32, #tpu.memory_space<vmem>>, %arg11: memref<512x128xf32, #tpu.memory_space<vmem>>, %arg12: memref<1x128xf32, #tpu.memory_space<vmem>>, %arg13: memref<128x64xf32, #tpu.memory_space<vmem>>, %arg14: memref<1x64xf32, #tpu.memory_space<vmem>>, %arg15: memref<64x128xf32, #tpu.memory_space<vmem>>, %arg16: memref<1x128xf32, #tpu.memory_space<vmem>>, %arg17: memref<2x8x128xf32, #tpu.memory_space<vmem>>) attributes {dimension_semantics = [], scalar_prefetch = 0 : i64, scratch_operands = 0 : i64, tpu.core_type = #tpu.core_type<tc>} {
    %c0 = arith.constant 0 : index
    %c0_0 = arith.constant 0 : index
    %c0_1 = arith.constant 0 : index
    %0 = vector.load %arg0[%c0, %c0_0, %c0_1] : memref<2x8x128xf32, #tpu.memory_space<vmem>>, vector<2x8x128xf32>
    %1 = vector.shape_cast %0 : vector<2x8x128xf32> to vector<16x128xf32>
    %c0_2 = arith.constant 0 : index
    %c0_3 = arith.constant 0 : index
    %2 = vector.load %arg1[%c0_2, %c0_3] : memref<1x128xf32, #tpu.memory_space<vmem>>, vector<1x128xf32>
    %c0_4 = arith.constant 0 : index
    %c0_5 = arith.constant 0 : index
    %3 = vector.load %arg2[%c0_4, %c0_5] : memref<1x128xf32, #tpu.memory_space<vmem>>, vector<1x128xf32>
    %cst = arith.constant dense<0.000000e+00> : vector<16xf32>
    %4 = vector.multi_reduction <add>, %1, %cst [1] : vector<16x128xf32> to vector<16xf32>
    %5 = vector.shape_cast %4 : vector<16xf32> to vector<16x1xf32>
    %cst_6 = arith.constant 1.280000e+02 : f32
    %6 = vector.broadcast %cst_6 : f32 to vector<16x1xf32>
    %7 = arith.divf %5, %6 : vector<16x1xf32>
    %8 = vector.broadcast %7 : vector<16x1xf32> to vector<16x128xf32>
    %9 = arith.subf %1, %8 : vector<16x128xf32>
    %10 = arith.mulf %9, %9 : vector<16x128xf32>
    %cst_7 = arith.constant dense<0.000000e+00> : vector<16xf32>
    %11 = vector.multi_reduction <add>, %10, %cst_7 [1] : vector<16x128xf32> to vector<16xf32>
    %12 = vector.shape_cast %11 : vector<16xf32> to vector<16x1xf32>
    %cst_8 = arith.constant 1.280000e+02 : f32
    %13 = vector.broadcast %cst_8 : f32 to vector<16x1xf32>
    %14 = arith.divf %12, %13 : vector<16x1xf32>
    %cst_9 = arith.constant 9.99999974E-6 : f32
    %15 = vector.broadcast %cst_9 : f32 to vector<16x1xf32>
    %16 = arith.addf %14, %15 : vector<16x1xf32>
    %17 = math.rsqrt %16 : vector<16x1xf32>
    %18 = vector.broadcast %17 : vector<16x1xf32> to vector<16x128xf32>
    %19 = arith.mulf %9, %18 : vector<16x128xf32>
    %20 = vector.broadcast %2 : vector<1x128xf32> to vector<16x128xf32>
    %21 = arith.mulf %19, %20 : vector<16x128xf32>
    %22 = vector.broadcast %3 : vector<1x128xf32> to vector<16x128xf32>
    %23 = arith.addf %21, %22 : vector<16x128xf32>
    %c0_10 = arith.constant 0 : index
    %c0_11 = arith.constant 0 : index
    %24 = vector.load %arg3[%c0_10, %c0_11] : memref<128x384xf32, #tpu.memory_space<vmem>>, vector<128x384xf32>
    %cst_12 = arith.constant dense<0.000000e+00> : vector<16x384xf32>
    %25 = tpu.matmul %23, %24, %cst_12 {dimension_numbers = #tpu.dot_dimension_numbers<[1], [0], [0], [1], [0, 0, 1, 1], [], []>} : vector<16x128xf32>, vector<128x384xf32>, vector<16x384xf32> -> vector<16x384xf32>
    %c0_13 = arith.constant 0 : index
    %c0_14 = arith.constant 0 : index
    %26 = vector.load %arg4[%c0_13, %c0_14] : memref<1x384xf32, #tpu.memory_space<vmem>>, vector<1x384xf32>
    %27 = vector.broadcast %26 : vector<1x384xf32> to vector<16x384xf32>
    %28 = arith.addf %25, %27 : vector<16x384xf32>
    %29 = vector.extract_strided_slice %28 {offsets = [0, 0], sizes = [8, 64], strides = [1, 1]} : vector<16x384xf32> to vector<8x64xf32>
    %30 = vector.extract_strided_slice %28 {offsets = [0, 128], sizes = [8, 64], strides = [1, 1]} : vector<16x384xf32> to vector<8x64xf32>
    %31 = vector.extract_strided_slice %28 {offsets = [0, 256], sizes = [8, 64], strides = [1, 1]} : vector<16x384xf32> to vector<8x64xf32>
    %cst_15 = arith.constant dense<0.000000e+00> : vector<8x8xf32>
    %32 = tpu.matmul %29, %30, %cst_15 {dimension_numbers = #tpu.dot_dimension_numbers<[1], [1], [0], [0], [0, 0, 1, 0], [], []>} : vector<8x64xf32>, vector<8x64xf32>, vector<8x8xf32> -> vector<8x8xf32>
    %cst_16 = arith.constant 1.250000e-01 : f32
    %33 = vector.broadcast %cst_16 : f32 to vector<8x8xf32>
    %34 = arith.mulf %32, %33 : vector<8x8xf32>
    %cst_17 = arith.constant dense<0xFF800000> : vector<8xf32>
    %35 = vector.multi_reduction <maximumf>, %34, %cst_17 [1] : vector<8x8xf32> to vector<8xf32>
    %36 = vector.shape_cast %35 : vector<8xf32> to vector<8x1xf32>
    %37 = vector.broadcast %36 : vector<8x1xf32> to vector<8x8xf32>
    %38 = arith.subf %34, %37 : vector<8x8xf32>
    %39 = math.exp %38 : vector<8x8xf32>
    %cst_18 = arith.constant dense<0.000000e+00> : vector<8xf32>
    %40 = vector.multi_reduction <add>, %39, %cst_18 [1] : vector<8x8xf32> to vector<8xf32>
    %41 = vector.shape_cast %40 : vector<8xf32> to vector<8x1xf32>
    %42 = vector.broadcast %41 : vector<8x1xf32> to vector<8x8xf32>
    %43 = arith.divf %39, %42 : vector<8x8xf32>
    %cst_19 = arith.constant dense<0.000000e+00> : vector<8x64xf32>
    %44 = tpu.matmul %43, %31, %cst_19 {dimension_numbers = #tpu.dot_dimension_numbers<[1], [0], [0], [1], [0, 0, 1, 1], [], []>} : vector<8x8xf32>, vector<8x64xf32>, vector<8x64xf32> -> vector<8x64xf32>
    %45 = vector.extract_strided_slice %28 {offsets = [0, 64], sizes = [8, 64], strides = [1, 1]} : vector<16x384xf32> to vector<8x64xf32>
    %46 = vector.extract_strided_slice %28 {offsets = [0, 192], sizes = [8, 64], strides = [1, 1]} : vector<16x384xf32> to vector<8x64xf32>
    %47 = vector.extract_strided_slice %28 {offsets = [0, 320], sizes = [8, 64], strides = [1, 1]} : vector<16x384xf32> to vector<8x64xf32>
    %cst_20 = arith.constant dense<0.000000e+00> : vector<8x8xf32>
    %48 = tpu.matmul %45, %46, %cst_20 {dimension_numbers = #tpu.dot_dimension_numbers<[1], [1], [0], [0], [0, 0, 1, 0], [], []>} : vector<8x64xf32>, vector<8x64xf32>, vector<8x8xf32> -> vector<8x8xf32>
    %cst_21 = arith.constant 1.250000e-01 : f32
    %49 = vector.broadcast %cst_21 : f32 to vector<8x8xf32>
    %50 = arith.mulf %48, %49 : vector<8x8xf32>
    %cst_22 = arith.constant dense<0xFF800000> : vector<8xf32>
    %51 = vector.multi_reduction <maximumf>, %50, %cst_22 [1] : vector<8x8xf32> to vector<8xf32>
    %52 = vector.shape_cast %51 : vector<8xf32> to vector<8x1xf32>
    %53 = vector.broadcast %52 : vector<8x1xf32> to vector<8x8xf32>
    %54 = arith.subf %50, %53 : vector<8x8xf32>
    %55 = math.exp %54 : vector<8x8xf32>
    %cst_23 = arith.constant dense<0.000000e+00> : vector<8xf32>
    %56 = vector.multi_reduction <add>, %55, %cst_23 [1] : vector<8x8xf32> to vector<8xf32>
    %57 = vector.shape_cast %56 : vector<8xf32> to vector<8x1xf32>
    %58 = vector.broadcast %57 : vector<8x1xf32> to vector<8x8xf32>
    %59 = arith.divf %55, %58 : vector<8x8xf32>
    %cst_24 = arith.constant dense<0.000000e+00> : vector<8x64xf32>
    %60 = tpu.matmul %59, %47, %cst_24 {dimension_numbers = #tpu.dot_dimension_numbers<[1], [0], [0], [1], [0, 0, 1, 1], [], []>} : vector<8x8xf32>, vector<8x64xf32>, vector<8x64xf32> -> vector<8x64xf32>
    %61 = tpu.concatenate %44, %60 in 1 : vector<8x64xf32>, vector<8x64xf32> -> vector<8x128xf32>
    %62 = vector.extract_strided_slice %28 {offsets = [8, 0], sizes = [8, 64], strides = [1, 1]} : vector<16x384xf32> to vector<8x64xf32>
    %63 = vector.extract_strided_slice %28 {offsets = [8, 128], sizes = [8, 64], strides = [1, 1]} : vector<16x384xf32> to vector<8x64xf32>
    %64 = vector.extract_strided_slice %28 {offsets = [8, 256], sizes = [8, 64], strides = [1, 1]} : vector<16x384xf32> to vector<8x64xf32>
    %cst_25 = arith.constant dense<0.000000e+00> : vector<8x8xf32>
    %65 = tpu.matmul %62, %63, %cst_25 {dimension_numbers = #tpu.dot_dimension_numbers<[1], [1], [0], [0], [0, 0, 1, 0], [], []>} : vector<8x64xf32>, vector<8x64xf32>, vector<8x8xf32> -> vector<8x8xf32>
    %cst_26 = arith.constant 1.250000e-01 : f32
    %66 = vector.broadcast %cst_26 : f32 to vector<8x8xf32>
    %67 = arith.mulf %65, %66 : vector<8x8xf32>
    %cst_27 = arith.constant dense<0xFF800000> : vector<8xf32>
    %68 = vector.multi_reduction <maximumf>, %67, %cst_27 [1] : vector<8x8xf32> to vector<8xf32>
    %69 = vector.shape_cast %68 : vector<8xf32> to vector<8x1xf32>
    %70 = vector.broadcast %69 : vector<8x1xf32> to vector<8x8xf32>
    %71 = arith.subf %67, %70 : vector<8x8xf32>
    %72 = math.exp %71 : vector<8x8xf32>
    %cst_28 = arith.constant dense<0.000000e+00> : vector<8xf32>
    %73 = vector.multi_reduction <add>, %72, %cst_28 [1] : vector<8x8xf32> to vector<8xf32>
    %74 = vector.shape_cast %73 : vector<8xf32> to vector<8x1xf32>
    %75 = vector.broadcast %74 : vector<8x1xf32> to vector<8x8xf32>
    %76 = arith.divf %72, %75 : vector<8x8xf32>
    %cst_29 = arith.constant dense<0.000000e+00> : vector<8x64xf32>
    %77 = tpu.matmul %76, %64, %cst_29 {dimension_numbers = #tpu.dot_dimension_numbers<[1], [0], [0], [1], [0, 0, 1, 1], [], []>} : vector<8x8xf32>, vector<8x64xf32>, vector<8x64xf32> -> vector<8x64xf32>
    %78 = vector.extract_strided_slice %28 {offsets = [8, 64], sizes = [8, 64], strides = [1, 1]} : vector<16x384xf32> to vector<8x64xf32>
    %79 = vector.extract_strided_slice %28 {offsets = [8, 192], sizes = [8, 64], strides = [1, 1]} : vector<16x384xf32> to vector<8x64xf32>
    %80 = vector.extract_strided_slice %28 {offsets = [8, 320], sizes = [8, 64], strides = [1, 1]} : vector<16x384xf32> to vector<8x64xf32>
    %cst_30 = arith.constant dense<0.000000e+00> : vector<8x8xf32>
    %81 = tpu.matmul %78, %79, %cst_30 {dimension_numbers = #tpu.dot_dimension_numbers<[1], [1], [0], [0], [0, 0, 1, 0], [], []>} : vector<8x64xf32>, vector<8x64xf32>, vector<8x8xf32> -> vector<8x8xf32>
    %cst_31 = arith.constant 1.250000e-01 : f32
    %82 = vector.broadcast %cst_31 : f32 to vector<8x8xf32>
    %83 = arith.mulf %81, %82 : vector<8x8xf32>
    %cst_32 = arith.constant dense<0xFF800000> : vector<8xf32>
    %84 = vector.multi_reduction <maximumf>, %83, %cst_32 [1] : vector<8x8xf32> to vector<8xf32>
    %85 = vector.shape_cast %84 : vector<8xf32> to vector<8x1xf32>
    %86 = vector.broadcast %85 : vector<8x1xf32> to vector<8x8xf32>
    %87 = arith.subf %83, %86 : vector<8x8xf32>
    %88 = math.exp %87 : vector<8x8xf32>
    %cst_33 = arith.constant dense<0.000000e+00> : vector<8xf32>
    %89 = vector.multi_reduction <add>, %88, %cst_33 [1] : vector<8x8xf32> to vector<8xf32>
    %90 = vector.shape_cast %89 : vector<8xf32> to vector<8x1xf32>
    %91 = vector.broadcast %90 : vector<8x1xf32> to vector<8x8xf32>
    %92 = arith.divf %88, %91 : vector<8x8xf32>
    %cst_34 = arith.constant dense<0.000000e+00> : vector<8x64xf32>
    %93 = tpu.matmul %92, %80, %cst_34 {dimension_numbers = #tpu.dot_dimension_numbers<[1], [0], [0], [1], [0, 0, 1, 1], [], []>} : vector<8x8xf32>, vector<8x64xf32>, vector<8x64xf32> -> vector<8x64xf32>
    %94 = tpu.concatenate %77, %93 in 1 : vector<8x64xf32>, vector<8x64xf32> -> vector<8x128xf32>
    %95 = tpu.concatenate %61, %94 in 0 : vector<8x128xf32>, vector<8x128xf32> -> vector<16x128xf32>
    %c0_35 = arith.constant 0 : index
    %c0_36 = arith.constant 0 : index
    %96 = vector.load %arg5[%c0_35, %c0_36] : memref<128x128xf32, #tpu.memory_space<vmem>>, vector<128x128xf32>
    %cst_37 = arith.constant dense<0.000000e+00> : vector<16x128xf32>
    %97 = tpu.matmul %95, %96, %cst_37 {dimension_numbers = #tpu.dot_dimension_numbers<[1], [0], [0], [1], [0, 0, 1, 1], [], []>} : vector<16x128xf32>, vector<128x128xf32>, vector<16x128xf32> -> vector<16x128xf32>
    %c0_38 = arith.constant 0 : index
    %c0_39 = arith.constant 0 : index
    %98 = vector.load %arg6[%c0_38, %c0_39] : memref<1x128xf32, #tpu.memory_space<vmem>>, vector<1x128xf32>
    %99 = vector.broadcast %98 : vector<1x128xf32> to vector<16x128xf32>
    %100 = arith.addf %97, %99 : vector<16x128xf32>
    %101 = arith.addf %1, %100 : vector<16x128xf32>
    %c0_40 = arith.constant 0 : index
    %c0_41 = arith.constant 0 : index
    %102 = vector.load %arg7[%c0_40, %c0_41] : memref<1x128xf32, #tpu.memory_space<vmem>>, vector<1x128xf32>
    %c0_42 = arith.constant 0 : index
    %c0_43 = arith.constant 0 : index
    %103 = vector.load %arg8[%c0_42, %c0_43] : memref<1x128xf32, #tpu.memory_space<vmem>>, vector<1x128xf32>
    %cst_44 = arith.constant dense<0.000000e+00> : vector<16xf32>
    %104 = vector.multi_reduction <add>, %101, %cst_44 [1] : vector<16x128xf32> to vector<16xf32>
    %105 = vector.shape_cast %104 : vector<16xf32> to vector<16x1xf32>
    %cst_45 = arith.constant 1.280000e+02 : f32
    %106 = vector.broadcast %cst_45 : f32 to vector<16x1xf32>
    %107 = arith.divf %105, %106 : vector<16x1xf32>
    %108 = vector.broadcast %107 : vector<16x1xf32> to vector<16x128xf32>
    %109 = arith.subf %101, %108 : vector<16x128xf32>
    %110 = arith.mulf %109, %109 : vector<16x128xf32>
    %cst_46 = arith.constant dense<0.000000e+00> : vector<16xf32>
    %111 = vector.multi_reduction <add>, %110, %cst_46 [1] : vector<16x128xf32> to vector<16xf32>
    %112 = vector.shape_cast %111 : vector<16xf32> to vector<16x1xf32>
    %cst_47 = arith.constant 1.280000e+02 : f32
    %113 = vector.broadcast %cst_47 : f32 to vector<16x1xf32>
    %114 = arith.divf %112, %113 : vector<16x1xf32>
    %cst_48 = arith.constant 9.99999974E-6 : f32
    %115 = vector.broadcast %cst_48 : f32 to vector<16x1xf32>
    %116 = arith.addf %114, %115 : vector<16x1xf32>
    %117 = math.rsqrt %116 : vector<16x1xf32>
    %118 = vector.broadcast %117 : vector<16x1xf32> to vector<16x128xf32>
    %119 = arith.mulf %109, %118 : vector<16x128xf32>
    %120 = vector.broadcast %102 : vector<1x128xf32> to vector<16x128xf32>
    %121 = arith.mulf %119, %120 : vector<16x128xf32>
    %122 = vector.broadcast %103 : vector<1x128xf32> to vector<16x128xf32>
    %123 = arith.addf %121, %122 : vector<16x128xf32>
    %c0_49 = arith.constant 0 : index
    %c0_50 = arith.constant 0 : index
    %124 = vector.load %arg9[%c0_49, %c0_50] : memref<128x512xf32, #tpu.memory_space<vmem>>, vector<128x512xf32>
    %cst_51 = arith.constant dense<0.000000e+00> : vector<16x512xf32>
    %125 = tpu.matmul %123, %124, %cst_51 {dimension_numbers = #tpu.dot_dimension_numbers<[1], [0], [0], [1], [0, 0, 1, 1], [], []>} : vector<16x128xf32>, vector<128x512xf32>, vector<16x512xf32> -> vector<16x512xf32>
    %c0_52 = arith.constant 0 : index
    %c0_53 = arith.constant 0 : index
    %126 = vector.load %arg10[%c0_52, %c0_53] : memref<1x512xf32, #tpu.memory_space<vmem>>, vector<1x512xf32>
    %127 = vector.broadcast %126 : vector<1x512xf32> to vector<16x512xf32>
    %128 = arith.addf %125, %127 : vector<16x512xf32>
    %cst_54 = arith.constant 5.000000e-01 : f32
    %129 = vector.broadcast %cst_54 : f32 to vector<16x512xf32>
    %130 = arith.mulf %129, %128 : vector<16x512xf32>
    %cst_55 = arith.constant 4.471500e-02 : f32
    %131 = vector.broadcast %cst_55 : f32 to vector<16x512xf32>
    %132 = arith.mulf %131, %128 : vector<16x512xf32>
    %133 = arith.mulf %132, %128 : vector<16x512xf32>
    %134 = arith.mulf %133, %128 : vector<16x512xf32>
    %135 = arith.addf %128, %134 : vector<16x512xf32>
    %cst_56 = arith.constant 0.797884583 : f32
    %136 = vector.broadcast %cst_56 : f32 to vector<16x512xf32>
    %137 = arith.mulf %136, %135 : vector<16x512xf32>
    %138 = math.tanh %137 : vector<16x512xf32>
    %cst_57 = arith.constant 1.000000e+00 : f32
    %139 = vector.broadcast %cst_57 : f32 to vector<16x512xf32>
    %140 = arith.addf %139, %138 : vector<16x512xf32>
    %141 = arith.mulf %130, %140 : vector<16x512xf32>
    %c0_58 = arith.constant 0 : index
    %c0_59 = arith.constant 0 : index
    %142 = vector.load %arg11[%c0_58, %c0_59] : memref<512x128xf32, #tpu.memory_space<vmem>>, vector<512x128xf32>
    %cst_60 = arith.constant dense<0.000000e+00> : vector<16x128xf32>
    %143 = tpu.matmul %141, %142, %cst_60 {dimension_numbers = #tpu.dot_dimension_numbers<[1], [0], [0], [1], [0, 0, 1, 1], [], []>} : vector<16x512xf32>, vector<512x128xf32>, vector<16x128xf32> -> vector<16x128xf32>
    %c0_61 = arith.constant 0 : index
    %c0_62 = arith.constant 0 : index
    %144 = vector.load %arg12[%c0_61, %c0_62] : memref<1x128xf32, #tpu.memory_space<vmem>>, vector<1x128xf32>
    %145 = vector.broadcast %144 : vector<1x128xf32> to vector<16x128xf32>
    %146 = arith.addf %143, %145 : vector<16x128xf32>
    %c0_63 = arith.constant 0 : index
    %c0_64 = arith.constant 0 : index
    %147 = vector.load %arg13[%c0_63, %c0_64] : memref<128x64xf32, #tpu.memory_space<vmem>>, vector<128x64xf32>
    %cst_65 = arith.constant dense<0.000000e+00> : vector<16x64xf32>
    %148 = tpu.matmul %146, %147, %cst_65 {dimension_numbers = #tpu.dot_dimension_numbers<[1], [0], [0], [1], [0, 0, 1, 1], [], []>} : vector<16x128xf32>, vector<128x64xf32>, vector<16x64xf32> -> vector<16x64xf32>
    %c0_66 = arith.constant 0 : index
    %c0_67 = arith.constant 0 : index
    %149 = vector.load %arg14[%c0_66, %c0_67] : memref<1x64xf32, #tpu.memory_space<vmem>>, vector<1x64xf32>
    %150 = vector.broadcast %149 : vector<1x64xf32> to vector<16x64xf32>
    %151 = arith.addf %148, %150 : vector<16x64xf32>
    %cst_68 = arith.constant 0.000000e+00 : f32
    %152 = vector.broadcast %cst_68 : f32 to vector<16x64xf32>
    %153 = arith.maximumf %151, %152 : vector<16x64xf32>
    %c0_69 = arith.constant 0 : index
    %c0_70 = arith.constant 0 : index
    %154 = vector.load %arg15[%c0_69, %c0_70] : memref<64x128xf32, #tpu.memory_space<vmem>>, vector<64x128xf32>
    %cst_71 = arith.constant dense<0.000000e+00> : vector<16x128xf32>
    %155 = tpu.matmul %153, %154, %cst_71 {dimension_numbers = #tpu.dot_dimension_numbers<[1], [0], [0], [1], [0, 0, 1, 1], [], []>} : vector<16x64xf32>, vector<64x128xf32>, vector<16x128xf32> -> vector<16x128xf32>
    %c0_72 = arith.constant 0 : index
    %c0_73 = arith.constant 0 : index
    %156 = vector.load %arg16[%c0_72, %c0_73] : memref<1x128xf32, #tpu.memory_space<vmem>>, vector<1x128xf32>
    %157 = vector.broadcast %156 : vector<1x128xf32> to vector<16x128xf32>
    %158 = arith.addf %155, %157 : vector<16x128xf32>
    %159 = arith.addf %146, %158 : vector<16x128xf32>
    %160 = arith.addf %101, %159 : vector<16x128xf32>
    %161 = vector.shape_cast %160 : vector<16x128xf32> to vector<2x8x128xf32>
    %c0_74 = arith.constant 0 : index
    %c0_75 = arith.constant 0 : index
    %c0_76 = arith.constant 0 : index
    %162 = vector.load %arg17[%c0_74, %c0_75, %c0_76] : memref<2x8x128xf32, #tpu.memory_space<vmem>>, vector<2x8x128xf32>
    tpu.vector_store %arg17[%c0_74, %c0_75, %c0_76], %161 {strides = array<i32>} : memref<2x8x128xf32, #tpu.memory_space<vmem>>, vector<2x8x128xf32>,
    return
  }
}

module attributes {stable_mosaic.version = 11 : i64} {
  func.func @_head_kernel(%arg0: memref<2x8x128xf32, #tpu.memory_space<vmem>>, %arg1: memref<1x128xf32, #tpu.memory_space<vmem>>, %arg2: memref<1x128xf32, #tpu.memory_space<vmem>>, %arg3: memref<128x10xf32, #tpu.memory_space<vmem>>, %arg4: memref<1x10xf32, #tpu.memory_space<vmem>>, %arg5: memref<2x10xf32, #tpu.memory_space<vmem>>) attributes {dimension_semantics = [], scalar_prefetch = 0 : i64, scratch_operands = 0 : i64, tpu.core_type = #tpu.core_type<tc>} {
    %c0 = arith.constant 0 : index
    %c0_0 = arith.constant 0 : index
    %c0_1 = arith.constant 0 : index
    %0 = vector.load %arg0[%c0, %c0_0, %c0_1] : memref<2x8x128xf32, #tpu.memory_space<vmem>>, vector<2x8x128xf32>
    %cst = arith.constant dense<0.000000e+00> : vector<2x128xf32>
    %1 = vector.multi_reduction <add>, %0, %cst [1] : vector<2x8x128xf32> to vector<2x128xf32>
    %cst_2 = arith.constant 8.000000e+00 : f32
    %2 = vector.broadcast %cst_2 : f32 to vector<2x128xf32>
    %3 = arith.divf %1, %2 : vector<2x128xf32>
    %c0_3 = arith.constant 0 : index
    %c0_4 = arith.constant 0 : index
    %4 = vector.load %arg1[%c0_3, %c0_4] : memref<1x128xf32, #tpu.memory_space<vmem>>, vector<1x128xf32>
    %c0_5 = arith.constant 0 : index
    %c0_6 = arith.constant 0 : index
    %5 = vector.load %arg2[%c0_5, %c0_6] : memref<1x128xf32, #tpu.memory_space<vmem>>, vector<1x128xf32>
    %cst_7 = arith.constant dense<0.000000e+00> : vector<2xf32>
    %6 = vector.multi_reduction <add>, %3, %cst_7 [1] : vector<2x128xf32> to vector<2xf32>
    %7 = vector.shape_cast %6 : vector<2xf32> to vector<2x1xf32>
    %cst_8 = arith.constant 1.280000e+02 : f32
    %8 = vector.broadcast %cst_8 : f32 to vector<2x1xf32>
    %9 = arith.divf %7, %8 : vector<2x1xf32>
    %10 = vector.broadcast %9 : vector<2x1xf32> to vector<2x128xf32>
    %11 = arith.subf %3, %10 : vector<2x128xf32>
    %12 = arith.mulf %11, %11 : vector<2x128xf32>
    %cst_9 = arith.constant dense<0.000000e+00> : vector<2xf32>
    %13 = vector.multi_reduction <add>, %12, %cst_9 [1] : vector<2x128xf32> to vector<2xf32>
    %14 = vector.shape_cast %13 : vector<2xf32> to vector<2x1xf32>
    %cst_10 = arith.constant 1.280000e+02 : f32
    %15 = vector.broadcast %cst_10 : f32 to vector<2x1xf32>
    %16 = arith.divf %14, %15 : vector<2x1xf32>
    %cst_11 = arith.constant 9.99999974E-6 : f32
    %17 = vector.broadcast %cst_11 : f32 to vector<2x1xf32>
    %18 = arith.addf %16, %17 : vector<2x1xf32>
    %19 = math.rsqrt %18 : vector<2x1xf32>
    %20 = vector.broadcast %19 : vector<2x1xf32> to vector<2x128xf32>
    %21 = arith.mulf %11, %20 : vector<2x128xf32>
    %22 = vector.broadcast %4 : vector<1x128xf32> to vector<2x128xf32>
    %23 = arith.mulf %21, %22 : vector<2x128xf32>
    %24 = vector.broadcast %5 : vector<1x128xf32> to vector<2x128xf32>
    %25 = arith.addf %23, %24 : vector<2x128xf32>
    %c0_12 = arith.constant 0 : index
    %c0_13 = arith.constant 0 : index
    %26 = vector.load %arg3[%c0_12, %c0_13] : memref<128x10xf32, #tpu.memory_space<vmem>>, vector<128x10xf32>
    %cst_14 = arith.constant dense<0.000000e+00> : vector<2x10xf32>
    %27 = tpu.matmul %25, %26, %cst_14 {dimension_numbers = #tpu.dot_dimension_numbers<[1], [0], [0], [1], [0, 0, 1, 1], [], []>} : vector<2x128xf32>, vector<128x10xf32>, vector<2x10xf32> -> vector<2x10xf32>
    %c0_15 = arith.constant 0 : index
    %c0_16 = arith.constant 0 : index
    %28 = vector.load %arg4[%c0_15, %c0_16] : memref<1x10xf32, #tpu.memory_space<vmem>>, vector<1x10xf32>
    %29 = vector.broadcast %28 : vector<1x10xf32> to vector<2x10xf32>
    %30 = arith.addf %27, %29 : vector<2x10xf32>
    %c0_17 = arith.constant 0 : index
    %c0_18 = arith.constant 0 : index
    %31 = vector.load %arg5[%c0_17, %c0_18] : memref<2x10xf32, #tpu.memory_space<vmem>>, vector<2x10xf32>
    tpu.vector_store %arg5[%c0_17, %c0_18], %30 {strides = array<i32>} : memref<2x10xf32, #tpu.memory_space<vmem>>, vector<2x10xf32>,
    return
  }
}

</mosaic_0001>

<bundles_post_ra>
// kernel: hft_forward.7
= control target key start
LH: loop header
LB: loop body
LE: loop exit
PB: predicated region body
PF: predicated region fallthrough
CT: control target
= control target key end

     0   :  { %9 = vsyncpa [#allocation3], 0  ;;  %s314_s0 = inlined_call_operand.vmem [shape: f32[2,8,32], index: 0, kind: input, shape index: {}]   ;;  %s315_s1 = inlined_call_operand.hbm [shape: f32[32,256], index: 1, kind: input, shape index: {}]   ;;  %s316_s2 = inlined_call_operand.hbm [shape: f32[1,256], index: 2, kind: input, shape index: {}]   ;;  %s317_s3 = inlined_call_operand.hbm [shape: f32[1,5000,256], index: 3, kind: input, shape index: {}]   ;;  %s318_s4 = inlined_call_operand.vmem [shape: f32[2,8,256], index: 4, kind: output, shape index: {}]  }
   0x1   :  { %10 = vsyncpa [#allocation5], 0  ;;  %s256_s15 = smov [#allocation4]   ;;  %s257_s17 = smov [#allocation2]  }
   0x2   :  { %s31_s16 = sshll.u32 %s256_s15, 4  ;;  %s18_s18 = sshll.u32 %s257_s17, 4  ;;  %s32_s16 = int_to_ptr.vmem [resolvable:$true] %s31_s16  ;;  %s19_s18 = int_to_ptr.vmem [resolvable:$true] %s18_s18 }
   0x3   :  { %s200_s19 = scalar_lea.vmem %s32_s16, 32  ;;  %p205_p1 = scmp.lt.s32.totalorder %s32_s16, %s32_s16 }
   0x4   :  { %p201_p0 = scmp.ne.s32.totalorder %s32_s16, %s200_s19  ;;  %p206_p2 = scmp.lt.s32.totalorder %s200_s19, %s200_s19 }
   0x6   :  { %p207_p3 = por %p206_p2, %p205_p1 }
   0x8   :  { %p208_p4 = pnand %p207_p3, %p201_p0 }
   0xa   :  { %211 = shalt.err (!%p208_p4)
}
   0xb   :  { %34 = dma.hbm_to_vmem [thread:$0]  %s316_s2, 32, %s32_s16, [#allocation5]  }
   0xc   :  { %s220_s22 = scalar_lea.vmem %s19_s18, 1024  ;;  %p225_p6 = scmp.lt.s32.totalorder %s19_s18, %s19_s18 }
   0xd   :  { %p221_p5 = scmp.ne.s32.totalorder %s19_s18, %s220_s22  ;;  %p226_p7 = scmp.lt.s32.totalorder %s220_s22, %s220_s22 }
   0xf   :  { %p227_p8 = por %p226_p7, %p225_p6 }
  0x11   :  { %p228_p9 = pnand %p227_p8, %p221_p5 }
  0x13   :  { %231 = shalt.err (!%p228_p9)
}
  0x14   :  { %s258_s23 = smov 256   ;;  %s259_s24 = smov 16  }
  0x15   :  { %24 = dma.hbm_to_vmem [thread:$0]  %s315_s1, 1024, %s19_s18, [#allocation3], %s258_s23, %s258_s23, %s259_s24  }
  0x16   :  { %s260_s27 = smov [#allocation6]  }
  0x17   :  { %s41_s28 = sshll.u32 %s260_s27, 4  ;;  %s42_s28 = int_to_ptr.vmem [resolvable:$true] %s41_s28 }
  0x18   :  { %s240_s29 = scalar_lea.vmem %s42_s28, 256  ;;  %p245_p11 = scmp.lt.s32.totalorder %s42_s28, %s42_s28 }
  0x19   :  { %p241_p10 = scmp.ne.s32.totalorder %s42_s28, %s240_s29  ;;  %p246_p12 = scmp.lt.s32.totalorder %s240_s29, %s240_s29 }
  0x1b   :  { %p247_p13 = por %p246_p12, %p245_p11 }
  0x1d   :  { %p248_p0 = pnand %p247_p13, %p241_p10 }
  0x1f   :  { %251 = shalt.err (!%p248_p0)
}
  0x20   :  { %44 = dma.hbm_to_vmem [thread:$0]  %s317_s3, 256, %s42_s28, [#allocation5]  }
  0x21   :  { %252 = dma.done.wait [#allocation3], 1024  }
  0x22   :  { %253 = vsyncadd [#allocation3], 4294966272 }
  0x23   :  { %254 = dma.done.wait [#allocation5], 288  }
  0x24   :  { %255 = vsyncadd [#allocation5], 4294967008  ;;  %v261_v0 = vmov 0.0   ;;  %v63_v1 = vld [vmem:[#allocation2 + $0x38] sm:$0xff]  ;;  %v62_v2 = vld [vmem:[#allocation2 + $0x30] sm:$0xff]  ;;  %vm76_vm0 = vcmask 261120   ;;  %v66_v11 = vlaneseq }
  0x25   :  { %147 = vmatprep.mubr.f32.mxu0 %v261_v0  ;;  %153 = vmatprep.mubr.f32.mxu1 %v261_v0  ;;  %v61_v3 = vld [vmem:[#allocation2 + $0x28] sm:$0xff]  ;;  %v60_v4 = vld [vmem:[#allocation2 + $0x20] sm:$0xff]  ;;  %v59_v5 = vld [vmem:[#allocation2 + $0x18] sm:$0xff] }
  0x26   :  { %107 = vmatprep.subr.mxu0 %v63_v1  ;;  %178 = vmatprep.subr.mxu1 %v63_v1  ;;  %v58_v6 = vld [vmem:[#allocation2 + $0x10] sm:$0xff]  ;;  %v57_v7 = vld [vmem:[#allocation2 + $0x8] sm:$0xff]  ;;  %v56_v8 = vld [vmem:[#allocation2] sm:$0xff]  ;;  %v67_v12 = vshrl.u32 %v66_v11, 7 }
  0x27   :  { %108 = vmatpush1.msra.mxu0 %v62_v2  ;;  %182 = vmatpush1.msra.mxu1 %v62_v2  ;;  %v54_v9 = vld [vmem:[%s314_s0] sm:$0xff]  ;;  %v55_v10 = vld [vmem:[%s314_s0 + $0x8] sm:$0xff] }
  0x28   :  { %109 = vmatprep.subr.mxu0 %v61_v3  ;;  %179 = vmatprep.subr.mxu1 %v61_v3  ;;  %v68_v13 = vsub.s32 0, %v67_v12  ;;  %v64_v14 = vld [vmem:[#allocation4] sm:$0x3]  ;;  %v72_v15 = vsub.s32 1, %v67_v12  ;;  %v160_v19 = vld [vmem:[#allocation6] sm:$0xff]  ;;  %v161_v24 = vld [vmem:[#allocation6 + $0x8] sm:$0xff] }
  0x29   :  { %110 = vmatpush1.msra.mxu0 %v60_v4  ;;  %183 = vmatpush1.msra.mxu1 %v60_v4 }
  0x2a   :  { %111 = vmatprep.subr.mxu0 %v59_v5  ;;  %180 = vmatprep.subr.mxu1 %v59_v5  ;;  %v69_v16 = vrot.slane %v64_v14, %v68_v13  ;;  %v73_v17 = vrot.slane %v64_v14, %v72_v15 }
  0x2b   :  { %112 = vmatpush1.msra.mxu0 %v58_v6  ;;  %184 = vmatpush1.msra.mxu1 %v58_v6 }
  0x2c   :  { %113 = vmatprep.subr.mxu0 %v57_v7  ;;  %181 = vmatprep.subr.mxu1 %v57_v7 }
  0x2d   :  { %114 = vmatpush1.msra.mxu0 %v56_v8  ;;  %185 = vmatpush1.msra.mxu1 %v56_v8 }
  0x2e   :  { %176 = vmatmul.mubr.msk.f32.vlgmr.msra.gmra.mxu0 %vm76_vm0, %v54_v9  ;;  %177 = vmatmul.mubr.msk.f32.vlgmr.msra.gmra.mxu1 %vm76_vm0, %v55_v10 }
  0xee   :  { %v149_v18 = vpop.f32.mrf.mxu0  ;;  %v155_v20 = vpop.f32.mrf.mxu1 }
  0xef   :  { %v150_v21 = vadd.f32 %v149_v18, %v69_v16  ;;  %v156_v22 = vadd.f32 %v155_v20, %v69_v16 }
  0xf0   :  { %v151_v23 = vpop.f32.mrf.mxu0  ;;  %v157_v25 = vpop.f32.mrf.mxu1 }
  0xf1   :  { %v162_v26 = vadd.f32 %v160_v19, %v150_v21  ;;  %v164_v27 = vadd.f32 %v160_v19, %v156_v22  ;;  %v152_v28 = vadd.f32 %v151_v23, %v73_v17  ;;  %v158_v29 = vadd.f32 %v157_v25, %v73_v17 }
  0xf3   :  { %166 = vst [vmem:[%s318_s4] sm:$0xff] %v162_v26  ;;  %168 = vst [vmem:[%s318_s4 + $0x10] sm:$0xff] %v164_v27  ;;  %v163_v30 = vadd.f32 %v161_v24, %v152_v28  ;;  %v165_v31 = vadd.f32 %v161_v24, %v158_v29 }
  0xf5   :  { %167 = vst [vmem:[%s318_s4 + $0x8] sm:$0xff] %v163_v30  ;;  %169 = vst [vmem:[%s318_s4 + $0x18] sm:$0xff] %v165_v31 }
  0xf6   :  { %174 = vsyncpa [#allocation3], 1 }
  0xf7   :  { %175 = vsyncpa [#allocation5], 1 }

// kernel: hft_forward.9
= control target key start
LH: loop header
LB: loop body
LE: loop exit
PB: predicated region body
PF: predicated region fallthrough
CT: control target
= control target key end

     0   :  { %s348_s1 = inlined_call_operand.vmem [shape: f32[256,128], index: 1, kind: input, shape index: {}]   ;;  %s349_s0 = inlined_call_operand.vmem [shape: f32[2,8,256], index: 0, kind: input, shape index: {}]   ;;  %s350_s2 = inlined_call_operand.vmem [shape: f32[1,128], index: 2, kind: input, shape index: {}]   ;;  %s351_s3 = inlined_call_operand.vmem [shape: f32[2,8,128], index: 3, kind: output, shape index: {}]  }
   0x1   :  { %v49_v0 = vld [vmem:[%s348_s1 + $0xf8] sm:$0xff]  ;;  %v48_v2 = vld [vmem:[%s348_s1 + $0xf0] sm:$0xff]  ;;  %v47_v4 = vld [vmem:[%s348_s1 + $0xe8] sm:$0xff] }
   0x2   :  { %v33_v1 = vld [vmem:[%s348_s1 + $0x78] sm:$0xff]  ;;  %141 = vmatprep.subr.mxu0 %v49_v0  ;;  %179 = vmatprep.subr.mxu1 %v49_v0  ;;  %v32_v3 = vld [vmem:[%s348_s1 + $0x70] sm:$0xff]  ;;  %v31_v5 = vld [vmem:[%s348_s1 + $0x68] sm:$0xff] }
   0x3   :  { %142 = vmatpush3.msra.mxu0 %v33_v1  ;;  %195 = vmatpush3.msra.mxu1 %v33_v1  ;;  %v46_v6 = vld [vmem:[%s348_s1 + $0xe0] sm:$0xff]  ;;  %v45_v8 = vld [vmem:[%s348_s1 + $0xd8] sm:$0xff]  ;;  %v44_v10 = vld [vmem:[%s348_s1 + $0xd0] sm:$0xff] }
   0x4   :  { %143 = vmatprep.subr.mxu0 %v48_v2  ;;  %180 = vmatprep.subr.mxu1 %v48_v2  ;;  %v30_v7 = vld [vmem:[%s348_s1 + $0x60] sm:$0xff]  ;;  %v29_v9 = vld [vmem:[%s348_s1 + $0x58] sm:$0xff]  ;;  %v28_v11 = vld [vmem:[%s348_s1 + $0x50] sm:$0xff] }
   0x5   :  { %144 = vmatpush3.msra.mxu0 %v32_v3  ;;  %196 = vmatpush3.msra.mxu1 %v32_v3  ;;  %v43_v12 = vld [vmem:[%s348_s1 + $0xc8] sm:$0xff]  ;;  %v42_v14 = vld [vmem:[%s348_s1 + $0xc0] sm:$0xff]  ;;  %v41_v16 = vld [vmem:[%s348_s1 + $0xb8] sm:$0xff] }
   0x6   :  { %145 = vmatprep.subr.mxu0 %v47_v4  ;;  %181 = vmatprep.subr.mxu1 %v47_v4  ;;  %v27_v13 = vld [vmem:[%s348_s1 + $0x48] sm:$0xff]  ;;  %v26_v15 = vld [vmem:[%s348_s1 + $0x40] sm:$0xff]  ;;  %v25_v17 = vld [vmem:[%s348_s1 + $0x38] sm:$0xff] }
   0x7   :  { %146 = vmatpush3.msra.mxu0 %v31_v5  ;;  %197 = vmatpush3.msra.mxu1 %v31_v5  ;;  %v40_v18 = vld [vmem:[%s348_s1 + $0xb0] sm:$0xff]  ;;  %v39_v20 = vld [vmem:[%s348_s1 + $0xa8] sm:$0xff]  ;;  %v38_v22 = vld [vmem:[%s348_s1 + $0xa0] sm:$0xff] }
   0x8   :  { %147 = vmatprep.subr.mxu0 %v46_v6  ;;  %182 = vmatprep.subr.mxu1 %v46_v6  ;;  %v24_v19 = vld [vmem:[%s348_s1 + $0x30] sm:$0xff]  ;;  %v23_v21 = vld [vmem:[%s348_s1 + $0x28] sm:$0xff]  ;;  %v22_v23 = vld [vmem:[%s348_s1 + $0x20] sm:$0xff] }
   0x9   :  { %148 = vmatpush3.msra.mxu0 %v30_v7  ;;  %198 = vmatpush3.msra.mxu1 %v30_v7  ;;  %v37_v24 = vld [vmem:[%s348_s1 + $0x98] sm:$0xff]  ;;  %v36_v26 = vld [vmem:[%s348_s1 + $0x90] sm:$0xff]  ;;  %v35_v28 = vld [vmem:[%s348_s1 + $0x88] sm:$0xff] }
   0xa   :  { %149 = vmatprep.subr.mxu0 %v45_v8  ;;  %183 = vmatprep.subr.mxu1 %v45_v8  ;;  %v21_v25 = vld [vmem:[%s348_s1 + $0x18] sm:$0xff]  ;;  %v20_v27 = vld [vmem:[%s348_s1 + $0x10] sm:$0xff]  ;;  %v19_v29 = vld [vmem:[%s348_s1 + $0x8] sm:$0xff] }
   0xb   :  { %150 = vmatpush3.msra.mxu0 %v29_v9  ;;  %199 = vmatpush3.msra.mxu1 %v29_v9  ;;  %v34_v30 = vld [vmem:[%s348_s1 + $0x80] sm:$0xff]  ;;  %v15_v32 = vld [vmem:[%s349_s0 + $0x8] sm:$0xff]  ;;  %v17_v33 = vld [vmem:[%s349_s0 + $0x18] sm:$0xff] }
   0xc   :  { %151 = vmatprep.subr.mxu0 %v44_v10  ;;  %184 = vmatprep.subr.mxu1 %v44_v10  ;;  %v18_v31 = vld [vmem:[%s348_s1] sm:$0xff]  ;;  %v16_v35 = vld [vmem:[%s349_s0 + $0x10] sm:$0xff] }
   0xd   :  { %152 = vmatpush3.msra.mxu0 %v28_v11  ;;  %200 = vmatpush3.msra.mxu1 %v28_v11  ;;  %v14_v34 = vld [vmem:[%s349_s0] sm:$0xff] }
   0xe   :  { %153 = vmatprep.subr.mxu0 %v43_v12  ;;  %185 = vmatprep.subr.mxu1 %v43_v12  ;;  %v140_v38 = vld [vmem:[%s350_s2] ss:$0 sm:$0xff] }
   0xf   :  { %154 = vmatpush3.msra.mxu0 %v27_v13  ;;  %201 = vmatpush3.msra.mxu1 %v27_v13 }
  0x10   :  { %155 = vmatprep.subr.mxu0 %v42_v14  ;;  %186 = vmatprep.subr.mxu1 %v42_v14 }
  0x11   :  { %156 = vmatpush3.msra.mxu0 %v26_v15  ;;  %202 = vmatpush3.msra.mxu1 %v26_v15 }
  0x12   :  { %157 = vmatprep.subr.mxu0 %v41_v16  ;;  %187 = vmatprep.subr.mxu1 %v41_v16 }
  0x13   :  { %158 = vmatpush3.msra.mxu0 %v25_v17  ;;  %203 = vmatpush3.msra.mxu1 %v25_v17 }
  0x14   :  { %159 = vmatprep.subr.mxu0 %v40_v18  ;;  %188 = vmatprep.subr.mxu1 %v40_v18 }
  0x15   :  { %160 = vmatpush3.msra.mxu0 %v24_v19  ;;  %204 = vmatpush3.msra.mxu1 %v24_v19 }
  0x16   :  { %161 = vmatprep.subr.mxu0 %v39_v20  ;;  %189 = vmatprep.subr.mxu1 %v39_v20 }
  0x17   :  { %162 = vmatpush3.msra.mxu0 %v23_v21  ;;  %205 = vmatpush3.msra.mxu1 %v23_v21 }
  0x18   :  { %163 = vmatprep.subr.mxu0 %v38_v22  ;;  %190 = vmatprep.subr.mxu1 %v38_v22 }
  0x19   :  { %164 = vmatpush3.msra.mxu0 %v22_v23  ;;  %206 = vmatpush3.msra.mxu1 %v22_v23 }
  0x1a   :  { %165 = vmatprep.subr.mxu0 %v37_v24  ;;  %191 = vmatprep.subr.mxu1 %v37_v24 }
  0x1b   :  { %166 = vmatpush3.msra.mxu0 %v21_v25  ;;  %207 = vmatpush3.msra.mxu1 %v21_v25 }
  0x1c   :  { %167 = vmatprep.subr.mxu0 %v36_v26  ;;  %192 = vmatprep.subr.mxu1 %v36_v26 }
  0x1d   :  { %168 = vmatpush3.msra.mxu0 %v20_v27  ;;  %208 = vmatpush3.msra.mxu1 %v20_v27 }
  0x1e   :  { %169 = vmatprep.subr.mxu0 %v35_v28  ;;  %193 = vmatprep.subr.mxu1 %v35_v28 }
  0x1f   :  { %170 = vmatpush3.msra.mxu0 %v19_v29  ;;  %209 = vmatpush3.msra.mxu1 %v19_v29 }
  0x20   :  { %171 = vmatprep.subr.mxu0 %v34_v30  ;;  %194 = vmatprep.subr.mxu1 %v34_v30 }
  0x21   :  { %172 = vmatpush3.msra.mxu0 %v18_v31  ;;  %210 = vmatpush3.msra.mxu1 %v18_v31 }
  0x22   :  { %121 = vmatprep.mubr.f32.mxu0 %v15_v32  ;;  %126 = vmatprep.mubr.f32.mxu1 %v17_v33 }
  0x23   :  { %122 = vmatmul.mubr.f32.vlgmr.msra.gmra.mxu0 %v14_v34  ;;  %127 = vmatmul.mubr.f32.vlgmr.msra.gmra.mxu1 %v16_v35 }
  0xe3   :  { %v173_v36 = vpop.f32.mrf.mxu0  ;;  %v176_v37 = vpop.f32.mrf.mxu1 }
  0xe5   :  { %v174_v39 = vpop.f32.mrf.mxu0  ;;  %v177_v40 = vpop.f32.mrf.mxu1 }
  0xe6   :  { %v175_v41 = vadd.f32 %v174_v39, %v173_v36  ;;  %v178_v42 = vadd.f32 %v177_v40, %v176_v37 }
  0xe8   :  { %v124_v43 = vadd.f32 %v175_v41, %v140_v38  ;;  %v129_v44 = vadd.f32 %v178_v42, %v140_v38 }
  0xea   :  { %v132_v45 = vmax.f32 %v124_v43, 0.0  ;;  %v133_v46 = vmax.f32 %v129_v44, 0.0 }
  0xec   :  { %134 = vst [vmem:[%s351_s3] sm:$0xff] %v132_v45  ;;  %135 = vst [vmem:[%s351_s3 + $0x8] sm:$0xff] %v133_v46 }

// kernel: hft_forward.11
= control target key start
LH: loop header
LB: loop body
LE: loop exit
PB: predicated region body
PF: predicated region fallthrough
CT: control target
= control target key end

     0   :  { %8 = vsyncpa [#allocation3], 0  ;;  %s212_s12 = smov [#allocation2]   ;;  %s296_s0 = inlined_call_operand.vmem [shape: f32[2,8,128], index: 0, kind: input, shape index: {}]   ;;  %s297_s1 = inlined_call_operand.vmem [shape: f32[128,128], index: 1, kind: input, shape index: {}]   ;;  %s298_s2 = inlined_call_operand.hbm [shape: f32[1,128], index: 2, kind: input, shape index: {}]   ;;  %s299_s3 = inlined_call_operand.vmem [shape: f32[2,8,128], index: 3, kind: output, shape index: {}]  }
   0x1   :  { %s19_s13 = sshll.u32 %s212_s12, 4  ;;  %s20_s13 = int_to_ptr.vmem [resolvable:$true] %s19_s13 }
   0x2   :  { %s198_s14 = scalar_lea.vmem %s20_s13, 16  ;;  %s202_s15 = scalar_lea.vmem %s20_s13, 32 }
   0x3   :  { %p199_p0 = scmp.ne.s32.totalorder %s20_s13, %s198_s14  ;;  %p203_p1 = scmp.lt.s32.totalorder %s20_s13, %s20_s13 }
   0x4   :  { %p204_p2 = scmp.lt.s32.totalorder %s202_s15, %s198_s14 }
   0x6   :  { %p205_p3 = por %p204_p2, %p203_p1 }
   0x8   :  { %p206_p4 = pnand %p205_p3, %p199_p0 }
   0xa   :  { %209 = shalt.err (!%p206_p4)
}
   0xb   :  { %22 = dma.hbm_to_vmem [thread:$0]  %s298_s2, 16, %s20_s13, [#allocation3]  }
   0xc   :  { %210 = dma.done.wait [#allocation3], 16  }
   0xd   :  { %211 = vsyncadd [#allocation3], 4294967280  ;;  %v43_v0 = vld [vmem:[%s297_s1 + $0x78] sm:$0xff]  ;;  %v42_v1 = vld [vmem:[%s297_s1 + $0x70] sm:$0xff] }
   0xe   :  { %154 = vmatprep.subr.mxu0 %v43_v0  ;;  %v41_v2 = vld [vmem:[%s297_s1 + $0x68] sm:$0xff]  ;;  %v40_v3 = vld [vmem:[%s297_s1 + $0x60] sm:$0xff]  ;;  %v39_v5 = vld [vmem:[%s297_s1 + $0x58] sm:$0xff] }
   0xf   :  { %155 = vmatpush3.msra.mxu0 %v43_v0  ;;  %v26_v4 = vld [vmem:[%s296_s0] sm:$0xff]  ;;  %v38_v6 = vld [vmem:[%s297_s1 + $0x50] sm:$0xff]  ;;  %v37_v7 = vld [vmem:[%s297_s1 + $0x48] sm:$0xff] }
  0x10   :  { %156 = vmatprep.subr.mxu0 %v42_v1  ;;  %186 = vmatprep.mubr.f32.mxu0 %v26_v4  ;;  %v36_v8 = vld [vmem:[%s297_s1 + $0x40] sm:$0xff]  ;;  %v35_v9 = vld [vmem:[%s297_s1 + $0x38] sm:$0xff]  ;;  %v34_v10 = vld [vmem:[%s297_s1 + $0x30] sm:$0xff] }
  0x11   :  { %157 = vmatpush3.msra.mxu0 %v42_v1  ;;  %v33_v11 = vld [vmem:[%s297_s1 + $0x28] sm:$0xff]  ;;  %v32_v12 = vld [vmem:[%s297_s1 + $0x20] sm:$0xff]  ;;  %v31_v13 = vld [vmem:[%s297_s1 + $0x18] sm:$0xff] }
  0x12   :  { %158 = vmatprep.subr.mxu0 %v41_v2  ;;  %v30_v14 = vld [vmem:[%s297_s1 + $0x10] sm:$0xff]  ;;  %v29_v15 = vld [vmem:[%s297_s1 + $0x8] sm:$0xff]  ;;  %v28_v16 = vld [vmem:[%s297_s1] sm:$0xff] }
  0x13   :  { %159 = vmatpush3.msra.mxu0 %v41_v2  ;;  %v27_v17 = vld [vmem:[%s296_s0 + $0x8] sm:$0xff]  ;;  %v135_v18 = vld [vmem:[#allocation2] ss:$0 sm:$0xff] }
  0x14   :  { %160 = vmatprep.subr.mxu0 %v40_v3 }
  0x15   :  { %161 = vmatpush3.msra.mxu0 %v40_v3 }
  0x16   :  { %162 = vmatprep.subr.mxu0 %v39_v5 }
  0x17   :  { %163 = vmatpush3.msra.mxu0 %v39_v5 }
  0x18   :  { %164 = vmatprep.subr.mxu0 %v38_v6 }
  0x19   :  { %165 = vmatpush3.msra.mxu0 %v38_v6 }
  0x1a   :  { %166 = vmatprep.subr.mxu0 %v37_v7 }
  0x1b   :  { %167 = vmatpush3.msra.mxu0 %v37_v7 }
  0x1c   :  { %168 = vmatprep.subr.mxu0 %v36_v8 }
  0x1d   :  { %169 = vmatpush3.msra.mxu0 %v36_v8 }
  0x1e   :  { %170 = vmatprep.subr.mxu0 %v35_v9 }
  0x1f   :  { %171 = vmatpush3.msra.mxu0 %v35_v9 }
  0x20   :  { %172 = vmatprep.subr.mxu0 %v34_v10 }
  0x21   :  { %173 = vmatpush3.msra.mxu0 %v34_v10 }
  0x22   :  { %174 = vmatprep.subr.mxu0 %v33_v11 }
  0x23   :  { %175 = vmatpush3.msra.mxu0 %v33_v11 }
  0x24   :  { %176 = vmatprep.subr.mxu0 %v32_v12 }
  0x25   :  { %177 = vmatpush3.msra.mxu0 %v32_v12 }
  0x26   :  { %178 = vmatprep.subr.mxu0 %v31_v13 }
  0x27   :  { %179 = vmatpush3.msra.mxu0 %v31_v13 }
  0x28   :  { %180 = vmatprep.subr.mxu0 %v30_v14 }
  0x29   :  { %181 = vmatpush3.msra.mxu0 %v30_v14 }
  0x2a   :  { %182 = vmatprep.subr.mxu0 %v29_v15 }
  0x2b   :  { %183 = vmatpush3.msra.mxu0 %v29_v15 }
  0x2c   :  { %184 = vmatprep.subr.mxu0 %v28_v16 }
  0x2d   :  { %185 = vmatpush3.msra.mxu0 %v28_v16 }
  0x2e   :  { %187 = vmatmul.mubr.f32.vlgmr.msra.gmra.mxu0 %v27_v17 }
  0xee   :  { %v188_v19 = vpop.f32.mrf.mxu0 }
  0xef   :  { %v123_v20 = vadd.f32 %v188_v19, %v135_v18 }
  0xf0   :  { %v117_v21 = vpop.f32.mrf.mxu0 }
  0xf1   :  { %v127_v22 = vmax.f32 %v123_v20, 0.0  ;;  %v118_v23 = vadd.f32 %v135_v18, %v117_v21 }
  0xf3   :  { %129 = vst [vmem:[%s299_s3 + $0x8] sm:$0xff] %v127_v22  ;;  %v126_v24 = vmax.f32 %v118_v23, 0.0 }
  0xf5   :  { %128 = vst [vmem:[%s299_s3] sm:$0xff] %v126_v24 }
  0xf6   :  { %134 = vsyncpa [#allocation3], 1 }

// kernel: hft_forward.10
= control target key start
LH: loop header
LB: loop body
LE: loop exit
PB: predicated region body
PF: predicated region fallthrough
CT: control target
= control target key end

     0   :  { %s3316_s0 = inlined_call_operand.vmem [shape: f32[2,8,128], index: 0, kind: input, shape index: {}, may-alias: {0,17}]   ;;  %s3317_s1 = inlined_call_operand.vmem [shape: f32[1,128], index: 1, kind: input, shape index: {}]   ;;  %s3318_s2 = inlined_call_operand.vmem [shape: f32[1,128], index: 2, kind: input, shape index: {}]   ;;  %s3319_s3 = inlined_call_operand.vmem [shape: f32[128,384], index: 3, kind: input, shape index: {}]   ;;  %s3320_s4 = inlined_call_operand.vmem [shape: f32[1,384], index: 4, kind: input, shape index: {}]   ;;  %s3321_s5 = inlined_call_operand.vmem [shape: f32[128,128], index: 5, kind: input, shape index: {}]   ;;  %s3322_s6 = inlined_call_operand.vmem [shape: f32[1,128], index: 6, kind: input, shape index: {}]   ;;  %s3323_s7 = inlined_call_operand.vmem [shape: f32[1,128], index: 7, kind: input, shape index: {}]   ;;  %s3324_s8 = inlined_call_operand.vmem [shape: f32[1,128], index: 8, kind: input, shape index: {}]   ;;  %s3325_s9 = inlined_call_operand.vmem [shape: f32[128,512], index: 9, kind: input, shape index: {}]   ;;  %s3326_s10 = inlined_call_operand.vmem [shape: f32[1,512], index: 10, kind: input, shape index: {}]   ;;  %s3327_s11 = inlined_call_operand.vmem [shape: f32[512,128], index: 11, kind: input, shape index: {}]   ;;  %s3328_s12 = inlined_call_operand.hbm [shape: f32[1,128], index: 12, kind: input, shape index: {}]   ;;  %s3329_s13 = inlined_call_operand.vmem [shape: f32[128,64], index: 13, kind: input, shape index: {}]   ;;  %s3330_s14 = inlined_call_operand.hbm [shape: f32[1,64], index: 14, kind: input, shape index: {}]   ;;  %s3331_s15 = inlined_call_operand.vmem [shape: f32[64,128], index: 15, kind: input, shape index: {}]   ;;  %s3332_s16 = inlined_call_operand.hbm [shape: f32[1,128], index: 16, kind: input, shape index: {}]   ;;  %s3333_s17 = inlined_call_operand.vmem [shape: f32[2,8,128], index: 17, kind: output, shape index: {}, may-alias: {0,17}]  }
   0x1   :  { %3335 = sst [smem:[#allocation9_spill]] %s3316_s0 }
   0x2   :  { %3336 = sst [smem:[#allocation10_spill]] %s3317_s1 }
   0x3   :  { %22 = vsyncpa [#allocation3], 0 }
   0x4   :  { %23 = vsyncpa [#allocation5], 0  ;;  %s2357_s24 = smov [#allocation4]   ;;  %s2358_s26 = smov [#allocation2]  }
   0x5   :  { %s66_s25 = sshll.u32 %s2357_s24, 4  ;;  %s54_s27 = sshll.u32 %s2358_s26, 4  ;;  %s67_s25 = int_to_ptr.vmem [resolvable:$true] %s66_s25  ;;  %s55_s27 = int_to_ptr.vmem [resolvable:$true] %s54_s27 }
   0x6   :  { %s2301_s28 = scalar_lea.vmem %s67_s25, 16  ;;  %s2305_s29 = scalar_lea.vmem %s67_s25, 32 }
   0x7   :  { %p2302_p0 = scmp.ne.s32.totalorder %s67_s25, %s2301_s28  ;;  %p2306_p1 = scmp.lt.s32.totalorder %s67_s25, %s67_s25 }
   0x8   :  { %p2307_p2 = scmp.lt.s32.totalorder %s2305_s29, %s2301_s28 }
   0xa   :  { %p2308_p3 = por %p2307_p2, %p2306_p1 }
   0xc   :  { %p2309_p4 = pnand %p2308_p3, %p2302_p0 }
   0xe   :  { %2312 = shalt.err (!%p2309_p4)
}
   0xf   :  { %69 = dma.hbm_to_vmem [thread:$0]  %s3330_s14, 16, %s67_s25, [#allocation5]  }
  0x10   :  { %s2321_s18 = scalar_lea.vmem %s55_s27, 16  ;;  %s2325_s19 = scalar_lea.vmem %s55_s27, 32 }
  0x11   :  { %p2322_p5 = scmp.ne.s32.totalorder %s55_s27, %s2321_s18  ;;  %p2326_p6 = scmp.lt.s32.totalorder %s55_s27, %s55_s27 }
  0x12   :  { %p2327_p7 = scmp.lt.s32.totalorder %s2325_s19, %s2321_s18 }
  0x14   :  { %p2328_p8 = por %p2327_p7, %p2326_p6 }
  0x16   :  { %p2329_p9 = pnand %p2328_p8, %p2322_p5 }
  0x18   :  { %2332 = shalt.err (!%p2329_p9)
}
  0x19   :  { %57 = dma.hbm_to_vmem [thread:$0]  %s3328_s12, 16, %s55_s27, [#allocation3]  }
  0x1a   :  { %s2359_s21 = smov [#allocation6]  }
  0x1b   :  { %s78_s22 = sshll.u32 %s2359_s21, 4  ;;  %s79_s22 = int_to_ptr.vmem [resolvable:$true] %s78_s22 }
  0x1c   :  { %s2341_s23 = scalar_lea.vmem %s79_s22, 16  ;;  %s2345_s24 = scalar_lea.vmem %s79_s22, 32 }
  0x1d   :  { %p2342_p10 = scmp.ne.s32.totalorder %s79_s22, %s2341_s23  ;;  %p2346_p11 = scmp.lt.s32.totalorder %s79_s22, %s79_s22 }
  0x1e   :  { %p2347_p12 = scmp.lt.s32.totalorder %s2345_s24, %s2341_s23 }
  0x20   :  { %p2348_p13 = por %p2347_p12, %p2346_p11 }
  0x22   :  { %p2349_p0 = pnand %p2348_p13, %p2342_p10 }
  0x24   :  { %2352 = shalt.err (!%p2349_p0)
}
  0x25   :  { %81 = dma.hbm_to_vmem [thread:$0]  %s3332_s16, 16, %s79_s22, [#allocation5]  }
  0x26   :  { %2353 = dma.done.wait [#allocation3], 16  }
  0x27   :  { %2354 = vsyncadd [#allocation3], 4294967280 }
  0x28   :  { %2355 = dma.done.wait [#allocation5], 32  }
  0x29   :  { %2356 = vsyncadd [#allocation5], 4294967264  ;;  %s3337_s27 = sld [smem:[#allocation9_spill]]  ;;  %v180_v2 = vld [vmem:[%s3319_s3 + $0x170] sm:$0xff]  ;;  %v179_v3 = vld [vmem:[%s3319_s3 + $0x168] sm:$0xff]  ;;  %v2360_v56 = vmov 0.0  }
  0x2a   :  { %v177_v4 = vld [vmem:[%s3319_s3 + $0x158] sm:$0xff]  ;;  %199 = vmatprep.subr.mxu0 %v180_v2  ;;  %v176_v5 = vld [vmem:[%s3319_s3 + $0x150] sm:$0xff]  ;;  %v174_v7 = vld [vmem:[%s3319_s3 + $0x140] sm:$0xff]  ;;  %263 = vmatprep.mubr.f32.mxu0 %v2360_v56  ;;  %vm2361_vm0 = vmmov 0   ;;  %vm351_vm1 = vcmask 523264   ;;  %s2362_s14 = smov 64  }
  0x2b   :  { %v181_v6 = vld [vmem:[%s3319_s3 + $0x178] sm:$0xff]  ;;  %200 = vmatpush1.msra.mxu0 %v179_v3  ;;  %v178_v8 = vld [vmem:[%s3319_s3 + $0x160] sm:$0xff]  ;;  %v171_v10 = vld [vmem:[%s3319_s3 + $0x128] sm:$0xff]  ;;  %vm429_vm2 = vcmask 64512  }
  0x2c   :  { %2078 = vmatprep.subr.mxu1 %v181_v6  ;;  %201 = vmatprep.subr.mxu0 %v177_v4  ;;  %v173_v9 = vld [vmem:[%s3319_s3 + $0x138] sm:$0xff]  ;;  %v170_v11 = vld [vmem:[%s3319_s3 + $0x120] sm:$0xff]  ;;  %v168_v20 = vld [vmem:[%s3319_s3 + $0x110] sm:$0xff] }
  0x2d   :  { %2079 = vmatpush3.msra.mxu1 %v181_v6  ;;  %202 = vmatpush1.msra.mxu0 %v176_v5  ;;  %v175_v21 = vld [vmem:[%s3319_s3 + $0x148] sm:$0xff]  ;;  %v165_v23 = vld [vmem:[%s3319_s3 + $0xf8] sm:$0xff]  ;;  %v172_v24 = vld [vmem:[%s3319_s3 + $0x130] sm:$0xff] }
  0x2e   :  { %2080 = vmatprep.subr.mxu1 %v178_v8  ;;  %203 = vmatprep.subr.mxu0 %v174_v7  ;;  %v167_v22 = vld [vmem:[%s3319_s3 + $0x108] sm:$0xff]  ;;  %v164_v25 = vld [vmem:[%s3319_s3 + $0xf0] sm:$0xff]  ;;  %v162_v26 = vld [vmem:[%s3319_s3 + $0xe0] sm:$0xff] }
  0x2f   :  { %v2465_v0 = vld [vmem:[%s3337_s27] sm:$0xff]  ;;  %v2471_v1 = vld [vmem:[%s3337_s27 + $0x8] sm:$0xff]  ;;  %2081 = vmatpush3.msra.mxu1 %v178_v8  ;;  %204 = vmatpush1.msra.mxu0 %v173_v9  ;;  %v169_v27 = vld [vmem:[%s3319_s3 + $0x118] sm:$0xff] }
  0x30   :  { %95 = vadd.xlane.f32.xlu0 %v2465_v0  ;;  %205 = vmatprep.subr.mxu0 %v171_v10  ;;  %v161_v28 = vld [vmem:[%s3319_s3 + $0xd8] sm:$0xff]  ;;  %v159_v29 = vld [vmem:[%s3319_s3 + $0xc8] sm:$0xff]  ;;  %v166_v30 = vld [vmem:[%s3319_s3 + $0x100] sm:$0xff] }
  0x31   :  { %206 = vmatpush1.msra.mxu0 %v170_v11  ;;  %2082 = vmatprep.subr.mxu1 %v175_v21  ;;  %v158_v31 = vld [vmem:[%s3319_s3 + $0xc0] sm:$0xff]  ;;  %v156_v32 = vld [vmem:[%s3319_s3 + $0xb0] sm:$0xff]  ;;  %v163_v33 = vld [vmem:[%s3319_s3 + $0xe8] sm:$0xff] }
  0x32   :  { %207 = vmatprep.subr.mxu0 %v168_v20  ;;  %2083 = vmatpush3.msra.mxu1 %v175_v21  ;;  %v155_v34 = vld [vmem:[%s3319_s3 + $0xa8] sm:$0xff]  ;;  %v153_v35 = vld [vmem:[%s3319_s3 + $0x98] sm:$0xff]  ;;  %v160_v36 = vld [vmem:[%s3319_s3 + $0xd0] sm:$0xff] }
  0x33   :  { %208 = vmatpush1.msra.mxu0 %v167_v22  ;;  %2084 = vmatprep.subr.mxu1 %v172_v24  ;;  %v152_v37 = vld [vmem:[%s3319_s3 + $0x90] sm:$0xff]  ;;  %v150_v38 = vld [vmem:[%s3319_s3 + $0x80] sm:$0xff]  ;;  %v157_v39 = vld [vmem:[%s3319_s3 + $0xb8] sm:$0xff] }
  0x34   :  { %97 = vadd.xlane.f32.xlu0 %v2471_v1  ;;  %209 = vmatprep.subr.mxu0 %v165_v23  ;;  %v149_v40 = vld [vmem:[%s3319_s3 + $0x78] sm:$0xff]  ;;  %v147_v41 = vld [vmem:[%s3319_s3 + $0x68] sm:$0xff]  ;;  %v154_v42 = vld [vmem:[%s3319_s3 + $0xa0] sm:$0xff] }
  0x35   :  { %210 = vmatpush1.msra.mxu0 %v164_v25  ;;  %2085 = vmatpush3.msra.mxu1 %v172_v24  ;;  %v146_v43 = vld [vmem:[%s3319_s3 + $0x60] sm:$0xff]  ;;  %v144_v44 = vld [vmem:[%s3319_s3 + $0x50] sm:$0xff]  ;;  %v151_v45 = vld [vmem:[%s3319_s3 + $0x88] sm:$0xff] }
  0x36   :  { %211 = vmatprep.subr.mxu0 %v162_v26  ;;  %2086 = vmatprep.subr.mxu1 %v169_v27  ;;  %v143_v46 = vld [vmem:[%s3319_s3 + $0x48] sm:$0xff]  ;;  %v141_v47 = vld [vmem:[%s3319_s3 + $0x38] sm:$0xff]  ;;  %v148_v48 = vld [vmem:[%s3319_s3 + $0x70] sm:$0xff] }
  0x37   :  { %212 = vmatpush1.msra.mxu0 %v161_v28  ;;  %2087 = vmatpush3.msra.mxu1 %v169_v27  ;;  %v140_v49 = vld [vmem:[%s3319_s3 + $0x30] sm:$0xff]  ;;  %v138_v50 = vld [vmem:[%s3319_s3 + $0x20] sm:$0xff]  ;;  %v145_v51 = vld [vmem:[%s3319_s3 + $0x58] sm:$0xff] }
  0x38   :  { %213 = vmatprep.subr.mxu0 %v159_v29  ;;  %2088 = vmatprep.subr.mxu1 %v166_v30  ;;  %v137_v52 = vld [vmem:[%s3319_s3 + $0x18] sm:$0xff]  ;;  %v135_v53 = vld [vmem:[%s3319_s3 + $0x8] sm:$0xff]  ;;  %v142_v54 = vld [vmem:[%s3319_s3 + $0x40] sm:$0xff] }
  0x39   :  { %214 = vmatpush1.msra.mxu0 %v158_v31  ;;  %2089 = vmatpush3.msra.mxu1 %v166_v30  ;;  %v134_v55 = vld [vmem:[%s3319_s3] sm:$0xff]  ;;  %v139_v57 = vld [vmem:[%s3319_s3 + $0x28] sm:$0xff]  ;;  %v136_v58 = vld [vmem:[%s3319_s3 + $0x10] sm:$0xff]  ;;  %s3338_s3 = sld [smem:[#allocation10_spill]] }
  0x3a   :  { %215 = vmatprep.subr.mxu0 %v156_v32  ;;  %2090 = vmatprep.subr.mxu1 %v163_v33  ;;  %v1901_v6 = vld [vmem:[%s3318_s2] ss:$0 sm:$0xff] }
  0x3b   :  { %216 = vmatpush1.msra.mxu0 %v155_v34  ;;  %2091 = vmatpush3.msra.mxu1 %v163_v33 }
  0x3c   :  { %217 = vmatprep.subr.mxu0 %v153_v35  ;;  %2092 = vmatprep.subr.mxu1 %v160_v36 }
  0x3d   :  { %218 = vmatpush1.msra.mxu0 %v152_v37  ;;  %2093 = vmatpush3.msra.mxu1 %v160_v36 }
  0x3e   :  { %219 = vmatprep.subr.mxu0 %v150_v38  ;;  %2094 = vmatprep.subr.mxu1 %v157_v39 }
  0x3f   :  { %220 = vmatpush1.msra.mxu0 %v149_v40  ;;  %2095 = vmatpush3.msra.mxu1 %v157_v39  ;;  %v1900_v4 = vld [vmem:[%s3338_s3] ss:$0 sm:$0xff] }
  0x40   :  { %221 = vmatprep.subr.mxu0 %v147_v41  ;;  %2096 = vmatprep.subr.mxu1 %v154_v42 }
  0x41   :  { %222 = vmatpush1.msra.mxu0 %v146_v43  ;;  %2097 = vmatpush3.msra.mxu1 %v154_v42 }
  0x42   :  { %223 = vmatprep.subr.mxu0 %v144_v44  ;;  %2098 = vmatprep.subr.mxu1 %v151_v45 }
  0x43   :  { %224 = vmatpush1.msra.mxu0 %v143_v46  ;;  %2099 = vmatpush3.msra.mxu1 %v151_v45 }
  0x44   :  { %225 = vmatprep.subr.mxu0 %v141_v47  ;;  %2100 = vmatprep.subr.mxu1 %v148_v48 }
  0x45   :  { %226 = vmatpush1.msra.mxu0 %v140_v49  ;;  %2101 = vmatpush3.msra.mxu1 %v148_v48 }
  0x46   :  { %227 = vmatprep.subr.mxu0 %v138_v50  ;;  %2102 = vmatprep.subr.mxu1 %v145_v51 }
  0x47   :  { %228 = vmatpush1.msra.mxu0 %v137_v52  ;;  %2103 = vmatpush3.msra.mxu1 %v145_v51 }
  0x48   :  { %229 = vmatprep.subr.mxu0 %v135_v53  ;;  %2104 = vmatprep.subr.mxu1 %v142_v54 }
  0x49   :  { %230 = vmatpush1.msra.mxu0 %v134_v55  ;;  %2105 = vmatpush3.msra.mxu1 %v142_v54 }
  0x4a   :  { %2113 = vmatprep.subr.mxu0 %v2360_v56  ;;  %2106 = vmatprep.subr.mxu1 %v139_v57 }
  0x4b   :  { %2107 = vmatpush3.msra.mxu1 %v139_v57 }
  0x4c   :  { %2108 = vmatprep.subr.mxu1 %v136_v58 }
  0x4d   :  { %2109 = vmatpush3.msra.mxu1 %v136_v58 }
  0x4e   :  { %2123 = vmatprep.subr.mxu1 %v2360_v56 }
  0xb9   :  { %v96_v12 = vpop.xlane.xlu0 %95 }
  0xba   :  { %v100_v13 = vmul.f32 0.0078125, %v96_v12 }
  0xbc   :  { %v2505_v14 = vsub.f32 %v2465_v0, %v100_v13  ;;  %v184_v13 = vlaneseq }
  0xbd   :  { %v98_v15 = vpop.xlane.xlu0 %97 }
  0xbe   :  { %v101_v16 = vmul.f32 0.0078125, %v98_v15  ;;  %v104_v17 = vmul.f32 %v2505_v14, %v2505_v14 }
  0xc0   :  { %v2510_v18 = vsub.f32 %v2471_v1, %v101_v16  ;;  %106 = vadd.xlane.f32.xlu1 %v104_v17  ;;  %v182_v16 = vld [vmem:[%s3320_s4] sm:$0x7] }
  0xc2   :  { %v105_v19 = vmul.f32 %v2510_v18, %v2510_v18 }
  0xc4   :  { %108 = vadd.xlane.f32.xlu1 %v105_v19 }
 0x149   :  { %v107_v59 = vpop.xlane.xlu1 %106 }
 0x14a   :  { %v110_v60 = vmul.f32 0.0078125, %v107_v59 }
 0x14c   :  { %v112_v61 = vadd.f32 1e-05, %v110_v60 }
 0x14d   :  { %v109_v62 = vpop.xlane.xlu1 %108 }
 0x14e   :  { %2253 = vrsqrt.f32 %v112_v61  ;;  %v111_v63 = vmul.f32 0.0078125, %v109_v62 }
 0x150   :  { %v113_v2 = vadd.f32 1e-05, %v111_v63 }
 0x152   :  { %2255 = vrsqrt.f32 %v113_v2 }
 0x15b   :  { %v2254_v3 = vpop.eup %2253 }
 0x15c   :  { %v116_v5 = vmul.f32 %v2254_v3, %v2505_v14  ;;  %v2644_v14 = vshrl.u32 %v184_v13, 7 }
 0x15e   :  { %v124_v7 = vmul.f32 %v1900_v4, %v116_v5  ;;  %v186_v15 = vsub.s32 0, %v2644_v14  ;;  %v190_v17 = vsub.s32 1, %v2644_v14  ;;  %v194_v19 = vsub.s32 2, %v2644_v14 }
 0x15f   :  { %v2256_v8 = vpop.eup %2255 }
 0x160   :  { %v132_v9 = vadd.f32 %v1901_v6, %v124_v7  ;;  %v117_v10 = vmul.f32 %v2256_v8, %v2510_v18  ;;  %v187_v18 = vrot.slane %v182_v16, %v186_v15  ;;  %v191_v20 = vrot.slane %v182_v16, %v190_v17 }
 0x161   :  { %v195_v23 = vrot.slane %v182_v16, %v194_v19 }
 0x162   :  { %264 = vmatmul.mubr.f32.vlgmr.msra.gmra.mxu0 %v132_v9  ;;  %2110 = vmatprep.mubr.f32.mxu1 %v132_v9  ;;  %v125_v11 = vmul.f32 %v1900_v4, %v117_v10 }
 0x163   :  { %269 = vmatprep.mubr.f32.mxu0 %v2360_v56 }
 0x164   :  { %v133_v12 = vadd.f32 %v1901_v6, %v125_v11 }
 0x166   :  { %270 = vmatmul.mubr.f32.gmra.mxu0 %v133_v12  ;;  %2111 = vmatmul.mubr.f32.vlgmr.msra.gmra.mxu1 %v133_v12 }
 0x167   :  { %2115 = vmatprep.mubr.msk.f32.mxu0 %vm2361_vm0, %v2360_v56  ;;  %2125 = vmatprep.mubr.msk.f32.mxu1 %vm2361_vm0, %v2360_v56 }
 0x222   :  { %v265_v21 = vpop.f32.mrf.mxu0 }
 0x223   :  { %v266_v22 = vadd.f32 %v265_v21, %v187_v18 }
 0x224   :  { %v267_v24 = vpop.f32.mrf.mxu0 }
 0x225   :  { %v268_v25 = vadd.f32 %v267_v24, %v191_v20  ;;  %514 = vrot.lane.b32.xlu1 %v266_v22, %s2362_s14 }
 0x226   :  { %v271_v26 = vpop.f32.mrf.mxu0  ;;  %v2112_v27 = vpop.f32.mrf.mxu1 }
 0x227   :  { %v2659_v28 = vadd.f32 %v2112_v27, %v195_v23  ;;  %516 = vrot.lane.b32.xlu0 %v268_v25, %s2362_s14  ;;  %2114 = vmatpush3.xpose.msk.msra.mxu0 %vm351_vm1, %v268_v25  ;;  %v272_v33 = vadd.f32 %v271_v26, %v187_v18 }
 0x228   :  { %v273_v29 = vpop.f32.mrf.mxu0  ;;  %v342_v30 = vpop.f32.mrf.mxu1  ;;  %2118 = vmatprep.subr.mxu0 %v2360_v56 }
 0x229   :  { %v274_v31 = vadd.f32 %v273_v29, %v191_v20  ;;  %v2664_v32 = vadd.f32 %v342_v30, %v195_v23 }
 0x22a   :  { %2116 = vmatmul.mubr.msk.f32.vlgmr.msra.gmra.mxu0 %vm351_vm1, %v266_v22 }
 0x22b   :  { %2119 = vmatpush3.msra.mxu0 %v2664_v32  ;;  %849 = vrot.lane.b32.xlu1 %v274_v31, %s2362_s14 }
 0x22c   :  { %2120 = vmatprep.mubr.msk.f32.mxu0 %vm2361_vm0, %v2360_v56  ;;  %2128 = vmatprep.subr.mxu0 %v2360_v56 }
 0x22f   :  { %847 = vrot.lane.b32.xlu1 %v272_v33, %s2362_s14 }
 0x297   :  { %v515_v35 = vpop.permute.xlu1 %514 }
 0x299   :  { %v517_v34 = vpop.permute.xlu0 %516 }
 0x29a   :  { %2124 = vmatpush3.xpose.msk.msra.mxu1 %vm351_vm1, %v517_v34  ;;  %v1032_v34 = vld [vmem:[%s3321_s5 + $0x68] sm:$0xff] }
 0x29b   :  { %2133 = vmatprep.subr.mxu1 %v2360_v56 }
 0x29d   :  { %2126 = vmatmul.mubr.msk.f32.vlgmr.msra.gmra.mxu1 %vm351_vm1, %v515_v35  ;;  %v850_v36 = vpop.permute.xlu1 %849 }
 0x29e   :  { %2134 = vmatpush3.xpose.msk.msra.mxu1 %vm351_vm1, %v274_v31  ;;  %2135 = vmatprep.mubr.msk.f32.mxu1 %vm2361_vm0, %v2360_v56 }
 0x29f   :  { %2143 = vmatprep.subr.mxu1 %v2360_v56 }
 0x2a1   :  { %2136 = vmatmul.mubr.msk.f32.vlgmr.msra.gmra.mxu1 %vm351_vm1, %v272_v33  ;;  %v848_v37 = vpop.permute.xlu1 %847 }
 0x2a2   :  { %2144 = vmatpush3.xpose.msk.msra.mxu1 %vm351_vm1, %v850_v36  ;;  %2145 = vmatprep.mubr.msk.f32.mxu1 %vm2361_vm0, %v2360_v56  ;;  %v1031_v36 = vld [vmem:[%s3321_s5 + $0x60] sm:$0xff] }
 0x2a5   :  { %2146 = vmatmul.mubr.msk.f32.vlgmr.msra.gmra.mxu1 %vm351_vm1, %v848_v37  ;;  %v1030_v37 = vld [vmem:[%s3321_s5 + $0x58] sm:$0xff] }
 0x2ea   :  { %v424_v38 = vpop.f32.mrf.mxu0 }
 0x2eb   :  { %v428_v39 = vmul.f32 0.125, %v424_v38  ;;  %v1029_v38 = vld [vmem:[%s3321_s5 + $0x50] sm:$0xff] }
 0x2ec   :  { %v2117_v40 = vpop.f32.mrf.mxu0 }
 0x2ed   :  { %v430_v41 = vsel %vm429_vm2, %v428_v39, -inf  ;;  %v1027_v40 = vld [vmem:[%s3321_s5 + $0x40] sm:$0xff] }
 0x2ee   :  { %431 = vmax.xlane.f32.xlu0 %v430_v41  ;;  %v1026_v41 = vld [vmem:[%s3321_s5 + $0x38] sm:$0xff] }
 0x35d   :  { %v588_v42 = vpop.f32.mrf.mxu1 }
 0x35e   :  { %v592_v43 = vmul.f32 0.125, %v588_v42  ;;  %v1025_v42 = vld [vmem:[%s3321_s5 + $0x30] sm:$0xff] }
 0x35f   :  { %v2127_v44 = vpop.f32.mrf.mxu1 }
 0x360   :  { %v593_v45 = vsel %vm429_vm2, %v592_v43, -inf  ;;  %v1023_v44 = vld [vmem:[%s3321_s5 + $0x20] sm:$0xff] }
 0x361   :  { %594 = vmax.xlane.f32.xlu1 %v593_v45  ;;  %v758_v46 = vpop.f32.mrf.mxu1  ;;  %v1022_v45 = vld [vmem:[%s3321_s5 + $0x18] sm:$0xff] }
 0x362   :  { %v762_v47 = vmul.f32 0.125, %v758_v46  ;;  %v1021_v46 = vld [vmem:[%s3321_s5 + $0x10] sm:$0xff] }
 0x363   :  { %v2137_v48 = vpop.f32.mrf.mxu1 }
 0x364   :  { %v763_v49 = vsel %vm429_vm2, %v762_v47, -inf  ;;  %v1019_v48 = vld [vmem:[%s3321_s5] sm:$0xff] }
 0x365   :  { %764 = vmax.xlane.f32.xlu0 %v763_v49  ;;  %v921_v50 = vpop.f32.mrf.mxu1 }
 0x366   :  { %v925_v51 = vmul.f32 0.125, %v921_v50 }
 0x367   :  { %v2147_v52 = vpop.f32.mrf.mxu1 }
 0x368   :  { %v926_v53 = vsel %vm429_vm2, %v925_v51, -inf }
 0x369   :  { %927 = vmax.xlane.f32.xlu0 %v926_v53 }
 0x377   :  { %v432_v54 = vpop.xlane.xlu0 %431 }
 0x378   :  { %v433_v55 = vsub.f32 %v428_v39, %v432_v54  ;;  %v1028_v39 = vld [vmem:[%s3321_s5 + $0x48] sm:$0xff] }
 0x37a   :  { %v434_v57 = vmul.f32 1.442695, %v433_v55 }
 0x37c   :  { %2257 = vpow2.f32 %v434_v57 }
 0x389   :  { %v2258_v58 = vpop.eup %2257 }
 0x38a   :  { %v436_v59 = vsel %vm429_vm2, %v2258_v58, 0.0 }
 0x38b   :  { %437 = vadd.xlane.f32.xlu0 %v436_v59 }
 0x3ea   :  { %v595_v60 = vpop.xlane.xlu1 %594 }
 0x3eb   :  { %v596_v61 = vsub.f32 %v592_v43, %v595_v60  ;;  %v1024_v43 = vld [vmem:[%s3321_s5 + $0x28] sm:$0xff] }
 0x3ed   :  { %v597_v62 = vmul.f32 1.442695, %v596_v61 }
 0x3ee   :  { %v765_v63 = vpop.xlane.xlu0 %764 }
 0x3ef   :  { %2259 = vpow2.f32 %v597_v62  ;;  %v766_v2 = vsub.f32 %v762_v47, %v765_v63  ;;  %v1020_v47 = vld [vmem:[%s3321_s5 + $0x8] sm:$0xff]  ;;  %v1914_v62 = vld [vmem:[%s3322_s6] ss:$0 sm:$0xff] }
 0x3f1   :  { %v767_v3 = vmul.f32 1.442695, %v766_v2 }
 0x3f2   :  { %v928_v4 = vpop.xlane.xlu0 %927 }
 0x3f3   :  { %2261 = vpow2.f32 %v767_v3  ;;  %v929_v5 = vsub.f32 %v925_v51, %v928_v4 }
 0x3f5   :  { %v930_v6 = vmul.f32 1.442695, %v929_v5 }
 0x3f7   :  { %2263 = vpow2.f32 %v930_v6 }
 0x3fc   :  { %v2260_v7 = vpop.eup %2259 }
 0x3fd   :  { %v599_v8 = vsel %vm429_vm2, %v2260_v7, 0.0 }
 0x3fe   :  { %600 = vadd.xlane.f32.xlu1 %v599_v8  ;;  %v1222_v8 = vld [vmem:[%s3325_s9 + $0x1f8] sm:$0xff] }
 0x400   :  { %v2262_v9 = vpop.eup %2261 }
 0x401   :  { %v769_v10 = vsel %vm429_vm2, %v2262_v9, 0.0 }
 0x402   :  { %770 = vadd.xlane.f32.xlu0 %v769_v10  ;;  %v1218_v10 = vld [vmem:[%s3325_s9 + $0x1d8] sm:$0xff] }
 0x404   :  { %v2264_v11 = vpop.eup %2263 }
 0x405   :  { %v932_v12 = vsel %vm429_vm2, %v2264_v11, 0.0 }
 0x406   :  { %933 = vadd.xlane.f32.xlu1 %v932_v12  ;;  %v1217_v12 = vld [vmem:[%s3325_s9 + $0x1d0] sm:$0xff] }
 0x414   :  { %v438_v13 = vpop.xlane.xlu0 %437 }
 0x415   :  { %2265 = vrcp.f32 %v438_v13  ;;  %v1212_v13 = vld [vmem:[%s3325_s9 + $0x1a8] sm:$0xff] }
 0x417   :  { %938 = vrot.lane.b32.xlu1 %v2659_v28, %s2362_s14 }
 0x418   :  { %605 = vrot.lane.b32.xlu0 %v2664_v32, %s2362_s14  ;;  %v1033_v32 = vld [vmem:[%s3321_s5 + $0x70] sm:$0xff] }
 0x422   :  { %v2266_v16 = vpop.eup %2265 }
 0x423   :  { %v440_v18 = vmul.f32 %v2266_v16, %v2258_v58  ;;  %v1214_v16 = vld [vmem:[%s3325_s9 + $0x1b8] sm:$0xff] }
 0x425   :  { %2121 = vmatmul.mubr.msk.f32.vlgmr.msra.gmra.mxu0 %vm429_vm2, %v440_v18  ;;  %v1211_v18 = vld [vmem:[%s3325_s9 + $0x1a0] sm:$0xff] }
 0x426   :  { %2130 = vmatprep.mubr.msk.f32.mxu0 %vm2361_vm0, %v2360_v56 }
 0x487   :  { %v601_v20 = vpop.xlane.xlu1 %600 }
 0x488   :  { %2267 = vrcp.f32 %v601_v20  ;;  %v1213_v20 = vld [vmem:[%s3325_s9 + $0x1b0] sm:$0xff] }
 0x48b   :  { %v771_v21 = vpop.xlane.xlu0 %770 }
 0x48c   :  { %2269 = vrcp.f32 %v771_v21  ;;  %v1208_v21 = vld [vmem:[%s3325_s9 + $0x188] sm:$0xff] }
 0x48f   :  { %v934_v22 = vpop.xlane.xlu1 %933  ;;  %v606_v23 = vpop.permute.xlu0 %605 }
 0x490   :  { %2271 = vrcp.f32 %v934_v22  ;;  %2129 = vmatpush3.msra.mxu0 %v606_v23  ;;  %v1210_v22 = vld [vmem:[%s3325_s9 + $0x198] sm:$0xff]  ;;  %v1207_v23 = vld [vmem:[%s3325_s9 + $0x180] sm:$0xff] }
 0x491   :  { %2138 = vmatprep.subr.mxu0 %v2360_v56 }
 0x493   :  { %v939_v29 = vpop.permute.xlu1 %938 }
 0x495   :  { %v2268_v24 = vpop.eup %2267 }
 0x496   :  { %v603_v25 = vmul.f32 %v2268_v24, %v2260_v7  ;;  %v1220_v7 = vld [vmem:[%s3325_s9 + $0x1e8] sm:$0xff]  ;;  %v1209_v24 = vld [vmem:[%s3325_s9 + $0x190] sm:$0xff] }
 0x498   :  { %2131 = vmatmul.mubr.msk.f32.vlgmr.msra.gmra.mxu0 %vm429_vm2, %v603_v25 }
 0x499   :  { %v2270_v26 = vpop.eup %2269  ;;  %2139 = vmatpush3.msra.mxu0 %v2659_v28  ;;  %2140 = vmatprep.mubr.msk.f32.mxu0 %vm2361_vm0, %v2360_v56  ;;  %v1034_v28 = vld [vmem:[%s3321_s5 + $0x78] sm:$0xff] }
 0x49a   :  { %2148 = vmatprep.subr.mxu0 %v2360_v56  ;;  %v773_v27 = vmul.f32 %v2270_v26, %v2262_v9  ;;  %2153 = vmatprep.subr.mxu1 %v1034_v28  ;;  %v1216_v9 = vld [vmem:[%s3325_s9 + $0x1c8] sm:$0xff] }
 0x49b   :  { %2154 = vmatpush3.msra.mxu1 %v1034_v28 }
 0x49c   :  { %2141 = vmatmul.mubr.msk.f32.vlgmr.msra.gmra.mxu0 %vm429_vm2, %v773_v27  ;;  %2155 = vmatprep.subr.mxu1 %v1033_v32 }
 0x49d   :  { %v2272_v30 = vpop.eup %2271  ;;  %2149 = vmatpush3.msra.mxu0 %v939_v29  ;;  %2150 = vmatprep.mubr.msk.f32.mxu0 %vm2361_vm0, %v2360_v56 }
 0x49e   :  { %v936_v31 = vmul.f32 %v2272_v30, %v2264_v11  ;;  %2156 = vmatpush3.msra.mxu1 %v1033_v32  ;;  %1245 = vmatprep.subr.mxu0 %v1220_v7  ;;  %v1215_v11 = vld [vmem:[%s3325_s9 + $0x1c0] sm:$0xff]  ;;  %v1174_v7 = vld [vmem:[%s3325_s9 + $0x78] sm:$0xff] }
 0x49f   :  { %2157 = vmatprep.subr.mxu1 %v1032_v34 }
 0x4a0   :  { %2151 = vmatmul.mubr.msk.f32.vlgmr.msra.gmra.mxu0 %vm429_vm2, %v936_v31  ;;  %2158 = vmatpush3.msra.mxu1 %v1032_v34  ;;  %v1206_v34 = vld [vmem:[%s3325_s9 + $0x178] sm:$0xff] }
 0x4a1   :  { %1309 = vmatprep.mubr.f32.mxu0 %v2360_v56  ;;  %2159 = vmatprep.subr.mxu1 %v1031_v36 }
 0x4a2   :  { %2160 = vmatpush3.msra.mxu1 %v1031_v36  ;;  %v1205_v36 = vld [vmem:[%s3325_s9 + $0x170] sm:$0xff] }
 0x4a3   :  { %2161 = vmatprep.subr.mxu1 %v1030_v37 }
 0x4a4   :  { %2162 = vmatpush3.msra.mxu1 %v1030_v37  ;;  %v1200_v37 = vld [vmem:[%s3325_s9 + $0x148] sm:$0xff] }
 0x4a5   :  { %2163 = vmatprep.subr.mxu1 %v1029_v38 }
 0x4a6   :  { %2164 = vmatpush3.msra.mxu1 %v1029_v38  ;;  %v1202_v38 = vld [vmem:[%s3325_s9 + $0x158] sm:$0xff] }
 0x4a7   :  { %2165 = vmatprep.subr.mxu1 %v1028_v39 }
 0x4a8   :  { %2166 = vmatpush3.msra.mxu1 %v1028_v39  ;;  %v1199_v39 = vld [vmem:[%s3325_s9 + $0x140] sm:$0xff] }
 0x4a9   :  { %2167 = vmatprep.subr.mxu1 %v1027_v40 }
 0x4aa   :  { %2168 = vmatpush3.msra.mxu1 %v1027_v40  ;;  %v1201_v40 = vld [vmem:[%s3325_s9 + $0x150] sm:$0xff] }
 0x4ab   :  { %2169 = vmatprep.subr.mxu1 %v1026_v41 }
 0x4ac   :  { %2170 = vmatpush3.msra.mxu1 %v1026_v41  ;;  %v1196_v41 = vld [vmem:[%s3325_s9 + $0x128] sm:$0xff] }
 0x4ad   :  { %2171 = vmatprep.subr.mxu1 %v1025_v42 }
 0x4ae   :  { %2172 = vmatpush3.msra.mxu1 %v1025_v42  ;;  %v1198_v42 = vld [vmem:[%s3325_s9 + $0x138] sm:$0xff] }
 0x4af   :  { %2173 = vmatprep.subr.mxu1 %v1024_v43 }
 0x4b0   :  { %2174 = vmatpush3.msra.mxu1 %v1024_v43  ;;  %v1195_v43 = vld [vmem:[%s3325_s9 + $0x120] sm:$0xff] }
 0x4b1   :  { %2175 = vmatprep.subr.mxu1 %v1023_v44 }
 0x4b2   :  { %2176 = vmatpush3.msra.mxu1 %v1023_v44  ;;  %v1197_v44 = vld [vmem:[%s3325_s9 + $0x130] sm:$0xff] }
 0x4b3   :  { %2177 = vmatprep.subr.mxu1 %v1022_v45 }
 0x4b4   :  { %2178 = vmatpush3.msra.mxu1 %v1022_v45  ;;  %v1192_v45 = vld [vmem:[%s3325_s9 + $0x108] sm:$0xff] }
 0x4b5   :  { %2179 = vmatprep.subr.mxu1 %v1021_v46 }
 0x4b6   :  { %2180 = vmatpush3.msra.mxu1 %v1021_v46  ;;  %v1194_v46 = vld [vmem:[%s3325_s9 + $0x118] sm:$0xff] }
 0x4b7   :  { %2181 = vmatprep.subr.mxu1 %v1020_v47 }
 0x4b8   :  { %2182 = vmatpush3.msra.mxu1 %v1020_v47  ;;  %v1191_v47 = vld [vmem:[%s3325_s9 + $0x100] sm:$0xff] }
 0x4b9   :  { %2183 = vmatprep.subr.mxu1 %v1019_v48 }
 0x4ba   :  { %2184 = vmatpush3.msra.mxu1 %v1019_v48  ;;  %v1193_v48 = vld [vmem:[%s3325_s9 + $0x110] sm:$0xff] }
 0x4bb   :  { %1322 = vmatprep.subr.mxu1 %v1222_v8  ;;  %v1171_v8 = vld [vmem:[%s3325_s9 + $0x60] sm:$0xff] }
 0x4e5   :  { %v510_v33 = vpop.f32.mrf.mxu0 }
 0x4e7   :  { %v2122_v35 = vpop.f32.mrf.mxu0 }
 0x4e8   :  { %v1203_v35 = vld [vmem:[%s3325_s9 + $0x160] sm:$0xff] }
 0x558   :  { %v677_v49 = vpop.f32.mrf.mxu0 }
 0x55a   :  { %v2132_v50 = vpop.f32.mrf.mxu0 }
 0x55b   :  { %v1190_v50 = vld [vmem:[%s3325_s9 + $0xf8] sm:$0xff] }
 0x55c   :  { %v843_v51 = vpop.f32.mrf.mxu0 }
 0x55e   :  { %v2142_v52 = vpop.f32.mrf.mxu0 }
 0x55f   :  { %v1189_v52 = vld [vmem:[%s3325_s9 + $0xf0] sm:$0xff] }
 0x560   :  { %v1010_v53 = vpop.f32.mrf.mxu0 }
 0x561   :  { %v2248_v54 = vpack.i.bf16 %v1010_v53, %v677_v49  ;;  %v1188_v49 = vld [vmem:[%s3325_s9 + $0xe8] sm:$0xff] }
 0x562   :  { %v2152_v55 = vpop.f32.mrf.mxu0  ;;  %v1184_v53 = vld [vmem:[%s3325_s9 + $0xc8] sm:$0xff] }
 0x563   :  { %2249 = vrot.lane.b32.xlu1 %v2248_v54, %s2362_s14  ;;  %v1186_v54 = vld [vmem:[%s3325_s9 + $0xd8] sm:$0xff]  ;;  %v1183_v55 = vld [vmem:[%s3325_s9 + $0xc0] sm:$0xff] }
 0x5d5   :  { %v2250_v57 = vpop.permute.xlu1 %2249 }
 0x5d6   :  { %v2252_v58 = vunpack.i.h.bf16 %v2250_v57  ;;  %v2251_v59 = vunpack.i.l.bf16 %v2250_v57  ;;  %v1185_v57 = vld [vmem:[%s3325_s9 + $0xd0] sm:$0xff] }
 0x5d8   :  { %v685_v60 = vsel %vm351_vm1, %v510_v33, %v2251_v59  ;;  %v1018_v61 = vsel %vm351_vm1, %v843_v51, %v2252_v58  ;;  %v1204_v33 = vld [vmem:[%s3325_s9 + $0x168] sm:$0xff]  ;;  %v1187_v51 = vld [vmem:[%s3325_s9 + $0xe0] sm:$0xff]  ;;  %v1182_v59 = vld [vmem:[%s3325_s9 + $0xb8] sm:$0xff] }
 0x5d9   :  { %2185 = vmatprep.mubr.f32.mxu1 %v685_v60  ;;  %v1180_v58 = vld [vmem:[%s3325_s9 + $0xa8] sm:$0xff]  ;;  %v1179_v60 = vld [vmem:[%s3325_s9 + $0xa0] sm:$0xff] }
 0x5da   :  { %2186 = vmatmul.mubr.f32.vlgmr.msra.gmra.mxu1 %v1018_v61  ;;  %v1181_v61 = vld [vmem:[%s3325_s9 + $0xb0] sm:$0xff] }
 0x5db   :  { %1386 = vmatprep.mubr.f32.mxu1 %v2360_v56 }
 0x69a   :  { %v2187_v63 = vpop.f32.mrf.mxu1 }
 0x69b   :  { %v1114_v2 = vadd.f32 %v2187_v63, %v1914_v62  ;;  %v1178_v63 = vld [vmem:[%s3325_s9 + $0x98] sm:$0xff] }
 0x69c   :  { %v1108_v3 = vpop.f32.mrf.mxu1 }
 0x69d   :  { %v2767_v4 = vadd.f32 %v1114_v2, %v2471_v1  ;;  %v1109_v5 = vadd.f32 %v1914_v62, %v1108_v3  ;;  %v1219_v1 = vld [vmem:[%s3325_s9 + $0x1e0] sm:$0xff]  ;;  %v1176_v62 = vld [vmem:[%s3325_s9 + $0x88] sm:$0xff]  ;;  %v1177_v3 = vld [vmem:[%s3325_s9 + $0x90] sm:$0xff] }
 0x69e   :  { %1246 = vmatpush1.msra.mxu0 %v1219_v1  ;;  %v1175_v2 = vld [vmem:[%s3325_s9 + $0x80] sm:$0xff]  ;;  %v1173_v1 = vld [vmem:[%s3325_s9 + $0x70] sm:$0xff] }
 0x69f   :  { %v2770_v6 = vadd.f32 %v1109_v5, %v2465_v0  ;;  %1123 = vadd.xlane.f32.xlu0 %v2767_v4  ;;  %v1221_v0 = vld [vmem:[%s3325_s9 + $0x1f0] sm:$0xff]  ;;  %1247 = vmatprep.subr.mxu0 %v1216_v9  ;;  %v1172_v5 = vld [vmem:[%s3325_s9 + $0x68] sm:$0xff]  ;;  %v1170_v9 = vld [vmem:[%s3325_s9 + $0x58] sm:$0xff] }
 0x6a0   :  { %1323 = vmatpush1.msra.mxu1 %v1221_v0  ;;  %1248 = vmatpush1.msra.mxu0 %v1215_v11  ;;  %v1168_v0 = vld [vmem:[%s3325_s9 + $0x48] sm:$0xff]  ;;  %v1169_v11 = vld [vmem:[%s3325_s9 + $0x50] sm:$0xff] }
 0x6a1   :  { %1121 = vadd.xlane.f32.xlu1 %v2770_v6  ;;  %1324 = vmatprep.subr.mxu1 %v1218_v10  ;;  %v1167_v10 = vld [vmem:[%s3325_s9 + $0x40] sm:$0xff] }
 0x6a2   :  { %1325 = vmatpush1.msra.mxu1 %v1217_v12  ;;  %1249 = vmatprep.subr.mxu0 %v1212_v13  ;;  %v1164_v12 = vld [vmem:[%s3325_s9 + $0x28] sm:$0xff]  ;;  %v1166_v13 = vld [vmem:[%s3325_s9 + $0x38] sm:$0xff] }
 0x6a3   :  { %1326 = vmatprep.subr.mxu1 %v1214_v16  ;;  %1250 = vmatpush1.msra.mxu0 %v1211_v18  ;;  %v1163_v16 = vld [vmem:[%s3325_s9 + $0x20] sm:$0xff]  ;;  %v1165_v18 = vld [vmem:[%s3325_s9 + $0x30] sm:$0xff] }
 0x6a4   :  { %1327 = vmatpush1.msra.mxu1 %v1213_v20  ;;  %1251 = vmatprep.subr.mxu0 %v1208_v21  ;;  %v1160_v20 = vld [vmem:[%s3325_s9 + $0x8] sm:$0xff]  ;;  %v1162_v21 = vld [vmem:[%s3325_s9 + $0x18] sm:$0xff] }
 0x6a5   :  { %1328 = vmatprep.subr.mxu1 %v1210_v22  ;;  %1252 = vmatpush1.msra.mxu0 %v1207_v23  ;;  %v1159_v22 = vld [vmem:[%s3325_s9] sm:$0xff]  ;;  %v1161_v23 = vld [vmem:[%s3325_s9 + $0x10] sm:$0xff] }
 0x6a6   :  { %1329 = vmatpush1.msra.mxu1 %v1209_v24  ;;  %1253 = vmatprep.subr.mxu0 %v1204_v33  ;;  %v1915_v33 = vld [vmem:[%s3323_s7] ss:$0 sm:$0xff] }
 0x6a7   :  { %1330 = vmatprep.subr.mxu1 %v1206_v34  ;;  %1254 = vmatpush1.msra.mxu0 %v1203_v35  ;;  %v1916_v35 = vld [vmem:[%s3324_s8] ss:$0 sm:$0xff] }
 0x6a8   :  { %1331 = vmatpush1.msra.mxu1 %v1205_v36  ;;  %1255 = vmatprep.subr.mxu0 %v1200_v37 }
 0x6a9   :  { %1332 = vmatprep.subr.mxu1 %v1202_v38  ;;  %1256 = vmatpush1.msra.mxu0 %v1199_v39 }
 0x6aa   :  { %1333 = vmatpush1.msra.mxu1 %v1201_v40  ;;  %1257 = vmatprep.subr.mxu0 %v1196_v41 }
 0x6ab   :  { %1334 = vmatprep.subr.mxu1 %v1198_v42  ;;  %1258 = vmatpush1.msra.mxu0 %v1195_v43  ;;  %v1534_v42 = vld [vmem:[%s3327_s11 + $0x1f8] sm:$0xff]  ;;  %v1501_v43 = vld [vmem:[%s3327_s11 + $0xf0] sm:$0xff] }
 0x6ac   :  { %1335 = vmatpush1.msra.mxu1 %v1197_v44  ;;  %1259 = vmatprep.subr.mxu0 %v1192_v45  ;;  %v1533_v44 = vld [vmem:[%s3327_s11 + $0x1f0] sm:$0xff] }
 0x6ad   :  { %1336 = vmatprep.subr.mxu1 %v1194_v46  ;;  %1260 = vmatpush1.msra.mxu0 %v1191_v47  ;;  %v1485_v45 = vld [vmem:[%s3327_s11 + $0x70] sm:$0xff]  ;;  %v1500_v47 = vld [vmem:[%s3327_s11 + $0xe8] sm:$0xff] }
 0x6ae   :  { %1337 = vmatpush1.msra.mxu1 %v1193_v48  ;;  %1261 = vmatprep.subr.mxu0 %v1188_v49  ;;  %v1517_v46 = vld [vmem:[%s3327_s11 + $0x170] sm:$0xff]  ;;  %v1532_v48 = vld [vmem:[%s3327_s11 + $0x1e8] sm:$0xff] }
 0x6af   :  { %1338 = vmatprep.subr.mxu1 %v1190_v50  ;;  %1262 = vmatpush1.msra.mxu0 %v1187_v51  ;;  %v1484_v49 = vld [vmem:[%s3327_s11 + $0x68] sm:$0xff]  ;;  %v1499_v51 = vld [vmem:[%s3327_s11 + $0xe0] sm:$0xff] }
 0x6b0   :  { %1339 = vmatpush1.msra.mxu1 %v1189_v52  ;;  %1263 = vmatprep.subr.mxu0 %v1184_v53  ;;  %v1516_v50 = vld [vmem:[%s3327_s11 + $0x168] sm:$0xff]  ;;  %v1531_v52 = vld [vmem:[%s3327_s11 + $0x1e0] sm:$0xff] }
 0x6b1   :  { %1340 = vmatprep.subr.mxu1 %v1186_v54  ;;  %1264 = vmatpush1.msra.mxu0 %v1183_v55  ;;  %v1483_v53 = vld [vmem:[%s3327_s11 + $0x60] sm:$0xff]  ;;  %v1498_v55 = vld [vmem:[%s3327_s11 + $0xd8] sm:$0xff] }
 0x6b2   :  { %1341 = vmatpush1.msra.mxu1 %v1185_v57  ;;  %1265 = vmatprep.subr.mxu0 %v1180_v58  ;;  %v1515_v54 = vld [vmem:[%s3327_s11 + $0x160] sm:$0xff]  ;;  %v1530_v57 = vld [vmem:[%s3327_s11 + $0x1d8] sm:$0xff] }
 0x6b3   :  { %1342 = vmatprep.subr.mxu1 %v1182_v59  ;;  %1266 = vmatpush1.msra.mxu0 %v1179_v60  ;;  %v1482_v58 = vld [vmem:[%s3327_s11 + $0x58] sm:$0xff]  ;;  %v1497_v60 = vld [vmem:[%s3327_s11 + $0xd0] sm:$0xff] }
 0x6b4   :  { %1343 = vmatpush1.msra.mxu1 %v1181_v61  ;;  %1267 = vmatprep.subr.mxu0 %v1176_v62  ;;  %v1514_v59 = vld [vmem:[%s3327_s11 + $0x158] sm:$0xff]  ;;  %v1529_v61 = vld [vmem:[%s3327_s11 + $0x1d0] sm:$0xff] }
 0x6b5   :  { %1344 = vmatprep.subr.mxu1 %v1178_v63  ;;  %1268 = vmatpush1.msra.mxu0 %v1175_v2  ;;  %v1481_v62 = vld [vmem:[%s3327_s11 + $0x50] sm:$0xff]  ;;  %v1496_v2 = vld [vmem:[%s3327_s11 + $0xc8] sm:$0xff] }
 0x6b6   :  { %1345 = vmatpush1.msra.mxu1 %v1177_v3  ;;  %1269 = vmatprep.subr.mxu0 %v1172_v5  ;;  %v1513_v63 = vld [vmem:[%s3327_s11 + $0x150] sm:$0xff]  ;;  %v1528_v3 = vld [vmem:[%s3327_s11 + $0x1c8] sm:$0xff] }
 0x6b7   :  { %1346 = vmatprep.subr.mxu1 %v1174_v7  ;;  %1270 = vmatpush1.msra.mxu0 %v1171_v8  ;;  %v1480_v5 = vld [vmem:[%s3327_s11 + $0x48] sm:$0xff]  ;;  %v1495_v8 = vld [vmem:[%s3327_s11 + $0xc0] sm:$0xff] }
 0x6b8   :  { %1347 = vmatpush1.msra.mxu1 %v1173_v1  ;;  %1271 = vmatprep.subr.mxu0 %v1168_v0  ;;  %v1512_v7 = vld [vmem:[%s3327_s11 + $0x148] sm:$0xff]  ;;  %v1527_v1 = vld [vmem:[%s3327_s11 + $0x1c0] sm:$0xff] }
 0x6b9   :  { %1348 = vmatprep.subr.mxu1 %v1170_v9  ;;  %1272 = vmatpush1.msra.mxu0 %v1167_v10  ;;  %v1479_v0 = vld [vmem:[%s3327_s11 + $0x40] sm:$0xff]  ;;  %v1494_v10 = vld [vmem:[%s3327_s11 + $0xb8] sm:$0xff] }
 0x6ba   :  { %1349 = vmatpush1.msra.mxu1 %v1169_v11  ;;  %1273 = vmatprep.subr.mxu0 %v1164_v12  ;;  %v1511_v9 = vld [vmem:[%s3327_s11 + $0x140] sm:$0xff]  ;;  %v1526_v11 = vld [vmem:[%s3327_s11 + $0x1b8] sm:$0xff] }
 0x6bb   :  { %1350 = vmatprep.subr.mxu1 %v1166_v13  ;;  %1274 = vmatpush1.msra.mxu0 %v1163_v16  ;;  %v1478_v12 = vld [vmem:[%s3327_s11 + $0x38] sm:$0xff]  ;;  %v1493_v16 = vld [vmem:[%s3327_s11 + $0xb0] sm:$0xff] }
 0x6bc   :  { %1351 = vmatpush1.msra.mxu1 %v1165_v18  ;;  %1275 = vmatprep.subr.mxu0 %v1160_v20  ;;  %v1510_v13 = vld [vmem:[%s3327_s11 + $0x138] sm:$0xff]  ;;  %v1525_v18 = vld [vmem:[%s3327_s11 + $0x1b0] sm:$0xff] }
 0x6bd   :  { %1352 = vmatprep.subr.mxu1 %v1162_v21  ;;  %1276 = vmatpush1.msra.mxu0 %v1159_v22  ;;  %v1477_v20 = vld [vmem:[%s3327_s11 + $0x30] sm:$0xff]  ;;  %v1492_v22 = vld [vmem:[%s3327_s11 + $0xa8] sm:$0xff] }
 0x6be   :  { %1353 = vmatpush1.msra.mxu1 %v1161_v23  ;;  %v1509_v21 = vld [vmem:[%s3327_s11 + $0x130] sm:$0xff]  ;;  %v1524_v23 = vld [vmem:[%s3327_s11 + $0x1a8] sm:$0xff] }
 0x6bf   :  { %2012 = vmatprep.subr.mxu1 %v1534_v42  ;;  %v1504_v42 = vld [vmem:[%s3327_s11 + $0x108] sm:$0xff] }
 0x728   :  { %v1124_v25 = vpop.xlane.xlu0 %1123 }
 0x729   :  { %v1126_v27 = vmul.f32 0.0078125, %v1124_v25 }
 0x72a   :  { %v1122_v26 = vpop.xlane.xlu1 %1121 }
 0x72b   :  { %v1125_v29 = vmul.f32 0.0078125, %v1122_v26  ;;  %v2826_v31 = vsub.f32 %v2767_v4, %v1126_v27 }
 0x72d   :  { %v2823_v30 = vsub.f32 %v2770_v6, %v1125_v29  ;;  %v1130_v32 = vmul.f32 %v2826_v31, %v2826_v31 }
 0x72f   :  { %v1129_v28 = vmul.f32 %v2823_v30, %v2823_v30 }
 0x731   :  { %1131 = vadd.xlane.f32.xlu0 %v1129_v28 }
 0x735   :  { %1133 = vadd.xlane.f32.xlu0 %v1130_v32 }
 0x7ba   :  { %v1132_v24 = vpop.xlane.xlu0 %1131 }
 0x7bb   :  { %v1135_v25 = vmul.f32 0.0078125, %v1132_v24  ;;  %v1476_v24 = vld [vmem:[%s3327_s11 + $0x28] sm:$0xff] }
 0x7bd   :  { %v1137_v26 = vadd.f32 1e-05, %v1135_v25  ;;  %v1508_v25 = vld [vmem:[%s3327_s11 + $0x128] sm:$0xff] }
 0x7be   :  { %v1134_v27 = vpop.xlane.xlu0 %1133 }
 0x7bf   :  { %2273 = vrsqrt.f32 %v1137_v26  ;;  %v1136_v29 = vmul.f32 0.0078125, %v1134_v27  ;;  %v1491_v26 = vld [vmem:[%s3327_s11 + $0xa0] sm:$0xff] }
 0x7c0   :  { %v1523_v27 = vld [vmem:[%s3327_s11 + $0x1a0] sm:$0xff] }
 0x7c1   :  { %v1138_v28 = vadd.f32 1e-05, %v1136_v29  ;;  %v1475_v29 = vld [vmem:[%s3327_s11 + $0x20] sm:$0xff] }
 0x7c3   :  { %2275 = vrsqrt.f32 %v1138_v28  ;;  %v1507_v28 = vld [vmem:[%s3327_s11 + $0x120] sm:$0xff] }
 0x7cc   :  { %v2274_v32 = vpop.eup %2273 }
 0x7cd   :  { %v1141_v34 = vmul.f32 %v2274_v32, %v2823_v30  ;;  %v1502_v30 = vld [vmem:[%s3327_s11 + $0xf8] sm:$0xff] }
 0x7ce   :  { %1974 = vmatprep.subr.mxu0 %v1502_v30  ;;  %v1490_v32 = vld [vmem:[%s3327_s11 + $0x98] sm:$0xff]  ;;  %v1472_v30 = vld [vmem:[%s3327_s11 + $0x8] sm:$0xff] }
 0x7cf   :  { %v1149_v36 = vmul.f32 %v1915_v33, %v1141_v34  ;;  %v1474_v34 = vld [vmem:[%s3327_s11 + $0x18] sm:$0xff] }
 0x7d0   :  { %v2276_v37 = vpop.eup %2275 }
 0x7d1   :  { %v1157_v38 = vadd.f32 %v1916_v35, %v1149_v36  ;;  %v1142_v39 = vmul.f32 %v2276_v37, %v2826_v31  ;;  %v1486_v31 = vld [vmem:[%s3327_s11 + $0x78] sm:$0xff]  ;;  %v1489_v36 = vld [vmem:[%s3327_s11 + $0x90] sm:$0xff] }
 0x7d2   :  { %v1521_v37 = vld [vmem:[%s3327_s11 + $0x190] sm:$0xff] }
 0x7d3   :  { %1310 = vmatmul.mubr.f32.vlgmr.msra.gmra.mxu0 %v1157_v38  ;;  %1387 = vmatmul.mubr.f32.vlgmr.msra.gmra.mxu1 %v1157_v38  ;;  %v1150_v40 = vmul.f32 %v1915_v33, %v1142_v39  ;;  %v1522_v33 = vld [vmem:[%s3327_s11 + $0x198] sm:$0xff]  ;;  %v1473_v38 = vld [vmem:[%s3327_s11 + $0x10] sm:$0xff] }
 0x7d4   :  { %1315 = vmatprep.mubr.f32.mxu0 %v2360_v56  ;;  %1392 = vmatprep.mubr.f32.mxu1 %v2360_v56  ;;  %v1518_v56 = vld [vmem:[%s3327_s11 + $0x178] sm:$0xff]  ;;  %v1505_v39 = vld [vmem:[%s3327_s11 + $0x110] sm:$0xff] }
 0x7d5   :  { %v1158_v41 = vadd.f32 %v1916_v35, %v1150_v40  ;;  %1975 = vmatpush3.msra.mxu0 %v1486_v31  ;;  %2013 = vmatpush3.msra.mxu1 %v1518_v56  ;;  %v1506_v35 = vld [vmem:[%s3327_s11 + $0x118] sm:$0xff]  ;;  %v1488_v40 = vld [vmem:[%s3327_s11 + $0x88] sm:$0xff]  ;;  %v1487_v31 = vld [vmem:[%s3327_s11 + $0x80] sm:$0xff] }
 0x7d6   :  { %1976 = vmatprep.subr.mxu0 %v1501_v43  ;;  %2014 = vmatprep.subr.mxu1 %v1533_v44  ;;  %v1519_v56 = vld [vmem:[%s3327_s11 + $0x180] sm:$0xff] }
 0x7d7   :  { %1316 = vmatmul.mubr.f32.gmra.mxu0 %v1158_v41  ;;  %1393 = vmatmul.mubr.f32.gmra.mxu1 %v1158_v41  ;;  %v1520_v41 = vld [vmem:[%s3327_s11 + $0x188] sm:$0xff]  ;;  %v1471_v43 = vld [vmem:[%s3327_s11] sm:$0xff] }
 0x7d8   :  { %1977 = vmatpush3.msra.mxu0 %v1485_v45  ;;  %2015 = vmatpush3.msra.mxu1 %v1517_v46  ;;  %v1503_v44 = vld [vmem:[%s3327_s11 + $0x100] sm:$0xff]  ;;  %v3181_v45 = vld [vmem:[%s3329_s13 + $0x78] sm:$0xff] }
 0x7d9   :  { %1978 = vmatprep.subr.mxu0 %v1500_v47  ;;  %2016 = vmatprep.subr.mxu1 %v1532_v48  ;;  %v1223_v46 = vld [vmem:[%s3326_s10] sm:$0xf]  ;;  %v1239_v47 = vsub.s32 3, %v2644_v14 }
 0x7da   :  { %1979 = vmatpush3.msra.mxu0 %v1484_v49  ;;  %2017 = vmatpush3.msra.mxu1 %v1516_v50  ;;  %v1228_v48 = vrot.slane %v1223_v46, %v186_v15  ;;  %v1236_v49 = vrot.slane %v1223_v46, %v194_v19 }
 0x7db   :  { %1980 = vmatprep.subr.mxu0 %v1499_v51  ;;  %2018 = vmatprep.subr.mxu1 %v1531_v52  ;;  %v1232_v52 = vrot.slane %v1223_v46, %v190_v17 }
 0x7dc   :  { %1981 = vmatpush3.msra.mxu0 %v1483_v53  ;;  %2019 = vmatpush3.msra.mxu1 %v1515_v54  ;;  %v1240_v53 = vrot.slane %v1223_v46, %v1239_v47 }
 0x7dd   :  { %1982 = vmatprep.subr.mxu0 %v1498_v55  ;;  %2020 = vmatprep.subr.mxu1 %v1530_v57 }
 0x7de   :  { %1983 = vmatpush3.msra.mxu0 %v1482_v58  ;;  %2021 = vmatpush3.msra.mxu1 %v1514_v59 }
 0x7df   :  { %1984 = vmatprep.subr.mxu0 %v1497_v60  ;;  %2022 = vmatprep.subr.mxu1 %v1529_v61 }
 0x7e0   :  { %1985 = vmatpush3.msra.mxu0 %v1481_v62  ;;  %2023 = vmatpush3.msra.mxu1 %v1513_v63 }
 0x7e1   :  { %1986 = vmatprep.subr.mxu0 %v1496_v2  ;;  %2024 = vmatprep.subr.mxu1 %v1528_v3 }
 0x7e2   :  { %1987 = vmatpush3.msra.mxu0 %v1480_v5  ;;  %2025 = vmatpush3.msra.mxu1 %v1512_v7 }
 0x7e3   :  { %1988 = vmatprep.subr.mxu0 %v1495_v8  ;;  %2026 = vmatprep.subr.mxu1 %v1527_v1 }
 0x7e4   :  { %1989 = vmatpush3.msra.mxu0 %v1479_v0  ;;  %2027 = vmatpush3.msra.mxu1 %v1511_v9 }
 0x7e5   :  { %1990 = vmatprep.subr.mxu0 %v1494_v10  ;;  %2028 = vmatprep.subr.mxu1 %v1526_v11 }
 0x7e6   :  { %1991 = vmatpush3.msra.mxu0 %v1478_v12  ;;  %2029 = vmatpush3.msra.mxu1 %v1510_v13 }
 0x7e7   :  { %1992 = vmatprep.subr.mxu0 %v1493_v16  ;;  %2030 = vmatprep.subr.mxu1 %v1525_v18 }
 0x7e8   :  { %1993 = vmatpush3.msra.mxu0 %v1477_v20  ;;  %2031 = vmatpush3.msra.mxu1 %v1509_v21 }
 0x7e9   :  { %1994 = vmatprep.subr.mxu0 %v1492_v22  ;;  %2032 = vmatprep.subr.mxu1 %v1524_v23 }
 0x7ea   :  { %1995 = vmatpush3.msra.mxu0 %v1476_v24  ;;  %2033 = vmatpush3.msra.mxu1 %v1508_v25 }
 0x7eb   :  { %1996 = vmatprep.subr.mxu0 %v1491_v26  ;;  %2034 = vmatprep.subr.mxu1 %v1523_v27 }
 0x7ec   :  { %1997 = vmatpush3.msra.mxu0 %v1475_v29  ;;  %2035 = vmatpush3.msra.mxu1 %v1507_v28 }
 0x7ed   :  { %1998 = vmatprep.subr.mxu0 %v1490_v32  ;;  %2036 = vmatprep.subr.mxu1 %v1522_v33 }
 0x7ee   :  { %1999 = vmatpush3.msra.mxu0 %v1474_v34  ;;  %2037 = vmatpush3.msra.mxu1 %v1506_v35 }
 0x7ef   :  { %2000 = vmatprep.subr.mxu0 %v1489_v36  ;;  %2038 = vmatprep.subr.mxu1 %v1521_v37 }
 0x7f0   :  { %2001 = vmatpush3.msra.mxu0 %v1473_v38  ;;  %2039 = vmatpush3.msra.mxu1 %v1505_v39 }
 0x7f1   :  { %2002 = vmatprep.subr.mxu0 %v1488_v40  ;;  %2040 = vmatprep.subr.mxu1 %v1520_v41 }
 0x7f2   :  { %2003 = vmatpush3.msra.mxu0 %v1472_v30  ;;  %2041 = vmatpush3.msra.mxu1 %v1504_v42 }
 0x7f3   :  { %2004 = vmatprep.subr.mxu0 %v1487_v31  ;;  %2042 = vmatprep.subr.mxu1 %v1519_v56 }
 0x7f4   :  { %2005 = vmatpush3.msra.mxu0 %v1471_v43  ;;  %2043 = vmatpush3.msra.mxu1 %v1503_v44 }
 0x7f5   :  { %2188 = vmatprep.subr.mxu0 %v3181_v45 }
 0x893   :  { %v1311_v50 = vpop.f32.mrf.mxu0  ;;  %v1388_v51 = vpop.f32.mrf.mxu1 }
 0x894   :  { %v3194_v54 = vadd.f32 %v1311_v50, %v1228_v48  ;;  %v3196_v55 = vadd.f32 %v1388_v51, %v1236_v49 }
 0x895   :  { %v1313_v57 = vpop.f32.mrf.mxu0  ;;  %v1390_v58 = vpop.f32.mrf.mxu1 }
 0x896   :  { %v1407_v59 = vmul.f32 0.044715, %v3194_v54  ;;  %v1409_v60 = vmul.f32 0.044715, %v3196_v55  ;;  %v1314_v15 = vadd.f32 %v1313_v57, %v1232_v52  ;;  %v3200_v61 = vadd.f32 %v1390_v58, %v1240_v53 }
 0x897   :  { %v1317_v19 = vpop.f32.mrf.mxu0  ;;  %v1394_v62 = vpop.f32.mrf.mxu1  ;;  %v1399_v58 = vmul.f32 0.5, %v3194_v54 }
 0x898   :  { %v1415_v63 = vmul.f32 %v1407_v59, %v3194_v54  ;;  %v1417_v14 = vmul.f32 %v1409_v60, %v3196_v55  ;;  %v3204_v17 = vadd.f32 %v1317_v19, %v1228_v48  ;;  %v3206_v2 = vadd.f32 %v1394_v62, %v1236_v49 }
 0x899   :  { %v1408_v3 = vmul.f32 0.044715, %v1314_v15  ;;  %v1410_v5 = vmul.f32 0.044715, %v3200_v61  ;;  %v1319_v7 = vpop.f32.mrf.mxu0  ;;  %v1396_v8 = vpop.f32.mrf.mxu1  ;;  %v1402_v59 = vmul.f32 0.5, %v3200_v61  ;;  %v1401_v62 = vmul.f32 0.5, %v3196_v55 }
 0x89a   :  { %v1423_v1 = vmul.f32 %v1415_v63, %v3194_v54  ;;  %v1425_v0 = vmul.f32 %v1417_v14, %v3196_v55  ;;  %v1411_v9 = vmul.f32 0.044715, %v3204_v17  ;;  %v1413_v10 = vmul.f32 0.044715, %v3206_v2 }
 0x89b   :  { %v1416_v11 = vmul.f32 %v1408_v3, %v1314_v15  ;;  %v1418_v12 = vmul.f32 %v1410_v5, %v3200_v61  ;;  %v1320_v13 = vadd.f32 %v1319_v7, %v1232_v52  ;;  %v3214_v16 = vadd.f32 %v1396_v8, %v1240_v53 }
 0x89c   :  { %v1431_v18 = vadd.f32 %v1423_v1, %v3194_v54  ;;  %v1433_v20 = vadd.f32 %v1425_v0, %v3196_v55  ;;  %v1419_v21 = vmul.f32 %v1411_v9, %v3204_v17  ;;  %v1421_v29 = vmul.f32 %v1413_v10, %v3206_v2  ;;  %v1706_v54 = vld [vmem:[%s3329_s13 + $0x70] sm:$0xff] }
 0x89d   :  { %v1412_v22 = vmul.f32 0.044715, %v1320_v13  ;;  %v1414_v23 = vmul.f32 0.044715, %v3214_v16  ;;  %v1424_v24 = vmul.f32 %v1416_v11, %v1314_v15  ;;  %v1426_v25 = vmul.f32 %v1418_v12, %v3200_v61 }
 0x89e   :  { %v1439_v26 = vmul.f32 0.7978846, %v1431_v18  ;;  %v1441_v27 = vmul.f32 0.7978846, %v1433_v20  ;;  %v1427_v35 = vmul.f32 %v1419_v21, %v3204_v17  ;;  %v1429_v41 = vmul.f32 %v1421_v29, %v3206_v2  ;;  %v1705_v21 = vld [vmem:[%s3329_s13 + $0x68] sm:$0xff]  ;;  %v1695_v29 = vld [vmem:[%s3329_s13 + $0x18] sm:$0xff] }
 0x89f   :  { %v1420_v28 = vmul.f32 %v1412_v22, %v1320_v13  ;;  %v1422_v32 = vmul.f32 %v1414_v23, %v3214_v16  ;;  %v1432_v33 = vadd.f32 %v1424_v24, %v1314_v15  ;;  %v1434_v34 = vadd.f32 %v1426_v25, %v3200_v61  ;;  %v1700_v23 = vld [vmem:[%s3329_s13 + $0x40] sm:$0xff]  ;;  %v1699_v24 = vld [vmem:[%s3329_s13 + $0x38] sm:$0xff]  ;;  %v1698_v25 = vld [vmem:[%s3329_s13 + $0x30] sm:$0xff] }
 0x8a0   :  { %2277 = vtanh.f32 %v1439_v26  ;;  %v1435_v40 = vadd.f32 %v1427_v35, %v3204_v17  ;;  %v1437_v56 = vadd.f32 %v1429_v41, %v3206_v2  ;;  %v1400_v52 = vmul.f32 0.5, %v1314_v15  ;;  %v1697_v26 = vld [vmem:[%s3329_s13 + $0x28] sm:$0xff]  ;;  %v1798_v35 = vld [vmem:[%s3331_s15 + $0x30] sm:$0xff] }
 0x8a1   :  { %2279 = vtanh.f32 %v1441_v27  ;;  %v1440_v36 = vmul.f32 0.7978846, %v1432_v33  ;;  %v1442_v37 = vmul.f32 0.7978846, %v1434_v34  ;;  %v1428_v38 = vmul.f32 %v1420_v28, %v1320_v13  ;;  %v1696_v27 = vld [vmem:[%s3329_s13 + $0x20] sm:$0xff]  ;;  %v1694_v28 = vld [vmem:[%s3329_s13 + $0x10] sm:$0xff] }
 0x8a2   :  { %v1430_v39 = vmul.f32 %v1422_v32, %v3214_v16  ;;  %v1443_v31 = vmul.f32 0.7978846, %v1435_v40  ;;  %v1445_v46 = vmul.f32 0.7978846, %v1437_v56  ;;  %v1404_v0 = vmul.f32 0.5, %v1320_v13  ;;  %v1693_v32 = vld [vmem:[%s3329_s13 + $0x8] sm:$0xff] }
 0x8a3   :  { %2281 = vtanh.f32 %v1440_v36  ;;  %v1436_v30 = vadd.f32 %v1428_v38, %v1320_v13  ;;  %v1406_v61 = vmul.f32 0.5, %v3214_v16  ;;  %v1403_v10 = vmul.f32 0.5, %v3204_v17  ;;  %v1704_v17 = vld [vmem:[%s3329_s13 + $0x60] sm:$0xff]  ;;  %v1799_v34 = vld [vmem:[%s3331_s15 + $0x38] sm:$0xff]  ;;  %v1797_v36 = vld [vmem:[%s3331_s15 + $0x28] sm:$0xff] }
 0x8a4   :  { %2283 = vtanh.f32 %v1442_v37  ;;  %v1438_v42 = vadd.f32 %v1430_v39, %v3214_v16  ;;  %v1405_v12 = vmul.f32 0.5, %v3206_v2  ;;  %v1702_v2 = vld [vmem:[%s3329_s13 + $0x50] sm:$0xff]  ;;  %v1701_v16 = vld [vmem:[%s3329_s13 + $0x48] sm:$0xff]  ;;  %v1692_v33 = vld [vmem:[%s3329_s13] sm:$0xff]  ;;  %2223 = vmatprep.subr.mxu1 %v1799_v34 }
 0x8a5   :  { %v1444_v43 = vmul.f32 0.7978846, %v1436_v30  ;;  %2285 = vtanh.f32 %v1443_v31  ;;  %v1796_v37 = vld [vmem:[%s3331_s15 + $0x20] sm:$0xff] }
 0x8a6   :  { %v1446_v44 = vmul.f32 0.7978846, %v1438_v42  ;;  %v1917_v40 = vld [vmem:[#allocation2] ss:$0 sm:$0xff] }
 0x8a7   :  { %2287 = vtanh.f32 %v1444_v43 }
 0x8a8   :  { %2289 = vtanh.f32 %v1446_v44 }
 0x8a9   :  { %2291 = vtanh.f32 %v1445_v46 }
 0x8ad   :  { %v2278_v47 = vpop.eup %2277 }
 0x8ae   :  { %v2280_v48 = vpop.eup %2279  ;;  %v1455_v50 = vadd.f32 1.0, %v2278_v47 }
 0x8af   :  { %v1457_v57 = vadd.f32 1.0, %v2280_v48 }
 0x8b0   :  { %v2282_v49 = vpop.eup %2281  ;;  %v1463_v5 = vmul.f32 %v1455_v50, %v1399_v58  ;;  %v1793_v58 = vld [vmem:[%s3331_s15 + $0x8] sm:$0xff] }
 0x8b1   :  { %v2284_v51 = vpop.eup %2283  ;;  %v1456_v53 = vadd.f32 1.0, %v2282_v49  ;;  %v1465_v1 = vmul.f32 %v1457_v57, %v1401_v62  ;;  %v1794_v57 = vld [vmem:[%s3331_s15 + $0x10] sm:$0xff] }
 0x8b2   :  { %v1458_v60 = vadd.f32 1.0, %v2284_v51  ;;  %v2286_v19 = vpop.eup %2285 }
 0x8b3   :  { %v1464_v63 = vmul.f32 %v1456_v53, %v1400_v52  ;;  %v1459_v7 = vadd.f32 1.0, %v2286_v19  ;;  %v1795_v53 = vld [vmem:[%s3331_s15 + $0x18] sm:$0xff] }
 0x8b4   :  { %v2288_v14 = vpop.eup %2287  ;;  %v1466_v3 = vmul.f32 %v1458_v60, %v1402_v59  ;;  %v1792_v59 = vld [vmem:[%s3331_s15] sm:$0xff] }
 0x8b5   :  { %v2290_v8 = vpop.eup %2289  ;;  %1606 = vmatprep.mubr.f32.mxu0 %v1464_v63  ;;  %v1460_v15 = vadd.f32 1.0, %v2288_v14  ;;  %v1467_v20 = vmul.f32 %v1459_v7, %v1403_v10  ;;  %v1918_v60 = vld [vmem:[#allocation4] ss:$0 sm:$0xff]  ;;  %v1919_v7 = vld [vmem:[#allocation6] ss:$0 sm:$0xff] }
 0x8b6   :  { %v2292_v9 = vpop.eup %2291  ;;  %1681 = vmatprep.mubr.f32.mxu1 %v1466_v3  ;;  %1607 = vmatmul.mubr.f32.vlgmr.msra.gmra.mxu0 %v1463_v5  ;;  %v1462_v55 = vadd.f32 1.0, %v2290_v8 }
 0x8b7   :  { %1682 = vmatmul.mubr.f32.vlgmr.msra.gmra.mxu1 %v1465_v1  ;;  %v1468_v11 = vmul.f32 %v1460_v15, %v1404_v0  ;;  %v1461_v18 = vadd.f32 1.0, %v2292_v9  ;;  %2189 = vmatpush3.msra.mxu0 %v3181_v45  ;;  %v1703_v45 = vld [vmem:[%s3329_s13 + $0x58] sm:$0xff] }
 0x8b8   :  { %v1470_v13 = vmul.f32 %v1462_v55, %v1406_v61  ;;  %2190 = vmatprep.subr.mxu0 %v1706_v54  ;;  %2224 = vmatpush3.msra.mxu1 %v1799_v34 }
 0x8b9   :  { %1611 = vmatprep.mubr.f32.mxu0 %v1468_v11  ;;  %v1469_v22 = vmul.f32 %v1461_v18, %v1405_v12  ;;  %2191 = vmatpush3.msra.mxu0 %v1706_v54 }
 0x8ba   :  { %1686 = vmatprep.mubr.f32.mxu1 %v1470_v13  ;;  %1612 = vmatmul.mubr.f32.gmra.mxu0 %v1467_v20 }
 0x8bb   :  { %1687 = vmatmul.mubr.f32.gmra.mxu1 %v1469_v22  ;;  %2192 = vmatprep.subr.mxu0 %v1705_v21 }
 0x8bc   :  { %2193 = vmatpush3.msra.mxu0 %v1705_v21  ;;  %2225 = vmatprep.subr.mxu1 %v1798_v35 }
 0x8bd   :  { %2194 = vmatprep.subr.mxu0 %v1704_v17  ;;  %2226 = vmatpush3.msra.mxu1 %v1798_v35 }
 0x8be   :  { %2195 = vmatpush3.msra.mxu0 %v1704_v17  ;;  %2227 = vmatprep.subr.mxu1 %v1797_v36 }
 0x8bf   :  { %2196 = vmatprep.subr.mxu0 %v1703_v45  ;;  %2228 = vmatpush3.msra.mxu1 %v1797_v36 }
 0x8c0   :  { %2197 = vmatpush3.msra.mxu0 %v1703_v45  ;;  %2229 = vmatprep.subr.mxu1 %v1796_v37 }
 0x8c1   :  { %2198 = vmatprep.subr.mxu0 %v1702_v2  ;;  %2230 = vmatpush3.msra.mxu1 %v1796_v37 }
 0x8c2   :  { %2199 = vmatpush3.msra.mxu0 %v1702_v2  ;;  %2231 = vmatprep.subr.mxu1 %v1795_v53 }
 0x8c3   :  { %2200 = vmatprep.subr.mxu0 %v1701_v16  ;;  %2232 = vmatpush3.msra.mxu1 %v1795_v53 }
 0x8c4   :  { %2201 = vmatpush3.msra.mxu0 %v1701_v16  ;;  %2233 = vmatprep.subr.mxu1 %v1794_v57 }
 0x8c5   :  { %2202 = vmatprep.subr.mxu0 %v1700_v23  ;;  %2234 = vmatpush3.msra.mxu1 %v1794_v57 }
 0x8c6   :  { %2203 = vmatpush3.msra.mxu0 %v1700_v23  ;;  %2235 = vmatprep.subr.mxu1 %v1793_v58 }
 0x8c7   :  { %2204 = vmatprep.subr.mxu0 %v1699_v24  ;;  %2236 = vmatpush3.msra.mxu1 %v1793_v58 }
 0x8c8   :  { %2205 = vmatpush3.msra.mxu0 %v1699_v24  ;;  %2237 = vmatprep.subr.mxu1 %v1792_v59 }
 0x8c9   :  { %2206 = vmatprep.subr.mxu0 %v1698_v25  ;;  %2238 = vmatpush3.msra.mxu1 %v1792_v59 }
 0x8ca   :  { %2207 = vmatpush3.msra.mxu0 %v1698_v25 }
 0x8cb   :  { %2208 = vmatprep.subr.mxu0 %v1697_v26 }
 0x8cc   :  { %2209 = vmatpush3.msra.mxu0 %v1697_v26 }
 0x8cd   :  { %2210 = vmatprep.subr.mxu0 %v1696_v27 }
 0x8ce   :  { %2211 = vmatpush3.msra.mxu0 %v1696_v27 }
 0x8cf   :  { %2212 = vmatprep.subr.mxu0 %v1695_v29 }
 0x8d0   :  { %2213 = vmatpush3.msra.mxu0 %v1695_v29 }
 0x8d1   :  { %2214 = vmatprep.subr.mxu0 %v1694_v28 }
 0x8d2   :  { %2215 = vmatpush3.msra.mxu0 %v1694_v28 }
 0x8d3   :  { %2216 = vmatprep.subr.mxu0 %v1693_v32 }
 0x8d4   :  { %2217 = vmatpush3.msra.mxu0 %v1693_v32 }
 0x8d5   :  { %2218 = vmatprep.subr.mxu0 %v1692_v33 }
 0x8d6   :  { %2219 = vmatpush3.msra.mxu0 %v1692_v33 }
 0x976   :  { %v2006_v38 = vpop.f32.mrf.mxu0 }
 0x977   :  { %v2044_v39 = vpop.f32.mrf.mxu1 }
 0x978   :  { %v2007_v41 = vpop.f32.mrf.mxu0 }
 0x979   :  { %v2008_v30 = vadd.f32 %v2007_v41, %v2006_v38  ;;  %v2045_v42 = vpop.f32.mrf.mxu1 }
 0x97a   :  { %v2009_v31 = vpop.f32.mrf.mxu0  ;;  %v2046_v43 = vadd.f32 %v2045_v42, %v2044_v39 }
 0x97b   :  { %v1609_v56 = vadd.f32 %v2008_v30, %v1917_v40  ;;  %v2047_v44 = vpop.f32.mrf.mxu1 }
 0x97c   :  { %v2010_v46 = vpop.f32.mrf.mxu0 }
 0x97d   :  { %v1684_v47 = vadd.f32 %v2046_v43, %v1609_v56  ;;  %v2011_v48 = vadd.f32 %v2010_v46, %v2009_v31  ;;  %v2048_v49 = vpop.f32.mrf.mxu1 }
 0x97e   :  { %v2049_v51 = vadd.f32 %v2048_v49, %v2047_v44 }
 0x97f   :  { %v1614_v50 = vadd.f32 %v2011_v48, %v1917_v40  ;;  %2220 = vmatprep.mubr.f32.mxu0 %v1684_v47 }
 0x981   :  { %v1689_v52 = vadd.f32 %v2049_v51, %v1614_v50 }
 0x983   :  { %2221 = vmatmul.mubr.f32.vlgmr.msra.gmra.mxu0 %v1689_v52 }
 0xa43   :  { %v2222_v19 = vpop.f32.mrf.mxu0 }
 0xa44   :  { %v1787_v62 = vadd.f32 %v2222_v19, %v1918_v60 }
 0xa45   :  { %v1781_v63 = vpop.f32.mrf.mxu0 }
 0xa46   :  { %v1782_v14 = vadd.f32 %v1918_v60, %v1781_v63  ;;  %v1791_v5 = vmax.f32 %v1787_v62, 0.0 }
 0xa48   :  { %v1790_v3 = vmax.f32 %v1782_v14, 0.0 }
 0xa4a   :  { %2239 = vmatprep.mubr.msk.f32.mxu1 %vm351_vm1, %v1790_v3 }
 0xa4b   :  { %2240 = vmatmul.mubr.msk.f32.vlgmr.msra.gmra.mxu1 %vm351_vm1, %v1791_v5 }
 0xb0b   :  { %v2241_v8 = vpop.f32.mrf.mxu1 }
 0xb0c   :  { %v1885_v1 = vadd.f32 %v2241_v8, %v1919_v7 }
 0xb0d   :  { %v1879_v0 = vpop.f32.mrf.mxu1 }
 0xb0e   :  { %v1889_v15 = vadd.f32 %v1885_v1, %v1689_v52  ;;  %v1880_v54 = vadd.f32 %v1919_v7, %v1879_v0 }
 0xb10   :  { %v1891_v9 = vadd.f32 %v1889_v15, %v2767_v4  ;;  %v1888_v61 = vadd.f32 %v1880_v54, %v1684_v47 }
 0xb12   :  { %1893 = vst [vmem:[%s3333_s17 + $0x8] sm:$0xff] %v1891_v9  ;;  %v1890_v55 = vadd.f32 %v1888_v61, %v2770_v6 }
 0xb14   :  { %1892 = vst [vmem:[%s3333_s17] sm:$0xff] %v1890_v55 }
 0xb15   :  { %1898 = vsyncpa [#allocation3], 1 }
 0xb16   :  { %1899 = vsyncpa [#allocation5], 1 }

// kernel: hft_forward.13
= control target key start
LH: loop header
LB: loop body
LE: loop exit
PB: predicated region body
PF: predicated region fallthrough
CT: control target
= control target key end

     0   :  { %10 = vsyncpa [#allocation3], 0  ;;  %s499_s0 = inlined_call_operand.vmem [shape: f32[2,8,128], index: 0, kind: input, shape index: {}]   ;;  %s500_s1 = inlined_call_operand.hbm [shape: f32[1,128], index: 1, kind: input, shape index: {}]   ;;  %s501_s2 = inlined_call_operand.hbm [shape: f32[1,128], index: 2, kind: input, shape index: {}]   ;;  %s502_s3 = inlined_call_operand.vmem [shape: f32[128,10], index: 3, kind: input, shape index: {}]   ;;  %s503_s4 = inlined_call_operand.hbm [shape: f32[1,10], index: 4, kind: input, shape index: {}]   ;;  %s504_s5 = inlined_call_operand.hbm [shape: f32[2,10], index: 5, kind: output, shape index: {}]  }
   0x1   :  { %11 = vsyncpa [#allocation6], 0 }
   0x2   :  { %12 = vsyncpa [#allocation4], 0  ;;  %s392_s18 = smov [#allocation5]   ;;  %s393_s20 = smov [#allocation2]  }
   0x3   :  { %s31_s19 = sshll.u32 %s392_s18, 4  ;;  %s21_s21 = sshll.u32 %s393_s20, 4  ;;  %s32_s19 = int_to_ptr.vmem [resolvable:$true] %s31_s19  ;;  %s22_s21 = int_to_ptr.vmem [resolvable:$true] %s21_s21 }
   0x4   :  { %s314_s22 = scalar_lea.vmem %s32_s19, 16  ;;  %s318_s23 = scalar_lea.vmem %s32_s19, 32 }
   0x5   :  { %p315_p0 = scmp.ne.s32.totalorder %s32_s19, %s314_s22  ;;  %p319_p1 = scmp.lt.s32.totalorder %s32_s19, %s32_s19 }
   0x6   :  { %p320_p2 = scmp.lt.s32.totalorder %s318_s23, %s314_s22 }
   0x8   :  { %p321_p3 = por %p320_p2, %p319_p1 }
   0xa   :  { %p322_p4 = pnand %p321_p3, %p315_p0 }
   0xc   :  { %325 = shalt.err (!%p322_p4)
}
   0xd   :  { %34 = dma.hbm_to_vmem [thread:$0]  %s501_s2, 16, %s32_s19, [#allocation6]  }
   0xe   :  { %s334_s26 = scalar_lea.vmem %s22_s21, 16  ;;  %s338_s27 = scalar_lea.vmem %s22_s21, 32 }
   0xf   :  { %p335_p5 = scmp.ne.s32.totalorder %s22_s21, %s334_s26  ;;  %p339_p6 = scmp.lt.s32.totalorder %s22_s21, %s22_s21 }
  0x10   :  { %p340_p7 = scmp.lt.s32.totalorder %s338_s27, %s334_s26 }
  0x12   :  { %p341_p8 = por %p340_p7, %p339_p6 }
  0x14   :  { %p342_p9 = pnand %p341_p8, %p335_p5 }
  0x16   :  { %345 = shalt.err (!%p342_p9)
}
  0x17   :  { %24 = dma.hbm_to_vmem [thread:$0]  %s500_s1, 16, %s22_s21, [#allocation3]  }
  0x18   :  { %s394_s30 = smov [#allocation7]  }
  0x19   :  { %s43_s6 = sshll.u32 %s394_s30, 4  ;;  %s44_s6 = int_to_ptr.vmem [resolvable:$true] %s43_s6 }
  0x1a   :  { %s354_s7 = scalar_lea.vmem %s44_s6, 16  ;;  %s358_s8 = scalar_lea.vmem %s44_s6, 32 }
  0x1b   :  { %p355_p10 = scmp.ne.s32.totalorder %s44_s6, %s354_s7  ;;  %p359_p11 = scmp.lt.s32.totalorder %s44_s6, %s44_s6 }
  0x1c   :  { %p360_p12 = scmp.lt.s32.totalorder %s358_s8, %s354_s7 }
  0x1e   :  { %p361_p13 = por %p360_p12, %p359_p11 }
  0x20   :  { %p362_p0 = pnand %p361_p13, %p355_p10 }
  0x22   :  { %365 = shalt.err (!%p362_p0)
}
  0x23   :  { %46 = dma.hbm_to_vmem [thread:$0]  %s503_s4, 16, %s44_s6, [#allocation6]  }
  0x24   :  { %386 = dma.done.wait [#allocation3], 16  }
  0x25   :  { %387 = vsyncadd [#allocation3], 4294967280 }
  0x26   :  { %388 = dma.done.wait [#allocation6], 32  }
  0x27   :  { %389 = vsyncadd [#allocation6], 4294967264  ;;  %v56_v0 = vld [vmem:[%s499_s0] sm:$0xff]  ;;  %v57_v1 = vld [vmem:[%s499_s0 + $0x8] sm:$0xff]  ;;  %vm77_vm0 = vcmask 1041409   ;;  %vm80_vm1 = vcmask 1041408  }
  0x28   :  { %v58_v2 = vrot.slane %v56_v0, 4  ;;  %v64_v3 = vrot.slane %v57_v1, 4  ;;  %v142_v18 = vld [vmem:[%s502_s3 + $0x78] sm:$0xff]  ;;  %v395_v19 = vmov 0.0   ;;  %v141_v30 = vld [vmem:[%s502_s3 + $0x70] sm:$0xff]  ;;  %v140_v31 = vld [vmem:[%s502_s3 + $0x68] sm:$0xff] }
  0x29   :  { %263 = vmatprep.subr.mxu0 %v395_v19  ;;  %v139_v32 = vld [vmem:[%s502_s3 + $0x60] sm:$0xff]  ;;  %v138_v33 = vld [vmem:[%s502_s3 + $0x58] sm:$0xff]  ;;  %v137_v34 = vld [vmem:[%s502_s3 + $0x50] sm:$0xff]  ;;  %vm396_vm2 = vmmov 0   ;;  %vm225_vm3 = vcmask 74752  }
  0x2a   :  { %v59_v4 = vadd.f32 %v58_v2, %v56_v0  ;;  %v65_v5 = vadd.f32 %v64_v3, %v57_v1  ;;  %264 = vmatpush3.msra.mxu0 %v142_v18  ;;  %295 = vmatprep.mubr.msk.f32.mxu0 %vm396_vm2, %v395_v19  ;;  %v136_v35 = vld [vmem:[%s502_s3 + $0x48] sm:$0xff]  ;;  %v135_v36 = vld [vmem:[%s502_s3 + $0x40] sm:$0xff]  ;;  %v134_v37 = vld [vmem:[%s502_s3 + $0x38] sm:$0xff] }
  0x2b   :  { %265 = vmatprep.subr.mxu0 %v395_v19  ;;  %v133_v38 = vld [vmem:[%s502_s3 + $0x30] sm:$0xff]  ;;  %v132_v39 = vld [vmem:[%s502_s3 + $0x28] sm:$0xff]  ;;  %v131_v40 = vld [vmem:[%s502_s3 + $0x20] sm:$0xff] }
  0x2c   :  { %v60_v6 = vrot.slane %v59_v4, 2  ;;  %v66_v7 = vrot.slane %v65_v5, 2  ;;  %266 = vmatpush3.msra.mxu0 %v141_v30  ;;  %v130_v41 = vld [vmem:[%s502_s3 + $0x18] sm:$0xff]  ;;  %v129_v42 = vld [vmem:[%s502_s3 + $0x10] sm:$0xff]  ;;  %v128_v43 = vld [vmem:[%s502_s3 + $0x8] sm:$0xff] }
  0x2d   :  { %267 = vmatprep.subr.mxu0 %v395_v19  ;;  %v127_v44 = vld [vmem:[%s502_s3] sm:$0xff]  ;;  %s397_s3 = smov [#allocation8]  }
  0x2e   :  { %v61_v8 = vadd.f32 %v60_v6, %v59_v4  ;;  %v67_v9 = vadd.f32 %v66_v7, %v65_v5  ;;  %268 = vmatpush3.msra.mxu0 %v140_v31  ;;  %v243_v51 = vld [vmem:[#allocation2] ss:$0 sm:$0xff]  ;;  %v244_v55 = vld [vmem:[#allocation5] ss:$0 sm:$0xff]  ;;  %v245_v60 = vld [vmem:[#allocation7] ss:$0 sm:$0xff] }
  0x2f   :  { %269 = vmatprep.subr.mxu0 %v395_v19  ;;  %s233_s14 = sshll.u32 %s397_s3, 4  ;;  %s234_s14 = int_to_ptr.vmem [resolvable:$true] %s233_s14 }
  0x30   :  { %v62_v10 = vrot.slane %v61_v8, 1  ;;  %v68_v11 = vrot.slane %v67_v9, 1  ;;  %270 = vmatpush3.msra.mxu0 %v139_v32  ;;  %s366_s15 = scalar_lea.vmem %s234_s14, 32  ;;  %p371_p2 = scmp.lt.s32.totalorder %s234_s14, %s234_s14 }
  0x31   :  { %271 = vmatprep.subr.mxu0 %v395_v19  ;;  %p367_p1 = scmp.ne.s32.totalorder %s234_s14, %s366_s15  ;;  %p372_p3 = scmp.lt.s32.totalorder %s366_s15, %s366_s15 }
  0x32   :  { %v63_v12 = vadd.f32 %v62_v10, %v61_v8  ;;  %v69_v13 = vadd.f32 %v68_v11, %v67_v9  ;;  %272 = vmatpush3.msra.mxu0 %v138_v33 }
  0x33   :  { %273 = vmatprep.subr.mxu0 %v395_v19  ;;  %p373_p4 = por %p372_p3, %p371_p2 }
  0x34   :  { %v71_v14 = vmul.f32 0.125, %v63_v12  ;;  %v72_v15 = vmul.f32 0.125, %v69_v13  ;;  %274 = vmatpush3.msra.mxu0 %v137_v34 }
  0x35   :  { %275 = vmatprep.subr.mxu0 %v395_v19  ;;  %p374_p5 = pnand %p373_p4, %p367_p1 }
  0x36   :  { %v78_v16 = vsel %vm77_vm0, %v72_v15, %v71_v14  ;;  %276 = vmatpush3.msra.mxu0 %v136_v35 }
  0x37   :  { %v81_v17 = vsel %vm80_vm1, %v78_v16, 0.0  ;;  %277 = vmatprep.subr.mxu0 %v395_v19 }
  0x38   :  { %82 = vadd.xlane.f32.xlu0 %v81_v17  ;;  %278 = vmatpush3.msra.mxu0 %v135_v36 }
  0x39   :  { %279 = vmatprep.subr.mxu0 %v395_v19 }
  0x3a   :  { %280 = vmatpush3.msra.mxu0 %v134_v37 }
  0x3b   :  { %281 = vmatprep.subr.mxu0 %v395_v19 }
  0x3c   :  { %282 = vmatpush3.msra.mxu0 %v133_v38 }
  0x3d   :  { %283 = vmatprep.subr.mxu0 %v395_v19 }
  0x3e   :  { %284 = vmatpush3.msra.mxu0 %v132_v39 }
  0x3f   :  { %285 = vmatprep.subr.mxu0 %v395_v19 }
  0x40   :  { %286 = vmatpush3.msra.mxu0 %v131_v40 }
  0x41   :  { %287 = vmatprep.subr.mxu0 %v395_v19 }
  0x42   :  { %288 = vmatpush3.msra.mxu0 %v130_v41 }
  0x43   :  { %289 = vmatprep.subr.mxu0 %v395_v19 }
  0x44   :  { %290 = vmatpush3.msra.mxu0 %v129_v42 }
  0x45   :  { %291 = vmatprep.subr.mxu0 %v395_v19 }
  0x46   :  { %292 = vmatpush3.msra.mxu0 %v128_v43 }
  0x47   :  { %293 = vmatprep.subr.mxu0 %v395_v19 }
  0x48   :  { %294 = vmatpush3.msra.mxu0 %v127_v44 }
  0xc1   :  { %v83_v20 = vpop.xlane.xlu0 %82 }
  0xc2   :  { %v85_v21 = vmul.f32 0.0078125, %v83_v20 }
  0xc4   :  { %v87_v22 = vrot.slane %v85_v21, 1  ;;  %v90_v23 = vsub.f32 %v71_v14, %v85_v21 }
  0xc6   :  { %v91_v24 = vsub.f32 %v72_v15, %v87_v22  ;;  %v92_v26 = vmul.f32 %v90_v23, %v90_v23 }
  0xc8   :  { %v93_v25 = vmul.f32 %v91_v24, %v91_v24 }
  0xca   :  { %v96_v27 = vrot.slane %v93_v25, 7 }
  0xcc   :  { %v97_v28 = vsel %vm77_vm0, %v96_v27, %v92_v26 }
  0xcd   :  { %v99_v29 = vsel %vm80_vm1, %v97_v28, 0.0 }
  0xce   :  { %100 = vadd.xlane.f32.xlu0 %v99_v29 }
 0x157   :  { %v101_v45 = vpop.xlane.xlu0 %100 }
 0x158   :  { %v102_v46 = vmul.f32 0.0078125, %v101_v45 }
 0x15a   :  { %v103_v47 = vadd.f32 1e-05, %v102_v46 }
 0x15c   :  { %304 = vrsqrt.f32 %v103_v47 }
 0x169   :  { %v305_v48 = vpop.eup %304 }
 0x16a   :  { %v106_v49 = vrot.slane %v305_v48, 1  ;;  %v109_v50 = vmul.f32 %v305_v48, %v90_v23 }
 0x16c   :  { %v110_v52 = vmul.f32 %v106_v49, %v91_v24  ;;  %v117_v53 = vmul.f32 %v243_v51, %v109_v50 }
 0x16e   :  { %v118_v54 = vmul.f32 %v243_v51, %v110_v52  ;;  %v125_v57 = vadd.f32 %v244_v55, %v117_v53 }
 0x170   :  { %v126_v56 = vadd.f32 %v244_v55, %v118_v54 }
 0x172   :  { %v152_v58 = vrot.slane %v126_v56, 7 }
 0x174   :  { %v153_v59 = vsel %vm77_vm0, %v152_v58, %v125_v57 }
 0x175   :  { %296 = vmatmul.mubr.f32.vlgmr.msra.gmra.mxu0 %v153_v59 }
 0x235   :  { %v221_v61 = vpop.f32.mrf.mxu0 }
 0x236   :  { %v222_v62 = vadd.f32 %v245_v60, %v221_v61 }
 0x237   :  { %v297_v63 = vpop.f32.mrf.mxu0 }
 0x238   :  { %226 = vst.msk [vmem:[#allocation8] sm:$0x3] %vm225_vm3, %v222_v62 }
 0x239   :  { %377 = shalt.err (!%p374_p5)
}
 0x23a   :  { %236 = dma.vmem_to_hbm [thread:$0]  %s234_s14, 32, %s504_s5, [#allocation4]  }
 0x23b   :  { %390 = dma.done.wait [#allocation4], 32  }
 0x23c   :  { %391 = vsyncadd [#allocation4], 4294967264 }
 0x23d   :  { %240 = vsyncpa [#allocation3], 1 }
 0x23e   :  { %241 = vsyncpa [#allocation6], 1 }
 0x23f   :  { %242 = vsyncpa [#allocation4], 1 }

// kernel: hft_forward.8
= control target key start
LH: loop header
LB: loop body
LE: loop exit
PB: predicated region body
PF: predicated region fallthrough
CT: control target
= control target key end

     0   :  { %s6173_s0 = inlined_call_operand.vmem [shape: f32[2,8,256], index: 0, kind: input, shape index: {}, may-alias: {0,17}]   ;;  %s6174_s1 = inlined_call_operand.vmem [shape: f32[1,256], index: 1, kind: input, shape index: {}]   ;;  %s6175_s2 = inlined_call_operand.vmem [shape: f32[1,256], index: 2, kind: input, shape index: {}]   ;;  %s6176_s3 = inlined_call_operand.vmem [shape: f32[256,768], index: 3, kind: input, shape index: {}]   ;;  %s6177_s4 = inlined_call_operand.vmem [shape: f32[1,768], index: 4, kind: input, shape index: {}]   ;;  %s6178_s5 = inlined_call_operand.vmem [shape: f32[256,256], index: 5, kind: input, shape index: {}]   ;;  %s6179_s6 = inlined_call_operand.vmem [shape: f32[1,256], index: 6, kind: input, shape index: {}]   ;;  %s6180_s7 = inlined_call_operand.vmem [shape: f32[1,256], index: 7, kind: input, shape index: {}]   ;;  %s6181_s8 = inlined_call_operand.vmem [shape: f32[1,256], index: 8, kind: input, shape index: {}]   ;;  %s6182_s9 = inlined_call_operand.vmem [shape: f32[256,1024], index: 9, kind: input, shape index: {}]   ;;  %s6183_s10 = inlined_call_operand.vmem [shape: f32[1,1024], index: 10, kind: input, shape index: {}]   ;;  %s6184_s11 = inlined_call_operand.vmem [shape: f32[1024,256], index: 11, kind: input, shape index: {}]   ;;  %s6185_s12 = inlined_call_operand.vmem [shape: f32[1,256], index: 12, kind: input, shape index: {}]   ;;  %s6186_s13 = inlined_call_operand.vmem [shape: f32[256,64], index: 13, kind: input, shape index: {}]   ;;  %s6187_s14 = inlined_call_operand.hbm [shape: f32[1,64], index: 14, kind: input, shape index: {}]   ;;  %s6188_s15 = inlined_call_operand.vmem [shape: f32[64,256], index: 15, kind: input, shape index: {}]   ;;  %s6189_s16 = inlined_call_operand.vmem [shape: f32[1,256], index: 16, kind: input, shape index: {}]   ;;  %s6190_s17 = inlined_call_operand.vmem [shape: f32[2,8,256], index: 17, kind: output, shape index: {}, may-alias: {0,17}]  }
   0x1   :  { %6192 = sst [smem:[#allocation5_spill]] %s6173_s0 }
   0x2   :  { %6193 = sst [smem:[#allocation6_spill]] %s6174_s1 }
   0x3   :  { %22 = vsyncpa [#allocation3], 0  ;;  %s3191_s24 = smov [#allocation2]  }
   0x4   :  { %s57_s25 = sshll.u32 %s3191_s24, 4  ;;  %s58_s25 = int_to_ptr.vmem [resolvable:$true] %s57_s25 }
   0x5   :  { %s3177_s26 = scalar_lea.vmem %s58_s25, 16  ;;  %s3181_s27 = scalar_lea.vmem %s58_s25, 32 }
   0x6   :  { %p3178_p0 = scmp.ne.s32.totalorder %s58_s25, %s3177_s26  ;;  %p3182_p1 = scmp.lt.s32.totalorder %s58_s25, %s58_s25 }
   0x7   :  { %p3183_p2 = scmp.lt.s32.totalorder %s3181_s27, %s3177_s26 }
   0x9   :  { %p3184_p3 = por %p3183_p2, %p3182_p1 }
   0xb   :  { %p3185_p4 = pnand %p3184_p3, %p3178_p0 }
   0xd   :  { %3188 = shalt.err (!%p3185_p4)
}
   0xe   :  { %60 = dma.hbm_to_vmem [thread:$0]  %s6187_s14, 16, %s58_s25, [#allocation3]  }
   0xf   :  { %3189 = dma.done.wait [#allocation3], 16  }
  0x10   :  { %3190 = vsyncadd [#allocation3], 4294967280  ;;  %s6194_s18 = sld [smem:[#allocation5_spill]]  ;;  %v228_v6 = vld [vmem:[%s6176_s3 + $0x2d8] sm:$0xff]  ;;  %v227_v7 = vld [vmem:[%s6176_s3 + $0x2d0] sm:$0xff]  ;;  %vm3193_vm0 = vmmov 0  }
  0x11   :  { %v230_v8 = vld [vmem:[%s6176_s3 + $0x2e8] sm:$0xff]  ;;  %361 = vmatprep.subr.mxu0 %v228_v6  ;;  %v229_v10 = vld [vmem:[%s6176_s3 + $0x2e0] sm:$0xff]  ;;  %v224_v12 = vld [vmem:[%s6176_s3 + $0x2b8] sm:$0xff]  ;;  %s6195_s28 = sld [smem:[#allocation6_spill]]  ;;  %vm663_vm1 = vcmask 64512   ;;  %vm2904_vm2 = vcmask 523264  }
  0x12   :  { %438 = vmatprep.subr.mxu1 %v230_v8  ;;  %v222_v9 = vld [vmem:[%s6176_s3 + $0x2a8] sm:$0xff]  ;;  %v221_v11 = vld [vmem:[%s6176_s3 + $0x2a0] sm:$0xff]  ;;  %362 = vmatpush1.msra.mxu0 %v227_v7  ;;  %v216_v13 = vld [vmem:[%s6176_s3 + $0x278] sm:$0xff] }
  0x13   :  { %439 = vmatpush1.msra.mxu1 %v229_v10  ;;  %v223_v14 = vld [vmem:[%s6176_s3 + $0x2b0] sm:$0xff]  ;;  %363 = vmatprep.subr.mxu0 %v222_v9  ;;  %v218_v16 = vld [vmem:[%s6176_s3 + $0x288] sm:$0xff]  ;;  %v217_v18 = vld [vmem:[%s6176_s3 + $0x280] sm:$0xff] }
  0x14   :  { %440 = vmatprep.subr.mxu1 %v224_v12  ;;  %v215_v15 = vld [vmem:[%s6176_s3 + $0x270] sm:$0xff]  ;;  %364 = vmatpush1.msra.mxu0 %v221_v11  ;;  %v210_v17 = vld [vmem:[%s6176_s3 + $0x248] sm:$0xff]  ;;  %v212_v19 = vld [vmem:[%s6176_s3 + $0x258] sm:$0xff] }
  0x15   :  { %441 = vmatpush1.msra.mxu1 %v223_v14  ;;  %365 = vmatprep.subr.mxu0 %v216_v13  ;;  %v209_v20 = vld [vmem:[%s6176_s3 + $0x240] sm:$0xff]  ;;  %v211_v21 = vld [vmem:[%s6176_s3 + $0x250] sm:$0xff]  ;;  %v204_v22 = vld [vmem:[%s6176_s3 + $0x218] sm:$0xff] }
  0x16   :  { %v3290_v0 = vld [vmem:[%s6194_s18] sm:$0xff]  ;;  %v3295_v1 = vld [vmem:[%s6194_s18 + $0x8] sm:$0xff]  ;;  %v3300_v2 = vld [vmem:[%s6194_s18 + $0x10] sm:$0xff]  ;;  %442 = vmatprep.subr.mxu1 %v218_v16  ;;  %366 = vmatpush1.msra.mxu0 %v215_v15 }
  0x17   :  { %v74_v3 = vadd.f32 %v3295_v1, %v3290_v0  ;;  %v3307_v4 = vld [vmem:[%s6194_s18 + $0x18] sm:$0xff]  ;;  %443 = vmatpush1.msra.mxu1 %v217_v18  ;;  %v206_v23 = vld [vmem:[%s6176_s3 + $0x228] sm:$0xff]  ;;  %367 = vmatprep.subr.mxu0 %v210_v17  ;;  %v203_v24 = vld [vmem:[%s6176_s3 + $0x210] sm:$0xff] }
  0x18   :  { %v77_v5 = vadd.f32 %v3307_v4, %v3300_v2  ;;  %444 = vmatprep.subr.mxu1 %v212_v19  ;;  %v205_v25 = vld [vmem:[%s6176_s3 + $0x220] sm:$0xff]  ;;  %368 = vmatpush1.msra.mxu0 %v209_v20  ;;  %v198_v26 = vld [vmem:[%s6176_s3 + $0x1e8] sm:$0xff]  ;;  %v200_v27 = vld [vmem:[%s6176_s3 + $0x1f8] sm:$0xff] }
  0x19   :  { %75 = vadd.xlane.f32.xlu0 %v74_v3  ;;  %445 = vmatpush1.msra.mxu1 %v211_v21  ;;  %v197_v28 = vld [vmem:[%s6176_s3 + $0x1e0] sm:$0xff]  ;;  %v199_v29 = vld [vmem:[%s6176_s3 + $0x1f0] sm:$0xff]  ;;  %v192_v30 = vld [vmem:[%s6176_s3 + $0x1b8] sm:$0xff] }
  0x1a   :  { %78 = vadd.xlane.f32.xlu1 %v77_v5  ;;  %369 = vmatprep.subr.mxu0 %v204_v22  ;;  %v194_v31 = vld [vmem:[%s6176_s3 + $0x1c8] sm:$0xff]  ;;  %v191_v32 = vld [vmem:[%s6176_s3 + $0x1b0] sm:$0xff]  ;;  %v193_v33 = vld [vmem:[%s6176_s3 + $0x1c0] sm:$0xff] }
  0x1b   :  { %446 = vmatprep.subr.mxu1 %v206_v23  ;;  %370 = vmatpush1.msra.mxu0 %v203_v24  ;;  %v186_v34 = vld [vmem:[%s6176_s3 + $0x188] sm:$0xff]  ;;  %v188_v35 = vld [vmem:[%s6176_s3 + $0x198] sm:$0xff]  ;;  %v185_v36 = vld [vmem:[%s6176_s3 + $0x180] sm:$0xff] }
  0x1c   :  { %447 = vmatpush1.msra.mxu1 %v205_v25  ;;  %371 = vmatprep.subr.mxu0 %v198_v26  ;;  %v187_v37 = vld [vmem:[%s6176_s3 + $0x190] sm:$0xff]  ;;  %v180_v38 = vld [vmem:[%s6176_s3 + $0x158] sm:$0xff]  ;;  %v182_v39 = vld [vmem:[%s6176_s3 + $0x168] sm:$0xff] }
  0x1d   :  { %448 = vmatprep.subr.mxu1 %v200_v27  ;;  %372 = vmatpush1.msra.mxu0 %v197_v28  ;;  %v179_v40 = vld [vmem:[%s6176_s3 + $0x150] sm:$0xff]  ;;  %v181_v41 = vld [vmem:[%s6176_s3 + $0x160] sm:$0xff]  ;;  %v174_v42 = vld [vmem:[%s6176_s3 + $0x128] sm:$0xff] }
  0x1e   :  { %449 = vmatpush1.msra.mxu1 %v199_v29  ;;  %373 = vmatprep.subr.mxu0 %v192_v30  ;;  %v176_v43 = vld [vmem:[%s6176_s3 + $0x138] sm:$0xff]  ;;  %v173_v44 = vld [vmem:[%s6176_s3 + $0x120] sm:$0xff]  ;;  %v175_v45 = vld [vmem:[%s6176_s3 + $0x130] sm:$0xff] }
  0x1f   :  { %450 = vmatprep.subr.mxu1 %v194_v31  ;;  %374 = vmatpush1.msra.mxu0 %v191_v32  ;;  %v168_v46 = vld [vmem:[%s6176_s3 + $0xf8] sm:$0xff]  ;;  %v170_v47 = vld [vmem:[%s6176_s3 + $0x108] sm:$0xff]  ;;  %v167_v48 = vld [vmem:[%s6176_s3 + $0xf0] sm:$0xff] }
  0x20   :  { %451 = vmatpush1.msra.mxu1 %v193_v33  ;;  %375 = vmatprep.subr.mxu0 %v186_v34  ;;  %v169_v49 = vld [vmem:[%s6176_s3 + $0x100] sm:$0xff]  ;;  %v162_v50 = vld [vmem:[%s6176_s3 + $0xc8] sm:$0xff]  ;;  %v164_v51 = vld [vmem:[%s6176_s3 + $0xd8] sm:$0xff] }
  0x21   :  { %452 = vmatprep.subr.mxu1 %v188_v35  ;;  %376 = vmatpush1.msra.mxu0 %v185_v36  ;;  %v161_v52 = vld [vmem:[%s6176_s3 + $0xc0] sm:$0xff]  ;;  %v163_v53 = vld [vmem:[%s6176_s3 + $0xd0] sm:$0xff]  ;;  %v156_v54 = vld [vmem:[%s6176_s3 + $0x98] sm:$0xff] }
  0x22   :  { %453 = vmatpush1.msra.mxu1 %v187_v37  ;;  %377 = vmatprep.subr.mxu0 %v180_v38  ;;  %v158_v55 = vld [vmem:[%s6176_s3 + $0xa8] sm:$0xff]  ;;  %v155_v56 = vld [vmem:[%s6176_s3 + $0x90] sm:$0xff]  ;;  %v157_v57 = vld [vmem:[%s6176_s3 + $0xa0] sm:$0xff] }
  0x23   :  { %454 = vmatprep.subr.mxu1 %v182_v39  ;;  %378 = vmatpush1.msra.mxu0 %v179_v40  ;;  %v150_v58 = vld [vmem:[%s6176_s3 + $0x68] sm:$0xff]  ;;  %v152_v59 = vld [vmem:[%s6176_s3 + $0x78] sm:$0xff]  ;;  %v149_v60 = vld [vmem:[%s6176_s3 + $0x60] sm:$0xff] }
  0x24   :  { %455 = vmatpush1.msra.mxu1 %v181_v41  ;;  %379 = vmatprep.subr.mxu0 %v174_v42  ;;  %v151_v61 = vld [vmem:[%s6176_s3 + $0x70] sm:$0xff]  ;;  %v144_v62 = vld [vmem:[%s6176_s3 + $0x38] sm:$0xff]  ;;  %v146_v63 = vld [vmem:[%s6176_s3 + $0x48] sm:$0xff] }
  0x25   :  { %456 = vmatprep.subr.mxu1 %v176_v43  ;;  %380 = vmatpush1.msra.mxu0 %v173_v44  ;;  %v143_v3 = vld [vmem:[%s6176_s3 + $0x30] sm:$0xff]  ;;  %v145_v5 = vld [vmem:[%s6176_s3 + $0x40] sm:$0xff]  ;;  %v138_v6 = vld [vmem:[%s6176_s3 + $0x8] sm:$0xff] }
  0x26   :  { %457 = vmatpush1.msra.mxu1 %v175_v45  ;;  %381 = vmatprep.subr.mxu0 %v168_v46  ;;  %v140_v7 = vld [vmem:[%s6176_s3 + $0x18] sm:$0xff]  ;;  %v137_v8 = vld [vmem:[%s6176_s3] sm:$0xff]  ;;  %v139_v9 = vld [vmem:[%s6176_s3 + $0x10] sm:$0xff] }
  0x27   :  { %458 = vmatprep.subr.mxu1 %v170_v47  ;;  %382 = vmatpush1.msra.mxu0 %v167_v48  ;;  %v324_v10 = vld [vmem:[%s6176_s3 + $0x5d8] sm:$0xff]  ;;  %v326_v11 = vld [vmem:[%s6176_s3 + $0x5e8] sm:$0xff]  ;;  %v323_v12 = vld [vmem:[%s6176_s3 + $0x5d0] sm:$0xff] }
  0x28   :  { %459 = vmatpush1.msra.mxu1 %v169_v49  ;;  %383 = vmatprep.subr.mxu0 %v162_v50  ;;  %v325_v13 = vld [vmem:[%s6176_s3 + $0x5e0] sm:$0xff]  ;;  %v318_v14 = vld [vmem:[%s6176_s3 + $0x5a8] sm:$0xff]  ;;  %v320_v15 = vld [vmem:[%s6176_s3 + $0x5b8] sm:$0xff] }
  0x29   :  { %460 = vmatprep.subr.mxu1 %v164_v51  ;;  %384 = vmatpush1.msra.mxu0 %v161_v52  ;;  %v317_v16 = vld [vmem:[%s6176_s3 + $0x5a0] sm:$0xff]  ;;  %v319_v17 = vld [vmem:[%s6176_s3 + $0x5b0] sm:$0xff]  ;;  %v312_v18 = vld [vmem:[%s6176_s3 + $0x578] sm:$0xff] }
  0x2a   :  { %461 = vmatpush1.msra.mxu1 %v163_v53  ;;  %385 = vmatprep.subr.mxu0 %v156_v54  ;;  %v314_v19 = vld [vmem:[%s6176_s3 + $0x588] sm:$0xff]  ;;  %v311_v20 = vld [vmem:[%s6176_s3 + $0x570] sm:$0xff]  ;;  %v313_v21 = vld [vmem:[%s6176_s3 + $0x580] sm:$0xff] }
  0x2b   :  { %462 = vmatprep.subr.mxu1 %v158_v55  ;;  %386 = vmatpush1.msra.mxu0 %v155_v56  ;;  %v306_v22 = vld [vmem:[%s6176_s3 + $0x548] sm:$0xff]  ;;  %v308_v23 = vld [vmem:[%s6176_s3 + $0x558] sm:$0xff]  ;;  %v305_v24 = vld [vmem:[%s6176_s3 + $0x540] sm:$0xff] }
  0x2c   :  { %463 = vmatpush1.msra.mxu1 %v157_v57  ;;  %387 = vmatprep.subr.mxu0 %v150_v58  ;;  %v299_v37 = vld [vmem:[%s6176_s3 + $0x510] sm:$0xff]  ;;  %v302_v38 = vld [vmem:[%s6176_s3 + $0x528] sm:$0xff]  ;;  %v301_v40 = vld [vmem:[%s6176_s3 + $0x520] sm:$0xff] }
  0x2d   :  { %464 = vmatprep.subr.mxu1 %v152_v59  ;;  %388 = vmatpush1.msra.mxu0 %v149_v60  ;;  %v294_v39 = vld [vmem:[%s6176_s3 + $0x4e8] sm:$0xff]  ;;  %v293_v41 = vld [vmem:[%s6176_s3 + $0x4e0] sm:$0xff]  ;;  %v296_v42 = vld [vmem:[%s6176_s3 + $0x4f8] sm:$0xff] }
  0x2e   :  { %465 = vmatpush1.msra.mxu1 %v151_v61  ;;  %389 = vmatprep.subr.mxu0 %v144_v62  ;;  %v288_v43 = vld [vmem:[%s6176_s3 + $0x4b8] sm:$0xff]  ;;  %v295_v44 = vld [vmem:[%s6176_s3 + $0x4f0] sm:$0xff]  ;;  %v290_v46 = vld [vmem:[%s6176_s3 + $0x4c8] sm:$0xff] }
  0x2f   :  { %466 = vmatprep.subr.mxu1 %v146_v63  ;;  %390 = vmatpush1.msra.mxu0 %v143_v3  ;;  %v287_v45 = vld [vmem:[%s6176_s3 + $0x4b0] sm:$0xff]  ;;  %v282_v47 = vld [vmem:[%s6176_s3 + $0x488] sm:$0xff]  ;;  %v289_v48 = vld [vmem:[%s6176_s3 + $0x4c0] sm:$0xff] }
  0x30   :  { %467 = vmatpush1.msra.mxu1 %v145_v5  ;;  %391 = vmatprep.subr.mxu0 %v138_v6  ;;  %v281_v49 = vld [vmem:[%s6176_s3 + $0x480] sm:$0xff]  ;;  %v284_v50 = vld [vmem:[%s6176_s3 + $0x498] sm:$0xff]  ;;  %v283_v52 = vld [vmem:[%s6176_s3 + $0x490] sm:$0xff] }
  0x31   :  { %468 = vmatprep.subr.mxu1 %v140_v7  ;;  %392 = vmatpush1.msra.mxu0 %v137_v8  ;;  %v276_v51 = vld [vmem:[%s6176_s3 + $0x458] sm:$0xff]  ;;  %v275_v53 = vld [vmem:[%s6176_s3 + $0x450] sm:$0xff]  ;;  %v278_v54 = vld [vmem:[%s6176_s3 + $0x468] sm:$0xff] }
  0x32   :  { %469 = vmatpush1.msra.mxu1 %v139_v9  ;;  %393 = vmatprep.subr.mxu0 %v324_v10  ;;  %v270_v55 = vld [vmem:[%s6176_s3 + $0x428] sm:$0xff]  ;;  %v277_v56 = vld [vmem:[%s6176_s3 + $0x460] sm:$0xff]  ;;  %v272_v58 = vld [vmem:[%s6176_s3 + $0x438] sm:$0xff] }
  0x33   :  { %470 = vmatprep.subr.mxu1 %v326_v11  ;;  %394 = vmatpush2.msra.mxu0 %v323_v12  ;;  %v269_v57 = vld [vmem:[%s6176_s3 + $0x420] sm:$0xff]  ;;  %v264_v59 = vld [vmem:[%s6176_s3 + $0x3f8] sm:$0xff]  ;;  %v271_v60 = vld [vmem:[%s6176_s3 + $0x430] sm:$0xff] }
  0x34   :  { %471 = vmatpush2.msra.mxu1 %v325_v13  ;;  %395 = vmatprep.subr.mxu0 %v318_v14  ;;  %v263_v61 = vld [vmem:[%s6176_s3 + $0x3f0] sm:$0xff]  ;;  %v266_v62 = vld [vmem:[%s6176_s3 + $0x408] sm:$0xff]  ;;  %v265_v3 = vld [vmem:[%s6176_s3 + $0x400] sm:$0xff] }
  0x35   :  { %472 = vmatprep.subr.mxu1 %v320_v15  ;;  %396 = vmatpush2.msra.mxu0 %v317_v16  ;;  %v258_v63 = vld [vmem:[%s6176_s3 + $0x3c8] sm:$0xff]  ;;  %v257_v5 = vld [vmem:[%s6176_s3 + $0x3c0] sm:$0xff]  ;;  %v260_v6 = vld [vmem:[%s6176_s3 + $0x3d8] sm:$0xff] }
  0x36   :  { %473 = vmatpush2.msra.mxu1 %v319_v17  ;;  %397 = vmatprep.subr.mxu0 %v312_v18  ;;  %v252_v7 = vld [vmem:[%s6176_s3 + $0x398] sm:$0xff]  ;;  %v259_v8 = vld [vmem:[%s6176_s3 + $0x3d0] sm:$0xff]  ;;  %v254_v10 = vld [vmem:[%s6176_s3 + $0x3a8] sm:$0xff] }
  0x37   :  { %474 = vmatprep.subr.mxu1 %v314_v19  ;;  %398 = vmatpush2.msra.mxu0 %v311_v20  ;;  %v251_v9 = vld [vmem:[%s6176_s3 + $0x390] sm:$0xff]  ;;  %v246_v11 = vld [vmem:[%s6176_s3 + $0x368] sm:$0xff]  ;;  %v253_v12 = vld [vmem:[%s6176_s3 + $0x3a0] sm:$0xff] }
  0x38   :  { %475 = vmatpush2.msra.mxu1 %v313_v21  ;;  %399 = vmatprep.subr.mxu0 %v306_v22  ;;  %v245_v13 = vld [vmem:[%s6176_s3 + $0x360] sm:$0xff]  ;;  %v248_v14 = vld [vmem:[%s6176_s3 + $0x378] sm:$0xff]  ;;  %v247_v16 = vld [vmem:[%s6176_s3 + $0x370] sm:$0xff] }
  0x39   :  { %476 = vmatprep.subr.mxu1 %v308_v23  ;;  %400 = vmatpush2.msra.mxu0 %v305_v24  ;;  %v240_v15 = vld [vmem:[%s6176_s3 + $0x338] sm:$0xff]  ;;  %v239_v17 = vld [vmem:[%s6176_s3 + $0x330] sm:$0xff]  ;;  %v242_v18 = vld [vmem:[%s6176_s3 + $0x348] sm:$0xff] }
  0x3a   :  { %v234_v19 = vld [vmem:[%s6176_s3 + $0x308] sm:$0xff]  ;;  %v241_v20 = vld [vmem:[%s6176_s3 + $0x340] sm:$0xff]  ;;  %v236_v22 = vld [vmem:[%s6176_s3 + $0x318] sm:$0xff] }
  0x3b   :  { %v233_v21 = vld [vmem:[%s6176_s3 + $0x300] sm:$0xff]  ;;  %v235_v23 = vld [vmem:[%s6176_s3 + $0x310] sm:$0xff]  ;;  %v232_v24 = vld [vmem:[%s6176_s3 + $0x2f8] sm:$0xff] }
  0xa2   :  { %v76_v25 = vpop.xlane.xlu0 %75 }
  0xa3   :  { %v81_v26 = vmul.f32 0.00390625, %v76_v25  ;;  %v79_v27 = vpop.xlane.xlu1 %78 }
  0xa4   :  { %v82_v28 = vmul.f32 0.00390625, %v79_v27 }
  0xa5   :  { %v3549_v29 = vsub.f32 %v3290_v0, %v81_v26  ;;  %v3552_v30 = vsub.f32 %v3295_v1, %v81_v26 }
  0xa6   :  { %v3555_v31 = vsub.f32 %v3300_v2, %v82_v28  ;;  %v3558_v32 = vsub.f32 %v3307_v4, %v82_v28  ;;  %v300_v2 = vld [vmem:[%s6176_s3 + $0x518] sm:$0xff]  ;;  %v307_v4 = vld [vmem:[%s6176_s3 + $0x550] sm:$0xff] }
  0xa7   :  { %v87_v33 = vmul.f32 %v3549_v29, %v3549_v29  ;;  %v88_v34 = vmul.f32 %v3552_v30, %v3552_v30  ;;  %401 = vmatprep.subr.mxu0 %v300_v2  ;;  %477 = vmatpush2.msra.mxu1 %v307_v4  ;;  %v72_v2 = vld [vmem:[%s6195_s28] sm:$0x3] }
  0xa8   :  { %v89_v35 = vmul.f32 %v3555_v31, %v3555_v31  ;;  %v90_v0 = vmul.f32 %v3558_v32, %v3558_v32  ;;  %402 = vmatpush2.msra.mxu0 %v299_v37  ;;  %478 = vmatprep.subr.mxu1 %v302_v38  ;;  %v73_v4 = vld [vmem:[%s6175_s2] sm:$0x3] }
  0xa9   :  { %v91_v1 = vadd.f32 %v88_v34, %v87_v33  ;;  %403 = vmatprep.subr.mxu0 %v294_v39  ;;  %479 = vmatpush2.msra.mxu1 %v301_v40 }
  0xaa   :  { %v94_v36 = vadd.f32 %v90_v0, %v89_v35  ;;  %404 = vmatpush2.msra.mxu0 %v293_v41  ;;  %480 = vmatprep.subr.mxu1 %v296_v42  ;;  %v108_v35 = vlaneseq }
  0xab   :  { %92 = vadd.xlane.f32.xlu0 %v91_v1  ;;  %405 = vmatprep.subr.mxu0 %v288_v43 }
  0xac   :  { %95 = vadd.xlane.f32.xlu1 %v94_v36  ;;  %481 = vmatpush2.msra.mxu1 %v295_v44  ;;  %v3718_v0 = vshrl.u32 %v108_v35, 7  ;;  %v303_v35 = vld [vmem:[%s6176_s3 + $0x530] sm:$0xff] }
  0xad   :  { %406 = vmatpush2.msra.mxu0 %v287_v45  ;;  %482 = vmatprep.subr.mxu1 %v290_v46 }
  0xae   :  { %407 = vmatprep.subr.mxu0 %v282_v47  ;;  %483 = vmatpush2.msra.mxu1 %v289_v48  ;;  %v3721_v1 = vsub.s32 1, %v3718_v0  ;;  %v3724_v36 = vsub.s32 0, %v3718_v0 }
  0xaf   :  { %408 = vmatpush2.msra.mxu0 %v281_v49  ;;  %484 = vmatprep.subr.mxu1 %v284_v50 }
  0xb0   :  { %409 = vmatprep.subr.mxu0 %v276_v51  ;;  %485 = vmatpush2.msra.mxu1 %v283_v52  ;;  %v115_v37 = vrot.slane %v72_v2, %v3721_v1  ;;  %v111_v38 = vrot.slane %v72_v2, %v3724_v36  ;;  %v130_v42 = vrot.slane %v73_v4, %v3721_v1  ;;  %v298_v2 = vld [vmem:[%s6176_s3 + $0x508] sm:$0xff] }
  0xb1   :  { %410 = vmatpush2.msra.mxu0 %v275_v53  ;;  %486 = vmatprep.subr.mxu1 %v278_v54  ;;  %v126_v44 = vrot.slane %v73_v4, %v3724_v36  ;;  %v220_v54 = vld [vmem:[%s6176_s3 + $0x298] sm:$0xff]  ;;  %v297_v4 = vld [vmem:[%s6176_s3 + $0x500] sm:$0xff] }
  0xb2   :  { %411 = vmatprep.subr.mxu0 %v270_v55  ;;  %487 = vmatpush2.msra.mxu1 %v277_v56  ;;  %v219_v55 = vld [vmem:[%s6176_s3 + $0x290] sm:$0xff]  ;;  %v214_v56 = vld [vmem:[%s6176_s3 + $0x268] sm:$0xff] }
  0xb3   :  { %412 = vmatpush2.msra.mxu0 %v269_v57  ;;  %488 = vmatprep.subr.mxu1 %v272_v58  ;;  %v213_v57 = vld [vmem:[%s6176_s3 + $0x260] sm:$0xff]  ;;  %v208_v58 = vld [vmem:[%s6176_s3 + $0x238] sm:$0xff] }
  0xb4   :  { %413 = vmatprep.subr.mxu0 %v264_v59  ;;  %489 = vmatpush2.msra.mxu1 %v271_v60  ;;  %v207_v59 = vld [vmem:[%s6176_s3 + $0x230] sm:$0xff]  ;;  %v202_v60 = vld [vmem:[%s6176_s3 + $0x208] sm:$0xff] }
  0xb5   :  { %414 = vmatpush2.msra.mxu0 %v263_v61  ;;  %490 = vmatprep.subr.mxu1 %v266_v62  ;;  %v201_v61 = vld [vmem:[%s6176_s3 + $0x200] sm:$0xff]  ;;  %v196_v62 = vld [vmem:[%s6176_s3 + $0x1d8] sm:$0xff] }
  0xb6   :  { %415 = vmatprep.subr.mxu0 %v258_v63  ;;  %491 = vmatpush2.msra.mxu1 %v265_v3  ;;  %v195_v63 = vld [vmem:[%s6176_s3 + $0x1d0] sm:$0xff]  ;;  %v190_v3 = vld [vmem:[%s6176_s3 + $0x1a8] sm:$0xff] }
  0xb7   :  { %416 = vmatpush2.msra.mxu0 %v257_v5  ;;  %492 = vmatprep.subr.mxu1 %v260_v6  ;;  %v189_v5 = vld [vmem:[%s6176_s3 + $0x1a0] sm:$0xff]  ;;  %v184_v6 = vld [vmem:[%s6176_s3 + $0x178] sm:$0xff] }
  0xb8   :  { %417 = vmatprep.subr.mxu0 %v252_v7  ;;  %493 = vmatpush2.msra.mxu1 %v259_v8  ;;  %v183_v7 = vld [vmem:[%s6176_s3 + $0x170] sm:$0xff]  ;;  %v178_v8 = vld [vmem:[%s6176_s3 + $0x148] sm:$0xff] }
  0xb9   :  { %418 = vmatpush2.msra.mxu0 %v251_v9  ;;  %494 = vmatprep.subr.mxu1 %v254_v10  ;;  %v177_v9 = vld [vmem:[%s6176_s3 + $0x140] sm:$0xff]  ;;  %v172_v10 = vld [vmem:[%s6176_s3 + $0x118] sm:$0xff] }
  0xba   :  { %419 = vmatprep.subr.mxu0 %v246_v11  ;;  %495 = vmatpush2.msra.mxu1 %v253_v12  ;;  %v171_v11 = vld [vmem:[%s6176_s3 + $0x110] sm:$0xff]  ;;  %v166_v12 = vld [vmem:[%s6176_s3 + $0xe8] sm:$0xff] }
  0xbb   :  { %420 = vmatpush2.msra.mxu0 %v245_v13  ;;  %496 = vmatprep.subr.mxu1 %v248_v14  ;;  %v165_v13 = vld [vmem:[%s6176_s3 + $0xe0] sm:$0xff]  ;;  %v160_v14 = vld [vmem:[%s6176_s3 + $0xb8] sm:$0xff] }
  0xbc   :  { %421 = vmatprep.subr.mxu0 %v240_v15  ;;  %497 = vmatpush2.msra.mxu1 %v247_v16  ;;  %v159_v15 = vld [vmem:[%s6176_s3 + $0xb0] sm:$0xff]  ;;  %v154_v16 = vld [vmem:[%s6176_s3 + $0x88] sm:$0xff] }
  0xbd   :  { %422 = vmatpush2.msra.mxu0 %v239_v17  ;;  %498 = vmatprep.subr.mxu1 %v242_v18  ;;  %v153_v17 = vld [vmem:[%s6176_s3 + $0x80] sm:$0xff]  ;;  %v148_v18 = vld [vmem:[%s6176_s3 + $0x58] sm:$0xff] }
  0xbe   :  { %423 = vmatprep.subr.mxu0 %v234_v19  ;;  %499 = vmatpush2.msra.mxu1 %v241_v20  ;;  %v147_v19 = vld [vmem:[%s6176_s3 + $0x50] sm:$0xff]  ;;  %v142_v20 = vld [vmem:[%s6176_s3 + $0x28] sm:$0xff] }
  0xbf   :  { %424 = vmatpush2.msra.mxu0 %v233_v21  ;;  %500 = vmatprep.subr.mxu1 %v236_v22  ;;  %v141_v21 = vld [vmem:[%s6176_s3 + $0x20] sm:$0xff]  ;;  %v328_v22 = vld [vmem:[%s6176_s3 + $0x5f8] sm:$0xff] }
  0xc0   :  { %501 = vmatpush2.msra.mxu1 %v235_v23  ;;  %515 = vmatprep.subr.mxu0 %v232_v24  ;;  %v327_v23 = vld [vmem:[%s6176_s3 + $0x5f0] sm:$0xff]  ;;  %v322_v24 = vld [vmem:[%s6176_s3 + $0x5c8] sm:$0xff] }
 0x134   :  { %v93_v25 = vpop.xlane.xlu0 %92 }
 0x135   :  { %v97_v26 = vmul.f32 0.00390625, %v93_v25  ;;  %v96_v27 = vpop.xlane.xlu1 %95  ;;  %v321_v25 = vld [vmem:[%s6176_s3 + $0x5c0] sm:$0xff] }
 0x136   :  { %v98_v28 = vmul.f32 0.00390625, %v96_v27  ;;  %v315_v27 = vld [vmem:[%s6176_s3 + $0x590] sm:$0xff] }
 0x137   :  { %v99_v33 = vadd.f32 1e-05, %v97_v26  ;;  %v316_v26 = vld [vmem:[%s6176_s3 + $0x598] sm:$0xff] }
 0x138   :  { %v100_v34 = vadd.f32 1e-05, %v98_v28  ;;  %v310_v28 = vld [vmem:[%s6176_s3 + $0x568] sm:$0xff] }
 0x139   :  { %3109 = vrsqrt.f32 %v99_v33  ;;  %v309_v33 = vld [vmem:[%s6176_s3 + $0x560] sm:$0xff] }
 0x13a   :  { %3111 = vrsqrt.f32 %v100_v34  ;;  %v304_v34 = vld [vmem:[%s6176_s3 + $0x538] sm:$0xff] }
 0x146   :  { %v3110_v39 = vpop.eup %3109 }
 0x147   :  { %v3112_v40 = vpop.eup %3111  ;;  %v104_v41 = vmul.f32 %v3110_v39, %v3552_v30  ;;  %v103_v43 = vmul.f32 %v3110_v39, %v3549_v29  ;;  %v231_v30 = vld [vmem:[%s6176_s3 + $0x2f0] sm:$0xff]  ;;  %v226_v29 = vld [vmem:[%s6176_s3 + $0x2c8] sm:$0xff] }
 0x148   :  { %v106_v45 = vmul.f32 %v3112_v40, %v3558_v32  ;;  %v105_v46 = vmul.f32 %v3112_v40, %v3555_v31  ;;  %v225_v31 = vld [vmem:[%s6176_s3 + $0x2c0] sm:$0xff]  ;;  %v286_v39 = vld [vmem:[%s6176_s3 + $0x4a8] sm:$0xff] }
 0x149   :  { %v119_v47 = vmul.f32 %v115_v37, %v104_v41  ;;  %v118_v48 = vmul.f32 %v111_v38, %v103_v43  ;;  %v285_v40 = vld [vmem:[%s6176_s3 + $0x4a0] sm:$0xff]  ;;  %v280_v41 = vld [vmem:[%s6176_s3 + $0x478] sm:$0xff]  ;;  %v274_v43 = vld [vmem:[%s6176_s3 + $0x448] sm:$0xff] }
 0x14a   :  { %v121_v49 = vmul.f32 %v115_v37, %v106_v45  ;;  %v120_v50 = vmul.f32 %v111_v38, %v105_v46  ;;  %v292_v37 = vld [vmem:[%s6176_s3 + $0x4d8] sm:$0xff]  ;;  %v291_v38 = vld [vmem:[%s6176_s3 + $0x4d0] sm:$0xff] }
 0x14b   :  { %v134_v51 = vadd.f32 %v130_v42, %v119_v47  ;;  %v3740_v52 = vadd.f32 %v126_v44, %v118_v48  ;;  %v268_v45 = vld [vmem:[%s6176_s3 + $0x418] sm:$0xff]  ;;  %v267_v46 = vld [vmem:[%s6176_s3 + $0x410] sm:$0xff]  ;;  %v262_v47 = vld [vmem:[%s6176_s3 + $0x3e8] sm:$0xff] }
 0x14c   :  { %v3745_v53 = vadd.f32 %v130_v42, %v121_v49  ;;  %v3755_v32 = vadd.f32 %v126_v44, %v120_v50  ;;  %v279_v42 = vld [vmem:[%s6176_s3 + $0x470] sm:$0xff]  ;;  %v273_v44 = vld [vmem:[%s6176_s3 + $0x440] sm:$0xff]  ;;  %v256_v49 = vld [vmem:[%s6176_s3 + $0x3b8] sm:$0xff] }
 0x14d   :  { %425 = vmatprep.mubr.f32.mxu0 %v134_v51  ;;  %502 = vmatprep.mubr.f32.mxu1 %v134_v51  ;;  %v261_v48 = vld [vmem:[%s6176_s3 + $0x3e0] sm:$0xff]  ;;  %v255_v50 = vld [vmem:[%s6176_s3 + $0x3b0] sm:$0xff] }
 0x14e   :  { %426 = vmatmul.mubr.f32.vlgmr.msra.gmra.mxu0 %v3740_v52  ;;  %503 = vmatmul.mubr.f32.vlgmr.msra.gmra.mxu1 %v3740_v52 }
 0x14f   :  { %516 = vmatpush1.msra.mxu0 %v231_v30  ;;  %431 = vmatprep.mubr.f32.mxu0 %v3745_v53  ;;  %v249_v30 = vld [vmem:[%s6176_s3 + $0x380] sm:$0xff] }
 0x150   :  { %517 = vmatprep.subr.mxu0 %v226_v29  ;;  %508 = vmatprep.mubr.f32.mxu1 %v3745_v53  ;;  %v244_v29 = vld [vmem:[%s6176_s3 + $0x358] sm:$0xff] }
 0x151   :  { %518 = vmatpush1.msra.mxu0 %v225_v31  ;;  %v243_v31 = vld [vmem:[%s6176_s3 + $0x350] sm:$0xff] }
 0x152   :  { %519 = vmatprep.subr.mxu0 %v220_v54  ;;  %432 = vmatmul.mubr.f32.gmra.mxu0 %v3755_v32  ;;  %v238_v54 = vld [vmem:[%s6176_s3 + $0x328] sm:$0xff] }
 0x153   :  { %520 = vmatpush1.msra.mxu0 %v219_v55  ;;  %579 = vmatprep.mubr.f32.mxu0 %v134_v51  ;;  %v250_v51 = vld [vmem:[%s6176_s3 + $0x388] sm:$0xff]  ;;  %v237_v55 = vld [vmem:[%s6176_s3 + $0x320] sm:$0xff] }
 0x154   :  { %521 = vmatprep.subr.mxu0 %v214_v56  ;;  %509 = vmatmul.mubr.f32.gmra.mxu1 %v3755_v32  ;;  %v3192_v56 = vmov 0.0  }
 0x155   :  { %522 = vmatpush1.msra.mxu0 %v213_v57  ;;  %3066 = vmatprep.subr.mxu1 %v3192_v56  ;;  %v341_v57 = vsub.s32 2, %v3718_v0 }
 0x156   :  { %523 = vmatprep.subr.mxu0 %v208_v58  ;;  %3068 = vmatprep.mubr.msk.f32.mxu1 %vm3193_vm0, %v3192_v56  ;;  %v329_v58 = vld [vmem:[%s6177_s4] sm:$0x3f] }
 0x157   :  { %524 = vmatpush1.msra.mxu0 %v207_v59 }
 0x158   :  { %525 = vmatprep.subr.mxu0 %v202_v60 }
 0x159   :  { %526 = vmatpush1.msra.mxu0 %v201_v61 }
 0x15a   :  { %527 = vmatprep.subr.mxu0 %v196_v62 }
 0x15b   :  { %528 = vmatpush1.msra.mxu0 %v195_v63 }
 0x15c   :  { %529 = vmatprep.subr.mxu0 %v190_v3 }
 0x15d   :  { %530 = vmatpush1.msra.mxu0 %v189_v5  ;;  %v338_v5 = vrot.slane %v329_v58, %v3721_v1 }
 0x15e   :  { %531 = vmatprep.subr.mxu0 %v184_v6 }
 0x15f   :  { %532 = vmatpush1.msra.mxu0 %v183_v7 }
 0x160   :  { %533 = vmatprep.subr.mxu0 %v178_v8 }
 0x161   :  { %534 = vmatpush1.msra.mxu0 %v177_v9 }
 0x162   :  { %535 = vmatprep.subr.mxu0 %v172_v10 }
 0x163   :  { %536 = vmatpush1.msra.mxu0 %v171_v11  ;;  %v349_v11 = vsub.s32 4, %v3718_v0 }
 0x164   :  { %537 = vmatprep.subr.mxu0 %v166_v12 }
 0x165   :  { %538 = vmatpush1.msra.mxu0 %v165_v13  ;;  %v350_v12 = vrot.slane %v329_v58, %v349_v11 }
 0x166   :  { %539 = vmatprep.subr.mxu0 %v160_v14 }
 0x167   :  { %540 = vmatpush1.msra.mxu0 %v159_v15 }
 0x168   :  { %541 = vmatprep.subr.mxu0 %v154_v16 }
 0x169   :  { %542 = vmatpush1.msra.mxu0 %v153_v17 }
 0x16a   :  { %543 = vmatprep.subr.mxu0 %v148_v18 }
 0x16b   :  { %544 = vmatpush1.msra.mxu0 %v147_v19 }
 0x16c   :  { %545 = vmatprep.subr.mxu0 %v142_v20 }
 0x16d   :  { %546 = vmatpush1.msra.mxu0 %v141_v21 }
 0x16e   :  { %547 = vmatprep.subr.mxu0 %v328_v22 }
 0x16f   :  { %548 = vmatpush2.msra.mxu0 %v327_v23 }
 0x170   :  { %549 = vmatprep.subr.mxu0 %v322_v24 }
 0x171   :  { %550 = vmatpush2.msra.mxu0 %v321_v25 }
 0x172   :  { %551 = vmatprep.subr.mxu0 %v316_v26  ;;  %v345_v26 = vsub.s32 3, %v3718_v0 }
 0x173   :  { %552 = vmatpush2.msra.mxu0 %v315_v27 }
 0x174   :  { %553 = vmatprep.subr.mxu0 %v310_v28  ;;  %v3975_v27 = vrot.slane %v329_v58, %v345_v26  ;;  %v353_v28 = vsub.s32 5, %v3718_v0 }
 0x175   :  { %554 = vmatpush2.msra.mxu0 %v309_v33 }
 0x176   :  { %555 = vmatprep.subr.mxu0 %v304_v34 }
 0x177   :  { %556 = vmatpush2.msra.mxu0 %v303_v35 }
 0x178   :  { %557 = vmatprep.subr.mxu0 %v298_v2  ;;  %v3981_v2 = vrot.slane %v329_v58, %v353_v28 }
 0x179   :  { %558 = vmatpush2.msra.mxu0 %v297_v4 }
 0x17a   :  { %559 = vmatprep.subr.mxu0 %v292_v37 }
 0x17b   :  { %560 = vmatpush2.msra.mxu0 %v291_v38 }
 0x17c   :  { %561 = vmatprep.subr.mxu0 %v286_v39 }
 0x17d   :  { %562 = vmatpush2.msra.mxu0 %v285_v40 }
 0x17e   :  { %563 = vmatprep.subr.mxu0 %v280_v41 }
 0x17f   :  { %564 = vmatpush2.msra.mxu0 %v279_v42 }
 0x180   :  { %565 = vmatprep.subr.mxu0 %v274_v43 }
 0x181   :  { %566 = vmatpush2.msra.mxu0 %v273_v44 }
 0x182   :  { %567 = vmatprep.subr.mxu0 %v268_v45 }
 0x183   :  { %568 = vmatpush2.msra.mxu0 %v267_v46 }
 0x184   :  { %569 = vmatprep.subr.mxu0 %v262_v47 }
 0x185   :  { %570 = vmatpush2.msra.mxu0 %v261_v48 }
 0x186   :  { %571 = vmatprep.subr.mxu0 %v256_v49 }
 0x187   :  { %572 = vmatpush2.msra.mxu0 %v255_v50 }
 0x188   :  { %573 = vmatprep.subr.mxu0 %v250_v51 }
 0x189   :  { %574 = vmatpush2.msra.mxu0 %v249_v30 }
 0x18a   :  { %575 = vmatprep.subr.mxu0 %v244_v29 }
 0x18b   :  { %576 = vmatpush2.msra.mxu0 %v243_v31 }
 0x18c   :  { %577 = vmatprep.subr.mxu0 %v238_v54 }
 0x18d   :  { %578 = vmatpush2.msra.mxu0 %v237_v55 }
 0x18e   :  { %580 = vmatmul.mubr.f32.vlgmr.msra.gmra.mxu0 %v3740_v52  ;;  %v342_v52 = vrot.slane %v329_v58, %v341_v57 }
 0x18f   :  { %585 = vmatprep.mubr.f32.mxu0 %v3745_v53  ;;  %v334_v53 = vrot.slane %v329_v58, %v3724_v36 }
 0x192   :  { %586 = vmatmul.mubr.f32.gmra.mxu0 %v3755_v32 }
 0x20e   :  { %v427_v59 = vpop.f32.mrf.mxu0  ;;  %v504_v60 = vpop.f32.mrf.mxu1 }
 0x20f   :  { %v505_v61 = vadd.f32 %v504_v60, %v342_v52  ;;  %v428_v32 = vadd.f32 %v427_v59, %v334_v53 }
 0x210   :  { %v429_v62 = vpop.f32.mrf.mxu0  ;;  %v506_v63 = vpop.f32.mrf.mxu1 }
 0x211   :  { %3067 = vmatpush3.xpose.msra.mxu1 %v505_v61  ;;  %v507_v35 = vadd.f32 %v506_v63, %v3975_v27  ;;  %v430_v37 = vadd.f32 %v429_v62, %v338_v5 }
 0x212   :  { %v433_v3 = vpop.f32.mrf.mxu0  ;;  %3071 = vmatprep.subr.mxu1 %v3192_v56 }
 0x213   :  { %v3956_v6 = vadd.f32 %v433_v3, %v334_v53 }
 0x214   :  { %3069 = vmatmul.mubr.f32.vlgmr.msra.gmra.mxu1 %v428_v32  ;;  %v510_v7 = vpop.f32.mrf.mxu1  ;;  %v435_v8 = vpop.f32.mrf.mxu0 }
 0x215   :  { %v3958_v9 = vadd.f32 %v510_v7, %v342_v52  ;;  %v3960_v10 = vadd.f32 %v435_v8, %v338_v5  ;;  %3073 = vmatprep.mubr.msk.f32.mxu1 %vm3193_vm0, %v3192_v56 }
 0x216   :  { %v3968_v15 = vpop.f32.mrf.mxu1 }
 0x217   :  { %v513_v7 = vadd.f32 %v3968_v15, %v3975_v27  ;;  %v1243_v27 = vld [vmem:[%s6178_s5 + $0xf0] sm:$0xff] }
 0x24e   :  { %v581_v13 = vpop.f32.mrf.mxu0 }
 0x24f   :  { %v582_v14 = vadd.f32 %v581_v13, %v350_v12 }
 0x250   :  { %v583_v4 = vpop.f32.mrf.mxu0 }
 0x251   :  { %3072 = vmatpush3.msra.mxu1 %v582_v14  ;;  %v584_v38 = vadd.f32 %v583_v4, %v3981_v2  ;;  %v1238_v4 = vld [vmem:[%s6178_s5 + $0xc8] sm:$0xff] }
 0x252   :  { %3076 = vmatprep.subr.mxu1 %v3192_v56  ;;  %v587_v29 = vpop.f32.mrf.mxu0 }
 0x253   :  { %v588_v31 = vadd.f32 %v587_v29, %v350_v12  ;;  %v1222_v29 = vld [vmem:[%s6178_s5 + $0x48] sm:$0xff] }
 0x254   :  { %v589_v8 = vpop.f32.mrf.mxu0 }
 0x2d4   :  { %v658_v16 = vpop.f32.mrf.mxu1 }
 0x2d5   :  { %v662_v17 = vmul.f32 0.088388346, %v658_v16 }
 0x2d6   :  { %v3070_v18 = vpop.f32.mrf.mxu1 }
 0x2d7   :  { %v664_v19 = vsel %vm663_vm1, %v662_v17, -inf }
 0x2d8   :  { %665 = vmax.xlane.f32.xlu0 %v664_v19 }
 0x361   :  { %v666_v20 = vpop.xlane.xlu0 %665 }
 0x362   :  { %v667_v21 = vsub.f32 %v662_v17, %v666_v20 }
 0x364   :  { %v668_v22 = vmul.f32 1.442695, %v667_v21 }
 0x366   :  { %3113 = vpow2.f32 %v668_v22  ;;  %v1244_v22 = vld [vmem:[%s6178_s5 + $0xf8] sm:$0xff] }
 0x373   :  { %v3114_v23 = vpop.eup %3113 }
 0x374   :  { %v670_v24 = vsel %vm663_vm1, %v3114_v23, 0.0 }
 0x375   :  { %671 = vadd.xlane.f32.xlu1 %v670_v24 }
 0x3fe   :  { %v672_v25 = vpop.xlane.xlu1 %671 }
 0x3ff   :  { %3115 = vrcp.f32 %v672_v25 }
 0x40c   :  { %v3116_v33 = vpop.eup %3115 }
 0x40d   :  { %v674_v34 = vmul.f32 %v3116_v33, %v3114_v23  ;;  %v1242_v33 = vld [vmem:[%s6178_s5 + $0xe8] sm:$0xff] }
 0x40f   :  { %3074 = vmatmul.mubr.msk.f32.vlgmr.msra.gmra.mxu1 %vm663_vm1, %v674_v34  ;;  %v1241_v34 = vld [vmem:[%s6178_s5 + $0xe0] sm:$0xff] }
 0x410   :  { %3077 = vmatpush3.xpose.msra.mxu1 %v507_v35  ;;  %3078 = vmatprep.mubr.msk.f32.mxu1 %vm3193_vm0, %v3192_v56  ;;  %v1240_v35 = vld [vmem:[%s6178_s5 + $0xd8] sm:$0xff] }
 0x411   :  { %3081 = vmatprep.subr.mxu1 %v3192_v56 }
 0x413   :  { %3079 = vmatmul.mubr.f32.vlgmr.msra.gmra.mxu1 %v430_v37  ;;  %v1237_v37 = vld [vmem:[%s6178_s5 + $0xc0] sm:$0xff] }
 0x414   :  { %3082 = vmatpush3.msra.mxu1 %v584_v38  ;;  %3083 = vmatprep.mubr.msk.f32.mxu1 %vm3193_vm0, %v3192_v56  ;;  %v1236_v38 = vld [vmem:[%s6178_s5 + $0xb8] sm:$0xff] }
 0x415   :  { %3086 = vmatprep.subr.mxu1 %v3192_v56 }
 0x4cf   :  { %v3991_v39 = vpop.f32.mrf.mxu1 }
 0x4d1   :  { %v3075_v40 = vpop.f32.mrf.mxu1 }
 0x4d2   :  { %v1235_v40 = vld [vmem:[%s6178_s5 + $0xb0] sm:$0xff] }
 0x4d3   :  { %v814_v41 = vpop.f32.mrf.mxu1 }
 0x4d4   :  { %v818_v42 = vmul.f32 0.088388346, %v814_v41  ;;  %v1234_v41 = vld [vmem:[%s6178_s5 + $0xa8] sm:$0xff] }
 0x4d5   :  { %v3080_v43 = vpop.f32.mrf.mxu1 }
 0x4d6   :  { %v819_v44 = vsel %vm663_vm1, %v818_v42, -inf  ;;  %v1232_v43 = vld [vmem:[%s6178_s5 + $0x98] sm:$0xff] }
 0x4d7   :  { %820 = vmax.xlane.f32.xlu0 %v819_v44  ;;  %v1231_v44 = vld [vmem:[%s6178_s5 + $0x90] sm:$0xff] }
 0x560   :  { %v821_v45 = vpop.xlane.xlu0 %820 }
 0x561   :  { %v822_v46 = vsub.f32 %v818_v42, %v821_v45  ;;  %v1233_v42 = vld [vmem:[%s6178_s5 + $0xa0] sm:$0xff]  ;;  %v1230_v45 = vld [vmem:[%s6178_s5 + $0x88] sm:$0xff] }
 0x563   :  { %v823_v47 = vmul.f32 1.442695, %v822_v46  ;;  %v1229_v46 = vld [vmem:[%s6178_s5 + $0x80] sm:$0xff] }
 0x565   :  { %3117 = vpow2.f32 %v823_v47  ;;  %v1228_v47 = vld [vmem:[%s6178_s5 + $0x78] sm:$0xff] }
 0x572   :  { %v3118_v48 = vpop.eup %3117 }
 0x573   :  { %v825_v49 = vsel %vm663_vm1, %v3118_v48, 0.0 }
 0x574   :  { %826 = vadd.xlane.f32.xlu1 %v825_v49  ;;  %v1226_v49 = vld [vmem:[%s6178_s5 + $0x68] sm:$0xff] }
 0x5fd   :  { %v827_v50 = vpop.xlane.xlu1 %826 }
 0x5fe   :  { %3119 = vrcp.f32 %v827_v50  ;;  %v1225_v50 = vld [vmem:[%s6178_s5 + $0x60] sm:$0xff] }
 0x60b   :  { %v3120_v51 = vpop.eup %3119 }
 0x60c   :  { %v829_v30 = vmul.f32 %v3120_v51, %v3118_v48  ;;  %v1227_v48 = vld [vmem:[%s6178_s5 + $0x70] sm:$0xff]  ;;  %v1224_v51 = vld [vmem:[%s6178_s5 + $0x58] sm:$0xff] }
 0x60e   :  { %3084 = vmatmul.mubr.msk.f32.vlgmr.msra.gmra.mxu1 %vm663_vm1, %v829_v30  ;;  %v1223_v30 = vld [vmem:[%s6178_s5 + $0x50] sm:$0xff] }
 0x60f   :  { %3087 = vmatpush3.xpose.msra.mxu1 %v3958_v9  ;;  %3088 = vmatprep.mubr.msk.f32.mxu1 %vm3193_vm0, %v3192_v56  ;;  %v590_v9 = vadd.f32 %v589_v8, %v3981_v2  ;;  %v1239_v2 = vld [vmem:[%s6178_s5 + $0xd0] sm:$0xff]  ;;  %v1269_v8 = vld [vmem:[%s6178_s5 + $0x1c0] sm:$0xff] }
 0x610   :  { %3091 = vmatprep.subr.mxu1 %v3192_v56 }
 0x612   :  { %3089 = vmatmul.mubr.f32.vlgmr.msra.gmra.mxu1 %v3956_v6 }
 0x613   :  { %3092 = vmatpush3.msra.mxu1 %v588_v31  ;;  %3093 = vmatprep.mubr.msk.f32.mxu1 %vm3193_vm0, %v3192_v56  ;;  %v1221_v31 = vld [vmem:[%s6178_s5 + $0x40] sm:$0xff] }
 0x614   :  { %3096 = vmatprep.subr.mxu1 %v3192_v56 }
 0x6ce   :  { %v899_v54 = vpop.f32.mrf.mxu1 }
 0x6d0   :  { %v3085_v55 = vpop.f32.mrf.mxu1 }
 0x6d1   :  { %v1219_v55 = vld [vmem:[%s6178_s5 + $0x30] sm:$0xff] }
 0x6d2   :  { %v969_v58 = vpop.f32.mrf.mxu1 }
 0x6d3   :  { %v973_v52 = vmul.f32 0.088388346, %v969_v58  ;;  %v1218_v58 = vld [vmem:[%s6178_s5 + $0x28] sm:$0xff] }
 0x6d4   :  { %v3090_v53 = vpop.f32.mrf.mxu1 }
 0x6d5   :  { %v974_v59 = vsel %vm663_vm1, %v973_v52, -inf  ;;  %v1216_v53 = vld [vmem:[%s6178_s5 + $0x18] sm:$0xff] }
 0x6d6   :  { %975 = vmax.xlane.f32.xlu0 %v974_v59  ;;  %v1215_v59 = vld [vmem:[%s6178_s5 + $0x10] sm:$0xff] }
 0x75f   :  { %v976_v60 = vpop.xlane.xlu0 %975 }
 0x760   :  { %v977_v61 = vsub.f32 %v973_v52, %v976_v60  ;;  %v1217_v52 = vld [vmem:[%s6178_s5 + $0x20] sm:$0xff]  ;;  %v1214_v60 = vld [vmem:[%s6178_s5 + $0x8] sm:$0xff] }
 0x762   :  { %v978_v62 = vmul.f32 1.442695, %v977_v61  ;;  %v1213_v61 = vld [vmem:[%s6178_s5] sm:$0xff] }
 0x764   :  { %3121 = vpow2.f32 %v978_v62  ;;  %v1276_v62 = vld [vmem:[%s6178_s5 + $0x1f8] sm:$0xff] }
 0x771   :  { %v3122_v32 = vpop.eup %3121 }
 0x772   :  { %v980_v63 = vsel %vm663_vm1, %v3122_v32, 0.0 }
 0x773   :  { %981 = vadd.xlane.f32.xlu1 %v980_v63  ;;  %v1274_v63 = vld [vmem:[%s6178_s5 + $0x1e8] sm:$0xff] }
 0x7fc   :  { %v982_v3 = vpop.xlane.xlu1 %981 }
 0x7fd   :  { %3123 = vrcp.f32 %v982_v3  ;;  %v1273_v3 = vld [vmem:[%s6178_s5 + $0x1e0] sm:$0xff] }
 0x80a   :  { %v3124_v5 = vpop.eup %3123 }
 0x80b   :  { %v984_v6 = vmul.f32 %v3124_v5, %v3122_v32  ;;  %v1275_v32 = vld [vmem:[%s6178_s5 + $0x1f0] sm:$0xff]  ;;  %v1272_v5 = vld [vmem:[%s6178_s5 + $0x1d8] sm:$0xff] }
 0x80d   :  { %3094 = vmatmul.mubr.msk.f32.vlgmr.msra.gmra.mxu1 %vm663_vm1, %v984_v6  ;;  %v1271_v6 = vld [vmem:[%s6178_s5 + $0x1d0] sm:$0xff] }
 0x80e   :  { %3097 = vmatpush3.xpose.msra.mxu1 %v513_v7  ;;  %3098 = vmatprep.mubr.msk.f32.mxu1 %vm3193_vm0, %v3192_v56  ;;  %v1270_v7 = vld [vmem:[%s6178_s5 + $0x1c8] sm:$0xff] }
 0x80f   :  { %3101 = vmatprep.subr.mxu1 %v3192_v56 }
 0x811   :  { %3099 = vmatmul.mubr.f32.vlgmr.msra.gmra.mxu1 %v3960_v10 }
 0x812   :  { %3102 = vmatpush3.msra.mxu1 %v590_v9  ;;  %3103 = vmatprep.mubr.msk.f32.mxu1 %vm3193_vm0, %v3192_v56  ;;  %v1268_v9 = vld [vmem:[%s6178_s5 + $0x1b8] sm:$0xff] }
 0x813   :  { %1289 = vmatprep.subr.mxu1 %v1244_v22  ;;  %v1257_v22 = vld [vmem:[%s6178_s5 + $0x160] sm:$0xff] }
 0x8cd   :  { %v4016_v12 = vpop.f32.mrf.mxu1 }
 0x8cf   :  { %v3095_v13 = vpop.f32.mrf.mxu1 }
 0x8d0   :  { %v1267_v13 = vld [vmem:[%s6178_s5 + $0x1b0] sm:$0xff] }
 0x8d1   :  { %v1124_v14 = vpop.f32.mrf.mxu1 }
 0x8d2   :  { %v1128_v15 = vmul.f32 0.088388346, %v1124_v14  ;;  %v1266_v14 = vld [vmem:[%s6178_s5 + $0x1a8] sm:$0xff] }
 0x8d3   :  { %v3100_v16 = vpop.f32.mrf.mxu1 }
 0x8d4   :  { %v1129_v17 = vsel %vm663_vm1, %v1128_v15, -inf  ;;  %v1264_v16 = vld [vmem:[%s6178_s5 + $0x198] sm:$0xff] }
 0x8d5   :  { %1130 = vmax.xlane.f32.xlu0 %v1129_v17  ;;  %v1263_v17 = vld [vmem:[%s6178_s5 + $0x190] sm:$0xff] }
 0x95e   :  { %v1131_v18 = vpop.xlane.xlu0 %1130 }
 0x95f   :  { %v1132_v19 = vsub.f32 %v1128_v15, %v1131_v18  ;;  %v1265_v15 = vld [vmem:[%s6178_s5 + $0x1a0] sm:$0xff]  ;;  %v1262_v18 = vld [vmem:[%s6178_s5 + $0x188] sm:$0xff] }
 0x961   :  { %v1133_v20 = vmul.f32 1.442695, %v1132_v19  ;;  %v1261_v19 = vld [vmem:[%s6178_s5 + $0x180] sm:$0xff] }
 0x963   :  { %3125 = vpow2.f32 %v1133_v20  ;;  %v1260_v20 = vld [vmem:[%s6178_s5 + $0x178] sm:$0xff] }
 0x970   :  { %v3126_v21 = vpop.eup %3125 }
 0x971   :  { %v1135_v10 = vsel %vm663_vm1, %v3126_v21, 0.0 }
 0x972   :  { %1136 = vadd.xlane.f32.xlu1 %v1135_v10  ;;  %v1258_v10 = vld [vmem:[%s6178_s5 + $0x168] sm:$0xff] }
 0x9fb   :  { %v1137_v23 = vpop.xlane.xlu1 %1136 }
 0x9fc   :  { %3127 = vrcp.f32 %v1137_v23  ;;  %v1256_v23 = vld [vmem:[%s6178_s5 + $0x158] sm:$0xff] }
 0xa09   :  { %v3128_v24 = vpop.eup %3127 }
 0xa0a   :  { %v1139_v25 = vmul.f32 %v3128_v24, %v3126_v21  ;;  %v1259_v21 = vld [vmem:[%s6178_s5 + $0x170] sm:$0xff] }
 0xa0b   :  { %v1255_v24 = vld [vmem:[%s6178_s5 + $0x150] sm:$0xff] }
 0xa0c   :  { %3104 = vmatmul.mubr.msk.f32.vlgmr.msra.gmra.mxu1 %vm663_vm1, %v1139_v25  ;;  %v1254_v25 = vld [vmem:[%s6178_s5 + $0x148] sm:$0xff] }
 0xa0d   :  { %1290 = vmatpush1.msra.mxu1 %v1243_v27  ;;  %1353 = vmatprep.mubr.f32.mxu1 %v899_v54  ;;  %v1220_v54 = vld [vmem:[%s6178_s5 + $0x38] sm:$0xff]  ;;  %v1253_v27 = vld [vmem:[%s6178_s5 + $0x140] sm:$0xff] }
 0xa0e   :  { %1291 = vmatprep.subr.mxu1 %v1242_v33  ;;  %v1252_v33 = vld [vmem:[%s6178_s5 + $0x138] sm:$0xff] }
 0xa0f   :  { %1292 = vmatpush1.msra.mxu1 %v1241_v34  ;;  %v1251_v34 = vld [vmem:[%s6178_s5 + $0x130] sm:$0xff] }
 0xa10   :  { %1293 = vmatprep.subr.mxu1 %v1240_v35  ;;  %v1250_v35 = vld [vmem:[%s6178_s5 + $0x128] sm:$0xff] }
 0xa11   :  { %1294 = vmatpush1.msra.mxu1 %v1239_v2  ;;  %v1249_v2 = vld [vmem:[%s6178_s5 + $0x120] sm:$0xff] }
 0xa12   :  { %1295 = vmatprep.subr.mxu1 %v1238_v4  ;;  %v1248_v4 = vld [vmem:[%s6178_s5 + $0x118] sm:$0xff] }
 0xa13   :  { %1296 = vmatpush1.msra.mxu1 %v1237_v37  ;;  %v1247_v37 = vld [vmem:[%s6178_s5 + $0x110] sm:$0xff] }
 0xa14   :  { %1297 = vmatprep.subr.mxu1 %v1236_v38  ;;  %v1246_v38 = vld [vmem:[%s6178_s5 + $0x108] sm:$0xff] }
 0xa15   :  { %1298 = vmatpush1.msra.mxu1 %v1235_v40  ;;  %v1245_v40 = vld [vmem:[%s6178_s5 + $0x100] sm:$0xff] }
 0xa16   :  { %1299 = vmatprep.subr.mxu1 %v1234_v41 }
 0xa17   :  { %1300 = vmatpush1.msra.mxu1 %v1233_v42 }
 0xa18   :  { %1301 = vmatprep.subr.mxu1 %v1232_v43  ;;  %v1277_v43 = vld [vmem:[%s6179_s6] sm:$0x3] }
 0xa19   :  { %1302 = vmatpush1.msra.mxu1 %v1231_v44  ;;  %v4219_v44 = vrot.slane %v1277_v43, %v3724_v36 }
 0xa1a   :  { %1303 = vmatprep.subr.mxu1 %v1230_v45  ;;  %v4222_v45 = vrot.slane %v1277_v43, %v3721_v1  ;;  %v1467_v43 = vld [vmem:[%s6182_s9 + $0x108] sm:$0xff] }
 0xa1b   :  { %1304 = vmatpush1.msra.mxu1 %v1229_v46 }
 0xa1c   :  { %1305 = vmatprep.subr.mxu1 %v1228_v47 }
 0xa1d   :  { %1306 = vmatpush1.msra.mxu1 %v1227_v48 }
 0xa1e   :  { %1307 = vmatprep.subr.mxu1 %v1226_v49 }
 0xa1f   :  { %1308 = vmatpush1.msra.mxu1 %v1225_v50  ;;  %v3166_v50 = vld [vmem:[%s6194_s18 + $0x8] sm:$0xff] }
 0xa20   :  { %1309 = vmatprep.subr.mxu1 %v1224_v51 }
 0xa21   :  { %1310 = vmatpush1.msra.mxu1 %v1223_v30 }
 0xa22   :  { %1311 = vmatprep.subr.mxu1 %v1222_v29  ;;  %v1555_v29 = vld [vmem:[%s6182_s9 + $0x3c8] sm:$0xff] }
 0xa23   :  { %1312 = vmatpush1.msra.mxu1 %v1221_v31  ;;  %v1557_v31 = vld [vmem:[%s6182_s9 + $0x3d8] sm:$0xff]  ;;  %1732 = vmatprep.subr.mxu0 %v1555_v29  ;;  %v3167_v29 = vld [vmem:[%s6194_s18 + $0x10] sm:$0xff] }
 0xa24   :  { %1313 = vmatprep.subr.mxu1 %v1220_v54  ;;  %v1554_v54 = vld [vmem:[%s6182_s9 + $0x3c0] sm:$0xff] }
 0xa25   :  { %1314 = vmatpush1.msra.mxu1 %v1219_v55  ;;  %v1556_v55 = vld [vmem:[%s6182_s9 + $0x3d0] sm:$0xff]  ;;  %1733 = vmatpush1.msra.mxu0 %v1554_v54  ;;  %v3168_v54 = vld [vmem:[%s6194_s18 + $0x18] sm:$0xff] }
 0xa26   :  { %1315 = vmatprep.subr.mxu1 %v1218_v58  ;;  %v1547_v58 = vld [vmem:[%s6182_s9 + $0x388] sm:$0xff] }
 0xa27   :  { %1316 = vmatpush1.msra.mxu1 %v1217_v52  ;;  %v1549_v52 = vld [vmem:[%s6182_s9 + $0x398] sm:$0xff]  ;;  %1734 = vmatprep.subr.mxu0 %v1547_v58 }
 0xa28   :  { %1317 = vmatprep.subr.mxu1 %v1216_v53  ;;  %v1546_v53 = vld [vmem:[%s6182_s9 + $0x380] sm:$0xff] }
 0xa29   :  { %1318 = vmatpush1.msra.mxu1 %v1215_v59  ;;  %v1548_v59 = vld [vmem:[%s6182_s9 + $0x390] sm:$0xff]  ;;  %1735 = vmatpush1.msra.mxu0 %v1546_v53 }
 0xa2a   :  { %1319 = vmatprep.subr.mxu1 %v1214_v60  ;;  %v1539_v60 = vld [vmem:[%s6182_s9 + $0x348] sm:$0xff] }
 0xa2b   :  { %1320 = vmatpush1.msra.mxu1 %v1213_v61  ;;  %v1541_v61 = vld [vmem:[%s6182_s9 + $0x358] sm:$0xff]  ;;  %1736 = vmatprep.subr.mxu0 %v1539_v60 }
 0xa2c   :  { %1321 = vmatprep.subr.mxu1 %v1276_v62  ;;  %v1538_v62 = vld [vmem:[%s6182_s9 + $0x340] sm:$0xff]  ;;  %v1461_v60 = vld [vmem:[%s6182_s9 + $0xd8] sm:$0xff] }
 0xa2d   :  { %1322 = vmatpush2.msra.mxu1 %v1275_v32  ;;  %v1540_v32 = vld [vmem:[%s6182_s9 + $0x350] sm:$0xff]  ;;  %1737 = vmatpush1.msra.mxu0 %v1538_v62 }
 0xa2e   :  { %1323 = vmatprep.subr.mxu1 %v1274_v63  ;;  %v1531_v63 = vld [vmem:[%s6182_s9 + $0x308] sm:$0xff]  ;;  %v1460_v62 = vld [vmem:[%s6182_s9 + $0xd0] sm:$0xff] }
 0xa2f   :  { %1324 = vmatpush2.msra.mxu1 %v1273_v3  ;;  %v1533_v3 = vld [vmem:[%s6182_s9 + $0x318] sm:$0xff]  ;;  %1738 = vmatprep.subr.mxu0 %v1531_v63 }
 0xa30   :  { %1325 = vmatprep.subr.mxu1 %v1272_v5  ;;  %v1530_v5 = vld [vmem:[%s6182_s9 + $0x300] sm:$0xff] }
 0xa31   :  { %1326 = vmatpush2.msra.mxu1 %v1271_v6  ;;  %v1532_v6 = vld [vmem:[%s6182_s9 + $0x310] sm:$0xff]  ;;  %1739 = vmatpush1.msra.mxu0 %v1530_v5  ;;  %v1453_v5 = vld [vmem:[%s6182_s9 + $0x98] sm:$0xff] }
 0xa32   :  { %1327 = vmatprep.subr.mxu1 %v1270_v7  ;;  %v1523_v7 = vld [vmem:[%s6182_s9 + $0x2c8] sm:$0xff] }
 0xa33   :  { %1328 = vmatpush2.msra.mxu1 %v1269_v8  ;;  %v1525_v8 = vld [vmem:[%s6182_s9 + $0x2d8] sm:$0xff]  ;;  %1740 = vmatprep.subr.mxu0 %v1523_v7  ;;  %v1452_v7 = vld [vmem:[%s6182_s9 + $0x90] sm:$0xff] }
 0xa34   :  { %1329 = vmatprep.subr.mxu1 %v1268_v9  ;;  %v1522_v9 = vld [vmem:[%s6182_s9 + $0x2c0] sm:$0xff] }
 0xa35   :  { %1330 = vmatpush2.msra.mxu1 %v1267_v13  ;;  %v1524_v13 = vld [vmem:[%s6182_s9 + $0x2d0] sm:$0xff]  ;;  %1741 = vmatpush1.msra.mxu0 %v1522_v9  ;;  %v1445_v9 = vld [vmem:[%s6182_s9 + $0x58] sm:$0xff] }
 0xa36   :  { %1331 = vmatprep.subr.mxu1 %v1266_v14  ;;  %v1515_v14 = vld [vmem:[%s6182_s9 + $0x288] sm:$0xff] }
 0xa37   :  { %1332 = vmatpush2.msra.mxu1 %v1265_v15  ;;  %v1517_v15 = vld [vmem:[%s6182_s9 + $0x298] sm:$0xff]  ;;  %1742 = vmatprep.subr.mxu0 %v1515_v14  ;;  %v1442_v14 = vld [vmem:[%s6182_s9 + $0x40] sm:$0xff] }
 0xa38   :  { %1333 = vmatprep.subr.mxu1 %v1264_v16  ;;  %v1514_v16 = vld [vmem:[%s6182_s9 + $0x280] sm:$0xff] }
 0xa39   :  { %1334 = vmatpush2.msra.mxu1 %v1263_v17  ;;  %v1516_v17 = vld [vmem:[%s6182_s9 + $0x290] sm:$0xff]  ;;  %1743 = vmatpush1.msra.mxu0 %v1514_v16  ;;  %v1435_v16 = vld [vmem:[%s6182_s9 + $0x8] sm:$0xff] }
 0xa3a   :  { %1335 = vmatprep.subr.mxu1 %v1262_v18  ;;  %v1507_v18 = vld [vmem:[%s6182_s9 + $0x248] sm:$0xff] }
 0xa3b   :  { %1336 = vmatpush2.msra.mxu1 %v1261_v19  ;;  %v1509_v19 = vld [vmem:[%s6182_s9 + $0x258] sm:$0xff]  ;;  %1744 = vmatprep.subr.mxu0 %v1507_v18  ;;  %v1434_v18 = vld [vmem:[%s6182_s9] sm:$0xff] }
 0xa3c   :  { %1337 = vmatprep.subr.mxu1 %v1260_v20  ;;  %v1506_v20 = vld [vmem:[%s6182_s9 + $0x240] sm:$0xff] }
 0xa3d   :  { %1338 = vmatpush2.msra.mxu1 %v1259_v21  ;;  %v1508_v21 = vld [vmem:[%s6182_s9 + $0x250] sm:$0xff]  ;;  %1745 = vmatpush1.msra.mxu0 %v1506_v20  ;;  %v1683_v20 = vld [vmem:[%s6182_s9 + $0x7c8] sm:$0xff] }
 0xa3e   :  { %1339 = vmatprep.subr.mxu1 %v1258_v10  ;;  %v1499_v10 = vld [vmem:[%s6182_s9 + $0x208] sm:$0xff] }
 0xa3f   :  { %1340 = vmatpush2.msra.mxu1 %v1257_v22  ;;  %v1501_v22 = vld [vmem:[%s6182_s9 + $0x218] sm:$0xff]  ;;  %1746 = vmatprep.subr.mxu0 %v1499_v10  ;;  %v1682_v10 = vld [vmem:[%s6182_s9 + $0x7c0] sm:$0xff] }
 0xa40   :  { %1341 = vmatprep.subr.mxu1 %v1256_v23  ;;  %v1498_v23 = vld [vmem:[%s6182_s9 + $0x200] sm:$0xff] }
 0xa41   :  { %1342 = vmatpush2.msra.mxu1 %v1255_v24  ;;  %v1500_v24 = vld [vmem:[%s6182_s9 + $0x210] sm:$0xff]  ;;  %1747 = vmatpush1.msra.mxu0 %v1498_v23  ;;  %v1675_v23 = vld [vmem:[%s6182_s9 + $0x788] sm:$0xff] }
 0xa42   :  { %1343 = vmatprep.subr.mxu1 %v1254_v25  ;;  %v1491_v25 = vld [vmem:[%s6182_s9 + $0x1c8] sm:$0xff] }
 0xa43   :  { %1344 = vmatpush2.msra.mxu1 %v1253_v27  ;;  %v1493_v27 = vld [vmem:[%s6182_s9 + $0x1d8] sm:$0xff]  ;;  %1748 = vmatprep.subr.mxu0 %v1491_v25  ;;  %v1674_v25 = vld [vmem:[%s6182_s9 + $0x780] sm:$0xff] }
 0xa44   :  { %1345 = vmatprep.subr.mxu1 %v1252_v33  ;;  %v1490_v33 = vld [vmem:[%s6182_s9 + $0x1c0] sm:$0xff] }
 0xa45   :  { %1346 = vmatpush2.msra.mxu1 %v1251_v34  ;;  %v1492_v34 = vld [vmem:[%s6182_s9 + $0x1d0] sm:$0xff]  ;;  %1749 = vmatpush1.msra.mxu0 %v1490_v33  ;;  %v1667_v33 = vld [vmem:[%s6182_s9 + $0x748] sm:$0xff] }
 0xa46   :  { %1347 = vmatprep.subr.mxu1 %v1250_v35  ;;  %v1483_v35 = vld [vmem:[%s6182_s9 + $0x188] sm:$0xff] }
 0xa47   :  { %1348 = vmatpush2.msra.mxu1 %v1249_v2  ;;  %v1485_v2 = vld [vmem:[%s6182_s9 + $0x198] sm:$0xff]  ;;  %1750 = vmatprep.subr.mxu0 %v1483_v35  ;;  %v1666_v35 = vld [vmem:[%s6182_s9 + $0x740] sm:$0xff] }
 0xa48   :  { %1349 = vmatprep.subr.mxu1 %v1248_v4  ;;  %v1482_v4 = vld [vmem:[%s6182_s9 + $0x180] sm:$0xff] }
 0xa49   :  { %1350 = vmatpush2.msra.mxu1 %v1247_v37  ;;  %v1484_v37 = vld [vmem:[%s6182_s9 + $0x190] sm:$0xff]  ;;  %1751 = vmatpush1.msra.mxu0 %v1482_v4  ;;  %v1659_v4 = vld [vmem:[%s6182_s9 + $0x708] sm:$0xff] }
 0xa4a   :  { %1351 = vmatprep.subr.mxu1 %v1246_v38  ;;  %v1475_v38 = vld [vmem:[%s6182_s9 + $0x148] sm:$0xff] }
 0xa4b   :  { %1352 = vmatpush2.msra.mxu1 %v1245_v40  ;;  %v1477_v40 = vld [vmem:[%s6182_s9 + $0x158] sm:$0xff]  ;;  %1752 = vmatprep.subr.mxu0 %v1475_v38  ;;  %v1658_v38 = vld [vmem:[%s6182_s9 + $0x700] sm:$0xff] }
 0xa4c   :  { %1354 = vmatmul.mubr.f32.vlgmr.msra.gmra.mxu1 %v3991_v39  ;;  %1809 = vmatprep.subr.mxu1 %v1557_v31 }
 0xa4d   :  { %1810 = vmatpush1.msra.mxu1 %v1556_v55 }
 0xa4e   :  { %1811 = vmatprep.subr.mxu1 %v1549_v52 }
 0xa4f   :  { %1812 = vmatpush1.msra.mxu1 %v1548_v59  ;;  %v1459_v59 = vld [vmem:[%s6182_s9 + $0xc8] sm:$0xff] }
 0xa50   :  { %1813 = vmatprep.subr.mxu1 %v1541_v61  ;;  %v1458_v61 = vld [vmem:[%s6182_s9 + $0xc0] sm:$0xff] }
 0xa51   :  { %1814 = vmatpush1.msra.mxu1 %v1540_v32 }
 0xa52   :  { %1815 = vmatprep.subr.mxu1 %v1533_v3  ;;  %v1451_v3 = vld [vmem:[%s6182_s9 + $0x88] sm:$0xff] }
 0xa53   :  { %1816 = vmatpush1.msra.mxu1 %v1532_v6  ;;  %v1450_v6 = vld [vmem:[%s6182_s9 + $0x80] sm:$0xff] }
 0xa54   :  { %1817 = vmatprep.subr.mxu1 %v1525_v8  ;;  %v1443_v8 = vld [vmem:[%s6182_s9 + $0x48] sm:$0xff] }
 0xa55   :  { %1818 = vmatpush1.msra.mxu1 %v1524_v13 }
 0xa56   :  { %1819 = vmatprep.subr.mxu1 %v1517_v15  ;;  %v1444_v15 = vld [vmem:[%s6182_s9 + $0x50] sm:$0xff] }
 0xa57   :  { %1820 = vmatpush1.msra.mxu1 %v1516_v17  ;;  %v1437_v17 = vld [vmem:[%s6182_s9 + $0x18] sm:$0xff] }
 0xa58   :  { %1821 = vmatprep.subr.mxu1 %v1509_v19  ;;  %v1436_v19 = vld [vmem:[%s6182_s9 + $0x10] sm:$0xff] }
 0xa59   :  { %1822 = vmatpush1.msra.mxu1 %v1508_v21  ;;  %v1685_v21 = vld [vmem:[%s6182_s9 + $0x7d8] sm:$0xff] }
 0xa5a   :  { %1823 = vmatprep.subr.mxu1 %v1501_v22  ;;  %v1684_v22 = vld [vmem:[%s6182_s9 + $0x7d0] sm:$0xff] }
 0xa5b   :  { %1824 = vmatpush1.msra.mxu1 %v1500_v24  ;;  %v1677_v24 = vld [vmem:[%s6182_s9 + $0x798] sm:$0xff] }
 0xa5c   :  { %1825 = vmatprep.subr.mxu1 %v1493_v27  ;;  %v1676_v27 = vld [vmem:[%s6182_s9 + $0x790] sm:$0xff] }
 0xa5d   :  { %1826 = vmatpush1.msra.mxu1 %v1492_v34  ;;  %v1669_v34 = vld [vmem:[%s6182_s9 + $0x758] sm:$0xff] }
 0xa5e   :  { %1827 = vmatprep.subr.mxu1 %v1485_v2  ;;  %v1668_v2 = vld [vmem:[%s6182_s9 + $0x750] sm:$0xff] }
 0xa5f   :  { %1828 = vmatpush1.msra.mxu1 %v1484_v37  ;;  %v1661_v37 = vld [vmem:[%s6182_s9 + $0x718] sm:$0xff] }
 0xa60   :  { %1829 = vmatprep.subr.mxu1 %v1477_v40  ;;  %v1660_v40 = vld [vmem:[%s6182_s9 + $0x710] sm:$0xff] }
 0xacc   :  { %v1209_v41 = vpop.f32.mrf.mxu1 }
 0xacd   :  { %1359 = vmatprep.mubr.f32.mxu1 %v1209_v41  ;;  %v1474_v41 = vld [vmem:[%s6182_s9 + $0x140] sm:$0xff] }
 0xace   :  { %v3105_v42 = vpop.f32.mrf.mxu1  ;;  %1360 = vmatmul.mubr.f32.gmra.mxu1 %v4016_v12  ;;  %v3165_v12 = vld [vmem:[%s6194_s18] sm:$0xff]  ;;  %1753 = vmatpush1.msra.mxu0 %v1474_v41  ;;  %v1651_v41 = vld [vmem:[%s6182_s9 + $0x6c8] sm:$0xff] }
 0xacf   :  { %v1476_v42 = vld [vmem:[%s6182_s9 + $0x150] sm:$0xff]  ;;  %1754 = vmatprep.subr.mxu0 %v1467_v43  ;;  %v1650_v43 = vld [vmem:[%s6182_s9 + $0x6c0] sm:$0xff] }
 0xad0   :  { %1830 = vmatpush1.msra.mxu1 %v1476_v42  ;;  %v1653_v42 = vld [vmem:[%s6182_s9 + $0x6d8] sm:$0xff] }
 0xb0c   :  { %v1355_v46 = vpop.f32.mrf.mxu1 }
 0xb0d   :  { %v1356_v47 = vadd.f32 %v1355_v46, %v4219_v44  ;;  %v1469_v46 = vld [vmem:[%s6182_s9 + $0x118] sm:$0xff] }
 0xb0e   :  { %v1357_v48 = vpop.f32.mrf.mxu1  ;;  %1831 = vmatprep.subr.mxu1 %v1469_v46  ;;  %v1652_v46 = vld [vmem:[%s6182_s9 + $0x6d0] sm:$0xff] }
 0xb0f   :  { %v1358_v39 = vadd.f32 %v1357_v48, %v4222_v45  ;;  %v4229_v49 = vadd.f32 %v3165_v12, %v1356_v47  ;;  %v1466_v47 = vld [vmem:[%s6182_s9 + $0x100] sm:$0xff]  ;;  %v1468_v48 = vld [vmem:[%s6182_s9 + $0x110] sm:$0xff] }
 0xb10   :  { %1755 = vmatpush1.msra.mxu0 %v1466_v47  ;;  %1832 = vmatpush1.msra.mxu1 %v1468_v48  ;;  %v1643_v47 = vld [vmem:[%s6182_s9 + $0x688] sm:$0xff]  ;;  %v1645_v48 = vld [vmem:[%s6182_s9 + $0x698] sm:$0xff] }
 0xb11   :  { %v4234_v51 = vadd.f32 %v3166_v50, %v1358_v39  ;;  %1756 = vmatprep.subr.mxu0 %v1459_v59  ;;  %1833 = vmatprep.subr.mxu1 %v1461_v60  ;;  %v1628_v59 = vld [vmem:[%s6182_s9 + $0x610] sm:$0xff]  ;;  %v1619_v60 = vld [vmem:[%s6182_s9 + $0x5c8] sm:$0xff] }
 0xb12   :  { %1757 = vmatpush1.msra.mxu0 %v1458_v61  ;;  %1834 = vmatpush1.msra.mxu1 %v1460_v62  ;;  %v1621_v61 = vld [vmem:[%s6182_s9 + $0x5d8] sm:$0xff]  ;;  %v1618_v62 = vld [vmem:[%s6182_s9 + $0x5c0] sm:$0xff] }
 0xb13   :  { %v1372_v30 = vadd.f32 %v4234_v51, %v4229_v49  ;;  %1758 = vmatprep.subr.mxu0 %v1451_v3  ;;  %1835 = vmatprep.subr.mxu1 %v1453_v5  ;;  %v1613_v3 = vld [vmem:[%s6182_s9 + $0x598] sm:$0xff]  ;;  %v1610_v5 = vld [vmem:[%s6182_s9 + $0x580] sm:$0xff] }
 0xb14   :  { %1759 = vmatpush1.msra.mxu0 %v1450_v6  ;;  %1836 = vmatpush1.msra.mxu1 %v1452_v7  ;;  %v1612_v6 = vld [vmem:[%s6182_s9 + $0x590] sm:$0xff]  ;;  %v1603_v7 = vld [vmem:[%s6182_s9 + $0x548] sm:$0xff] }
 0xb15   :  { %1373 = vadd.xlane.f32.xlu0 %v1372_v30  ;;  %1760 = vmatprep.subr.mxu0 %v1443_v8  ;;  %v1605_v8 = vld [vmem:[%s6182_s9 + $0x558] sm:$0xff] }
 0xb16   :  { %1837 = vmatprep.subr.mxu1 %v1445_v9  ;;  %1761 = vmatpush1.msra.mxu0 %v1442_v14  ;;  %v1602_v9 = vld [vmem:[%s6182_s9 + $0x540] sm:$0xff]  ;;  %v1595_v14 = vld [vmem:[%s6182_s9 + $0x508] sm:$0xff] }
 0xb17   :  { %1838 = vmatpush1.msra.mxu1 %v1444_v15  ;;  %1762 = vmatprep.subr.mxu0 %v1435_v16  ;;  %v1597_v15 = vld [vmem:[%s6182_s9 + $0x518] sm:$0xff]  ;;  %v1594_v16 = vld [vmem:[%s6182_s9 + $0x500] sm:$0xff] }
 0xb18   :  { %1839 = vmatprep.subr.mxu1 %v1437_v17  ;;  %1763 = vmatpush1.msra.mxu0 %v1434_v18  ;;  %v1596_v17 = vld [vmem:[%s6182_s9 + $0x510] sm:$0xff]  ;;  %v1587_v18 = vld [vmem:[%s6182_s9 + $0x4c8] sm:$0xff] }
 0xb19   :  { %1840 = vmatpush1.msra.mxu1 %v1436_v19  ;;  %1764 = vmatprep.subr.mxu0 %v1683_v20  ;;  %v1589_v19 = vld [vmem:[%s6182_s9 + $0x4d8] sm:$0xff]  ;;  %v1586_v20 = vld [vmem:[%s6182_s9 + $0x4c0] sm:$0xff] }
 0xb1a   :  { %1841 = vmatprep.subr.mxu1 %v1685_v21  ;;  %1765 = vmatpush2.msra.mxu0 %v1682_v10  ;;  %v1588_v21 = vld [vmem:[%s6182_s9 + $0x4d0] sm:$0xff]  ;;  %v1579_v10 = vld [vmem:[%s6182_s9 + $0x488] sm:$0xff] }
 0xb1b   :  { %1842 = vmatpush2.msra.mxu1 %v1684_v22  ;;  %1766 = vmatprep.subr.mxu0 %v1675_v23  ;;  %v1581_v22 = vld [vmem:[%s6182_s9 + $0x498] sm:$0xff]  ;;  %v1578_v23 = vld [vmem:[%s6182_s9 + $0x480] sm:$0xff] }
 0xb1c   :  { %1843 = vmatprep.subr.mxu1 %v1677_v24  ;;  %1767 = vmatpush2.msra.mxu0 %v1674_v25  ;;  %v1580_v24 = vld [vmem:[%s6182_s9 + $0x490] sm:$0xff]  ;;  %v1571_v25 = vld [vmem:[%s6182_s9 + $0x448] sm:$0xff] }
 0xb1d   :  { %1844 = vmatpush2.msra.mxu1 %v1676_v27  ;;  %1768 = vmatprep.subr.mxu0 %v1667_v33  ;;  %v1573_v27 = vld [vmem:[%s6182_s9 + $0x458] sm:$0xff]  ;;  %v1570_v33 = vld [vmem:[%s6182_s9 + $0x440] sm:$0xff] }
 0xb1e   :  { %1845 = vmatprep.subr.mxu1 %v1669_v34  ;;  %1769 = vmatpush2.msra.mxu0 %v1666_v35  ;;  %v1572_v34 = vld [vmem:[%s6182_s9 + $0x450] sm:$0xff]  ;;  %v1563_v35 = vld [vmem:[%s6182_s9 + $0x408] sm:$0xff] }
 0xb1f   :  { %1846 = vmatpush2.msra.mxu1 %v1668_v2  ;;  %1770 = vmatprep.subr.mxu0 %v1659_v4  ;;  %v1565_v2 = vld [vmem:[%s6182_s9 + $0x418] sm:$0xff]  ;;  %v1562_v4 = vld [vmem:[%s6182_s9 + $0x400] sm:$0xff] }
 0xb20   :  { %1847 = vmatprep.subr.mxu1 %v1661_v37  ;;  %1771 = vmatpush2.msra.mxu0 %v1658_v38  ;;  %v1564_v37 = vld [vmem:[%s6182_s9 + $0x410] sm:$0xff]  ;;  %v1559_v38 = vld [vmem:[%s6182_s9 + $0x3e8] sm:$0xff] }
 0xb21   :  { %1848 = vmatpush2.msra.mxu1 %v1660_v40  ;;  %1772 = vmatprep.subr.mxu0 %v1651_v41  ;;  %v1561_v40 = vld [vmem:[%s6182_s9 + $0x3f8] sm:$0xff] }
 0xb22   :  { %1849 = vmatprep.subr.mxu1 %v1653_v42  ;;  %1773 = vmatpush2.msra.mxu0 %v1650_v43 }
 0xb23   :  { %1850 = vmatpush2.msra.mxu1 %v1652_v46  ;;  %1774 = vmatprep.subr.mxu0 %v1643_v47 }
 0xb24   :  { %1851 = vmatprep.subr.mxu1 %v1645_v48 }
 0xb8e   :  { %v1361_v39 = vpop.f32.mrf.mxu1 }
 0xb8f   :  { %v1362_v12 = vadd.f32 %v1361_v39, %v4219_v44  ;;  %v1642_v39 = vld [vmem:[%s6182_s9 + $0x680] sm:$0xff] }
 0xb90   :  { %v1363_v50 = vpop.f32.mrf.mxu1  ;;  %1775 = vmatpush2.msra.mxu0 %v1642_v39 }
 0xb91   :  { %v1364_v30 = vadd.f32 %v1363_v50, %v4222_v45  ;;  %v4387_v31 = vadd.f32 %v3167_v29, %v1362_v12  ;;  %v1644_v12 = vld [vmem:[%s6182_s9 + $0x690] sm:$0xff]  ;;  %v1635_v50 = vld [vmem:[%s6182_s9 + $0x648] sm:$0xff]  ;;  %v1634_v29 = vld [vmem:[%s6182_s9 + $0x640] sm:$0xff] }
 0xb92   :  { %1852 = vmatpush2.msra.mxu1 %v1644_v12  ;;  %1776 = vmatprep.subr.mxu0 %v1635_v50 }
 0xb93   :  { %v4392_v55 = vadd.f32 %v3168_v54, %v1364_v30  ;;  %v1637_v30 = vld [vmem:[%s6182_s9 + $0x658] sm:$0xff]  ;;  %v1636_v54 = vld [vmem:[%s6182_s9 + $0x650] sm:$0xff]  ;;  %1777 = vmatpush2.msra.mxu0 %v1634_v29  ;;  %v1370_v29 = vld [vmem:[%s6180_s7] sm:$0x3] }
 0xb94   :  { %1853 = vmatprep.subr.mxu1 %v1637_v30 }
 0xb95   :  { %v1375_v58 = vadd.f32 %v4392_v55, %v4387_v31  ;;  %1854 = vmatpush2.msra.mxu1 %v1636_v54  ;;  %v1371_v54 = vld [vmem:[%s6181_s8] sm:$0x3] }
 0xb97   :  { %1376 = vadd.xlane.f32.xlu1 %v1375_v58  ;;  %v1627_v58 = vld [vmem:[%s6182_s9 + $0x608] sm:$0xff] }
 0xb98   :  { %1778 = vmatprep.subr.mxu0 %v1627_v58  ;;  %v4669_v58 = vrot.slane %v1370_v29, %v3724_v36 }
 0xb9e   :  { %v1374_v44 = vpop.xlane.xlu0 %1373 }
 0xb9f   :  { %v1378_v52 = vmul.f32 0.00390625, %v1374_v44  ;;  %v1629_v44 = vld [vmem:[%s6182_s9 + $0x618] sm:$0xff] }
 0xba0   :  { %1855 = vmatprep.subr.mxu1 %v1629_v44  ;;  %v4672_v44 = vrot.slane %v1370_v29, %v3721_v1  ;;  %v1488_v29 = vld [vmem:[%s6182_s9 + $0x1b0] sm:$0xff] }
 0xba1   :  { %v4397_v45 = vsub.f32 %v4229_v49, %v1378_v52  ;;  %v4400_v53 = vsub.f32 %v4234_v51, %v1378_v52  ;;  %v1626_v52 = vld [vmem:[%s6182_s9 + $0x600] sm:$0xff]  ;;  %1856 = vmatpush2.msra.mxu1 %v1628_v59 }
 0xba2   :  { %1779 = vmatpush2.msra.mxu0 %v1626_v52  ;;  %1857 = vmatprep.subr.mxu1 %v1621_v61  ;;  %v4677_v61 = vrot.slane %v1371_v54, %v3724_v36 }
 0xba3   :  { %v1384_v32 = vmul.f32 %v4397_v45, %v4397_v45  ;;  %v1385_v63 = vmul.f32 %v4400_v53, %v4400_v53  ;;  %1780 = vmatprep.subr.mxu0 %v1619_v60 }
 0xba4   :  { %1781 = vmatpush2.msra.mxu0 %v1618_v62  ;;  %v4680_v62 = vrot.slane %v1371_v54, %v3721_v1  ;;  %v1479_v54 = vld [vmem:[%s6182_s9 + $0x168] sm:$0xff] }
 0xba5   :  { %v1388_v13 = vadd.f32 %v1385_v63, %v1384_v32  ;;  %v1620_v32 = vld [vmem:[%s6182_s9 + $0x5d0] sm:$0xff]  ;;  %v1611_v63 = vld [vmem:[%s6182_s9 + $0x588] sm:$0xff] }
 0xba6   :  { %1858 = vmatpush2.msra.mxu1 %v1620_v32  ;;  %1782 = vmatprep.subr.mxu0 %v1611_v63 }
 0xba7   :  { %1389 = vadd.xlane.f32.xlu0 %v1388_v13  ;;  %1859 = vmatprep.subr.mxu1 %v1613_v3  ;;  %v1604_v13 = vld [vmem:[%s6182_s9 + $0x550] sm:$0xff] }
 0xba8   :  { %1783 = vmatpush2.msra.mxu0 %v1610_v5  ;;  %1860 = vmatpush2.msra.mxu1 %v1612_v6  ;;  %v1551_v6 = vld [vmem:[%s6182_s9 + $0x3a8] sm:$0xff] }
 0xba9   :  { %1784 = vmatprep.subr.mxu0 %v1603_v7  ;;  %1861 = vmatprep.subr.mxu1 %v1605_v8  ;;  %v1553_v7 = vld [vmem:[%s6182_s9 + $0x3b8] sm:$0xff]  ;;  %v1550_v8 = vld [vmem:[%s6182_s9 + $0x3a0] sm:$0xff] }
 0xbaa   :  { %1785 = vmatpush2.msra.mxu0 %v1602_v9  ;;  %1862 = vmatpush2.msra.mxu1 %v1604_v13  ;;  %v1552_v9 = vld [vmem:[%s6182_s9 + $0x3b0] sm:$0xff]  ;;  %v1543_v13 = vld [vmem:[%s6182_s9 + $0x368] sm:$0xff] }
 0xbab   :  { %1786 = vmatprep.subr.mxu0 %v1595_v14  ;;  %1863 = vmatprep.subr.mxu1 %v1597_v15  ;;  %v1545_v14 = vld [vmem:[%s6182_s9 + $0x378] sm:$0xff]  ;;  %v1542_v15 = vld [vmem:[%s6182_s9 + $0x360] sm:$0xff] }
 0xbac   :  { %1787 = vmatpush2.msra.mxu0 %v1594_v16  ;;  %1864 = vmatpush2.msra.mxu1 %v1596_v17  ;;  %v1544_v16 = vld [vmem:[%s6182_s9 + $0x370] sm:$0xff]  ;;  %v1535_v17 = vld [vmem:[%s6182_s9 + $0x328] sm:$0xff] }
 0xbad   :  { %1788 = vmatprep.subr.mxu0 %v1587_v18  ;;  %1865 = vmatprep.subr.mxu1 %v1589_v19  ;;  %v1537_v18 = vld [vmem:[%s6182_s9 + $0x338] sm:$0xff]  ;;  %v1534_v19 = vld [vmem:[%s6182_s9 + $0x320] sm:$0xff] }
 0xbae   :  { %1789 = vmatpush2.msra.mxu0 %v1586_v20  ;;  %1866 = vmatpush2.msra.mxu1 %v1588_v21  ;;  %v1536_v20 = vld [vmem:[%s6182_s9 + $0x330] sm:$0xff]  ;;  %v1527_v21 = vld [vmem:[%s6182_s9 + $0x2e8] sm:$0xff] }
 0xbaf   :  { %1790 = vmatprep.subr.mxu0 %v1579_v10  ;;  %1867 = vmatprep.subr.mxu1 %v1581_v22  ;;  %v1529_v10 = vld [vmem:[%s6182_s9 + $0x2f8] sm:$0xff]  ;;  %v1526_v22 = vld [vmem:[%s6182_s9 + $0x2e0] sm:$0xff] }
 0xbb0   :  { %1791 = vmatpush2.msra.mxu0 %v1578_v23  ;;  %1868 = vmatpush2.msra.mxu1 %v1580_v24  ;;  %v1528_v23 = vld [vmem:[%s6182_s9 + $0x2f0] sm:$0xff]  ;;  %v1519_v24 = vld [vmem:[%s6182_s9 + $0x2a8] sm:$0xff] }
 0xbb1   :  { %1792 = vmatprep.subr.mxu0 %v1571_v25  ;;  %1869 = vmatprep.subr.mxu1 %v1573_v27  ;;  %v1521_v25 = vld [vmem:[%s6182_s9 + $0x2b8] sm:$0xff]  ;;  %v1518_v27 = vld [vmem:[%s6182_s9 + $0x2a0] sm:$0xff] }
 0xbb2   :  { %1793 = vmatpush2.msra.mxu0 %v1570_v33  ;;  %1870 = vmatpush2.msra.mxu1 %v1572_v34  ;;  %v1520_v33 = vld [vmem:[%s6182_s9 + $0x2b0] sm:$0xff]  ;;  %v1511_v34 = vld [vmem:[%s6182_s9 + $0x268] sm:$0xff] }
 0xbb3   :  { %1794 = vmatprep.subr.mxu0 %v1563_v35  ;;  %1871 = vmatprep.subr.mxu1 %v1565_v2  ;;  %v1513_v35 = vld [vmem:[%s6182_s9 + $0x278] sm:$0xff]  ;;  %v1510_v2 = vld [vmem:[%s6182_s9 + $0x260] sm:$0xff] }
 0xbb4   :  { %1795 = vmatpush2.msra.mxu0 %v1562_v4  ;;  %1872 = vmatpush2.msra.mxu1 %v1564_v37  ;;  %v1512_v4 = vld [vmem:[%s6182_s9 + $0x270] sm:$0xff]  ;;  %v1503_v37 = vld [vmem:[%s6182_s9 + $0x228] sm:$0xff] }
 0xbb5   :  { %1886 = vmatprep.subr.mxu0 %v1559_v38  ;;  %1963 = vmatprep.subr.mxu1 %v1561_v40  ;;  %v1505_v38 = vld [vmem:[%s6182_s9 + $0x238] sm:$0xff]  ;;  %v1502_v40 = vld [vmem:[%s6182_s9 + $0x220] sm:$0xff] }
 0xc20   :  { %v1377_v41 = vpop.xlane.xlu1 %1376 }
 0xc21   :  { %v1379_v42 = vmul.f32 0.00390625, %v1377_v41  ;;  %v1504_v41 = vld [vmem:[%s6182_s9 + $0x230] sm:$0xff] }
 0xc23   :  { %v4653_v43 = vsub.f32 %v4387_v31, %v1379_v42  ;;  %v4656_v46 = vsub.f32 %v4392_v55, %v1379_v42  ;;  %v1495_v42 = vld [vmem:[%s6182_s9 + $0x1e8] sm:$0xff] }
 0xc25   :  { %v1386_v47 = vmul.f32 %v4653_v43, %v4653_v43  ;;  %v1387_v48 = vmul.f32 %v4656_v46, %v4656_v46 }
 0xc27   :  { %v1391_v39 = vadd.f32 %v1387_v48, %v1386_v47  ;;  %v1497_v47 = vld [vmem:[%s6182_s9 + $0x1f8] sm:$0xff]  ;;  %v1494_v48 = vld [vmem:[%s6182_s9 + $0x1e0] sm:$0xff] }
 0xc29   :  { %1392 = vadd.xlane.f32.xlu1 %v1391_v39  ;;  %v1496_v39 = vld [vmem:[%s6182_s9 + $0x1f0] sm:$0xff] }
 0xc30   :  { %v1390_v12 = vpop.xlane.xlu0 %1389 }
 0xc31   :  { %v1394_v50 = vmul.f32 0.00390625, %v1390_v12  ;;  %v1487_v12 = vld [vmem:[%s6182_s9 + $0x1a8] sm:$0xff] }
 0xc33   :  { %v1396_v30 = vadd.f32 1e-05, %v1394_v50  ;;  %v1489_v50 = vld [vmem:[%s6182_s9 + $0x1b8] sm:$0xff] }
 0xc35   :  { %3129 = vrsqrt.f32 %v1396_v30  ;;  %v1486_v30 = vld [vmem:[%s6182_s9 + $0x1a0] sm:$0xff] }
 0xc42   :  { %v3130_v52 = vpop.eup %3129 }
 0xc43   :  { %v1400_v59 = vmul.f32 %v3130_v52, %v4397_v45  ;;  %v1401_v60 = vmul.f32 %v3130_v52, %v4400_v53  ;;  %v1558_v45 = vld [vmem:[%s6182_s9 + $0x3e0] sm:$0xff]  ;;  %v1560_v53 = vld [vmem:[%s6182_s9 + $0x3f0] sm:$0xff]  ;;  %v1481_v52 = vld [vmem:[%s6182_s9 + $0x178] sm:$0xff] }
 0xc45   :  { %v1416_v32 = vmul.f32 %v4672_v44, %v1401_v60  ;;  %v1415_v63 = vmul.f32 %v4669_v58, %v1400_v59  ;;  %v1478_v59 = vld [vmem:[%s6182_s9 + $0x160] sm:$0xff]  ;;  %v1480_v60 = vld [vmem:[%s6182_s9 + $0x170] sm:$0xff] }
 0xc47   :  { %v4685_v3 = vadd.f32 %v4680_v62, %v1416_v32  ;;  %v4688_v5 = vadd.f32 %v4677_v61, %v1415_v63  ;;  %v1471_v32 = vld [vmem:[%s6182_s9 + $0x128] sm:$0xff]  ;;  %v1473_v63 = vld [vmem:[%s6182_s9 + $0x138] sm:$0xff] }
 0xc49   :  { %1796 = vmatprep.mubr.f32.mxu0 %v4685_v3  ;;  %1873 = vmatprep.mubr.f32.mxu1 %v4685_v3 }
 0xc4a   :  { %1797 = vmatmul.mubr.f32.vlgmr.msra.gmra.mxu0 %v4688_v5  ;;  %1874 = vmatmul.mubr.f32.vlgmr.msra.gmra.mxu1 %v4688_v5 }
 0xc4b   :  { %1887 = vmatpush1.msra.mxu0 %v1558_v45  ;;  %1964 = vmatpush1.msra.mxu1 %v1560_v53  ;;  %v1470_v45 = vld [vmem:[%s6182_s9 + $0x120] sm:$0xff]  ;;  %v1472_v53 = vld [vmem:[%s6182_s9 + $0x130] sm:$0xff] }
 0xc4c   :  { %1888 = vmatprep.subr.mxu0 %v1551_v6  ;;  %1965 = vmatprep.subr.mxu1 %v1553_v7  ;;  %v1463_v6 = vld [vmem:[%s6182_s9 + $0xe8] sm:$0xff]  ;;  %v1465_v7 = vld [vmem:[%s6182_s9 + $0xf8] sm:$0xff] }
 0xc4d   :  { %1889 = vmatpush1.msra.mxu0 %v1550_v8  ;;  %1966 = vmatpush1.msra.mxu1 %v1552_v9  ;;  %v1462_v8 = vld [vmem:[%s6182_s9 + $0xe0] sm:$0xff]  ;;  %v1464_v9 = vld [vmem:[%s6182_s9 + $0xf0] sm:$0xff] }
 0xc4e   :  { %1890 = vmatprep.subr.mxu0 %v1543_v13  ;;  %1967 = vmatprep.subr.mxu1 %v1545_v14  ;;  %v1455_v13 = vld [vmem:[%s6182_s9 + $0xa8] sm:$0xff]  ;;  %v1457_v14 = vld [vmem:[%s6182_s9 + $0xb8] sm:$0xff] }
 0xc4f   :  { %1891 = vmatpush1.msra.mxu0 %v1542_v15  ;;  %1968 = vmatpush1.msra.mxu1 %v1544_v16  ;;  %v1454_v15 = vld [vmem:[%s6182_s9 + $0xa0] sm:$0xff]  ;;  %v1456_v16 = vld [vmem:[%s6182_s9 + $0xb0] sm:$0xff] }
 0xc50   :  { %1892 = vmatprep.subr.mxu0 %v1535_v17  ;;  %1969 = vmatprep.subr.mxu1 %v1537_v18  ;;  %v1447_v17 = vld [vmem:[%s6182_s9 + $0x68] sm:$0xff]  ;;  %v1449_v18 = vld [vmem:[%s6182_s9 + $0x78] sm:$0xff] }
 0xc51   :  { %1893 = vmatpush1.msra.mxu0 %v1534_v19  ;;  %1970 = vmatpush1.msra.mxu1 %v1536_v20  ;;  %v1446_v19 = vld [vmem:[%s6182_s9 + $0x60] sm:$0xff]  ;;  %v1448_v20 = vld [vmem:[%s6182_s9 + $0x70] sm:$0xff] }
 0xc52   :  { %1894 = vmatprep.subr.mxu0 %v1527_v21  ;;  %1971 = vmatprep.subr.mxu1 %v1529_v10  ;;  %v1439_v21 = vld [vmem:[%s6182_s9 + $0x28] sm:$0xff]  ;;  %v1441_v10 = vld [vmem:[%s6182_s9 + $0x38] sm:$0xff] }
 0xc53   :  { %1895 = vmatpush1.msra.mxu0 %v1526_v22  ;;  %1972 = vmatpush1.msra.mxu1 %v1528_v23  ;;  %v1438_v22 = vld [vmem:[%s6182_s9 + $0x20] sm:$0xff]  ;;  %v1440_v23 = vld [vmem:[%s6182_s9 + $0x30] sm:$0xff] }
 0xc54   :  { %1896 = vmatprep.subr.mxu0 %v1519_v24  ;;  %1973 = vmatprep.subr.mxu1 %v1521_v25  ;;  %v1687_v24 = vld [vmem:[%s6182_s9 + $0x7e8] sm:$0xff]  ;;  %v1689_v25 = vld [vmem:[%s6182_s9 + $0x7f8] sm:$0xff] }
 0xc55   :  { %1897 = vmatpush1.msra.mxu0 %v1518_v27  ;;  %1974 = vmatpush1.msra.mxu1 %v1520_v33  ;;  %v1686_v27 = vld [vmem:[%s6182_s9 + $0x7e0] sm:$0xff]  ;;  %v1688_v33 = vld [vmem:[%s6182_s9 + $0x7f0] sm:$0xff] }
 0xc56   :  { %1898 = vmatprep.subr.mxu0 %v1511_v34  ;;  %1975 = vmatprep.subr.mxu1 %v1513_v35  ;;  %v1679_v34 = vld [vmem:[%s6182_s9 + $0x7a8] sm:$0xff]  ;;  %v1681_v35 = vld [vmem:[%s6182_s9 + $0x7b8] sm:$0xff] }
 0xc57   :  { %1899 = vmatpush1.msra.mxu0 %v1510_v2  ;;  %1976 = vmatpush1.msra.mxu1 %v1512_v4  ;;  %v1678_v2 = vld [vmem:[%s6182_s9 + $0x7a0] sm:$0xff]  ;;  %v1680_v4 = vld [vmem:[%s6182_s9 + $0x7b0] sm:$0xff] }
 0xc58   :  { %1900 = vmatprep.subr.mxu0 %v1503_v37  ;;  %1977 = vmatprep.subr.mxu1 %v1505_v38  ;;  %v1671_v37 = vld [vmem:[%s6182_s9 + $0x768] sm:$0xff]  ;;  %v1673_v38 = vld [vmem:[%s6182_s9 + $0x778] sm:$0xff] }
 0xc59   :  { %1901 = vmatpush1.msra.mxu0 %v1502_v40  ;;  %1978 = vmatpush1.msra.mxu1 %v1504_v41  ;;  %v1670_v40 = vld [vmem:[%s6182_s9 + $0x760] sm:$0xff]  ;;  %v1672_v41 = vld [vmem:[%s6182_s9 + $0x770] sm:$0xff] }
 0xc5a   :  { %1902 = vmatprep.subr.mxu0 %v1495_v42  ;;  %1979 = vmatprep.subr.mxu1 %v1497_v47  ;;  %v1663_v42 = vld [vmem:[%s6182_s9 + $0x728] sm:$0xff]  ;;  %v1665_v47 = vld [vmem:[%s6182_s9 + $0x738] sm:$0xff] }
 0xc5b   :  { %1903 = vmatpush1.msra.mxu0 %v1494_v48  ;;  %1980 = vmatpush1.msra.mxu1 %v1496_v39  ;;  %v1662_v48 = vld [vmem:[%s6182_s9 + $0x720] sm:$0xff]  ;;  %v1664_v39 = vld [vmem:[%s6182_s9 + $0x730] sm:$0xff] }
 0xc5c   :  { %1904 = vmatprep.subr.mxu0 %v1487_v12  ;;  %1981 = vmatprep.subr.mxu1 %v1489_v50  ;;  %v1655_v12 = vld [vmem:[%s6182_s9 + $0x6e8] sm:$0xff]  ;;  %v1657_v50 = vld [vmem:[%s6182_s9 + $0x6f8] sm:$0xff] }
 0xc5d   :  { %1905 = vmatpush1.msra.mxu0 %v1486_v30  ;;  %1982 = vmatpush1.msra.mxu1 %v1488_v29  ;;  %v1654_v30 = vld [vmem:[%s6182_s9 + $0x6e0] sm:$0xff]  ;;  %v1656_v29 = vld [vmem:[%s6182_s9 + $0x6f0] sm:$0xff] }
 0xc5e   :  { %1906 = vmatprep.subr.mxu0 %v1479_v54  ;;  %1983 = vmatprep.subr.mxu1 %v1481_v52  ;;  %v1647_v54 = vld [vmem:[%s6182_s9 + $0x6a8] sm:$0xff]  ;;  %v1649_v52 = vld [vmem:[%s6182_s9 + $0x6b8] sm:$0xff] }
 0xc5f   :  { %1907 = vmatpush1.msra.mxu0 %v1478_v59  ;;  %1984 = vmatpush1.msra.mxu1 %v1480_v60  ;;  %v1646_v59 = vld [vmem:[%s6182_s9 + $0x6a0] sm:$0xff]  ;;  %v1648_v60 = vld [vmem:[%s6182_s9 + $0x6b0] sm:$0xff] }
 0xc60   :  { %1908 = vmatprep.subr.mxu0 %v1471_v32  ;;  %1985 = vmatprep.subr.mxu1 %v1473_v63  ;;  %v1639_v32 = vld [vmem:[%s6182_s9 + $0x668] sm:$0xff]  ;;  %v1641_v63 = vld [vmem:[%s6182_s9 + $0x678] sm:$0xff] }
 0xc61   :  { %1909 = vmatpush1.msra.mxu0 %v1470_v45  ;;  %1986 = vmatpush1.msra.mxu1 %v1472_v53  ;;  %v1638_v45 = vld [vmem:[%s6182_s9 + $0x660] sm:$0xff]  ;;  %v1640_v53 = vld [vmem:[%s6182_s9 + $0x670] sm:$0xff] }
 0xc62   :  { %1910 = vmatprep.subr.mxu0 %v1463_v6  ;;  %1987 = vmatprep.subr.mxu1 %v1465_v7  ;;  %v1631_v6 = vld [vmem:[%s6182_s9 + $0x628] sm:$0xff]  ;;  %v1633_v7 = vld [vmem:[%s6182_s9 + $0x638] sm:$0xff] }
 0xc63   :  { %1911 = vmatpush1.msra.mxu0 %v1462_v8  ;;  %1988 = vmatpush1.msra.mxu1 %v1464_v9  ;;  %v1630_v8 = vld [vmem:[%s6182_s9 + $0x620] sm:$0xff]  ;;  %v1632_v9 = vld [vmem:[%s6182_s9 + $0x630] sm:$0xff] }
 0xc64   :  { %1912 = vmatprep.subr.mxu0 %v1455_v13  ;;  %1989 = vmatprep.subr.mxu1 %v1457_v14  ;;  %v1623_v13 = vld [vmem:[%s6182_s9 + $0x5e8] sm:$0xff]  ;;  %v1625_v14 = vld [vmem:[%s6182_s9 + $0x5f8] sm:$0xff] }
 0xc65   :  { %1913 = vmatpush1.msra.mxu0 %v1454_v15  ;;  %1990 = vmatpush1.msra.mxu1 %v1456_v16  ;;  %v1622_v15 = vld [vmem:[%s6182_s9 + $0x5e0] sm:$0xff]  ;;  %v1624_v16 = vld [vmem:[%s6182_s9 + $0x5f0] sm:$0xff] }
 0xc66   :  { %1914 = vmatprep.subr.mxu0 %v1447_v17  ;;  %1991 = vmatprep.subr.mxu1 %v1449_v18  ;;  %v1615_v17 = vld [vmem:[%s6182_s9 + $0x5a8] sm:$0xff]  ;;  %v1617_v18 = vld [vmem:[%s6182_s9 + $0x5b8] sm:$0xff] }
 0xc67   :  { %1915 = vmatpush1.msra.mxu0 %v1446_v19  ;;  %1992 = vmatpush1.msra.mxu1 %v1448_v20  ;;  %v1614_v19 = vld [vmem:[%s6182_s9 + $0x5a0] sm:$0xff]  ;;  %v1616_v20 = vld [vmem:[%s6182_s9 + $0x5b0] sm:$0xff] }
 0xc68   :  { %1916 = vmatprep.subr.mxu0 %v1439_v21  ;;  %1993 = vmatprep.subr.mxu1 %v1441_v10  ;;  %v1607_v21 = vld [vmem:[%s6182_s9 + $0x568] sm:$0xff]  ;;  %v1609_v10 = vld [vmem:[%s6182_s9 + $0x578] sm:$0xff] }
 0xc69   :  { %1917 = vmatpush1.msra.mxu0 %v1438_v22  ;;  %1994 = vmatpush1.msra.mxu1 %v1440_v23  ;;  %v1606_v22 = vld [vmem:[%s6182_s9 + $0x560] sm:$0xff]  ;;  %v1608_v23 = vld [vmem:[%s6182_s9 + $0x570] sm:$0xff] }
 0xc6a   :  { %1918 = vmatprep.subr.mxu0 %v1687_v24  ;;  %1995 = vmatprep.subr.mxu1 %v1689_v25  ;;  %v1599_v24 = vld [vmem:[%s6182_s9 + $0x528] sm:$0xff]  ;;  %v1601_v25 = vld [vmem:[%s6182_s9 + $0x538] sm:$0xff] }
 0xc6b   :  { %1919 = vmatpush2.msra.mxu0 %v1686_v27  ;;  %1996 = vmatpush2.msra.mxu1 %v1688_v33  ;;  %v1598_v27 = vld [vmem:[%s6182_s9 + $0x520] sm:$0xff]  ;;  %v1600_v33 = vld [vmem:[%s6182_s9 + $0x530] sm:$0xff] }
 0xc6c   :  { %1920 = vmatprep.subr.mxu0 %v1679_v34  ;;  %1997 = vmatprep.subr.mxu1 %v1681_v35  ;;  %v1591_v34 = vld [vmem:[%s6182_s9 + $0x4e8] sm:$0xff]  ;;  %v1593_v35 = vld [vmem:[%s6182_s9 + $0x4f8] sm:$0xff] }
 0xc6d   :  { %1921 = vmatpush2.msra.mxu0 %v1678_v2  ;;  %1998 = vmatpush2.msra.mxu1 %v1680_v4  ;;  %v1590_v2 = vld [vmem:[%s6182_s9 + $0x4e0] sm:$0xff]  ;;  %v1592_v4 = vld [vmem:[%s6182_s9 + $0x4f0] sm:$0xff] }
 0xc6e   :  { %1922 = vmatprep.subr.mxu0 %v1671_v37  ;;  %1999 = vmatprep.subr.mxu1 %v1673_v38  ;;  %v1583_v37 = vld [vmem:[%s6182_s9 + $0x4a8] sm:$0xff]  ;;  %v1585_v38 = vld [vmem:[%s6182_s9 + $0x4b8] sm:$0xff] }
 0xc6f   :  { %1923 = vmatpush2.msra.mxu0 %v1670_v40  ;;  %2000 = vmatpush2.msra.mxu1 %v1672_v41  ;;  %v1582_v40 = vld [vmem:[%s6182_s9 + $0x4a0] sm:$0xff]  ;;  %v1584_v41 = vld [vmem:[%s6182_s9 + $0x4b0] sm:$0xff] }
 0xc70   :  { %1924 = vmatprep.subr.mxu0 %v1663_v42  ;;  %2001 = vmatprep.subr.mxu1 %v1665_v47  ;;  %v1575_v42 = vld [vmem:[%s6182_s9 + $0x468] sm:$0xff]  ;;  %v1577_v47 = vld [vmem:[%s6182_s9 + $0x478] sm:$0xff] }
 0xc71   :  { %1925 = vmatpush2.msra.mxu0 %v1662_v48  ;;  %2002 = vmatpush2.msra.mxu1 %v1664_v39  ;;  %v1574_v48 = vld [vmem:[%s6182_s9 + $0x460] sm:$0xff]  ;;  %v1576_v39 = vld [vmem:[%s6182_s9 + $0x470] sm:$0xff] }
 0xc72   :  { %1926 = vmatprep.subr.mxu0 %v1655_v12  ;;  %2003 = vmatprep.subr.mxu1 %v1657_v50  ;;  %v1567_v12 = vld [vmem:[%s6182_s9 + $0x428] sm:$0xff]  ;;  %v1569_v50 = vld [vmem:[%s6182_s9 + $0x438] sm:$0xff] }
 0xc73   :  { %1927 = vmatpush2.msra.mxu0 %v1654_v30  ;;  %2004 = vmatpush2.msra.mxu1 %v1656_v29  ;;  %v1566_v30 = vld [vmem:[%s6182_s9 + $0x420] sm:$0xff]  ;;  %v1568_v29 = vld [vmem:[%s6182_s9 + $0x430] sm:$0xff] }
 0xc74   :  { %1928 = vmatprep.subr.mxu0 %v1647_v54  ;;  %2005 = vmatprep.subr.mxu1 %v1649_v52  ;;  %v2215_v54 = vld [vmem:[%s6184_s11 + $0xf8] sm:$0xff] }
 0xc75   :  { %1929 = vmatpush2.msra.mxu0 %v1646_v59  ;;  %2006 = vmatpush2.msra.mxu1 %v1648_v60  ;;  %v2279_v52 = vld [vmem:[%s6184_s11 + $0x2f8] sm:$0xff] }
 0xc76   :  { %1930 = vmatprep.subr.mxu0 %v1639_v32  ;;  %2007 = vmatprep.subr.mxu1 %v1641_v63 }
 0xc77   :  { %1931 = vmatpush2.msra.mxu0 %v1638_v45  ;;  %2008 = vmatpush2.msra.mxu1 %v1640_v53 }
 0xc78   :  { %1932 = vmatprep.subr.mxu0 %v1631_v6  ;;  %2009 = vmatprep.subr.mxu1 %v1633_v7 }
 0xc79   :  { %1933 = vmatpush2.msra.mxu0 %v1630_v8  ;;  %2010 = vmatpush2.msra.mxu1 %v1632_v9 }
 0xc7a   :  { %1934 = vmatprep.subr.mxu0 %v1623_v13  ;;  %2011 = vmatprep.subr.mxu1 %v1625_v14  ;;  %v2210_v13 = vld [vmem:[%s6184_s11 + $0xd0] sm:$0xff] }
 0xc7b   :  { %1935 = vmatpush2.msra.mxu0 %v1622_v15  ;;  %2012 = vmatpush2.msra.mxu1 %v1624_v16  ;;  %v2274_v14 = vld [vmem:[%s6184_s11 + $0x2d0] sm:$0xff]  ;;  %v2209_v15 = vld [vmem:[%s6184_s11 + $0xc8] sm:$0xff] }
 0xc7c   :  { %1936 = vmatprep.subr.mxu0 %v1615_v17  ;;  %2013 = vmatprep.subr.mxu1 %v1617_v18  ;;  %v2273_v16 = vld [vmem:[%s6184_s11 + $0x2c8] sm:$0xff]  ;;  %v2208_v17 = vld [vmem:[%s6184_s11 + $0xc0] sm:$0xff] }
 0xc7d   :  { %1937 = vmatpush2.msra.mxu0 %v1614_v19  ;;  %2014 = vmatpush2.msra.mxu1 %v1616_v20  ;;  %v2272_v18 = vld [vmem:[%s6184_s11 + $0x2c0] sm:$0xff]  ;;  %v2207_v19 = vld [vmem:[%s6184_s11 + $0xb8] sm:$0xff] }
 0xc7e   :  { %1938 = vmatprep.subr.mxu0 %v1607_v21  ;;  %2015 = vmatprep.subr.mxu1 %v1609_v10  ;;  %v2271_v20 = vld [vmem:[%s6184_s11 + $0x2b8] sm:$0xff]  ;;  %v2206_v21 = vld [vmem:[%s6184_s11 + $0xb0] sm:$0xff] }
 0xc7f   :  { %1939 = vmatpush2.msra.mxu0 %v1606_v22  ;;  %2016 = vmatpush2.msra.mxu1 %v1608_v23  ;;  %v2270_v10 = vld [vmem:[%s6184_s11 + $0x2b0] sm:$0xff]  ;;  %v2205_v22 = vld [vmem:[%s6184_s11 + $0xa8] sm:$0xff] }
 0xc80   :  { %1940 = vmatprep.subr.mxu0 %v1599_v24  ;;  %2017 = vmatprep.subr.mxu1 %v1601_v25  ;;  %v2269_v23 = vld [vmem:[%s6184_s11 + $0x2a8] sm:$0xff]  ;;  %v2204_v24 = vld [vmem:[%s6184_s11 + $0xa0] sm:$0xff] }
 0xc81   :  { %1941 = vmatpush2.msra.mxu0 %v1598_v27  ;;  %2018 = vmatpush2.msra.mxu1 %v1600_v33  ;;  %v2268_v25 = vld [vmem:[%s6184_s11 + $0x2a0] sm:$0xff]  ;;  %v2203_v27 = vld [vmem:[%s6184_s11 + $0x98] sm:$0xff] }
 0xc82   :  { %1942 = vmatprep.subr.mxu0 %v1591_v34  ;;  %2019 = vmatprep.subr.mxu1 %v1593_v35  ;;  %v2267_v33 = vld [vmem:[%s6184_s11 + $0x298] sm:$0xff]  ;;  %v2202_v34 = vld [vmem:[%s6184_s11 + $0x90] sm:$0xff] }
 0xc83   :  { %1943 = vmatpush2.msra.mxu0 %v1590_v2  ;;  %2020 = vmatpush2.msra.mxu1 %v1592_v4  ;;  %v2266_v35 = vld [vmem:[%s6184_s11 + $0x290] sm:$0xff]  ;;  %v2201_v2 = vld [vmem:[%s6184_s11 + $0x88] sm:$0xff] }
 0xc84   :  { %1944 = vmatprep.subr.mxu0 %v1583_v37  ;;  %2021 = vmatprep.subr.mxu1 %v1585_v38  ;;  %v2265_v4 = vld [vmem:[%s6184_s11 + $0x288] sm:$0xff]  ;;  %v2200_v37 = vld [vmem:[%s6184_s11 + $0x80] sm:$0xff] }
 0xc85   :  { %1945 = vmatpush2.msra.mxu0 %v1582_v40  ;;  %2022 = vmatpush2.msra.mxu1 %v1584_v41  ;;  %v2264_v38 = vld [vmem:[%s6184_s11 + $0x280] sm:$0xff]  ;;  %v2199_v40 = vld [vmem:[%s6184_s11 + $0x78] sm:$0xff] }
 0xc86   :  { %1946 = vmatprep.subr.mxu0 %v1575_v42  ;;  %2023 = vmatprep.subr.mxu1 %v1577_v47  ;;  %v2263_v41 = vld [vmem:[%s6184_s11 + $0x278] sm:$0xff]  ;;  %v2198_v42 = vld [vmem:[%s6184_s11 + $0x70] sm:$0xff] }
 0xc87   :  { %1947 = vmatpush2.msra.mxu0 %v1574_v48  ;;  %2024 = vmatpush2.msra.mxu1 %v1576_v39  ;;  %v2262_v47 = vld [vmem:[%s6184_s11 + $0x270] sm:$0xff]  ;;  %v2197_v48 = vld [vmem:[%s6184_s11 + $0x68] sm:$0xff] }
 0xc88   :  { %1948 = vmatprep.subr.mxu0 %v1567_v12  ;;  %2025 = vmatprep.subr.mxu1 %v1569_v50  ;;  %v2261_v39 = vld [vmem:[%s6184_s11 + $0x268] sm:$0xff]  ;;  %v2196_v12 = vld [vmem:[%s6184_s11 + $0x60] sm:$0xff] }
 0xc89   :  { %1949 = vmatpush2.msra.mxu0 %v1566_v30  ;;  %2026 = vmatpush2.msra.mxu1 %v1568_v29  ;;  %v2260_v50 = vld [vmem:[%s6184_s11 + $0x260] sm:$0xff]  ;;  %v2195_v30 = vld [vmem:[%s6184_s11 + $0x58] sm:$0xff] }
 0xc8a   :  { %2452 = vmatprep.subr.mxu0 %v2215_v54  ;;  %2529 = vmatprep.subr.mxu1 %v2279_v52  ;;  %v2259_v29 = vld [vmem:[%s6184_s11 + $0x258] sm:$0xff]  ;;  %v2194_v54 = vld [vmem:[%s6184_s11 + $0x50] sm:$0xff] }
 0xc8b   :  { %v2258_v52 = vld [vmem:[%s6184_s11 + $0x250] sm:$0xff] }
 0xcb2   :  { %v1393_v59 = vpop.xlane.xlu1 %1392 }
 0xcb3   :  { %v1395_v60 = vmul.f32 0.00390625, %v1393_v59  ;;  %v2193_v59 = vld [vmem:[%s6184_s11 + $0x48] sm:$0xff] }
 0xcb5   :  { %v1397_v32 = vadd.f32 1e-05, %v1395_v60  ;;  %v2257_v60 = vld [vmem:[%s6184_s11 + $0x248] sm:$0xff] }
 0xcb7   :  { %3131 = vrsqrt.f32 %v1397_v32  ;;  %v2192_v32 = vld [vmem:[%s6184_s11 + $0x40] sm:$0xff] }
 0xcc4   :  { %v3132_v63 = vpop.eup %3131 }
 0xcc5   :  { %v1403_v45 = vmul.f32 %v3132_v63, %v4656_v46  ;;  %v1402_v53 = vmul.f32 %v3132_v63, %v4653_v43  ;;  %v2214_v43 = vld [vmem:[%s6184_s11 + $0xf0] sm:$0xff]  ;;  %v2256_v63 = vld [vmem:[%s6184_s11 + $0x240] sm:$0xff] }
 0xcc6   :  { %v2278_v46 = vld [vmem:[%s6184_s11 + $0x2f0] sm:$0xff] }
 0xcc7   :  { %v1418_v6 = vmul.f32 %v4672_v44, %v1403_v45  ;;  %v1417_v7 = vmul.f32 %v4669_v58, %v1402_v53  ;;  %v2213_v58 = vld [vmem:[%s6184_s11 + $0xe8] sm:$0xff]  ;;  %v2191_v45 = vld [vmem:[%s6184_s11 + $0x38] sm:$0xff] }
 0xcc8   :  { %v2277_v44 = vld [vmem:[%s6184_s11 + $0x2e8] sm:$0xff]  ;;  %v2255_v53 = vld [vmem:[%s6184_s11 + $0x238] sm:$0xff] }
 0xcc9   :  { %v1433_v8 = vadd.f32 %v4680_v62, %v1418_v6  ;;  %v1432_v9 = vadd.f32 %v4677_v61, %v1417_v7  ;;  %v2212_v61 = vld [vmem:[%s6184_s11 + $0xe0] sm:$0xff]  ;;  %v2190_v6 = vld [vmem:[%s6184_s11 + $0x30] sm:$0xff] }
 0xcca   :  { %v2276_v62 = vld [vmem:[%s6184_s11 + $0x2e0] sm:$0xff]  ;;  %v2254_v7 = vld [vmem:[%s6184_s11 + $0x230] sm:$0xff] }
 0xccb   :  { %1802 = vmatprep.mubr.f32.mxu0 %v1433_v8  ;;  %1879 = vmatprep.mubr.f32.mxu1 %v1433_v8 }
 0xccc   :  { %1803 = vmatmul.mubr.f32.gmra.mxu0 %v1432_v9  ;;  %1880 = vmatmul.mubr.f32.gmra.mxu1 %v1432_v9 }
 0xccd   :  { %1950 = vmatprep.mubr.f32.mxu0 %v4685_v3  ;;  %2027 = vmatprep.mubr.f32.mxu1 %v4685_v3  ;;  %v2211_v3 = vld [vmem:[%s6184_s11 + $0xd8] sm:$0xff] }
 0xcd0   :  { %1951 = vmatmul.mubr.f32.vlgmr.msra.gmra.mxu0 %v4688_v5  ;;  %2028 = vmatmul.mubr.f32.vlgmr.msra.gmra.mxu1 %v4688_v5  ;;  %v2275_v5 = vld [vmem:[%s6184_s11 + $0x2d8] sm:$0xff] }
 0xcd1   :  { %1956 = vmatprep.mubr.f32.mxu0 %v1433_v8  ;;  %2033 = vmatprep.mubr.f32.mxu1 %v1433_v8  ;;  %v2189_v8 = vld [vmem:[%s6184_s11 + $0x28] sm:$0xff] }
 0xcd2   :  { %2453 = vmatpush1.msra.mxu0 %v2214_v43  ;;  %2530 = vmatpush1.msra.mxu1 %v2278_v46  ;;  %v2188_v43 = vld [vmem:[%s6184_s11 + $0x20] sm:$0xff] }
 0xcd3   :  { %2454 = vmatprep.subr.mxu0 %v2213_v58  ;;  %2531 = vmatprep.subr.mxu1 %v2277_v44  ;;  %v2252_v46 = vld [vmem:[%s6184_s11 + $0x220] sm:$0xff]  ;;  %v2187_v58 = vld [vmem:[%s6184_s11 + $0x18] sm:$0xff] }
 0xcd4   :  { %1957 = vmatmul.mubr.f32.gmra.mxu0 %v1432_v9  ;;  %2034 = vmatmul.mubr.f32.gmra.mxu1 %v1432_v9  ;;  %v2253_v9 = vld [vmem:[%s6184_s11 + $0x228] sm:$0xff]  ;;  %v2251_v44 = vld [vmem:[%s6184_s11 + $0x218] sm:$0xff] }
 0xcd5   :  { %2455 = vmatpush1.msra.mxu0 %v2212_v61  ;;  %2532 = vmatpush1.msra.mxu1 %v2276_v62  ;;  %v2186_v61 = vld [vmem:[%s6184_s11 + $0x10] sm:$0xff] }
 0xcd6   :  { %2456 = vmatprep.subr.mxu0 %v2211_v3  ;;  %2533 = vmatprep.subr.mxu1 %v2275_v5  ;;  %v2250_v62 = vld [vmem:[%s6184_s11 + $0x210] sm:$0xff]  ;;  %v2185_v3 = vld [vmem:[%s6184_s11 + $0x8] sm:$0xff] }
 0xcd7   :  { %2457 = vmatpush1.msra.mxu0 %v2210_v13  ;;  %2534 = vmatpush1.msra.mxu1 %v2274_v14  ;;  %v2249_v5 = vld [vmem:[%s6184_s11 + $0x208] sm:$0xff]  ;;  %v2184_v13 = vld [vmem:[%s6184_s11] sm:$0xff] }
 0xcd8   :  { %2458 = vmatprep.subr.mxu0 %v2209_v15  ;;  %2535 = vmatprep.subr.mxu1 %v2273_v16  ;;  %v2248_v14 = vld [vmem:[%s6184_s11 + $0x200] sm:$0xff]  ;;  %v2247_v15 = vld [vmem:[%s6184_s11 + $0x1f8] sm:$0xff] }
 0xcd9   :  { %2459 = vmatpush1.msra.mxu0 %v2208_v17  ;;  %2536 = vmatpush1.msra.mxu1 %v2272_v18  ;;  %v2311_v16 = vld [vmem:[%s6184_s11 + $0x3f8] sm:$0xff]  ;;  %v2246_v17 = vld [vmem:[%s6184_s11 + $0x1f0] sm:$0xff] }
 0xcda   :  { %2460 = vmatprep.subr.mxu0 %v2207_v19  ;;  %2537 = vmatprep.subr.mxu1 %v2271_v20  ;;  %v2310_v18 = vld [vmem:[%s6184_s11 + $0x3f0] sm:$0xff]  ;;  %v2245_v19 = vld [vmem:[%s6184_s11 + $0x1e8] sm:$0xff] }
 0xcdb   :  { %2461 = vmatpush1.msra.mxu0 %v2206_v21  ;;  %2538 = vmatpush1.msra.mxu1 %v2270_v10  ;;  %v2309_v20 = vld [vmem:[%s6184_s11 + $0x3e8] sm:$0xff]  ;;  %v2244_v21 = vld [vmem:[%s6184_s11 + $0x1e0] sm:$0xff] }
 0xcdc   :  { %2462 = vmatprep.subr.mxu0 %v2205_v22  ;;  %2539 = vmatprep.subr.mxu1 %v2269_v23  ;;  %v2308_v10 = vld [vmem:[%s6184_s11 + $0x3e0] sm:$0xff]  ;;  %v2243_v22 = vld [vmem:[%s6184_s11 + $0x1d8] sm:$0xff] }
 0xcdd   :  { %2463 = vmatpush1.msra.mxu0 %v2204_v24  ;;  %2540 = vmatpush1.msra.mxu1 %v2268_v25  ;;  %v2307_v23 = vld [vmem:[%s6184_s11 + $0x3d8] sm:$0xff]  ;;  %v2242_v24 = vld [vmem:[%s6184_s11 + $0x1d0] sm:$0xff] }
 0xcde   :  { %2464 = vmatprep.subr.mxu0 %v2203_v27  ;;  %2541 = vmatprep.subr.mxu1 %v2267_v33  ;;  %v2306_v25 = vld [vmem:[%s6184_s11 + $0x3d0] sm:$0xff]  ;;  %v2241_v27 = vld [vmem:[%s6184_s11 + $0x1c8] sm:$0xff] }
 0xcdf   :  { %2465 = vmatpush1.msra.mxu0 %v2202_v34  ;;  %2542 = vmatpush1.msra.mxu1 %v2266_v35  ;;  %v2305_v33 = vld [vmem:[%s6184_s11 + $0x3c8] sm:$0xff]  ;;  %v2240_v34 = vld [vmem:[%s6184_s11 + $0x1c0] sm:$0xff] }
 0xce0   :  { %2466 = vmatprep.subr.mxu0 %v2201_v2  ;;  %2543 = vmatprep.subr.mxu1 %v2265_v4  ;;  %v2304_v35 = vld [vmem:[%s6184_s11 + $0x3c0] sm:$0xff]  ;;  %v2239_v2 = vld [vmem:[%s6184_s11 + $0x1b8] sm:$0xff] }
 0xce1   :  { %2467 = vmatpush1.msra.mxu0 %v2200_v37  ;;  %2544 = vmatpush1.msra.mxu1 %v2264_v38  ;;  %v2303_v4 = vld [vmem:[%s6184_s11 + $0x3b8] sm:$0xff]  ;;  %v2238_v37 = vld [vmem:[%s6184_s11 + $0x1b0] sm:$0xff] }
 0xce2   :  { %2468 = vmatprep.subr.mxu0 %v2199_v40  ;;  %2545 = vmatprep.subr.mxu1 %v2263_v41  ;;  %v2302_v38 = vld [vmem:[%s6184_s11 + $0x3b0] sm:$0xff]  ;;  %v2237_v40 = vld [vmem:[%s6184_s11 + $0x1a8] sm:$0xff] }
 0xce3   :  { %2469 = vmatpush1.msra.mxu0 %v2198_v42  ;;  %2546 = vmatpush1.msra.mxu1 %v2262_v47  ;;  %v2301_v41 = vld [vmem:[%s6184_s11 + $0x3a8] sm:$0xff]  ;;  %v2236_v42 = vld [vmem:[%s6184_s11 + $0x1a0] sm:$0xff] }
 0xce4   :  { %2470 = vmatprep.subr.mxu0 %v2197_v48  ;;  %2547 = vmatprep.subr.mxu1 %v2261_v39  ;;  %v2300_v47 = vld [vmem:[%s6184_s11 + $0x3a0] sm:$0xff]  ;;  %v2235_v48 = vld [vmem:[%s6184_s11 + $0x198] sm:$0xff] }
 0xce5   :  { %2471 = vmatpush1.msra.mxu0 %v2196_v12  ;;  %2548 = vmatpush1.msra.mxu1 %v2260_v50  ;;  %v2299_v39 = vld [vmem:[%s6184_s11 + $0x398] sm:$0xff]  ;;  %v2234_v12 = vld [vmem:[%s6184_s11 + $0x190] sm:$0xff] }
 0xce6   :  { %2472 = vmatprep.subr.mxu0 %v2195_v30  ;;  %2549 = vmatprep.subr.mxu1 %v2259_v29  ;;  %v2298_v50 = vld [vmem:[%s6184_s11 + $0x390] sm:$0xff]  ;;  %v2233_v30 = vld [vmem:[%s6184_s11 + $0x188] sm:$0xff] }
 0xce7   :  { %2473 = vmatpush1.msra.mxu0 %v2194_v54  ;;  %2550 = vmatpush1.msra.mxu1 %v2258_v52  ;;  %v2297_v29 = vld [vmem:[%s6184_s11 + $0x388] sm:$0xff]  ;;  %v2232_v54 = vld [vmem:[%s6184_s11 + $0x180] sm:$0xff] }
 0xce8   :  { %2474 = vmatprep.subr.mxu0 %v2193_v59  ;;  %2551 = vmatprep.subr.mxu1 %v2257_v60  ;;  %v2296_v52 = vld [vmem:[%s6184_s11 + $0x380] sm:$0xff]  ;;  %v2231_v59 = vld [vmem:[%s6184_s11 + $0x178] sm:$0xff] }
 0xce9   :  { %2475 = vmatpush1.msra.mxu0 %v2192_v32  ;;  %2552 = vmatpush1.msra.mxu1 %v2256_v63  ;;  %v2295_v60 = vld [vmem:[%s6184_s11 + $0x378] sm:$0xff]  ;;  %v2230_v32 = vld [vmem:[%s6184_s11 + $0x170] sm:$0xff] }
 0xcea   :  { %2476 = vmatprep.subr.mxu0 %v2191_v45  ;;  %2553 = vmatprep.subr.mxu1 %v2255_v53  ;;  %v2294_v63 = vld [vmem:[%s6184_s11 + $0x370] sm:$0xff]  ;;  %v2229_v45 = vld [vmem:[%s6184_s11 + $0x168] sm:$0xff] }
 0xceb   :  { %2477 = vmatpush1.msra.mxu0 %v2190_v6  ;;  %2554 = vmatpush1.msra.mxu1 %v2254_v7  ;;  %v2293_v53 = vld [vmem:[%s6184_s11 + $0x368] sm:$0xff]  ;;  %v2228_v6 = vld [vmem:[%s6184_s11 + $0x160] sm:$0xff] }
 0xcec   :  { %2478 = vmatprep.subr.mxu0 %v2189_v8  ;;  %2555 = vmatprep.subr.mxu1 %v2253_v9  ;;  %v2292_v7 = vld [vmem:[%s6184_s11 + $0x360] sm:$0xff]  ;;  %v2227_v8 = vld [vmem:[%s6184_s11 + $0x158] sm:$0xff] }
 0xced   :  { %2479 = vmatpush1.msra.mxu0 %v2188_v43  ;;  %2556 = vmatpush1.msra.mxu1 %v2252_v46  ;;  %v2291_v9 = vld [vmem:[%s6184_s11 + $0x358] sm:$0xff]  ;;  %v5403_v43 = vld [vmem:[%s6183_s10] sm:$0xff]  ;;  %v2226_v46 = vld [vmem:[%s6184_s11 + $0x150] sm:$0xff] }
 0xcee   :  { %2480 = vmatprep.subr.mxu0 %v2187_v58  ;;  %2557 = vmatprep.subr.mxu1 %v2251_v44  ;;  %v2290_v58 = vld [vmem:[%s6184_s11 + $0x350] sm:$0xff]  ;;  %v2225_v44 = vld [vmem:[%s6184_s11 + $0x148] sm:$0xff] }
 0xcef   :  { %2481 = vmatpush1.msra.mxu0 %v2186_v61  ;;  %2558 = vmatpush1.msra.mxu1 %v2250_v62  ;;  %v2289_v61 = vld [vmem:[%s6184_s11 + $0x348] sm:$0xff]  ;;  %v2224_v62 = vld [vmem:[%s6184_s11 + $0x140] sm:$0xff] }
 0xcf0   :  { %2482 = vmatprep.subr.mxu0 %v2185_v3  ;;  %2559 = vmatprep.subr.mxu1 %v2249_v5  ;;  %v2288_v3 = vld [vmem:[%s6184_s11 + $0x340] sm:$0xff]  ;;  %v5425_v5 = vrot.slane %v5403_v43, %v3724_v36 }
 0xcf1   :  { %2483 = vmatpush1.msra.mxu0 %v2184_v13  ;;  %2560 = vmatpush1.msra.mxu1 %v2248_v14  ;;  %v5430_v13 = vrot.slane %v5403_v43, %v341_v57  ;;  %v2223_v14 = vld [vmem:[%s6184_s11 + $0x138] sm:$0xff]  ;;  %v2286_v57 = vld [vmem:[%s6184_s11 + $0x330] sm:$0xff] }
 0xcf2   :  { %2484 = vmatprep.subr.mxu0 %v2247_v15  ;;  %2561 = vmatprep.subr.mxu1 %v2311_v16  ;;  %v2287_v15 = vld [vmem:[%s6184_s11 + $0x338] sm:$0xff]  ;;  %v2222_v16 = vld [vmem:[%s6184_s11 + $0x130] sm:$0xff] }
 0xcf3   :  { %2485 = vmatpush2.msra.mxu0 %v2246_v17  ;;  %2562 = vmatpush2.msra.mxu1 %v2310_v18  ;;  %v2221_v17 = vld [vmem:[%s6184_s11 + $0x128] sm:$0xff] }
 0xcf4   :  { %2486 = vmatprep.subr.mxu0 %v2245_v19  ;;  %2563 = vmatprep.subr.mxu1 %v2309_v20  ;;  %v2285_v18 = vld [vmem:[%s6184_s11 + $0x328] sm:$0xff] }
 0xcf5   :  { %2487 = vmatpush2.msra.mxu0 %v2244_v21  ;;  %2564 = vmatpush2.msra.mxu1 %v2308_v10  ;;  %v5452_v21 = vrot.slane %v5403_v43, %v3721_v1  ;;  %v5457_v10 = vrot.slane %v5403_v43, %v345_v26  ;;  %v2219_v26 = vld [vmem:[%s6184_s11 + $0x118] sm:$0xff] }
 0xcf6   :  { %2488 = vmatprep.subr.mxu0 %v2243_v22  ;;  %2565 = vmatprep.subr.mxu1 %v2307_v23  ;;  %v2220_v22 = vld [vmem:[%s6184_s11 + $0x120] sm:$0xff] }
 0xcf7   :  { %2489 = vmatpush2.msra.mxu0 %v2242_v24  ;;  %2566 = vmatpush2.msra.mxu1 %v2306_v25  ;;  %v2284_v23 = vld [vmem:[%s6184_s11 + $0x320] sm:$0xff] }
 0xcf8   :  { %2490 = vmatprep.subr.mxu0 %v2241_v27  ;;  %2567 = vmatprep.subr.mxu1 %v2305_v33  ;;  %v2283_v27 = vld [vmem:[%s6184_s11 + $0x318] sm:$0xff] }
 0xcf9   :  { %2491 = vmatpush2.msra.mxu0 %v2240_v34  ;;  %2568 = vmatpush2.msra.mxu1 %v2304_v35  ;;  %v2218_v35 = vld [vmem:[%s6184_s11 + $0x110] sm:$0xff] }
 0xcfa   :  { %2492 = vmatprep.subr.mxu0 %v2239_v2  ;;  %2569 = vmatprep.subr.mxu1 %v2303_v4  ;;  %v2282_v2 = vld [vmem:[%s6184_s11 + $0x310] sm:$0xff] }
 0xcfb   :  { %2493 = vmatpush2.msra.mxu0 %v2238_v37  ;;  %2570 = vmatpush2.msra.mxu1 %v2302_v38  ;;  %v2217_v38 = vld [vmem:[%s6184_s11 + $0x108] sm:$0xff] }
 0xcfc   :  { %2494 = vmatprep.subr.mxu0 %v2237_v40  ;;  %2571 = vmatprep.subr.mxu1 %v2301_v41  ;;  %v2281_v40 = vld [vmem:[%s6184_s11 + $0x308] sm:$0xff] }
 0xcfd   :  { %2495 = vmatpush2.msra.mxu0 %v2236_v42  ;;  %2572 = vmatpush2.msra.mxu1 %v2300_v47  ;;  %v2216_v47 = vld [vmem:[%s6184_s11 + $0x100] sm:$0xff] }
 0xcfe   :  { %2496 = vmatprep.subr.mxu0 %v2235_v48  ;;  %2573 = vmatprep.subr.mxu1 %v2299_v39  ;;  %v2280_v48 = vld [vmem:[%s6184_s11 + $0x300] sm:$0xff] }
 0xcff   :  { %2497 = vmatpush2.msra.mxu0 %v2234_v12  ;;  %2574 = vmatpush2.msra.mxu1 %v2298_v50  ;;  %v2343_v50 = vld [vmem:[%s6184_s11 + $0x4f8] sm:$0xff] }
 0xd00   :  { %2498 = vmatprep.subr.mxu0 %v2233_v30  ;;  %2575 = vmatprep.subr.mxu1 %v2297_v29  ;;  %v2407_v30 = vld [vmem:[%s6184_s11 + $0x6f8] sm:$0xff] }
 0xd01   :  { %2499 = vmatpush2.msra.mxu0 %v2232_v54  ;;  %2576 = vmatpush2.msra.mxu1 %v2296_v52 }
 0xd02   :  { %2500 = vmatprep.subr.mxu0 %v2231_v59  ;;  %2577 = vmatprep.subr.mxu1 %v2295_v60 }
 0xd03   :  { %2501 = vmatpush2.msra.mxu0 %v2230_v32  ;;  %2578 = vmatpush2.msra.mxu1 %v2294_v63 }
 0xd04   :  { %2502 = vmatprep.subr.mxu0 %v2229_v45  ;;  %2579 = vmatprep.subr.mxu1 %v2293_v53 }
 0xd05   :  { %2503 = vmatpush2.msra.mxu0 %v2228_v6  ;;  %2580 = vmatpush2.msra.mxu1 %v2292_v7 }
 0xd06   :  { %2504 = vmatprep.subr.mxu0 %v2227_v8  ;;  %2581 = vmatprep.subr.mxu1 %v2291_v9 }
 0xd07   :  { %2505 = vmatpush2.msra.mxu0 %v2226_v46  ;;  %2582 = vmatpush2.msra.mxu1 %v2290_v58 }
 0xd08   :  { %2506 = vmatprep.subr.mxu0 %v2225_v44  ;;  %2583 = vmatprep.subr.mxu1 %v2289_v61 }
 0xd09   :  { %2507 = vmatpush2.msra.mxu0 %v2224_v62  ;;  %2584 = vmatpush2.msra.mxu1 %v2288_v3 }
 0xd0a   :  { %v1798_v19 = vpop.f32.mrf.mxu0  ;;  %v1875_v20 = vpop.f32.mrf.mxu1  ;;  %2508 = vmatprep.subr.mxu0 %v2223_v14  ;;  %2585 = vmatprep.subr.mxu1 %v2287_v15 }
 0xd0b   :  { %v5466_v24 = vadd.f32 %v1798_v19, %v5425_v5  ;;  %v5469_v25 = vadd.f32 %v1875_v20, %v5430_v13  ;;  %2509 = vmatpush2.msra.mxu0 %v2222_v16  ;;  %2586 = vmatpush2.msra.mxu1 %v2286_v57 }
 0xd0c   :  { %v1800_v33 = vpop.f32.mrf.mxu0  ;;  %v1877_v34 = vpop.f32.mrf.mxu1  ;;  %2510 = vmatprep.subr.mxu0 %v2221_v17  ;;  %2587 = vmatprep.subr.mxu1 %v2285_v18 }
 0xd0d   :  { %v2056_v4 = vmul.f32 0.044715, %v5466_v24  ;;  %v2058_v37 = vmul.f32 0.044715, %v5469_v25  ;;  %2511 = vmatpush2.msra.mxu0 %v2220_v22  ;;  %2588 = vmatpush2.msra.mxu1 %v2284_v23  ;;  %v1801_v41 = vadd.f32 %v1800_v33, %v5452_v21  ;;  %v1878_v42 = vadd.f32 %v1877_v34, %v5457_v10  ;;  %v2342_v33 = vld [vmem:[%s6184_s11 + $0x4f0] sm:$0xff] }
 0xd0e   :  { %2512 = vmatprep.subr.mxu0 %v2219_v26  ;;  %2589 = vmatprep.subr.mxu1 %v2283_v27  ;;  %v2040_v18 = vmul.f32 0.5, %v5466_v24  ;;  %v2042_v22 = vmul.f32 0.5, %v5469_v25 }
 0xd0f   :  { %v2072_v39 = vmul.f32 %v2056_v4, %v5466_v24  ;;  %v2074_v12 = vmul.f32 %v2058_v37, %v5469_v25  ;;  %2513 = vmatpush2.msra.mxu0 %v2218_v35  ;;  %2590 = vmatpush2.msra.mxu1 %v2282_v2  ;;  %v2057_v29 = vmul.f32 0.044715, %v1801_v41  ;;  %v2059_v54 = vmul.f32 0.044715, %v1878_v42  ;;  %v2406_v35 = vld [vmem:[%s6184_s11 + $0x6f0] sm:$0xff]  ;;  %v2340_v2 = vld [vmem:[%s6184_s11 + $0x4e0] sm:$0xff] }
 0xd10   :  { %2514 = vmatprep.subr.mxu0 %v2217_v38  ;;  %2591 = vmatprep.subr.mxu1 %v2281_v40  ;;  %v2041_v16 = vmul.f32 0.5, %v1801_v41  ;;  %v2043_v19 = vmul.f32 0.5, %v1878_v42  ;;  %v2404_v4 = vld [vmem:[%s6184_s11 + $0x6e0] sm:$0xff]  ;;  %v2339_v37 = vld [vmem:[%s6184_s11 + $0x4d8] sm:$0xff]  ;;  %v2338_v40 = vld [vmem:[%s6184_s11 + $0x4d0] sm:$0xff] }
 0xd11   :  { %v2088_v52 = vmul.f32 %v2072_v39, %v5466_v24  ;;  %v2090_v59 = vmul.f32 %v2074_v12, %v5469_v25  ;;  %2515 = vmatpush2.msra.mxu0 %v2216_v47  ;;  %2592 = vmatpush2.msra.mxu1 %v2280_v48  ;;  %v2073_v60 = vmul.f32 %v2057_v29, %v1801_v41  ;;  %v2403_v38 = vld [vmem:[%s6184_s11 + $0x6d8] sm:$0xff]  ;;  %v2401_v47 = vld [vmem:[%s6184_s11 + $0x6c8] sm:$0xff]  ;;  %v2336_v48 = vld [vmem:[%s6184_s11 + $0x4c0] sm:$0xff] }
 0xd12   :  { %v2075_v32 = vmul.f32 %v2059_v54, %v1878_v42  ;;  %2606 = vmatprep.subr.mxu0 %v2343_v50  ;;  %2683 = vmatprep.subr.mxu1 %v2407_v30  ;;  %v2400_v39 = vld [vmem:[%s6184_s11 + $0x6c0] sm:$0xff]  ;;  %v2335_v12 = vld [vmem:[%s6184_s11 + $0x4b8] sm:$0xff]  ;;  %v2334_v30 = vld [vmem:[%s6184_s11 + $0x4b0] sm:$0xff] }
 0xd13   :  { %v2104_v63 = vadd.f32 %v2088_v52, %v5466_v24  ;;  %v2106_v45 = vadd.f32 %v2090_v59, %v5469_v25  ;;  %v2089_v53 = vmul.f32 %v2073_v60, %v1801_v41  ;;  %v2341_v24 = vld [vmem:[%s6184_s11 + $0x4e8] sm:$0xff]  ;;  %v2399_v50 = vld [vmem:[%s6184_s11 + $0x6b8] sm:$0xff]  ;;  %v2398_v29 = vld [vmem:[%s6184_s11 + $0x6b0] sm:$0xff] }
 0xd14   :  { %v2091_v6 = vmul.f32 %v2075_v32, %v1878_v42  ;;  %v2405_v25 = vld [vmem:[%s6184_s11 + $0x6e8] sm:$0xff]  ;;  %v2332_v59 = vld [vmem:[%s6184_s11 + $0x4a0] sm:$0xff]  ;;  %v2331_v32 = vld [vmem:[%s6184_s11 + $0x498] sm:$0xff] }
 0xd15   :  { %v2120_v7 = vmul.f32 0.7978846, %v2104_v63  ;;  %v2122_v8 = vmul.f32 0.7978846, %v2106_v45  ;;  %v2105_v9 = vadd.f32 %v2089_v53, %v1801_v41  ;;  %v2402_v41 = vld [vmem:[%s6184_s11 + $0x6d0] sm:$0xff]  ;;  %v2333_v54 = vld [vmem:[%s6184_s11 + $0x4a8] sm:$0xff] }
 0xd16   :  { %v2107_v46 = vadd.f32 %v2091_v6, %v1878_v42  ;;  %v2337_v42 = vld [vmem:[%s6184_s11 + $0x4c8] sm:$0xff]  ;;  %v2396_v60 = vld [vmem:[%s6184_s11 + $0x6a0] sm:$0xff]  ;;  %v2395_v63 = vld [vmem:[%s6184_s11 + $0x698] sm:$0xff] }
 0xd17   :  { %3133 = vtanh.f32 %v2120_v7  ;;  %v2121_v58 = vmul.f32 0.7978846, %v2105_v9  ;;  %v2397_v52 = vld [vmem:[%s6184_s11 + $0x6a8] sm:$0xff]  ;;  %v2330_v45 = vld [vmem:[%s6184_s11 + $0x490] sm:$0xff]  ;;  %v2392_v9 = vld [vmem:[%s6184_s11 + $0x680] sm:$0xff] }
 0xd18   :  { %3135 = vtanh.f32 %v2122_v8  ;;  %v2123_v44 = vmul.f32 0.7978846, %v2107_v46  ;;  %v2394_v53 = vld [vmem:[%s6184_s11 + $0x690] sm:$0xff]  ;;  %v2329_v6 = vld [vmem:[%s6184_s11 + $0x488] sm:$0xff]  ;;  %v2328_v8 = vld [vmem:[%s6184_s11 + $0x480] sm:$0xff] }
 0xd19   :  { %3137 = vtanh.f32 %v2121_v58  ;;  %v2393_v7 = vld [vmem:[%s6184_s11 + $0x688] sm:$0xff]  ;;  %v2327_v46 = vld [vmem:[%s6184_s11 + $0x478] sm:$0xff] }
 0xd1a   :  { %3139 = vtanh.f32 %v2123_v44  ;;  %v2391_v58 = vld [vmem:[%s6184_s11 + $0x678] sm:$0xff]  ;;  %v2326_v44 = vld [vmem:[%s6184_s11 + $0x470] sm:$0xff] }
 0xd24   :  { %v3134_v61 = vpop.eup %3133 }
 0xd25   :  { %v3136_v62 = vpop.eup %3135  ;;  %v2152_v14 = vadd.f32 1.0, %v3134_v61  ;;  %v2390_v61 = vld [vmem:[%s6184_s11 + $0x670] sm:$0xff] }
 0xd26   :  { %v3138_v3 = vpop.eup %3137  ;;  %v2154_v17 = vadd.f32 1.0, %v3136_v62  ;;  %v2325_v62 = vld [vmem:[%s6184_s11 + $0x468] sm:$0xff] }
 0xd27   :  { %v3140_v15 = vpop.eup %3139  ;;  %v2153_v57 = vadd.f32 1.0, %v3138_v3  ;;  %v2168_v27 = vmul.f32 %v2152_v14, %v2040_v18  ;;  %v2389_v3 = vld [vmem:[%s6184_s11 + $0x668] sm:$0xff]  ;;  %v2324_v14 = vld [vmem:[%s6184_s11 + $0x460] sm:$0xff]  ;;  %v2386_v18 = vld [vmem:[%s6184_s11 + $0x650] sm:$0xff] }
 0xd28   :  { %v2155_v20 = vadd.f32 1.0, %v3140_v15  ;;  %v2170_v34 = vmul.f32 %v2154_v17, %v2042_v22  ;;  %v2388_v15 = vld [vmem:[%s6184_s11 + $0x660] sm:$0xff]  ;;  %v2322_v17 = vld [vmem:[%s6184_s11 + $0x450] sm:$0xff] }
 0xd29   :  { %v2169_v23 = vmul.f32 %v2153_v57, %v2041_v16  ;;  %v2323_v16 = vld [vmem:[%s6184_s11 + $0x458] sm:$0xff]  ;;  %v2320_v22 = vld [vmem:[%s6184_s11 + $0x440] sm:$0xff] }
 0xd2a   :  { %v2171_v26 = vmul.f32 %v2155_v20, %v2043_v19  ;;  %v2387_v57 = vld [vmem:[%s6184_s11 + $0x658] sm:$0xff]  ;;  %v2321_v19 = vld [vmem:[%s6184_s11 + $0x448] sm:$0xff] }
 0xd2b   :  { %2516 = vmatprep.mubr.f32.mxu0 %v2169_v23  ;;  %v2385_v20 = vld [vmem:[%s6184_s11 + $0x648] sm:$0xff]  ;;  %v2384_v23 = vld [vmem:[%s6184_s11 + $0x640] sm:$0xff] }
 0xd2c   :  { %2593 = vmatprep.mubr.f32.mxu1 %v2171_v26  ;;  %2517 = vmatmul.mubr.f32.vlgmr.msra.gmra.mxu0 %v2168_v27  ;;  %v2319_v26 = vld [vmem:[%s6184_s11 + $0x438] sm:$0xff] }
 0xd2d   :  { %2594 = vmatmul.mubr.f32.vlgmr.msra.gmra.mxu1 %v2170_v34  ;;  %2607 = vmatpush1.msra.mxu0 %v2342_v33  ;;  %v2383_v27 = vld [vmem:[%s6184_s11 + $0x638] sm:$0xff]  ;;  %v2318_v33 = vld [vmem:[%s6184_s11 + $0x430] sm:$0xff] }
 0xd2e   :  { %2684 = vmatpush1.msra.mxu1 %v2406_v35  ;;  %2608 = vmatprep.subr.mxu0 %v2341_v24  ;;  %v2382_v34 = vld [vmem:[%s6184_s11 + $0x630] sm:$0xff]  ;;  %v2317_v35 = vld [vmem:[%s6184_s11 + $0x428] sm:$0xff] }
 0xd2f   :  { %2685 = vmatprep.subr.mxu1 %v2405_v25  ;;  %2609 = vmatpush1.msra.mxu0 %v2340_v2  ;;  %v2381_v24 = vld [vmem:[%s6184_s11 + $0x628] sm:$0xff]  ;;  %v2316_v25 = vld [vmem:[%s6184_s11 + $0x420] sm:$0xff] }
 0xd30   :  { %2686 = vmatpush1.msra.mxu1 %v2404_v4  ;;  %2610 = vmatprep.subr.mxu0 %v2339_v37  ;;  %v2380_v2 = vld [vmem:[%s6184_s11 + $0x620] sm:$0xff]  ;;  %v2315_v4 = vld [vmem:[%s6184_s11 + $0x418] sm:$0xff] }
 0xd31   :  { %2687 = vmatprep.subr.mxu1 %v2403_v38  ;;  %2611 = vmatpush1.msra.mxu0 %v2338_v40  ;;  %v2379_v37 = vld [vmem:[%s6184_s11 + $0x618] sm:$0xff]  ;;  %v2314_v38 = vld [vmem:[%s6184_s11 + $0x410] sm:$0xff] }
 0xd32   :  { %2688 = vmatpush1.msra.mxu1 %v2402_v41  ;;  %2612 = vmatprep.subr.mxu0 %v2337_v42  ;;  %v2378_v40 = vld [vmem:[%s6184_s11 + $0x610] sm:$0xff]  ;;  %v2313_v41 = vld [vmem:[%s6184_s11 + $0x408] sm:$0xff] }
 0xd33   :  { %2689 = vmatprep.subr.mxu1 %v2401_v47  ;;  %2613 = vmatpush1.msra.mxu0 %v2336_v48  ;;  %v2377_v42 = vld [vmem:[%s6184_s11 + $0x608] sm:$0xff]  ;;  %v2312_v47 = vld [vmem:[%s6184_s11 + $0x400] sm:$0xff] }
 0xd34   :  { %2690 = vmatpush1.msra.mxu1 %v2400_v39  ;;  %2614 = vmatprep.subr.mxu0 %v2335_v12  ;;  %v2376_v48 = vld [vmem:[%s6184_s11 + $0x600] sm:$0xff]  ;;  %v2375_v39 = vld [vmem:[%s6184_s11 + $0x5f8] sm:$0xff] }
 0xd35   :  { %2691 = vmatprep.subr.mxu1 %v2399_v50  ;;  %2615 = vmatpush1.msra.mxu0 %v2334_v30  ;;  %v2439_v12 = vld [vmem:[%s6184_s11 + $0x7f8] sm:$0xff]  ;;  %v2374_v50 = vld [vmem:[%s6184_s11 + $0x5f0] sm:$0xff] }
 0xd36   :  { %2692 = vmatpush1.msra.mxu1 %v2398_v29  ;;  %2616 = vmatprep.subr.mxu0 %v2333_v54  ;;  %v2438_v30 = vld [vmem:[%s6184_s11 + $0x7f0] sm:$0xff]  ;;  %v2373_v29 = vld [vmem:[%s6184_s11 + $0x5e8] sm:$0xff] }
 0xd37   :  { %2693 = vmatprep.subr.mxu1 %v2397_v52  ;;  %2617 = vmatpush1.msra.mxu0 %v2332_v59  ;;  %v2437_v54 = vld [vmem:[%s6184_s11 + $0x7e8] sm:$0xff]  ;;  %v2372_v52 = vld [vmem:[%s6184_s11 + $0x5e0] sm:$0xff] }
 0xd38   :  { %2694 = vmatpush1.msra.mxu1 %v2396_v60  ;;  %2618 = vmatprep.subr.mxu0 %v2331_v32  ;;  %v2436_v59 = vld [vmem:[%s6184_s11 + $0x7e0] sm:$0xff]  ;;  %v2371_v60 = vld [vmem:[%s6184_s11 + $0x5d8] sm:$0xff] }
 0xd39   :  { %2695 = vmatprep.subr.mxu1 %v2395_v63  ;;  %2619 = vmatpush1.msra.mxu0 %v2330_v45  ;;  %v2435_v32 = vld [vmem:[%s6184_s11 + $0x7d8] sm:$0xff]  ;;  %v2370_v63 = vld [vmem:[%s6184_s11 + $0x5d0] sm:$0xff] }
 0xd3a   :  { %2696 = vmatpush1.msra.mxu1 %v2394_v53  ;;  %2620 = vmatprep.subr.mxu0 %v2329_v6  ;;  %v2434_v45 = vld [vmem:[%s6184_s11 + $0x7d0] sm:$0xff]  ;;  %v2369_v53 = vld [vmem:[%s6184_s11 + $0x5c8] sm:$0xff] }
 0xd3b   :  { %2697 = vmatprep.subr.mxu1 %v2393_v7  ;;  %2621 = vmatpush1.msra.mxu0 %v2328_v8  ;;  %v2433_v6 = vld [vmem:[%s6184_s11 + $0x7c8] sm:$0xff]  ;;  %v2368_v7 = vld [vmem:[%s6184_s11 + $0x5c0] sm:$0xff] }
 0xd3c   :  { %2698 = vmatpush1.msra.mxu1 %v2392_v9  ;;  %2622 = vmatprep.subr.mxu0 %v2327_v46  ;;  %v2432_v8 = vld [vmem:[%s6184_s11 + $0x7c0] sm:$0xff]  ;;  %v2367_v9 = vld [vmem:[%s6184_s11 + $0x5b8] sm:$0xff] }
 0xd3d   :  { %2699 = vmatprep.subr.mxu1 %v2391_v58  ;;  %2623 = vmatpush1.msra.mxu0 %v2326_v44  ;;  %v2431_v46 = vld [vmem:[%s6184_s11 + $0x7b8] sm:$0xff]  ;;  %v2366_v58 = vld [vmem:[%s6184_s11 + $0x5b0] sm:$0xff] }
 0xd3e   :  { %2700 = vmatpush1.msra.mxu1 %v2390_v61  ;;  %2624 = vmatprep.subr.mxu0 %v2325_v62  ;;  %v2430_v44 = vld [vmem:[%s6184_s11 + $0x7b0] sm:$0xff]  ;;  %v2365_v61 = vld [vmem:[%s6184_s11 + $0x5a8] sm:$0xff] }
 0xd3f   :  { %2701 = vmatprep.subr.mxu1 %v2389_v3  ;;  %2625 = vmatpush1.msra.mxu0 %v2324_v14  ;;  %v2429_v62 = vld [vmem:[%s6184_s11 + $0x7a8] sm:$0xff]  ;;  %v2364_v3 = vld [vmem:[%s6184_s11 + $0x5a0] sm:$0xff] }
 0xd40   :  { %2702 = vmatpush1.msra.mxu1 %v2388_v15  ;;  %2626 = vmatprep.subr.mxu0 %v2323_v16  ;;  %v2428_v14 = vld [vmem:[%s6184_s11 + $0x7a0] sm:$0xff]  ;;  %v2363_v15 = vld [vmem:[%s6184_s11 + $0x598] sm:$0xff] }
 0xd41   :  { %2703 = vmatprep.subr.mxu1 %v2387_v57  ;;  %2627 = vmatpush1.msra.mxu0 %v2322_v17  ;;  %v2427_v16 = vld [vmem:[%s6184_s11 + $0x798] sm:$0xff]  ;;  %v2362_v57 = vld [vmem:[%s6184_s11 + $0x590] sm:$0xff] }
 0xd42   :  { %2704 = vmatpush1.msra.mxu1 %v2386_v18  ;;  %2628 = vmatprep.subr.mxu0 %v2321_v19  ;;  %v2426_v17 = vld [vmem:[%s6184_s11 + $0x790] sm:$0xff]  ;;  %v2361_v18 = vld [vmem:[%s6184_s11 + $0x588] sm:$0xff] }
 0xd43   :  { %2705 = vmatprep.subr.mxu1 %v2385_v20  ;;  %2629 = vmatpush1.msra.mxu0 %v2320_v22  ;;  %v2425_v19 = vld [vmem:[%s6184_s11 + $0x788] sm:$0xff]  ;;  %v2360_v20 = vld [vmem:[%s6184_s11 + $0x580] sm:$0xff] }
 0xd44   :  { %2706 = vmatpush1.msra.mxu1 %v2384_v23  ;;  %2630 = vmatprep.subr.mxu0 %v2319_v26  ;;  %v2424_v22 = vld [vmem:[%s6184_s11 + $0x780] sm:$0xff]  ;;  %v2359_v23 = vld [vmem:[%s6184_s11 + $0x578] sm:$0xff] }
 0xd45   :  { %2707 = vmatprep.subr.mxu1 %v2383_v27  ;;  %2631 = vmatpush1.msra.mxu0 %v2318_v33  ;;  %v2423_v26 = vld [vmem:[%s6184_s11 + $0x778] sm:$0xff]  ;;  %v2358_v27 = vld [vmem:[%s6184_s11 + $0x570] sm:$0xff] }
 0xd46   :  { %2708 = vmatpush1.msra.mxu1 %v2382_v34  ;;  %2632 = vmatprep.subr.mxu0 %v2317_v35  ;;  %v2422_v33 = vld [vmem:[%s6184_s11 + $0x770] sm:$0xff]  ;;  %v2357_v34 = vld [vmem:[%s6184_s11 + $0x568] sm:$0xff] }
 0xd47   :  { %2709 = vmatprep.subr.mxu1 %v2381_v24  ;;  %2633 = vmatpush1.msra.mxu0 %v2316_v25  ;;  %v2421_v35 = vld [vmem:[%s6184_s11 + $0x768] sm:$0xff]  ;;  %v2356_v24 = vld [vmem:[%s6184_s11 + $0x560] sm:$0xff] }
 0xd48   :  { %2710 = vmatpush1.msra.mxu1 %v2380_v2  ;;  %2634 = vmatprep.subr.mxu0 %v2315_v4  ;;  %v2420_v25 = vld [vmem:[%s6184_s11 + $0x760] sm:$0xff]  ;;  %v2355_v2 = vld [vmem:[%s6184_s11 + $0x558] sm:$0xff] }
 0xd49   :  { %2711 = vmatprep.subr.mxu1 %v2379_v37  ;;  %2635 = vmatpush1.msra.mxu0 %v2314_v38  ;;  %v2419_v4 = vld [vmem:[%s6184_s11 + $0x758] sm:$0xff]  ;;  %v2354_v37 = vld [vmem:[%s6184_s11 + $0x550] sm:$0xff] }
 0xd4a   :  { %2712 = vmatpush1.msra.mxu1 %v2378_v40  ;;  %2636 = vmatprep.subr.mxu0 %v2313_v41  ;;  %v2418_v38 = vld [vmem:[%s6184_s11 + $0x750] sm:$0xff]  ;;  %v2353_v40 = vld [vmem:[%s6184_s11 + $0x548] sm:$0xff] }
 0xd4b   :  { %2713 = vmatprep.subr.mxu1 %v2377_v42  ;;  %2637 = vmatpush1.msra.mxu0 %v2312_v47  ;;  %v2417_v41 = vld [vmem:[%s6184_s11 + $0x748] sm:$0xff]  ;;  %v2352_v42 = vld [vmem:[%s6184_s11 + $0x540] sm:$0xff] }
 0xd4c   :  { %2714 = vmatpush1.msra.mxu1 %v2376_v48  ;;  %2638 = vmatprep.subr.mxu0 %v2375_v39  ;;  %v2416_v47 = vld [vmem:[%s6184_s11 + $0x740] sm:$0xff]  ;;  %v2351_v48 = vld [vmem:[%s6184_s11 + $0x538] sm:$0xff] }
 0xd4d   :  { %2715 = vmatprep.subr.mxu1 %v2439_v12  ;;  %2639 = vmatpush2.msra.mxu0 %v2374_v50  ;;  %v2415_v39 = vld [vmem:[%s6184_s11 + $0x738] sm:$0xff]  ;;  %v2350_v12 = vld [vmem:[%s6184_s11 + $0x530] sm:$0xff] }
 0xd4e   :  { %2716 = vmatpush2.msra.mxu1 %v2438_v30  ;;  %2640 = vmatprep.subr.mxu0 %v2373_v29  ;;  %v2414_v50 = vld [vmem:[%s6184_s11 + $0x730] sm:$0xff]  ;;  %v2349_v30 = vld [vmem:[%s6184_s11 + $0x528] sm:$0xff] }
 0xd4f   :  { %2717 = vmatprep.subr.mxu1 %v2437_v54  ;;  %2641 = vmatpush2.msra.mxu0 %v2372_v52  ;;  %v2413_v29 = vld [vmem:[%s6184_s11 + $0x728] sm:$0xff]  ;;  %v2348_v54 = vld [vmem:[%s6184_s11 + $0x520] sm:$0xff] }
 0xd50   :  { %2718 = vmatpush2.msra.mxu1 %v2436_v59  ;;  %2642 = vmatprep.subr.mxu0 %v2371_v60  ;;  %v2412_v52 = vld [vmem:[%s6184_s11 + $0x720] sm:$0xff]  ;;  %v2347_v59 = vld [vmem:[%s6184_s11 + $0x518] sm:$0xff] }
 0xd51   :  { %2719 = vmatprep.subr.mxu1 %v2435_v32  ;;  %2643 = vmatpush2.msra.mxu0 %v2370_v63  ;;  %v2411_v60 = vld [vmem:[%s6184_s11 + $0x718] sm:$0xff]  ;;  %v2346_v32 = vld [vmem:[%s6184_s11 + $0x510] sm:$0xff] }
 0xd52   :  { %2720 = vmatpush2.msra.mxu1 %v2434_v45  ;;  %2644 = vmatprep.subr.mxu0 %v2369_v53  ;;  %v2410_v63 = vld [vmem:[%s6184_s11 + $0x710] sm:$0xff]  ;;  %v2345_v45 = vld [vmem:[%s6184_s11 + $0x508] sm:$0xff] }
 0xd53   :  { %2721 = vmatprep.subr.mxu1 %v2433_v6  ;;  %2645 = vmatpush2.msra.mxu0 %v2368_v7  ;;  %v2409_v53 = vld [vmem:[%s6184_s11 + $0x708] sm:$0xff]  ;;  %v2344_v6 = vld [vmem:[%s6184_s11 + $0x500] sm:$0xff] }
 0xd54   :  { %2722 = vmatpush2.msra.mxu1 %v2432_v8  ;;  %2646 = vmatprep.subr.mxu0 %v2367_v9  ;;  %v2408_v7 = vld [vmem:[%s6184_s11 + $0x700] sm:$0xff]  ;;  %v2791_v8 = vld [vmem:[%s6186_s13 + $0xf8] sm:$0xff]  ;;  %v1718_v9 = vsub.s32 6, %v3718_v0 }
 0xd55   :  { %2723 = vmatprep.subr.mxu1 %v2431_v46  ;;  %2647 = vmatpush2.msra.mxu0 %v2366_v58  ;;  %v1722_v46 = vsub.s32 7, %v3718_v0 }
 0xd56   :  { %2724 = vmatpush2.msra.mxu1 %v2430_v44  ;;  %2648 = vmatprep.subr.mxu0 %v2365_v61 }
 0xd57   :  { %2725 = vmatprep.subr.mxu1 %v2429_v62  ;;  %2649 = vmatpush2.msra.mxu0 %v2364_v3 }
 0xd58   :  { %2726 = vmatpush2.msra.mxu1 %v2428_v14  ;;  %2650 = vmatprep.subr.mxu0 %v2363_v15  ;;  %v1711_v15 = vrot.slane %v5403_v43, %v349_v11 }
 0xd59   :  { %2727 = vmatprep.subr.mxu1 %v2427_v16  ;;  %2651 = vmatpush2.msra.mxu0 %v2362_v57  ;;  %v1719_v16 = vrot.slane %v5403_v43, %v1718_v9 }
 0xd5a   :  { %2728 = vmatpush2.msra.mxu1 %v2426_v17  ;;  %2652 = vmatprep.subr.mxu0 %v2361_v18 }
 0xd5b   :  { %2729 = vmatprep.subr.mxu1 %v2425_v19  ;;  %2653 = vmatpush2.msra.mxu0 %v2360_v20 }
 0xd5c   :  { %2730 = vmatpush2.msra.mxu1 %v2424_v22  ;;  %2654 = vmatprep.subr.mxu0 %v2359_v23 }
 0xd5d   :  { %2731 = vmatprep.subr.mxu1 %v2423_v26  ;;  %2655 = vmatpush2.msra.mxu0 %v2358_v27 }
 0xd5e   :  { %2732 = vmatpush2.msra.mxu1 %v2422_v33  ;;  %2656 = vmatprep.subr.mxu0 %v2357_v34 }
 0xd5f   :  { %2733 = vmatprep.subr.mxu1 %v2421_v35  ;;  %2657 = vmatpush2.msra.mxu0 %v2356_v24 }
 0xd60   :  { %2734 = vmatpush2.msra.mxu1 %v2420_v25  ;;  %2658 = vmatprep.subr.mxu0 %v2355_v2 }
 0xd61   :  { %2735 = vmatprep.subr.mxu1 %v2419_v4  ;;  %2659 = vmatpush2.msra.mxu0 %v2354_v37 }
 0xd62   :  { %2736 = vmatpush2.msra.mxu1 %v2418_v38  ;;  %2660 = vmatprep.subr.mxu0 %v2353_v40 }
 0xd63   :  { %2737 = vmatprep.subr.mxu1 %v2417_v41  ;;  %2661 = vmatpush2.msra.mxu0 %v2352_v42 }
 0xd64   :  { %2738 = vmatpush2.msra.mxu1 %v2416_v47  ;;  %2662 = vmatprep.subr.mxu0 %v2351_v48 }
 0xd65   :  { %2739 = vmatprep.subr.mxu1 %v2415_v39  ;;  %2663 = vmatpush2.msra.mxu0 %v2350_v12 }
 0xd66   :  { %2740 = vmatpush2.msra.mxu1 %v2414_v50  ;;  %2664 = vmatprep.subr.mxu0 %v2349_v30 }
 0xd67   :  { %2741 = vmatprep.subr.mxu1 %v2413_v29  ;;  %2665 = vmatpush2.msra.mxu0 %v2348_v54 }
 0xd68   :  { %2742 = vmatpush2.msra.mxu1 %v2412_v52  ;;  %2666 = vmatprep.subr.mxu0 %v2347_v59 }
 0xd69   :  { %2743 = vmatprep.subr.mxu1 %v2411_v60  ;;  %2667 = vmatpush2.msra.mxu0 %v2346_v32 }
 0xd6a   :  { %2744 = vmatpush2.msra.mxu1 %v2410_v63  ;;  %2668 = vmatprep.subr.mxu0 %v2345_v45 }
 0xd6b   :  { %2745 = vmatprep.subr.mxu1 %v2409_v53  ;;  %2669 = vmatpush2.msra.mxu0 %v2344_v6 }
 0xd6c   :  { %2746 = vmatpush2.msra.mxu1 %v2408_v7  ;;  %3028 = vmatprep.subr.mxu0 %v2791_v8 }
 0xd8c   :  { %v1804_v58 = vpop.f32.mrf.mxu0  ;;  %v1881_v44 = vpop.f32.mrf.mxu1 }
 0xd8d   :  { %v5897_v61 = vadd.f32 %v1804_v58, %v5425_v5  ;;  %v5900_v62 = vadd.f32 %v1881_v44, %v5430_v13  ;;  %v1715_v5 = vrot.slane %v5403_v43, %v353_v28  ;;  %v1723_v13 = vrot.slane %v5403_v43, %v1722_v46 }
 0xd8e   :  { %v1806_v3 = vpop.f32.mrf.mxu0  ;;  %v1883_v14 = vpop.f32.mrf.mxu1 }
 0xd8f   :  { %v5907_v57 = vadd.f32 %v1806_v3, %v5452_v21  ;;  %v5910_v17 = vadd.f32 %v1883_v14, %v5457_v10  ;;  %v2064_v22 = vmul.f32 0.044715, %v5897_v61  ;;  %v2066_v21 = vmul.f32 0.044715, %v5900_v62 }
 0xd90   :  { %v1952_v18 = vpop.f32.mrf.mxu0  ;;  %v2029_v19 = vpop.f32.mrf.mxu1 }
 0xd91   :  { %v2065_v20 = vmul.f32 0.044715, %v5907_v57  ;;  %v2067_v11 = vmul.f32 0.044715, %v5910_v17  ;;  %v5920_v23 = vadd.f32 %v1952_v18, %v1711_v15  ;;  %v5922_v10 = vadd.f32 %v2029_v19, %v1719_v16 }
 0xd92   :  { %v1954_v26 = vpop.f32.mrf.mxu0  ;;  %v2031_v0 = vpop.f32.mrf.mxu1  ;;  %v2080_v39 = vmul.f32 %v2064_v22, %v5897_v61  ;;  %v2082_v12 = vmul.f32 %v2066_v21, %v5900_v62 }
 0xd93   :  { %v2081_v28 = vmul.f32 %v2065_v20, %v5907_v57  ;;  %v2083_v43 = vmul.f32 %v2067_v11, %v5910_v17  ;;  %v5926_v27 = vadd.f32 %v1954_v26, %v1715_v5  ;;  %v5928_v33 = vadd.f32 %v2031_v0, %v1723_v13 }
 0xd94   :  { %v2060_v34 = vmul.f32 0.044715, %v5920_v23  ;;  %v2062_v35 = vmul.f32 0.044715, %v5922_v10  ;;  %v1958_v24 = vpop.f32.mrf.mxu0  ;;  %v2035_v25 = vpop.f32.mrf.mxu1  ;;  %v2096_v58 = vmul.f32 %v2080_v39, %v5897_v61  ;;  %v2098_v44 = vmul.f32 %v2082_v12, %v5900_v62 }
 0xd95   :  { %v2061_v2 = vmul.f32 0.044715, %v5926_v27  ;;  %v2063_v4 = vmul.f32 0.044715, %v5928_v33  ;;  %v5934_v37 = vadd.f32 %v1958_v24, %v1711_v15  ;;  %v2097_v47 = vmul.f32 %v2081_v28, %v5907_v57 }
 0xd96   :  { %v2076_v38 = vmul.f32 %v2060_v34, %v5920_v23  ;;  %v2078_v40 = vmul.f32 %v2062_v35, %v5922_v10  ;;  %v1960_v41 = vpop.f32.mrf.mxu0  ;;  %v2037_v42 = vpop.f32.mrf.mxu1  ;;  %v2099_v48 = vmul.f32 %v2083_v43, %v5910_v17  ;;  %v5943_v30 = vadd.f32 %v2035_v25, %v1719_v16 }
 0xd97   :  { %v2077_v50 = vmul.f32 %v2061_v2, %v5926_v27  ;;  %v5947_v52 = vadd.f32 %v1960_v41, %v1715_v5  ;;  %v5949_v59 = vadd.f32 %v2037_v42, %v1723_v13  ;;  %v2079_v60 = vmul.f32 %v2063_v4, %v5928_v33 }
 0xd98   :  { %v2092_v29 = vmul.f32 %v2076_v38, %v5920_v23  ;;  %v2094_v54 = vmul.f32 %v2078_v40, %v5922_v10  ;;  %v2068_v32 = vmul.f32 0.044715, %v5934_v37  ;;  %v2113_v63 = vadd.f32 %v2097_v47, %v5907_v57 }
 0xd99   :  { %v2115_v45 = vadd.f32 %v2099_v48, %v5910_v17  ;;  %v2069_v7 = vmul.f32 0.044715, %v5947_v52  ;;  %v2071_v8 = vmul.f32 0.044715, %v5949_v59  ;;  %v2070_v9 = vmul.f32 0.044715, %v5943_v30 }
 0xd9a   :  { %v2108_v53 = vadd.f32 %v2092_v29, %v5920_v23  ;;  %v2110_v6 = vadd.f32 %v2094_v54, %v5922_v10  ;;  %v2129_v46 = vmul.f32 0.7978846, %v2113_v63  ;;  %v2112_v13 = vadd.f32 %v2096_v58, %v5897_v61 }
 0xd9b   :  { %v2085_v15 = vmul.f32 %v2069_v7, %v5947_v52  ;;  %v2131_v16 = vmul.f32 0.7978846, %v2115_v45  ;;  %v2087_v5 = vmul.f32 %v2071_v8, %v5949_v59  ;;  %v2114_v18 = vadd.f32 %v2098_v44, %v5900_v62 }
 0xd9c   :  { %v2124_v3 = vmul.f32 0.7978846, %v2108_v53  ;;  %v2126_v14 = vmul.f32 0.7978846, %v2110_v6  ;;  %3141 = vtanh.f32 %v2129_v46  ;;  %v2084_v19 = vmul.f32 %v2068_v32, %v5934_v37 }
 0xd9d   :  { %v2093_v20 = vmul.f32 %v2077_v50, %v5926_v27  ;;  %v2095_v11 = vmul.f32 %v2079_v60, %v5928_v33  ;;  %v2086_v22 = vmul.f32 %v2070_v9, %v5943_v30  ;;  %v2128_v21 = vmul.f32 0.7978846, %v2112_v13 }
 0xd9e   :  { %3143 = vtanh.f32 %v2124_v3  ;;  %v2130_v26 = vmul.f32 0.7978846, %v2114_v18  ;;  %v2101_v43 = vmul.f32 %v2085_v15, %v5947_v52  ;;  %v2103_v34 = vmul.f32 %v2087_v5, %v5949_v59 }
 0xd9f   :  { %3145 = vtanh.f32 %v2126_v14  ;;  %v2109_v0 = vadd.f32 %v2093_v20, %v5926_v27  ;;  %v2111_v28 = vadd.f32 %v2095_v11, %v5928_v33  ;;  %v2100_v4 = vmul.f32 %v2084_v19, %v5934_v37 }
 0xda0   :  { %3147 = vtanh.f32 %v2131_v16  ;;  %v2117_v25 = vadd.f32 %v2101_v43, %v5947_v52  ;;  %v2119_v2 = vadd.f32 %v2103_v34, %v5949_v59  ;;  %v2102_v38 = vmul.f32 %v2086_v22, %v5943_v30 }
 0xda1   :  { %3149 = vtanh.f32 %v2128_v21  ;;  %v2125_v35 = vmul.f32 0.7978846, %v2109_v0  ;;  %v2127_v24 = vmul.f32 0.7978846, %v2111_v28  ;;  %v2116_v42 = vadd.f32 %v2100_v4, %v5934_v37 }
 0xda2   :  { %3151 = vtanh.f32 %v2130_v26  ;;  %v2133_v40 = vmul.f32 0.7978846, %v2117_v25  ;;  %v2135_v41 = vmul.f32 0.7978846, %v2119_v2  ;;  %v2118_v47 = vadd.f32 %v2102_v38, %v5943_v30 }
 0xda3   :  { %3153 = vtanh.f32 %v2125_v35  ;;  %v2132_v48 = vmul.f32 0.7978846, %v2116_v42  ;;  %v2049_v29 = vmul.f32 0.5, %v5907_v57  ;;  %v2051_v53 = vmul.f32 0.5, %v5910_v17  ;;  %v2773_v42 = vld [vmem:[%s6186_s13 + $0x68] sm:$0xff] }
 0xda4   :  { %3155 = vtanh.f32 %v2127_v24  ;;  %v2134_v39 = vmul.f32 0.7978846, %v2118_v47  ;;  %v2048_v8 = vmul.f32 0.5, %v5897_v61  ;;  %v2050_v58 = vmul.f32 0.5, %v5900_v62  ;;  %v2772_v47 = vld [vmem:[%s6186_s13 + $0x60] sm:$0xff] }
 0xda5   :  { %3157 = vtanh.f32 %v2133_v40  ;;  %v2045_v5 = vmul.f32 0.5, %v5926_v27  ;;  %v2044_v19 = vmul.f32 0.5, %v5920_v23  ;;  %v2047_v61 = vmul.f32 0.5, %v5928_v33  ;;  %v2775_v33 = vld [vmem:[%s6186_s13 + $0x78] sm:$0xff]  ;;  %v2774_v40 = vld [vmem:[%s6186_s13 + $0x70] sm:$0xff] }
 0xda6   :  { %3159 = vtanh.f32 %v2135_v41  ;;  %v2046_v62 = vmul.f32 0.5, %v5922_v10  ;;  %v2053_v21 = vmul.f32 0.5, %v5947_v52  ;;  %v2055_v27 = vmul.f32 0.5, %v5949_v59  ;;  %v2790_v59 = vld [vmem:[%s6186_s13 + $0xf0] sm:$0xff] }
 0xda7   :  { %3161 = vtanh.f32 %v2132_v48  ;;  %v2052_v52 = vmul.f32 0.5, %v5934_v37  ;;  %v2054_v2 = vmul.f32 0.5, %v5943_v30  ;;  %v2789_v37 = vld [vmem:[%s6186_s13 + $0xe8] sm:$0xff]  ;;  %v2788_v30 = vld [vmem:[%s6186_s13 + $0xe0] sm:$0xff]  ;;  %v2787_v48 = vld [vmem:[%s6186_s13 + $0xd8] sm:$0xff] }
 0xda8   :  { %3163 = vtanh.f32 %v2134_v39  ;;  %v2771_v39 = vld [vmem:[%s6186_s13 + $0x58] sm:$0xff] }
 0xda9   :  { %v3142_v12 = vpop.eup %3141 }
 0xdaa   :  { %v2161_v54 = vadd.f32 1.0, %v3142_v12  ;;  %v2786_v12 = vld [vmem:[%s6186_s13 + $0xd0] sm:$0xff] }
 0xdab   :  { %v3144_v50 = vpop.eup %3143 }
 0xdac   :  { %v3146_v60 = vpop.eup %3145  ;;  %v2177_v63 = vmul.f32 %v2161_v54, %v2049_v29  ;;  %v2156_v57 = vadd.f32 1.0, %v3144_v50  ;;  %v2770_v50 = vld [vmem:[%s6186_s13 + $0x50] sm:$0xff]  ;;  %v2785_v29 = vld [vmem:[%s6186_s13 + $0xc8] sm:$0xff] }
 0xdad   :  { %v3148_v32 = vpop.eup %3147  ;;  %v2158_v17 = vadd.f32 1.0, %v3146_v60  ;;  %v2769_v54 = vld [vmem:[%s6186_s13 + $0x48] sm:$0xff]  ;;  %v2784_v60 = vld [vmem:[%s6186_s13 + $0xc0] sm:$0xff] }
 0xdae   :  { %v3150_v45 = vpop.eup %3149  ;;  %v2163_v6 = vadd.f32 1.0, %v3148_v32  ;;  %2522 = vmatprep.mubr.f32.mxu0 %v2177_v63  ;;  %v2172_v28 = vmul.f32 %v2156_v57, %v2044_v19  ;;  %v2768_v32 = vld [vmem:[%s6186_s13 + $0x40] sm:$0xff]  ;;  %v2783_v63 = vld [vmem:[%s6186_s13 + $0xb8] sm:$0xff]  ;;  %v2777_v57 = vld [vmem:[%s6186_s13 + $0x88] sm:$0xff] }
 0xdaf   :  { %v3152_v7 = vpop.eup %3151  ;;  %v2160_v9 = vadd.f32 1.0, %v3150_v45  ;;  %v2174_v23 = vmul.f32 %v2158_v17, %v2046_v62  ;;  %v2767_v45 = vld [vmem:[%s6186_s13 + $0x38] sm:$0xff]  ;;  %v2440_v17 = vld [vmem:[%s6185_s12] sm:$0x3] }
 0xdb0   :  { %v2179_v46 = vmul.f32 %v2163_v6, %v2051_v53  ;;  %v2162_v44 = vadd.f32 1.0, %v3152_v7  ;;  %v3154_v3 = vpop.eup %3153  ;;  %v2782_v53 = vld [vmem:[%s6186_s13 + $0xb0] sm:$0xff]  ;;  %v2781_v7 = vld [vmem:[%s6186_s13 + $0xa8] sm:$0xff] }
 0xdb1   :  { %v2176_v14 = vmul.f32 %v2160_v9, %v2048_v8  ;;  %v3156_v15 = vpop.eup %3155  ;;  %v2157_v13 = vadd.f32 1.0, %v3154_v3  ;;  %v2766_v6 = vld [vmem:[%s6186_s13 + $0x30] sm:$0xff]  ;;  %v2765_v8 = vld [vmem:[%s6186_s13 + $0x28] sm:$0xff]  ;;  %v2780_v9 = vld [vmem:[%s6186_s13 + $0xa0] sm:$0xff] }
 0xdb2   :  { %2599 = vmatprep.mubr.f32.mxu1 %v2179_v46  ;;  %v2178_v16 = vmul.f32 %v2162_v44, %v2050_v58  ;;  %v3158_v18 = vpop.eup %3157  ;;  %v2159_v20 = vadd.f32 1.0, %v3156_v15  ;;  %v2764_v46 = vld [vmem:[%s6186_s13 + $0x20] sm:$0xff]  ;;  %v2779_v58 = vld [vmem:[%s6186_s13 + $0x98] sm:$0xff]  ;;  %v2778_v3 = vld [vmem:[%s6186_s13 + $0x90] sm:$0xff] }
 0xdb3   :  { %2523 = vmatmul.mubr.f32.gmra.mxu0 %v2176_v14  ;;  %v3160_v11 = vpop.eup %3159  ;;  %v2173_v22 = vmul.f32 %v2157_v13, %v2045_v5  ;;  %v2165_v26 = vadd.f32 1.0, %v3158_v18  ;;  %v2763_v44 = vld [vmem:[%s6186_s13 + $0x18] sm:$0xff]  ;;  %v2762_v14 = vld [vmem:[%s6186_s13 + $0x10] sm:$0xff]  ;;  %v2761_v15 = vld [vmem:[%s6186_s13 + $0x8] sm:$0xff] }
 0xdb4   :  { %2600 = vmatmul.mubr.f32.gmra.mxu1 %v2178_v16  ;;  %v2175_v0 = vmul.f32 %v2159_v20, %v2047_v61  ;;  %v2167_v43 = vadd.f32 1.0, %v3160_v11  ;;  %v3162_v34 = vpop.eup %3161  ;;  %v2776_v16 = vld [vmem:[%s6186_s13 + $0x80] sm:$0xff]  ;;  %v2891_v13 = vld [vmem:[%s6188_s15 + $0x78] sm:$0xff]  ;;  %v2445_v61 = vrot.slane %v2440_v17, %v3724_v36  ;;  %v2449_v20 = vrot.slane %v2440_v17, %v3721_v1 }
 0xdb5   :  { %2670 = vmatprep.mubr.f32.mxu0 %v2173_v22  ;;  %v2181_v35 = vmul.f32 %v2165_v26, %v2053_v21  ;;  %v3164_v24 = vpop.eup %3163  ;;  %v2164_v25 = vadd.f32 1.0, %v3162_v34  ;;  %v2760_v5 = vld [vmem:[%s6186_s13] sm:$0xff] }
 0xdb6   :  { %2747 = vmatprep.mubr.f32.mxu1 %v2175_v0  ;;  %v2183_v10 = vmul.f32 %v2167_v43, %v2055_v27  ;;  %v2166_v4 = vadd.f32 1.0, %v3164_v24 }
 0xdb7   :  { %2671 = vmatmul.mubr.f32.vlgmr.msra.gmra.mxu0 %v2172_v28  ;;  %v2180_v38 = vmul.f32 %v2164_v25, %v2052_v52 }
 0xdb8   :  { %2748 = vmatmul.mubr.f32.vlgmr.msra.gmra.mxu1 %v2174_v23  ;;  %2676 = vmatprep.mubr.f32.mxu0 %v2181_v35  ;;  %v2182_v41 = vmul.f32 %v2166_v4, %v2054_v2 }
 0xdb9   :  { %2753 = vmatprep.mubr.f32.mxu1 %v2183_v10  ;;  %3029 = vmatpush3.msra.mxu0 %v2775_v33 }
 0xdba   :  { %3030 = vmatprep.subr.mxu0 %v2790_v59 }
 0xdbb   :  { %2677 = vmatmul.mubr.f32.gmra.mxu0 %v2180_v38 }
 0xdbc   :  { %2754 = vmatmul.mubr.f32.gmra.mxu1 %v2182_v41  ;;  %3031 = vmatpush3.msra.mxu0 %v2774_v40 }
 0xdbd   :  { %3032 = vmatprep.subr.mxu0 %v2789_v37 }
 0xdbe   :  { %3033 = vmatpush3.msra.mxu0 %v2773_v42 }
 0xdbf   :  { %3034 = vmatprep.subr.mxu0 %v2788_v30 }
 0xdc0   :  { %3035 = vmatpush3.msra.mxu0 %v2772_v47  ;;  %v2890_v47 = vld [vmem:[%s6188_s15 + $0x70] sm:$0xff] }
 0xdc1   :  { %3036 = vmatprep.subr.mxu0 %v2787_v48 }
 0xdc2   :  { %3037 = vmatpush3.msra.mxu0 %v2771_v39  ;;  %v2889_v39 = vld [vmem:[%s6188_s15 + $0x68] sm:$0xff] }
 0xdc3   :  { %3038 = vmatprep.subr.mxu0 %v2786_v12 }
 0xdc4   :  { %3039 = vmatpush3.msra.mxu0 %v2770_v50  ;;  %v2888_v50 = vld [vmem:[%s6188_s15 + $0x60] sm:$0xff] }
 0xdc5   :  { %3040 = vmatprep.subr.mxu0 %v2785_v29 }
 0xdc6   :  { %3041 = vmatpush3.msra.mxu0 %v2769_v54  ;;  %v2887_v54 = vld [vmem:[%s6188_s15 + $0x58] sm:$0xff] }
 0xdc7   :  { %3042 = vmatprep.subr.mxu0 %v2784_v60 }
 0xdc8   :  { %3043 = vmatpush3.msra.mxu0 %v2768_v32  ;;  %v2886_v32 = vld [vmem:[%s6188_s15 + $0x50] sm:$0xff] }
 0xdc9   :  { %3044 = vmatprep.subr.mxu0 %v2783_v63  ;;  %v2885_v63 = vld [vmem:[%s6188_s15 + $0x48] sm:$0xff] }
 0xdca   :  { %3045 = vmatpush3.msra.mxu0 %v2767_v45  ;;  %v2884_v45 = vld [vmem:[%s6188_s15 + $0x40] sm:$0xff] }
 0xdcb   :  { %3046 = vmatprep.subr.mxu0 %v2782_v53  ;;  %v2883_v53 = vld [vmem:[%s6188_s15 + $0x38] sm:$0xff] }
 0xdcc   :  { %3047 = vmatpush3.msra.mxu0 %v2766_v6  ;;  %v2882_v6 = vld [vmem:[%s6188_s15 + $0x30] sm:$0xff] }
 0xdcd   :  { %3048 = vmatprep.subr.mxu0 %v2781_v7  ;;  %v2881_v7 = vld [vmem:[%s6188_s15 + $0x28] sm:$0xff] }
 0xdce   :  { %3049 = vmatpush3.msra.mxu0 %v2765_v8  ;;  %v2880_v8 = vld [vmem:[%s6188_s15 + $0x20] sm:$0xff] }
 0xdcf   :  { %3050 = vmatprep.subr.mxu0 %v2780_v9  ;;  %v2879_v9 = vld [vmem:[%s6188_s15 + $0x18] sm:$0xff] }
 0xdd0   :  { %3051 = vmatpush3.msra.mxu0 %v2764_v46  ;;  %v2878_v46 = vld [vmem:[%s6188_s15 + $0x10] sm:$0xff] }
 0xdd1   :  { %3052 = vmatprep.subr.mxu0 %v2779_v58  ;;  %v2877_v58 = vld [vmem:[%s6188_s15 + $0x8] sm:$0xff] }
 0xdd2   :  { %3053 = vmatpush3.msra.mxu0 %v2763_v44  ;;  %v2876_v44 = vld [vmem:[%s6188_s15] sm:$0xff] }
 0xdd3   :  { %3054 = vmatprep.subr.mxu0 %v2778_v3 }
 0xdd4   :  { %3055 = vmatpush3.msra.mxu0 %v2762_v14  ;;  %v3009_v14 = vld [vmem:[#allocation2] ss:$0 sm:$0xff] }
 0xdd5   :  { %3056 = vmatprep.subr.mxu0 %v2777_v57 }
 0xdd6   :  { %3057 = vmatpush3.msra.mxu0 %v2761_v15 }
 0xdd7   :  { %3058 = vmatprep.subr.mxu0 %v2776_v16 }
 0xdd8   :  { %3059 = vmatpush3.msra.mxu0 %v2760_v5 }
 0xdd9   :  { %2927 = vmatprep.subr.mxu0 %v2891_v13 }
 0xdec   :  { %v2518_v18 = vpop.f32.mrf.mxu0 }
 0xded   :  { %v2595_v19 = vpop.f32.mrf.mxu1  ;;  %v2519_v22 = vadd.f32 %v2518_v18, %v2445_v61 }
 0xdee   :  { %v2520_v11 = vpop.f32.mrf.mxu0 }
 0xdef   :  { %v2597_v62 = vpop.f32.mrf.mxu1  ;;  %v2521_v26 = vadd.f32 %v2520_v11, %v2449_v20  ;;  %v2596_v43 = vadd.f32 %v2595_v19, %v2519_v22 }
 0xdf1   :  { %v2598_v35 = vadd.f32 %v2597_v62, %v2521_v26 }
 0xe73   :  { %v2524_v21 = vpop.f32.mrf.mxu0 }
 0xe74   :  { %v2601_v0 = vpop.f32.mrf.mxu1  ;;  %v2525_v34 = vadd.f32 %v2524_v21, %v2445_v61 }
 0xe75   :  { %v2526_v28 = vpop.f32.mrf.mxu0 }
 0xe76   :  { %v2603_v27 = vpop.f32.mrf.mxu1  ;;  %v2527_v33 = vadd.f32 %v2526_v28, %v2449_v20  ;;  %v2602_v2 = vadd.f32 %v2601_v0, %v2525_v34  ;;  %v2892_v20 = vld [vmem:[%s6189_s16] sm:$0x3] }
 0xe77   :  { %v2672_v23 = vpop.f32.mrf.mxu0  ;;  %v2897_v11 = vrot.slane %v2892_v20, %v3724_v36  ;;  %v2901_v62 = vrot.slane %v2892_v20, %v3721_v1 }
 0xe78   :  { %v2749_v24 = vpop.f32.mrf.mxu1  ;;  %v2673_v10 = vadd.f32 %v2672_v23, %v2596_v43  ;;  %v2604_v38 = vadd.f32 %v2603_v27, %v2527_v33 }
 0xe79   :  { %v2674_v52 = vpop.f32.mrf.mxu0 }
 0xe7a   :  { %v2675_v25 = vadd.f32 %v2674_v52, %v2598_v35  ;;  %v2751_v59 = vpop.f32.mrf.mxu1  ;;  %v6095_v37 = vadd.f32 %v2749_v24, %v2673_v10 }
 0xe7b   :  { %v2678_v4 = vpop.f32.mrf.mxu0 }
 0xe7c   :  { %v6093_v40 = vadd.f32 %v2751_v59, %v2675_v25  ;;  %v2755_v41 = vpop.f32.mrf.mxu1  ;;  %v2679_v42 = vadd.f32 %v2678_v4, %v2602_v2 }
 0xe7d   :  { %v2680_v30 = vpop.f32.mrf.mxu0 }
 0xe7e   :  { %v2681_v48 = vadd.f32 %v2680_v30, %v2604_v38  ;;  %2863 = vmatprep.mubr.f32.mxu0 %v6093_v40  ;;  %v2757_v12 = vpop.f32.mrf.mxu1  ;;  %v2756_v60 = vadd.f32 %v2755_v41, %v2679_v42 }
 0xe7f   :  { %2864 = vmatmul.mubr.f32.vlgmr.msra.gmra.mxu0 %v6095_v37 }
 0xe80   :  { %v6108_v29 = vadd.f32 %v2757_v12, %v2681_v48  ;;  %2928 = vmatpush1.msra.mxu0 %v2890_v47 }
 0xe81   :  { %2929 = vmatprep.subr.mxu0 %v2889_v39 }
 0xe82   :  { %2868 = vmatprep.mubr.f32.mxu0 %v6108_v29  ;;  %2930 = vmatpush1.msra.mxu0 %v2888_v50 }
 0xe83   :  { %2869 = vmatmul.mubr.f32.gmra.mxu0 %v2756_v60  ;;  %2931 = vmatprep.subr.mxu0 %v2887_v54 }
 0xe84   :  { %2932 = vmatpush1.msra.mxu0 %v2886_v32  ;;  %2975 = vmatprep.mubr.f32.mxu0 %v3192_v56 }
 0xe85   :  { %2933 = vmatprep.subr.mxu0 %v2885_v63 }
 0xe86   :  { %2934 = vmatpush1.msra.mxu0 %v2884_v45 }
 0xe87   :  { %2935 = vmatprep.subr.mxu0 %v2883_v53 }
 0xe88   :  { %2936 = vmatpush1.msra.mxu0 %v2882_v6 }
 0xe89   :  { %2937 = vmatprep.subr.mxu0 %v2881_v7 }
 0xe8a   :  { %2938 = vmatpush1.msra.mxu0 %v2880_v8 }
 0xe8b   :  { %2939 = vmatprep.subr.mxu0 %v2879_v9 }
 0xe8c   :  { %2940 = vmatpush1.msra.mxu0 %v2878_v46 }
 0xe8d   :  { %2941 = vmatprep.subr.mxu0 %v2877_v58 }
 0xe8e   :  { %2942 = vmatpush1.msra.mxu0 %v2876_v44 }
 0xf3f   :  { %v3060_v3 = vpop.f32.mrf.mxu0 }
 0xf41   :  { %v3061_v57 = vpop.f32.mrf.mxu0 }
 0xf42   :  { %v3062_v15 = vadd.f32 %v3061_v57, %v3060_v3 }
 0xf43   :  { %v3063_v16 = vpop.f32.mrf.mxu0 }
 0xf44   :  { %v2866_v5 = vadd.f32 %v3062_v15, %v3009_v14 }
 0xf45   :  { %v3064_v13 = vpop.f32.mrf.mxu0 }
 0xf46   :  { %v2874_v17 = vmax.f32 %v2866_v5, 0.0  ;;  %v3065_v18 = vadd.f32 %v3064_v13, %v3063_v16 }
 0xf48   :  { %v2871_v19 = vadd.f32 %v3065_v18, %v3009_v14  ;;  %3010 = vmatmul.mubr.msk.f32.vlgmr.msra.gmra.mxu0 %vm2904_vm2, %v2874_v17 }
 0xf49   :  { %2981 = vmatprep.mubr.f32.mxu0 %v3192_v56 }
 0xf4a   :  { %v2875_v61 = vmax.f32 %v2871_v19, 0.0 }
 0xf4c   :  { %3011 = vmatmul.mubr.msk.f32.gmra.mxu0 %vm2904_vm2, %v2875_v61 }
0x1008   :  { %v2977_v22 = vpop.f32.mrf.mxu0 }
0x1009   :  { %v2978_v21 = vadd.f32 %v2977_v22, %v2897_v11 }
0x100a   :  { %v2979_v26 = vpop.f32.mrf.mxu0 }
0x100b   :  { %v2988_v0 = vadd.f32 %v2978_v21, %v6095_v37  ;;  %v2980_v28 = vadd.f32 %v2979_v26, %v2901_v62 }
0x100c   :  { %v2983_v27 = vpop.f32.mrf.mxu0 }
0x100d   :  { %v2992_v43 = vadd.f32 %v2988_v0, %v4229_v49  ;;  %v2989_v56 = vadd.f32 %v2980_v28, %v6093_v40  ;;  %v2984_v34 = vadd.f32 %v2983_v27, %v2897_v11 }
0x100e   :  { %v2985_v23 = vpop.f32.mrf.mxu0 }
0x100f   :  { %2996 = vst [vmem:[%s6190_s17] sm:$0xff] %v2992_v43  ;;  %v2993_v36 = vadd.f32 %v2989_v56, %v4234_v51  ;;  %v2990_v1 = vadd.f32 %v2984_v34, %v2756_v60  ;;  %v2986_v35 = vadd.f32 %v2985_v23, %v2901_v62 }
0x1011   :  { %2997 = vst [vmem:[%s6190_s17 + $0x8] sm:$0xff] %v2993_v36  ;;  %v2994_v33 = vadd.f32 %v2990_v1, %v4387_v31  ;;  %v2991_v49 = vadd.f32 %v2986_v35, %v6108_v29 }
0x1013   :  { %2998 = vst [vmem:[%s6190_s17 + $0x10] sm:$0xff] %v2994_v33  ;;  %v2995_v24 = vadd.f32 %v2991_v49, %v4392_v55 }
0x1015   :  { %2999 = vst [vmem:[%s6190_s17 + $0x18] sm:$0xff] %v2995_v24 }
0x1016   :  { %3004 = vsyncpa [#allocation3], 1 }

// kernel: hft_forward.12
= control target key start
LH: loop header
LB: loop body
LE: loop exit
PB: predicated region body
PF: predicated region fallthrough
CT: control target
= control target key end

     0   :  { %s3493_s0 = inlined_call_operand.vmem [shape: f32[2,8,128], index: 0, kind: input, shape index: {}, may-alias: {0,17}]   ;;  %s3494_s1 = inlined_call_operand.hbm [shape: f32[1,128], index: 1, kind: input, shape index: {}]   ;;  %s3495_s2 = inlined_call_operand.hbm [shape: f32[1,128], index: 2, kind: input, shape index: {}]   ;;  %s3496_s3 = inlined_call_operand.vmem [shape: f32[128,384], index: 3, kind: input, shape index: {}]   ;;  %s3497_s4 = inlined_call_operand.vmem [shape: f32[1,384], index: 4, kind: input, shape index: {}]   ;;  %s3498_s5 = inlined_call_operand.vmem [shape: f32[128,128], index: 5, kind: input, shape index: {}]   ;;  %s3499_s6 = inlined_call_operand.hbm [shape: f32[1,128], index: 6, kind: input, shape index: {}]   ;;  %s3500_s7 = inlined_call_operand.hbm [shape: f32[1,128], index: 7, kind: input, shape index: {}]   ;;  %s3501_s8 = inlined_call_operand.hbm [shape: f32[1,128], index: 8, kind: input, shape index: {}]   ;;  %s3502_s9 = inlined_call_operand.vmem [shape: f32[128,512], index: 9, kind: input, shape index: {}]   ;;  %s3503_s10 = inlined_call_operand.vmem [shape: f32[1,512], index: 10, kind: input, shape index: {}]   ;;  %s3504_s11 = inlined_call_operand.vmem [shape: f32[512,128], index: 11, kind: input, shape index: {}]   ;;  %s3505_s12 = inlined_call_operand.hbm [shape: f32[1,128], index: 12, kind: input, shape index: {}]   ;;  %s3506_s13 = inlined_call_operand.vmem [shape: f32[128,64], index: 13, kind: input, shape index: {}]   ;;  %s3507_s14 = inlined_call_operand.hbm [shape: f32[1,64], index: 14, kind: input, shape index: {}]   ;;  %s3508_s15 = inlined_call_operand.vmem [shape: f32[64,128], index: 15, kind: input, shape index: {}]   ;;  %s3509_s16 = inlined_call_operand.hbm [shape: f32[1,128], index: 16, kind: input, shape index: {}]   ;;  %s3510_s17 = inlined_call_operand.vmem [shape: f32[2,8,128], index: 17, kind: output, shape index: {}, may-alias: {0,17}]  }
   0x1   :  { %3512 = sst [smem:[#allocation20_spill]] %s3493_s0 }
   0x2   :  { %3513 = sst [smem:[#allocation21_spill]] %s3494_s1 }
   0x3   :  { %22 = vsyncpa [#allocation3], 0 }
   0x4   :  { %23 = vsyncpa [#allocation5], 0 }
   0x5   :  { %24 = vsyncpa [#allocation8], 0 }
   0x6   :  { %25 = vsyncpa [#allocation11], 0 }
   0x7   :  { %26 = vsyncpa [#allocation14], 0  ;;  %s2529_s24 = smov [#allocation4]   ;;  %s2530_s26 = smov [#allocation7]  }
   0x8   :  { %s45_s25 = sshll.u32 %s2529_s24, 4  ;;  %s71_s27 = sshll.u32 %s2530_s26, 4  ;;  %s46_s25 = int_to_ptr.vmem [resolvable:$true] %s45_s25  ;;  %s72_s27 = int_to_ptr.vmem [resolvable:$true] %s71_s27 }
   0x9   :  { %s2367_s28 = scalar_lea.vmem %s46_s25, 16  ;;  %s2371_s29 = scalar_lea.vmem %s46_s25, 32 }
   0xa   :  { %p2368_p0 = scmp.ne.s32.totalorder %s46_s25, %s2367_s28  ;;  %p2372_p1 = scmp.lt.s32.totalorder %s46_s25, %s46_s25 }
   0xb   :  { %p2373_p2 = scmp.lt.s32.totalorder %s2371_s29, %s2367_s28 }
   0xd   :  { %p2374_p3 = por %p2373_p2, %p2372_p1 }
   0xf   :  { %p2375_p4 = pnand %p2374_p3, %p2368_p0 }
  0x11   :  { %2378 = shalt.err (!%p2375_p4)
}
  0x12   :  { %48 = dma.hbm_to_vmem [thread:$0]  %s3495_s2, 16, %s46_s25, [#allocation5]  }
  0x13   :  { %s2387_s18 = scalar_lea.vmem %s72_s27, 16  ;;  %s2391_s19 = scalar_lea.vmem %s72_s27, 32 }
  0x14   :  { %p2388_p5 = scmp.ne.s32.totalorder %s72_s27, %s2387_s18  ;;  %p2392_p6 = scmp.lt.s32.totalorder %s72_s27, %s72_s27 }
  0x15   :  { %p2393_p7 = scmp.lt.s32.totalorder %s2391_s19, %s2387_s18 }
  0x17   :  { %p2394_p8 = por %p2393_p7, %p2392_p6 }
  0x19   :  { %p2395_p9 = pnand %p2394_p8, %p2388_p5 }
  0x1b   :  { %2398 = shalt.err (!%p2395_p9)
}
  0x1c   :  { %74 = dma.hbm_to_vmem [thread:$0]  %s3500_s7, 16, %s72_s27, [#allocation8]  }
  0x1d   :  { %s2531_s21 = smov [#allocation10]   ;;  %s2532_s23 = smov [#allocation2]  }
  0x1e   :  { %s97_s22 = sshll.u32 %s2531_s21, 4  ;;  %s35_s24 = sshll.u32 %s2532_s23, 4  ;;  %s98_s22 = int_to_ptr.vmem [resolvable:$true] %s97_s22  ;;  %s36_s24 = int_to_ptr.vmem [resolvable:$true] %s35_s24 }
  0x1f   :  { %s2407_s26 = scalar_lea.vmem %s98_s22, 16  ;;  %s2411_s2 = scalar_lea.vmem %s98_s22, 32 }
  0x20   :  { %p2408_p10 = scmp.ne.s32.totalorder %s98_s22, %s2407_s26  ;;  %p2412_p11 = scmp.lt.s32.totalorder %s98_s22, %s98_s22 }
  0x21   :  { %p2413_p12 = scmp.lt.s32.totalorder %s2411_s2, %s2407_s26 }
  0x23   :  { %p2414_p13 = por %p2413_p12, %p2412_p11 }
  0x25   :  { %p2415_p0 = pnand %p2414_p13, %p2408_p10 }
  0x27   :  { %2418 = shalt.err (!%p2415_p0)
}
  0x28   :  { %100 = dma.hbm_to_vmem [thread:$0]  %s3505_s12, 16, %s98_s22, [#allocation11]  }
  0x29   :  { %s2427_s29 = scalar_lea.vmem %s36_s24, 16  ;;  %s2431_s7 = scalar_lea.vmem %s36_s24, 32 }
  0x2a   :  { %p2428_p1 = scmp.ne.s32.totalorder %s36_s24, %s2427_s29  ;;  %p2432_p2 = scmp.lt.s32.totalorder %s36_s24, %s36_s24 }
  0x2b   :  { %p2433_p3 = scmp.lt.s32.totalorder %s2431_s7, %s2427_s29 }
  0x2d   :  { %p2434_p4 = por %p2433_p3, %p2432_p2 }
  0x2f   :  { %p2435_p5 = pnand %p2434_p4, %p2428_p1 }
  0x31   :  { %2438 = shalt.err (!%p2435_p5)
}
  0x32   :  { %s3514_s30 = sld [smem:[#allocation21_spill]]  ;;  %s2533_s18 = smov [#allocation6]  }
  0x33   :  { %s61_s19 = sshll.u32 %s2533_s18, 4  ;;  %s2534_s1 = smov [#allocation9]   ;;  %s62_s19 = int_to_ptr.vmem [resolvable:$true] %s61_s19 }
  0x34   :  { %s81_s20 = sshll.u32 %s2534_s1, 4  ;;  %s2447_s21 = scalar_lea.vmem %s62_s19, 16  ;;  %s82_s20 = int_to_ptr.vmem [resolvable:$true] %s81_s20 }
  0x35   :  { %p2448_p6 = scmp.ne.s32.totalorder %s62_s19, %s2447_s21  ;;  %s2451_s12 = scalar_lea.vmem %s62_s19, 32 }
  0x36   :  { %p2452_p7 = scmp.lt.s32.totalorder %s62_s19, %s62_s19  ;;  %p2453_p8 = scmp.lt.s32.totalorder %s2451_s12, %s2447_s21 }
  0x38   :  { %38 = dma.hbm_to_vmem [thread:$0]  %s3514_s30, 16, %s36_s24, [#allocation3]  }
  0x39   :  { %p2454_p9 = por %p2453_p8, %p2452_p7 }
  0x3b   :  { %p2455_p10 = pnand %p2454_p9, %p2448_p6 }
  0x3d   :  { %2458 = shalt.err (!%p2455_p10)
}
  0x3e   :  { %64 = dma.hbm_to_vmem [thread:$0]  %s3499_s6, 16, %s62_s19, [#allocation5]  }
  0x3f   :  { %s2467_s26 = scalar_lea.vmem %s82_s20, 16  ;;  %s2471_s24 = scalar_lea.vmem %s82_s20, 32 }
  0x40   :  { %p2468_p11 = scmp.ne.s32.totalorder %s82_s20, %s2467_s26  ;;  %p2472_p12 = scmp.lt.s32.totalorder %s82_s20, %s82_s20 }
  0x41   :  { %p2473_p13 = scmp.lt.s32.totalorder %s2471_s24, %s2467_s26 }
  0x43   :  { %p2474_p0 = por %p2473_p13, %p2472_p12 }
  0x45   :  { %p2475_p1 = pnand %p2474_p0, %p2468_p11 }
  0x47   :  { %2478 = shalt.err (!%p2475_p1)
}
  0x48   :  { %84 = dma.hbm_to_vmem [thread:$0]  %s3501_s8, 16, %s82_s20, [#allocation8]  }
  0x49   :  { %s2535_s28 = smov [#allocation12]   ;;  %s2536_s7 = smov [#allocation13]  }
  0x4a   :  { %s109_s29 = sshll.u32 %s2535_s28, 4  ;;  %s121_s27 = sshll.u32 %s2536_s7, 4  ;;  %s110_s29 = int_to_ptr.vmem [resolvable:$true] %s109_s29  ;;  %s122_s27 = int_to_ptr.vmem [resolvable:$true] %s121_s27 }
  0x4b   :  { %s2487_s0 = scalar_lea.vmem %s110_s29, 16  ;;  %s2491_s6 = scalar_lea.vmem %s110_s29, 32 }
  0x4c   :  { %p2488_p2 = scmp.ne.s32.totalorder %s110_s29, %s2487_s0  ;;  %p2492_p3 = scmp.lt.s32.totalorder %s110_s29, %s110_s29 }
  0x4d   :  { %p2493_p4 = scmp.lt.s32.totalorder %s2491_s6, %s2487_s0 }
  0x4f   :  { %p2494_p5 = por %p2493_p4, %p2492_p3 }
  0x51   :  { %p2495_p6 = pnand %p2494_p5, %p2488_p2 }
  0x53   :  { %2498 = shalt.err (!%p2495_p6)
}
  0x54   :  { %112 = dma.hbm_to_vmem [thread:$0]  %s3507_s14, 16, %s110_s29, [#allocation11]  }
  0x55   :  { %s2507_s19 = scalar_lea.vmem %s122_s27, 16  ;;  %s2511_s8 = scalar_lea.vmem %s122_s27, 32 }
  0x56   :  { %p2508_p7 = scmp.ne.s32.totalorder %s122_s27, %s2507_s19  ;;  %p2512_p8 = scmp.lt.s32.totalorder %s122_s27, %s122_s27 }
  0x57   :  { %p2513_p9 = scmp.lt.s32.totalorder %s2511_s8, %s2507_s19 }
  0x59   :  { %p2514_p10 = por %p2513_p9, %p2512_p8 }
  0x5b   :  { %p2515_p11 = pnand %p2514_p10, %p2508_p7 }
  0x5d   :  { %2518 = shalt.err (!%p2515_p11)
}
  0x5e   :  { %124 = dma.hbm_to_vmem [thread:$0]  %s3509_s16, 16, %s122_s27, [#allocation14]  }
  0x5f   :  { %2519 = dma.done.wait [#allocation3], 16  }
  0x60   :  { %2520 = vsyncadd [#allocation3], 4294967280 }
  0x61   :  { %2521 = dma.done.wait [#allocation5], 32  }
  0x62   :  { %2522 = vsyncadd [#allocation5], 4294967264 }
  0x63   :  { %2523 = dma.done.wait [#allocation8], 32  }
  0x64   :  { %2524 = vsyncadd [#allocation8], 4294967264 }
  0x65   :  { %2525 = dma.done.wait [#allocation11], 32  }
  0x66   :  { %2526 = vsyncadd [#allocation11], 4294967264 }
  0x67   :  { %2527 = dma.done.wait [#allocation14], 16  }
  0x68   :  { %2528 = vsyncadd [#allocation14], 4294967280  ;;  %s3515_s12 = sld [smem:[#allocation20_spill]]  ;;  %v238_v2 = vld [vmem:[%s3496_s3 + $0x170] sm:$0xff]  ;;  %v237_v3 = vld [vmem:[%s3496_s3 + $0x168] sm:$0xff]  ;;  %v2537_v56 = vmov 0.0  }
  0x69   :  { %v235_v4 = vld [vmem:[%s3496_s3 + $0x158] sm:$0xff]  ;;  %257 = vmatprep.subr.mxu0 %v238_v2  ;;  %v234_v5 = vld [vmem:[%s3496_s3 + $0x150] sm:$0xff]  ;;  %v232_v7 = vld [vmem:[%s3496_s3 + $0x140] sm:$0xff]  ;;  %321 = vmatprep.mubr.f32.mxu0 %v2537_v56  ;;  %vm2538_vm0 = vmmov 0   ;;  %vm409_vm1 = vcmask 523264   ;;  %s2539_s0 = smov 64  }
  0x6a   :  { %v239_v6 = vld [vmem:[%s3496_s3 + $0x178] sm:$0xff]  ;;  %258 = vmatpush1.msra.mxu0 %v237_v3  ;;  %v236_v8 = vld [vmem:[%s3496_s3 + $0x160] sm:$0xff]  ;;  %v229_v10 = vld [vmem:[%s3496_s3 + $0x128] sm:$0xff]  ;;  %vm487_vm2 = vcmask 64512  }
  0x6b   :  { %2139 = vmatprep.subr.mxu1 %v239_v6  ;;  %259 = vmatprep.subr.mxu0 %v235_v4  ;;  %v231_v9 = vld [vmem:[%s3496_s3 + $0x138] sm:$0xff]  ;;  %v228_v11 = vld [vmem:[%s3496_s3 + $0x120] sm:$0xff]  ;;  %v226_v20 = vld [vmem:[%s3496_s3 + $0x110] sm:$0xff] }
  0x6c   :  { %2140 = vmatpush3.msra.mxu1 %v239_v6  ;;  %260 = vmatpush1.msra.mxu0 %v234_v5  ;;  %v233_v21 = vld [vmem:[%s3496_s3 + $0x148] sm:$0xff]  ;;  %v223_v23 = vld [vmem:[%s3496_s3 + $0xf8] sm:$0xff]  ;;  %v230_v24 = vld [vmem:[%s3496_s3 + $0x130] sm:$0xff] }
  0x6d   :  { %2141 = vmatprep.subr.mxu1 %v236_v8  ;;  %261 = vmatprep.subr.mxu0 %v232_v7  ;;  %v225_v22 = vld [vmem:[%s3496_s3 + $0x108] sm:$0xff]  ;;  %v222_v25 = vld [vmem:[%s3496_s3 + $0xf0] sm:$0xff]  ;;  %v220_v26 = vld [vmem:[%s3496_s3 + $0xe0] sm:$0xff] }
  0x6e   :  { %v2657_v0 = vld [vmem:[%s3515_s12] sm:$0xff]  ;;  %v2663_v1 = vld [vmem:[%s3515_s12 + $0x8] sm:$0xff]  ;;  %2142 = vmatpush3.msra.mxu1 %v236_v8  ;;  %262 = vmatpush1.msra.mxu0 %v231_v9  ;;  %v227_v27 = vld [vmem:[%s3496_s3 + $0x118] sm:$0xff] }
  0x6f   :  { %153 = vadd.xlane.f32.xlu0 %v2657_v0  ;;  %263 = vmatprep.subr.mxu0 %v229_v10  ;;  %v219_v28 = vld [vmem:[%s3496_s3 + $0xd8] sm:$0xff]  ;;  %v217_v29 = vld [vmem:[%s3496_s3 + $0xc8] sm:$0xff]  ;;  %v224_v30 = vld [vmem:[%s3496_s3 + $0x100] sm:$0xff] }
  0x70   :  { %264 = vmatpush1.msra.mxu0 %v228_v11  ;;  %2143 = vmatprep.subr.mxu1 %v233_v21  ;;  %v216_v31 = vld [vmem:[%s3496_s3 + $0xc0] sm:$0xff]  ;;  %v214_v32 = vld [vmem:[%s3496_s3 + $0xb0] sm:$0xff]  ;;  %v221_v33 = vld [vmem:[%s3496_s3 + $0xe8] sm:$0xff] }
  0x71   :  { %265 = vmatprep.subr.mxu0 %v226_v20  ;;  %2144 = vmatpush3.msra.mxu1 %v233_v21  ;;  %v213_v34 = vld [vmem:[%s3496_s3 + $0xa8] sm:$0xff]  ;;  %v211_v35 = vld [vmem:[%s3496_s3 + $0x98] sm:$0xff]  ;;  %v218_v36 = vld [vmem:[%s3496_s3 + $0xd0] sm:$0xff] }
  0x72   :  { %266 = vmatpush1.msra.mxu0 %v225_v22  ;;  %2145 = vmatprep.subr.mxu1 %v230_v24  ;;  %v210_v37 = vld [vmem:[%s3496_s3 + $0x90] sm:$0xff]  ;;  %v208_v38 = vld [vmem:[%s3496_s3 + $0x80] sm:$0xff]  ;;  %v215_v39 = vld [vmem:[%s3496_s3 + $0xb8] sm:$0xff] }
  0x73   :  { %155 = vadd.xlane.f32.xlu0 %v2663_v1  ;;  %267 = vmatprep.subr.mxu0 %v223_v23  ;;  %v207_v40 = vld [vmem:[%s3496_s3 + $0x78] sm:$0xff]  ;;  %v205_v41 = vld [vmem:[%s3496_s3 + $0x68] sm:$0xff]  ;;  %v212_v42 = vld [vmem:[%s3496_s3 + $0xa0] sm:$0xff] }
  0x74   :  { %268 = vmatpush1.msra.mxu0 %v222_v25  ;;  %2146 = vmatpush3.msra.mxu1 %v230_v24  ;;  %v204_v43 = vld [vmem:[%s3496_s3 + $0x60] sm:$0xff]  ;;  %v202_v44 = vld [vmem:[%s3496_s3 + $0x50] sm:$0xff]  ;;  %v209_v45 = vld [vmem:[%s3496_s3 + $0x88] sm:$0xff] }
  0x75   :  { %269 = vmatprep.subr.mxu0 %v220_v26  ;;  %2147 = vmatprep.subr.mxu1 %v227_v27  ;;  %v201_v46 = vld [vmem:[%s3496_s3 + $0x48] sm:$0xff]  ;;  %v199_v47 = vld [vmem:[%s3496_s3 + $0x38] sm:$0xff]  ;;  %v206_v48 = vld [vmem:[%s3496_s3 + $0x70] sm:$0xff] }
  0x76   :  { %270 = vmatpush1.msra.mxu0 %v219_v28  ;;  %2148 = vmatpush3.msra.mxu1 %v227_v27  ;;  %v198_v49 = vld [vmem:[%s3496_s3 + $0x30] sm:$0xff]  ;;  %v196_v50 = vld [vmem:[%s3496_s3 + $0x20] sm:$0xff]  ;;  %v203_v51 = vld [vmem:[%s3496_s3 + $0x58] sm:$0xff] }
  0x77   :  { %271 = vmatprep.subr.mxu0 %v217_v29  ;;  %2149 = vmatprep.subr.mxu1 %v224_v30  ;;  %v195_v52 = vld [vmem:[%s3496_s3 + $0x18] sm:$0xff]  ;;  %v193_v53 = vld [vmem:[%s3496_s3 + $0x8] sm:$0xff]  ;;  %v200_v54 = vld [vmem:[%s3496_s3 + $0x40] sm:$0xff] }
  0x78   :  { %272 = vmatpush1.msra.mxu0 %v216_v31  ;;  %2150 = vmatpush3.msra.mxu1 %v224_v30  ;;  %v192_v55 = vld [vmem:[%s3496_s3] sm:$0xff]  ;;  %v197_v57 = vld [vmem:[%s3496_s3 + $0x28] sm:$0xff]  ;;  %v194_v58 = vld [vmem:[%s3496_s3 + $0x10] sm:$0xff] }
  0x79   :  { %273 = vmatprep.subr.mxu0 %v214_v32  ;;  %2151 = vmatprep.subr.mxu1 %v221_v33  ;;  %v1961_v4 = vld [vmem:[#allocation2] ss:$0 sm:$0xff]  ;;  %v1962_v6 = vld [vmem:[#allocation4] ss:$0 sm:$0xff] }
  0x7a   :  { %274 = vmatpush1.msra.mxu0 %v213_v34  ;;  %2152 = vmatpush3.msra.mxu1 %v221_v33 }
  0x7b   :  { %275 = vmatprep.subr.mxu0 %v211_v35  ;;  %2153 = vmatprep.subr.mxu1 %v218_v36 }
  0x7c   :  { %276 = vmatpush1.msra.mxu0 %v210_v37  ;;  %2154 = vmatpush3.msra.mxu1 %v218_v36 }
  0x7d   :  { %277 = vmatprep.subr.mxu0 %v208_v38  ;;  %2155 = vmatprep.subr.mxu1 %v215_v39 }
  0x7e   :  { %278 = vmatpush1.msra.mxu0 %v207_v40  ;;  %2156 = vmatpush3.msra.mxu1 %v215_v39 }
  0x7f   :  { %279 = vmatprep.subr.mxu0 %v205_v41  ;;  %2157 = vmatprep.subr.mxu1 %v212_v42 }
  0x80   :  { %280 = vmatpush1.msra.mxu0 %v204_v43  ;;  %2158 = vmatpush3.msra.mxu1 %v212_v42 }
  0x81   :  { %281 = vmatprep.subr.mxu0 %v202_v44  ;;  %2159 = vmatprep.subr.mxu1 %v209_v45 }
  0x82   :  { %282 = vmatpush1.msra.mxu0 %v201_v46  ;;  %2160 = vmatpush3.msra.mxu1 %v209_v45 }
  0x83   :  { %283 = vmatprep.subr.mxu0 %v199_v47  ;;  %2161 = vmatprep.subr.mxu1 %v206_v48 }
  0x84   :  { %284 = vmatpush1.msra.mxu0 %v198_v49  ;;  %2162 = vmatpush3.msra.mxu1 %v206_v48 }
  0x85   :  { %285 = vmatprep.subr.mxu0 %v196_v50  ;;  %2163 = vmatprep.subr.mxu1 %v203_v51 }
  0x86   :  { %286 = vmatpush1.msra.mxu0 %v195_v52  ;;  %2164 = vmatpush3.msra.mxu1 %v203_v51 }
  0x87   :  { %287 = vmatprep.subr.mxu0 %v193_v53  ;;  %2165 = vmatprep.subr.mxu1 %v200_v54 }
  0x88   :  { %288 = vmatpush1.msra.mxu0 %v192_v55  ;;  %2166 = vmatpush3.msra.mxu1 %v200_v54 }
  0x89   :  { %2174 = vmatprep.subr.mxu0 %v2537_v56  ;;  %2167 = vmatprep.subr.mxu1 %v197_v57 }
  0x8a   :  { %2168 = vmatpush3.msra.mxu1 %v197_v57 }
  0x8b   :  { %2169 = vmatprep.subr.mxu1 %v194_v58 }
  0x8c   :  { %2170 = vmatpush3.msra.mxu1 %v194_v58 }
  0x8d   :  { %2184 = vmatprep.subr.mxu1 %v2537_v56 }
  0xf8   :  { %v154_v12 = vpop.xlane.xlu0 %153 }
  0xf9   :  { %v158_v13 = vmul.f32 0.0078125, %v154_v12 }
  0xfb   :  { %v2697_v14 = vsub.f32 %v2657_v0, %v158_v13  ;;  %v242_v13 = vlaneseq }
  0xfc   :  { %v156_v15 = vpop.xlane.xlu0 %155 }
  0xfd   :  { %v159_v16 = vmul.f32 0.0078125, %v156_v15  ;;  %v162_v17 = vmul.f32 %v2697_v14, %v2697_v14 }
  0xff   :  { %v2702_v18 = vsub.f32 %v2663_v1, %v159_v16  ;;  %164 = vadd.xlane.f32.xlu1 %v162_v17  ;;  %v240_v16 = vld [vmem:[%s3497_s4] sm:$0x7] }
 0x101   :  { %v163_v19 = vmul.f32 %v2702_v18, %v2702_v18 }
 0x103   :  { %166 = vadd.xlane.f32.xlu1 %v163_v19 }
 0x188   :  { %v165_v59 = vpop.xlane.xlu1 %164 }
 0x189   :  { %v168_v60 = vmul.f32 0.0078125, %v165_v59 }
 0x18b   :  { %v170_v61 = vadd.f32 1e-05, %v168_v60 }
 0x18c   :  { %v167_v62 = vpop.xlane.xlu1 %166 }
 0x18d   :  { %2319 = vrsqrt.f32 %v170_v61  ;;  %v169_v63 = vmul.f32 0.0078125, %v167_v62 }
 0x18f   :  { %v171_v2 = vadd.f32 1e-05, %v169_v63 }
 0x191   :  { %2321 = vrsqrt.f32 %v171_v2 }
 0x19a   :  { %v2320_v3 = vpop.eup %2319 }
 0x19b   :  { %v174_v5 = vmul.f32 %v2320_v3, %v2697_v14  ;;  %v2830_v14 = vshrl.u32 %v242_v13, 7 }
 0x19d   :  { %v182_v7 = vmul.f32 %v1961_v4, %v174_v5  ;;  %v244_v15 = vsub.s32 0, %v2830_v14  ;;  %v248_v17 = vsub.s32 1, %v2830_v14  ;;  %v252_v19 = vsub.s32 2, %v2830_v14 }
 0x19e   :  { %v2322_v8 = vpop.eup %2321 }
 0x19f   :  { %v190_v9 = vadd.f32 %v1962_v6, %v182_v7  ;;  %v175_v10 = vmul.f32 %v2322_v8, %v2702_v18  ;;  %v245_v18 = vrot.slane %v240_v16, %v244_v15  ;;  %v249_v20 = vrot.slane %v240_v16, %v248_v17 }
 0x1a0   :  { %v253_v23 = vrot.slane %v240_v16, %v252_v19 }
 0x1a1   :  { %322 = vmatmul.mubr.f32.vlgmr.msra.gmra.mxu0 %v190_v9  ;;  %2171 = vmatprep.mubr.f32.mxu1 %v190_v9  ;;  %v183_v11 = vmul.f32 %v1961_v4, %v175_v10 }
 0x1a2   :  { %327 = vmatprep.mubr.f32.mxu0 %v2537_v56 }
 0x1a3   :  { %v191_v12 = vadd.f32 %v1962_v6, %v183_v11 }
 0x1a5   :  { %328 = vmatmul.mubr.f32.gmra.mxu0 %v191_v12  ;;  %2172 = vmatmul.mubr.f32.vlgmr.msra.gmra.mxu1 %v191_v12 }
 0x1a6   :  { %2176 = vmatprep.mubr.msk.f32.mxu0 %vm2538_vm0, %v2537_v56  ;;  %2186 = vmatprep.mubr.msk.f32.mxu1 %vm2538_vm0, %v2537_v56 }
 0x261   :  { %v323_v21 = vpop.f32.mrf.mxu0 }
 0x262   :  { %v324_v22 = vadd.f32 %v323_v21, %v245_v18 }
 0x263   :  { %v325_v24 = vpop.f32.mrf.mxu0 }
 0x264   :  { %v326_v25 = vadd.f32 %v325_v24, %v249_v20  ;;  %572 = vrot.lane.b32.xlu1 %v324_v22, %s2539_s0 }
 0x265   :  { %v329_v26 = vpop.f32.mrf.mxu0  ;;  %v2173_v27 = vpop.f32.mrf.mxu1 }
 0x266   :  { %v2845_v28 = vadd.f32 %v2173_v27, %v253_v23  ;;  %574 = vrot.lane.b32.xlu0 %v326_v25, %s2539_s0  ;;  %2175 = vmatpush3.xpose.msk.msra.mxu0 %vm409_vm1, %v326_v25  ;;  %v330_v33 = vadd.f32 %v329_v26, %v245_v18 }
 0x267   :  { %v331_v29 = vpop.f32.mrf.mxu0  ;;  %v400_v30 = vpop.f32.mrf.mxu1  ;;  %2179 = vmatprep.subr.mxu0 %v2537_v56 }
 0x268   :  { %v332_v31 = vadd.f32 %v331_v29, %v249_v20  ;;  %v2850_v32 = vadd.f32 %v400_v30, %v253_v23 }
 0x269   :  { %2177 = vmatmul.mubr.msk.f32.vlgmr.msra.gmra.mxu0 %vm409_vm1, %v324_v22 }
 0x26a   :  { %2180 = vmatpush3.msra.mxu0 %v2850_v32  ;;  %907 = vrot.lane.b32.xlu1 %v332_v31, %s2539_s0 }
 0x26b   :  { %2181 = vmatprep.mubr.msk.f32.mxu0 %vm2538_vm0, %v2537_v56  ;;  %2189 = vmatprep.subr.mxu0 %v2537_v56 }
 0x26e   :  { %905 = vrot.lane.b32.xlu1 %v330_v33, %s2539_s0 }
 0x2d6   :  { %v573_v35 = vpop.permute.xlu1 %572 }
 0x2d8   :  { %v575_v34 = vpop.permute.xlu0 %574 }
 0x2d9   :  { %2185 = vmatpush3.xpose.msk.msra.mxu1 %vm409_vm1, %v575_v34  ;;  %v1090_v34 = vld [vmem:[%s3498_s5 + $0x68] sm:$0xff] }
 0x2da   :  { %2194 = vmatprep.subr.mxu1 %v2537_v56 }
 0x2dc   :  { %2187 = vmatmul.mubr.msk.f32.vlgmr.msra.gmra.mxu1 %vm409_vm1, %v573_v35  ;;  %v908_v36 = vpop.permute.xlu1 %907 }
 0x2dd   :  { %2195 = vmatpush3.xpose.msk.msra.mxu1 %vm409_vm1, %v332_v31  ;;  %2196 = vmatprep.mubr.msk.f32.mxu1 %vm2538_vm0, %v2537_v56 }
 0x2de   :  { %2204 = vmatprep.subr.mxu1 %v2537_v56 }
 0x2e0   :  { %2197 = vmatmul.mubr.msk.f32.vlgmr.msra.gmra.mxu1 %vm409_vm1, %v330_v33  ;;  %v906_v37 = vpop.permute.xlu1 %905 }
 0x2e1   :  { %2205 = vmatpush3.xpose.msk.msra.mxu1 %vm409_vm1, %v908_v36  ;;  %2206 = vmatprep.mubr.msk.f32.mxu1 %vm2538_vm0, %v2537_v56  ;;  %v1089_v36 = vld [vmem:[%s3498_s5 + $0x60] sm:$0xff] }
 0x2e4   :  { %2207 = vmatmul.mubr.msk.f32.vlgmr.msra.gmra.mxu1 %vm409_vm1, %v906_v37  ;;  %v1088_v37 = vld [vmem:[%s3498_s5 + $0x58] sm:$0xff] }
 0x329   :  { %v482_v38 = vpop.f32.mrf.mxu0 }
 0x32a   :  { %v486_v39 = vmul.f32 0.125, %v482_v38  ;;  %v1087_v38 = vld [vmem:[%s3498_s5 + $0x50] sm:$0xff] }
 0x32b   :  { %v2178_v40 = vpop.f32.mrf.mxu0 }
 0x32c   :  { %v488_v41 = vsel %vm487_vm2, %v486_v39, -inf  ;;  %v1085_v40 = vld [vmem:[%s3498_s5 + $0x40] sm:$0xff] }
 0x32d   :  { %489 = vmax.xlane.f32.xlu0 %v488_v41  ;;  %v1084_v41 = vld [vmem:[%s3498_s5 + $0x38] sm:$0xff] }
 0x39c   :  { %v646_v42 = vpop.f32.mrf.mxu1 }
 0x39d   :  { %v650_v43 = vmul.f32 0.125, %v646_v42  ;;  %v1083_v42 = vld [vmem:[%s3498_s5 + $0x30] sm:$0xff] }
 0x39e   :  { %v2188_v44 = vpop.f32.mrf.mxu1 }
 0x39f   :  { %v651_v45 = vsel %vm487_vm2, %v650_v43, -inf  ;;  %v1081_v44 = vld [vmem:[%s3498_s5 + $0x20] sm:$0xff] }
 0x3a0   :  { %652 = vmax.xlane.f32.xlu1 %v651_v45  ;;  %v816_v46 = vpop.f32.mrf.mxu1  ;;  %v1080_v45 = vld [vmem:[%s3498_s5 + $0x18] sm:$0xff] }
 0x3a1   :  { %v820_v47 = vmul.f32 0.125, %v816_v46  ;;  %v1079_v46 = vld [vmem:[%s3498_s5 + $0x10] sm:$0xff] }
 0x3a2   :  { %v2198_v48 = vpop.f32.mrf.mxu1 }
 0x3a3   :  { %v821_v49 = vsel %vm487_vm2, %v820_v47, -inf  ;;  %v1077_v48 = vld [vmem:[%s3498_s5] sm:$0xff] }
 0x3a4   :  { %822 = vmax.xlane.f32.xlu0 %v821_v49  ;;  %v979_v50 = vpop.f32.mrf.mxu1 }
 0x3a5   :  { %v983_v51 = vmul.f32 0.125, %v979_v50 }
 0x3a6   :  { %v2208_v52 = vpop.f32.mrf.mxu1 }
 0x3a7   :  { %v984_v53 = vsel %vm487_vm2, %v983_v51, -inf }
 0x3a8   :  { %985 = vmax.xlane.f32.xlu0 %v984_v53 }
 0x3b6   :  { %v490_v54 = vpop.xlane.xlu0 %489 }
 0x3b7   :  { %v491_v55 = vsub.f32 %v486_v39, %v490_v54  ;;  %v1086_v39 = vld [vmem:[%s3498_s5 + $0x48] sm:$0xff] }
 0x3b9   :  { %v492_v57 = vmul.f32 1.442695, %v491_v55 }
 0x3bb   :  { %2323 = vpow2.f32 %v492_v57 }
 0x3c8   :  { %v2324_v58 = vpop.eup %2323 }
 0x3c9   :  { %v494_v59 = vsel %vm487_vm2, %v2324_v58, 0.0 }
 0x3ca   :  { %495 = vadd.xlane.f32.xlu0 %v494_v59 }
 0x429   :  { %v653_v60 = vpop.xlane.xlu1 %652 }
 0x42a   :  { %v654_v61 = vsub.f32 %v650_v43, %v653_v60  ;;  %v1082_v43 = vld [vmem:[%s3498_s5 + $0x28] sm:$0xff] }
 0x42c   :  { %v655_v62 = vmul.f32 1.442695, %v654_v61 }
 0x42d   :  { %v823_v63 = vpop.xlane.xlu0 %822 }
 0x42e   :  { %2325 = vpow2.f32 %v655_v62  ;;  %v824_v2 = vsub.f32 %v820_v47, %v823_v63  ;;  %v1078_v47 = vld [vmem:[%s3498_s5 + $0x8] sm:$0xff]  ;;  %v1975_v62 = vld [vmem:[#allocation6] ss:$0 sm:$0xff] }
 0x430   :  { %v825_v3 = vmul.f32 1.442695, %v824_v2 }
 0x431   :  { %v986_v4 = vpop.xlane.xlu0 %985 }
 0x432   :  { %2327 = vpow2.f32 %v825_v3  ;;  %v987_v5 = vsub.f32 %v983_v51, %v986_v4 }
 0x434   :  { %v988_v6 = vmul.f32 1.442695, %v987_v5 }
 0x436   :  { %2329 = vpow2.f32 %v988_v6 }
 0x43b   :  { %v2326_v7 = vpop.eup %2325 }
 0x43c   :  { %v657_v8 = vsel %vm487_vm2, %v2326_v7, 0.0 }
 0x43d   :  { %658 = vadd.xlane.f32.xlu1 %v657_v8  ;;  %v1280_v8 = vld [vmem:[%s3502_s9 + $0x1f8] sm:$0xff] }
 0x43f   :  { %v2328_v9 = vpop.eup %2327 }
 0x440   :  { %v827_v10 = vsel %vm487_vm2, %v2328_v9, 0.0 }
 0x441   :  { %828 = vadd.xlane.f32.xlu0 %v827_v10  ;;  %v1276_v10 = vld [vmem:[%s3502_s9 + $0x1d8] sm:$0xff] }
 0x443   :  { %v2330_v11 = vpop.eup %2329 }
 0x444   :  { %v990_v12 = vsel %vm487_vm2, %v2330_v11, 0.0 }
 0x445   :  { %991 = vadd.xlane.f32.xlu1 %v990_v12  ;;  %v1275_v12 = vld [vmem:[%s3502_s9 + $0x1d0] sm:$0xff] }
 0x453   :  { %v496_v13 = vpop.xlane.xlu0 %495 }
 0x454   :  { %2331 = vrcp.f32 %v496_v13  ;;  %v1270_v13 = vld [vmem:[%s3502_s9 + $0x1a8] sm:$0xff] }
 0x456   :  { %996 = vrot.lane.b32.xlu1 %v2845_v28, %s2539_s0 }
 0x457   :  { %663 = vrot.lane.b32.xlu0 %v2850_v32, %s2539_s0  ;;  %v1091_v32 = vld [vmem:[%s3498_s5 + $0x70] sm:$0xff] }
 0x461   :  { %v2332_v16 = vpop.eup %2331 }
 0x462   :  { %v498_v18 = vmul.f32 %v2332_v16, %v2324_v58  ;;  %v1272_v16 = vld [vmem:[%s3502_s9 + $0x1b8] sm:$0xff] }
 0x464   :  { %2182 = vmatmul.mubr.msk.f32.vlgmr.msra.gmra.mxu0 %vm487_vm2, %v498_v18  ;;  %v1269_v18 = vld [vmem:[%s3502_s9 + $0x1a0] sm:$0xff] }
 0x465   :  { %2191 = vmatprep.mubr.msk.f32.mxu0 %vm2538_vm0, %v2537_v56 }
 0x4c6   :  { %v659_v20 = vpop.xlane.xlu1 %658 }
 0x4c7   :  { %2333 = vrcp.f32 %v659_v20  ;;  %v1271_v20 = vld [vmem:[%s3502_s9 + $0x1b0] sm:$0xff] }
 0x4ca   :  { %v829_v21 = vpop.xlane.xlu0 %828 }
 0x4cb   :  { %2335 = vrcp.f32 %v829_v21  ;;  %v1266_v21 = vld [vmem:[%s3502_s9 + $0x188] sm:$0xff] }
 0x4ce   :  { %v992_v22 = vpop.xlane.xlu1 %991  ;;  %v664_v23 = vpop.permute.xlu0 %663 }
 0x4cf   :  { %2337 = vrcp.f32 %v992_v22  ;;  %2190 = vmatpush3.msra.mxu0 %v664_v23  ;;  %v1268_v22 = vld [vmem:[%s3502_s9 + $0x198] sm:$0xff]  ;;  %v1265_v23 = vld [vmem:[%s3502_s9 + $0x180] sm:$0xff] }
 0x4d0   :  { %2199 = vmatprep.subr.mxu0 %v2537_v56 }
 0x4d2   :  { %v997_v29 = vpop.permute.xlu1 %996 }
 0x4d4   :  { %v2334_v24 = vpop.eup %2333 }
 0x4d5   :  { %v661_v25 = vmul.f32 %v2334_v24, %v2326_v7  ;;  %v1278_v7 = vld [vmem:[%s3502_s9 + $0x1e8] sm:$0xff]  ;;  %v1267_v24 = vld [vmem:[%s3502_s9 + $0x190] sm:$0xff] }
 0x4d7   :  { %2192 = vmatmul.mubr.msk.f32.vlgmr.msra.gmra.mxu0 %vm487_vm2, %v661_v25 }
 0x4d8   :  { %v2336_v26 = vpop.eup %2335  ;;  %2200 = vmatpush3.msra.mxu0 %v2845_v28  ;;  %2201 = vmatprep.mubr.msk.f32.mxu0 %vm2538_vm0, %v2537_v56  ;;  %v1092_v28 = vld [vmem:[%s3498_s5 + $0x78] sm:$0xff] }
 0x4d9   :  { %2209 = vmatprep.subr.mxu0 %v2537_v56  ;;  %v831_v27 = vmul.f32 %v2336_v26, %v2328_v9  ;;  %2214 = vmatprep.subr.mxu1 %v1092_v28  ;;  %v1274_v9 = vld [vmem:[%s3502_s9 + $0x1c8] sm:$0xff] }
 0x4da   :  { %2215 = vmatpush3.msra.mxu1 %v1092_v28 }
 0x4db   :  { %2202 = vmatmul.mubr.msk.f32.vlgmr.msra.gmra.mxu0 %vm487_vm2, %v831_v27  ;;  %2216 = vmatprep.subr.mxu1 %v1091_v32 }
 0x4dc   :  { %v2338_v30 = vpop.eup %2337  ;;  %2210 = vmatpush3.msra.mxu0 %v997_v29  ;;  %2211 = vmatprep.mubr.msk.f32.mxu0 %vm2538_vm0, %v2537_v56 }
 0x4dd   :  { %v994_v31 = vmul.f32 %v2338_v30, %v2330_v11  ;;  %2217 = vmatpush3.msra.mxu1 %v1091_v32  ;;  %1303 = vmatprep.subr.mxu0 %v1278_v7  ;;  %v1273_v11 = vld [vmem:[%s3502_s9 + $0x1c0] sm:$0xff]  ;;  %v1232_v7 = vld [vmem:[%s3502_s9 + $0x78] sm:$0xff] }
 0x4de   :  { %2218 = vmatprep.subr.mxu1 %v1090_v34 }
 0x4df   :  { %2212 = vmatmul.mubr.msk.f32.vlgmr.msra.gmra.mxu0 %vm487_vm2, %v994_v31  ;;  %2219 = vmatpush3.msra.mxu1 %v1090_v34  ;;  %v1264_v34 = vld [vmem:[%s3502_s9 + $0x178] sm:$0xff] }
 0x4e0   :  { %1367 = vmatprep.mubr.f32.mxu0 %v2537_v56  ;;  %2220 = vmatprep.subr.mxu1 %v1089_v36 }
 0x4e1   :  { %2221 = vmatpush3.msra.mxu1 %v1089_v36  ;;  %v1263_v36 = vld [vmem:[%s3502_s9 + $0x170] sm:$0xff] }
 0x4e2   :  { %2222 = vmatprep.subr.mxu1 %v1088_v37 }
 0x4e3   :  { %2223 = vmatpush3.msra.mxu1 %v1088_v37  ;;  %v1258_v37 = vld [vmem:[%s3502_s9 + $0x148] sm:$0xff] }
 0x4e4   :  { %2224 = vmatprep.subr.mxu1 %v1087_v38 }
 0x4e5   :  { %2225 = vmatpush3.msra.mxu1 %v1087_v38  ;;  %v1260_v38 = vld [vmem:[%s3502_s9 + $0x158] sm:$0xff] }
 0x4e6   :  { %2226 = vmatprep.subr.mxu1 %v1086_v39 }
 0x4e7   :  { %2227 = vmatpush3.msra.mxu1 %v1086_v39  ;;  %v1257_v39 = vld [vmem:[%s3502_s9 + $0x140] sm:$0xff] }
 0x4e8   :  { %2228 = vmatprep.subr.mxu1 %v1085_v40 }
 0x4e9   :  { %2229 = vmatpush3.msra.mxu1 %v1085_v40  ;;  %v1259_v40 = vld [vmem:[%s3502_s9 + $0x150] sm:$0xff] }
 0x4ea   :  { %2230 = vmatprep.subr.mxu1 %v1084_v41 }
 0x4eb   :  { %2231 = vmatpush3.msra.mxu1 %v1084_v41  ;;  %v1254_v41 = vld [vmem:[%s3502_s9 + $0x128] sm:$0xff] }
 0x4ec   :  { %2232 = vmatprep.subr.mxu1 %v1083_v42 }
 0x4ed   :  { %2233 = vmatpush3.msra.mxu1 %v1083_v42  ;;  %v1256_v42 = vld [vmem:[%s3502_s9 + $0x138] sm:$0xff] }
 0x4ee   :  { %2234 = vmatprep.subr.mxu1 %v1082_v43 }
 0x4ef   :  { %2235 = vmatpush3.msra.mxu1 %v1082_v43  ;;  %v1253_v43 = vld [vmem:[%s3502_s9 + $0x120] sm:$0xff] }
 0x4f0   :  { %2236 = vmatprep.subr.mxu1 %v1081_v44 }
 0x4f1   :  { %2237 = vmatpush3.msra.mxu1 %v1081_v44  ;;  %v1255_v44 = vld [vmem:[%s3502_s9 + $0x130] sm:$0xff] }
 0x4f2   :  { %2238 = vmatprep.subr.mxu1 %v1080_v45 }
 0x4f3   :  { %2239 = vmatpush3.msra.mxu1 %v1080_v45  ;;  %v1250_v45 = vld [vmem:[%s3502_s9 + $0x108] sm:$0xff] }
 0x4f4   :  { %2240 = vmatprep.subr.mxu1 %v1079_v46 }
 0x4f5   :  { %2241 = vmatpush3.msra.mxu1 %v1079_v46  ;;  %v1252_v46 = vld [vmem:[%s3502_s9 + $0x118] sm:$0xff] }
 0x4f6   :  { %2242 = vmatprep.subr.mxu1 %v1078_v47 }
 0x4f7   :  { %2243 = vmatpush3.msra.mxu1 %v1078_v47  ;;  %v1249_v47 = vld [vmem:[%s3502_s9 + $0x100] sm:$0xff] }
 0x4f8   :  { %2244 = vmatprep.subr.mxu1 %v1077_v48 }
 0x4f9   :  { %2245 = vmatpush3.msra.mxu1 %v1077_v48  ;;  %v1251_v48 = vld [vmem:[%s3502_s9 + $0x110] sm:$0xff] }
 0x4fa   :  { %1380 = vmatprep.subr.mxu1 %v1280_v8  ;;  %v1229_v8 = vld [vmem:[%s3502_s9 + $0x60] sm:$0xff] }
 0x524   :  { %v568_v33 = vpop.f32.mrf.mxu0 }
 0x526   :  { %v2183_v35 = vpop.f32.mrf.mxu0 }
 0x527   :  { %v1261_v35 = vld [vmem:[%s3502_s9 + $0x160] sm:$0xff] }
 0x597   :  { %v735_v49 = vpop.f32.mrf.mxu0 }
 0x599   :  { %v2193_v50 = vpop.f32.mrf.mxu0 }
 0x59a   :  { %v1248_v50 = vld [vmem:[%s3502_s9 + $0xf8] sm:$0xff] }
 0x59b   :  { %v901_v51 = vpop.f32.mrf.mxu0 }
 0x59d   :  { %v2203_v52 = vpop.f32.mrf.mxu0 }
 0x59e   :  { %v1247_v52 = vld [vmem:[%s3502_s9 + $0xf0] sm:$0xff] }
 0x59f   :  { %v1068_v53 = vpop.f32.mrf.mxu0 }
 0x5a0   :  { %v2314_v54 = vpack.i.bf16 %v1068_v53, %v735_v49  ;;  %v1246_v49 = vld [vmem:[%s3502_s9 + $0xe8] sm:$0xff] }
 0x5a1   :  { %v2213_v55 = vpop.f32.mrf.mxu0  ;;  %v1242_v53 = vld [vmem:[%s3502_s9 + $0xc8] sm:$0xff] }
 0x5a2   :  { %2315 = vrot.lane.b32.xlu1 %v2314_v54, %s2539_s0  ;;  %v1244_v54 = vld [vmem:[%s3502_s9 + $0xd8] sm:$0xff]  ;;  %v1241_v55 = vld [vmem:[%s3502_s9 + $0xc0] sm:$0xff] }
 0x614   :  { %v2316_v57 = vpop.permute.xlu1 %2315 }
 0x615   :  { %v2318_v58 = vunpack.i.h.bf16 %v2316_v57  ;;  %v2317_v59 = vunpack.i.l.bf16 %v2316_v57  ;;  %v1243_v57 = vld [vmem:[%s3502_s9 + $0xd0] sm:$0xff] }
 0x617   :  { %v743_v60 = vsel %vm409_vm1, %v568_v33, %v2317_v59  ;;  %v1076_v61 = vsel %vm409_vm1, %v901_v51, %v2318_v58  ;;  %v1262_v33 = vld [vmem:[%s3502_s9 + $0x168] sm:$0xff]  ;;  %v1245_v51 = vld [vmem:[%s3502_s9 + $0xe0] sm:$0xff]  ;;  %v1240_v59 = vld [vmem:[%s3502_s9 + $0xb8] sm:$0xff] }
 0x618   :  { %2246 = vmatprep.mubr.f32.mxu1 %v743_v60  ;;  %v1238_v58 = vld [vmem:[%s3502_s9 + $0xa8] sm:$0xff]  ;;  %v1237_v60 = vld [vmem:[%s3502_s9 + $0xa0] sm:$0xff] }
 0x619   :  { %2247 = vmatmul.mubr.f32.vlgmr.msra.gmra.mxu1 %v1076_v61  ;;  %v1239_v61 = vld [vmem:[%s3502_s9 + $0xb0] sm:$0xff] }
 0x61a   :  { %1444 = vmatprep.mubr.f32.mxu1 %v2537_v56 }
 0x6d9   :  { %v2248_v63 = vpop.f32.mrf.mxu1 }
 0x6da   :  { %v1172_v2 = vadd.f32 %v2248_v63, %v1975_v62  ;;  %v1236_v63 = vld [vmem:[%s3502_s9 + $0x98] sm:$0xff] }
 0x6db   :  { %v1166_v3 = vpop.f32.mrf.mxu1 }
 0x6dc   :  { %v2950_v4 = vadd.f32 %v1172_v2, %v2663_v1  ;;  %v1167_v5 = vadd.f32 %v1975_v62, %v1166_v3  ;;  %v1277_v1 = vld [vmem:[%s3502_s9 + $0x1e0] sm:$0xff]  ;;  %v1234_v62 = vld [vmem:[%s3502_s9 + $0x88] sm:$0xff]  ;;  %v1235_v3 = vld [vmem:[%s3502_s9 + $0x90] sm:$0xff] }
 0x6dd   :  { %1304 = vmatpush1.msra.mxu0 %v1277_v1  ;;  %v1233_v2 = vld [vmem:[%s3502_s9 + $0x80] sm:$0xff]  ;;  %v1231_v1 = vld [vmem:[%s3502_s9 + $0x70] sm:$0xff] }
 0x6de   :  { %v2953_v6 = vadd.f32 %v1167_v5, %v2657_v0  ;;  %1181 = vadd.xlane.f32.xlu0 %v2950_v4  ;;  %v1279_v0 = vld [vmem:[%s3502_s9 + $0x1f0] sm:$0xff]  ;;  %1305 = vmatprep.subr.mxu0 %v1274_v9  ;;  %v1230_v5 = vld [vmem:[%s3502_s9 + $0x68] sm:$0xff]  ;;  %v1228_v9 = vld [vmem:[%s3502_s9 + $0x58] sm:$0xff] }
 0x6df   :  { %1381 = vmatpush1.msra.mxu1 %v1279_v0  ;;  %1306 = vmatpush1.msra.mxu0 %v1273_v11  ;;  %v1226_v0 = vld [vmem:[%s3502_s9 + $0x48] sm:$0xff]  ;;  %v1227_v11 = vld [vmem:[%s3502_s9 + $0x50] sm:$0xff] }
 0x6e0   :  { %1179 = vadd.xlane.f32.xlu1 %v2953_v6  ;;  %1382 = vmatprep.subr.mxu1 %v1276_v10  ;;  %v1225_v10 = vld [vmem:[%s3502_s9 + $0x40] sm:$0xff] }
 0x6e1   :  { %1383 = vmatpush1.msra.mxu1 %v1275_v12  ;;  %1307 = vmatprep.subr.mxu0 %v1270_v13  ;;  %v1222_v12 = vld [vmem:[%s3502_s9 + $0x28] sm:$0xff]  ;;  %v1224_v13 = vld [vmem:[%s3502_s9 + $0x38] sm:$0xff] }
 0x6e2   :  { %1384 = vmatprep.subr.mxu1 %v1272_v16  ;;  %1308 = vmatpush1.msra.mxu0 %v1269_v18  ;;  %v1221_v16 = vld [vmem:[%s3502_s9 + $0x20] sm:$0xff]  ;;  %v1223_v18 = vld [vmem:[%s3502_s9 + $0x30] sm:$0xff] }
 0x6e3   :  { %1385 = vmatpush1.msra.mxu1 %v1271_v20  ;;  %1309 = vmatprep.subr.mxu0 %v1266_v21  ;;  %v1218_v20 = vld [vmem:[%s3502_s9 + $0x8] sm:$0xff]  ;;  %v1220_v21 = vld [vmem:[%s3502_s9 + $0x18] sm:$0xff] }
 0x6e4   :  { %1386 = vmatprep.subr.mxu1 %v1268_v22  ;;  %1310 = vmatpush1.msra.mxu0 %v1265_v23  ;;  %v1217_v22 = vld [vmem:[%s3502_s9] sm:$0xff]  ;;  %v1219_v23 = vld [vmem:[%s3502_s9 + $0x10] sm:$0xff] }
 0x6e5   :  { %1387 = vmatpush1.msra.mxu1 %v1267_v24  ;;  %1311 = vmatprep.subr.mxu0 %v1262_v33  ;;  %v1976_v33 = vld [vmem:[#allocation7] ss:$0 sm:$0xff] }
 0x6e6   :  { %1388 = vmatprep.subr.mxu1 %v1264_v34  ;;  %1312 = vmatpush1.msra.mxu0 %v1261_v35  ;;  %v1977_v35 = vld [vmem:[#allocation9] ss:$0 sm:$0xff] }
 0x6e7   :  { %1389 = vmatpush1.msra.mxu1 %v1263_v36  ;;  %1313 = vmatprep.subr.mxu0 %v1258_v37 }
 0x6e8   :  { %1390 = vmatprep.subr.mxu1 %v1260_v38  ;;  %1314 = vmatpush1.msra.mxu0 %v1257_v39 }
 0x6e9   :  { %1391 = vmatpush1.msra.mxu1 %v1259_v40  ;;  %1315 = vmatprep.subr.mxu0 %v1254_v41 }
 0x6ea   :  { %1392 = vmatprep.subr.mxu1 %v1256_v42  ;;  %1316 = vmatpush1.msra.mxu0 %v1253_v43  ;;  %v1592_v42 = vld [vmem:[%s3504_s11 + $0x1f8] sm:$0xff]  ;;  %v1559_v43 = vld [vmem:[%s3504_s11 + $0xf0] sm:$0xff] }
 0x6eb   :  { %1393 = vmatpush1.msra.mxu1 %v1255_v44  ;;  %1317 = vmatprep.subr.mxu0 %v1250_v45  ;;  %v1591_v44 = vld [vmem:[%s3504_s11 + $0x1f0] sm:$0xff] }
 0x6ec   :  { %1394 = vmatprep.subr.mxu1 %v1252_v46  ;;  %1318 = vmatpush1.msra.mxu0 %v1249_v47  ;;  %v1543_v45 = vld [vmem:[%s3504_s11 + $0x70] sm:$0xff]  ;;  %v1558_v47 = vld [vmem:[%s3504_s11 + $0xe8] sm:$0xff] }
 0x6ed   :  { %1395 = vmatpush1.msra.mxu1 %v1251_v48  ;;  %1319 = vmatprep.subr.mxu0 %v1246_v49  ;;  %v1575_v46 = vld [vmem:[%s3504_s11 + $0x170] sm:$0xff]  ;;  %v1590_v48 = vld [vmem:[%s3504_s11 + $0x1e8] sm:$0xff] }
 0x6ee   :  { %1396 = vmatprep.subr.mxu1 %v1248_v50  ;;  %1320 = vmatpush1.msra.mxu0 %v1245_v51  ;;  %v1542_v49 = vld [vmem:[%s3504_s11 + $0x68] sm:$0xff]  ;;  %v1557_v51 = vld [vmem:[%s3504_s11 + $0xe0] sm:$0xff] }
 0x6ef   :  { %1397 = vmatpush1.msra.mxu1 %v1247_v52  ;;  %1321 = vmatprep.subr.mxu0 %v1242_v53  ;;  %v1574_v50 = vld [vmem:[%s3504_s11 + $0x168] sm:$0xff]  ;;  %v1589_v52 = vld [vmem:[%s3504_s11 + $0x1e0] sm:$0xff] }
 0x6f0   :  { %1398 = vmatprep.subr.mxu1 %v1244_v54  ;;  %1322 = vmatpush1.msra.mxu0 %v1241_v55  ;;  %v1541_v53 = vld [vmem:[%s3504_s11 + $0x60] sm:$0xff]  ;;  %v1556_v55 = vld [vmem:[%s3504_s11 + $0xd8] sm:$0xff] }
 0x6f1   :  { %1399 = vmatpush1.msra.mxu1 %v1243_v57  ;;  %1323 = vmatprep.subr.mxu0 %v1238_v58  ;;  %v1573_v54 = vld [vmem:[%s3504_s11 + $0x160] sm:$0xff]  ;;  %v1588_v57 = vld [vmem:[%s3504_s11 + $0x1d8] sm:$0xff] }
 0x6f2   :  { %1400 = vmatprep.subr.mxu1 %v1240_v59  ;;  %1324 = vmatpush1.msra.mxu0 %v1237_v60  ;;  %v1540_v58 = vld [vmem:[%s3504_s11 + $0x58] sm:$0xff]  ;;  %v1555_v60 = vld [vmem:[%s3504_s11 + $0xd0] sm:$0xff] }
 0x6f3   :  { %1401 = vmatpush1.msra.mxu1 %v1239_v61  ;;  %1325 = vmatprep.subr.mxu0 %v1234_v62  ;;  %v1572_v59 = vld [vmem:[%s3504_s11 + $0x158] sm:$0xff]  ;;  %v1587_v61 = vld [vmem:[%s3504_s11 + $0x1d0] sm:$0xff] }
 0x6f4   :  { %1402 = vmatprep.subr.mxu1 %v1236_v63  ;;  %1326 = vmatpush1.msra.mxu0 %v1233_v2  ;;  %v1539_v62 = vld [vmem:[%s3504_s11 + $0x50] sm:$0xff]  ;;  %v1554_v2 = vld [vmem:[%s3504_s11 + $0xc8] sm:$0xff] }
 0x6f5   :  { %1403 = vmatpush1.msra.mxu1 %v1235_v3  ;;  %1327 = vmatprep.subr.mxu0 %v1230_v5  ;;  %v1571_v63 = vld [vmem:[%s3504_s11 + $0x150] sm:$0xff]  ;;  %v1586_v3 = vld [vmem:[%s3504_s11 + $0x1c8] sm:$0xff] }
 0x6f6   :  { %1404 = vmatprep.subr.mxu1 %v1232_v7  ;;  %1328 = vmatpush1.msra.mxu0 %v1229_v8  ;;  %v1538_v5 = vld [vmem:[%s3504_s11 + $0x48] sm:$0xff]  ;;  %v1553_v8 = vld [vmem:[%s3504_s11 + $0xc0] sm:$0xff] }
 0x6f7   :  { %1405 = vmatpush1.msra.mxu1 %v1231_v1  ;;  %1329 = vmatprep.subr.mxu0 %v1226_v0  ;;  %v1570_v7 = vld [vmem:[%s3504_s11 + $0x148] sm:$0xff]  ;;  %v1585_v1 = vld [vmem:[%s3504_s11 + $0x1c0] sm:$0xff] }
 0x6f8   :  { %1406 = vmatprep.subr.mxu1 %v1228_v9  ;;  %1330 = vmatpush1.msra.mxu0 %v1225_v10  ;;  %v1537_v0 = vld [vmem:[%s3504_s11 + $0x40] sm:$0xff]  ;;  %v1552_v10 = vld [vmem:[%s3504_s11 + $0xb8] sm:$0xff] }
 0x6f9   :  { %1407 = vmatpush1.msra.mxu1 %v1227_v11  ;;  %1331 = vmatprep.subr.mxu0 %v1222_v12  ;;  %v1569_v9 = vld [vmem:[%s3504_s11 + $0x140] sm:$0xff]  ;;  %v1584_v11 = vld [vmem:[%s3504_s11 + $0x1b8] sm:$0xff] }
 0x6fa   :  { %1408 = vmatprep.subr.mxu1 %v1224_v13  ;;  %1332 = vmatpush1.msra.mxu0 %v1221_v16  ;;  %v1536_v12 = vld [vmem:[%s3504_s11 + $0x38] sm:$0xff]  ;;  %v1551_v16 = vld [vmem:[%s3504_s11 + $0xb0] sm:$0xff] }
 0x6fb   :  { %1409 = vmatpush1.msra.mxu1 %v1223_v18  ;;  %1333 = vmatprep.subr.mxu0 %v1218_v20  ;;  %v1568_v13 = vld [vmem:[%s3504_s11 + $0x138] sm:$0xff]  ;;  %v1583_v18 = vld [vmem:[%s3504_s11 + $0x1b0] sm:$0xff] }
 0x6fc   :  { %1410 = vmatprep.subr.mxu1 %v1220_v21  ;;  %1334 = vmatpush1.msra.mxu0 %v1217_v22  ;;  %v1535_v20 = vld [vmem:[%s3504_s11 + $0x30] sm:$0xff]  ;;  %v1550_v22 = vld [vmem:[%s3504_s11 + $0xa8] sm:$0xff] }
 0x6fd   :  { %1411 = vmatpush1.msra.mxu1 %v1219_v23  ;;  %v1567_v21 = vld [vmem:[%s3504_s11 + $0x130] sm:$0xff]  ;;  %v1582_v23 = vld [vmem:[%s3504_s11 + $0x1a8] sm:$0xff] }
 0x6fe   :  { %2073 = vmatprep.subr.mxu1 %v1592_v42  ;;  %v1562_v42 = vld [vmem:[%s3504_s11 + $0x108] sm:$0xff] }
 0x767   :  { %v1182_v25 = vpop.xlane.xlu0 %1181 }
 0x768   :  { %v1184_v27 = vmul.f32 0.0078125, %v1182_v25 }
 0x769   :  { %v1180_v26 = vpop.xlane.xlu1 %1179 }
 0x76a   :  { %v1183_v29 = vmul.f32 0.0078125, %v1180_v26  ;;  %v3009_v31 = vsub.f32 %v2950_v4, %v1184_v27 }
 0x76c   :  { %v3006_v30 = vsub.f32 %v2953_v6, %v1183_v29  ;;  %v1188_v32 = vmul.f32 %v3009_v31, %v3009_v31 }
 0x76e   :  { %v1187_v28 = vmul.f32 %v3006_v30, %v3006_v30 }
 0x770   :  { %1189 = vadd.xlane.f32.xlu0 %v1187_v28 }
 0x774   :  { %1191 = vadd.xlane.f32.xlu0 %v1188_v32 }
 0x7f9   :  { %v1190_v24 = vpop.xlane.xlu0 %1189 }
 0x7fa   :  { %v1193_v25 = vmul.f32 0.0078125, %v1190_v24  ;;  %v1534_v24 = vld [vmem:[%s3504_s11 + $0x28] sm:$0xff] }
 0x7fc   :  { %v1195_v26 = vadd.f32 1e-05, %v1193_v25  ;;  %v1566_v25 = vld [vmem:[%s3504_s11 + $0x128] sm:$0xff] }
 0x7fd   :  { %v1192_v27 = vpop.xlane.xlu0 %1191 }
 0x7fe   :  { %2339 = vrsqrt.f32 %v1195_v26  ;;  %v1194_v29 = vmul.f32 0.0078125, %v1192_v27  ;;  %v1549_v26 = vld [vmem:[%s3504_s11 + $0xa0] sm:$0xff] }
 0x7ff   :  { %v1581_v27 = vld [vmem:[%s3504_s11 + $0x1a0] sm:$0xff] }
 0x800   :  { %v1196_v28 = vadd.f32 1e-05, %v1194_v29  ;;  %v1533_v29 = vld [vmem:[%s3504_s11 + $0x20] sm:$0xff] }
 0x802   :  { %2341 = vrsqrt.f32 %v1196_v28  ;;  %v1565_v28 = vld [vmem:[%s3504_s11 + $0x120] sm:$0xff] }
 0x80b   :  { %v2340_v32 = vpop.eup %2339 }
 0x80c   :  { %v1199_v34 = vmul.f32 %v2340_v32, %v3006_v30  ;;  %v1560_v30 = vld [vmem:[%s3504_s11 + $0xf8] sm:$0xff] }
 0x80d   :  { %2035 = vmatprep.subr.mxu0 %v1560_v30  ;;  %v1548_v32 = vld [vmem:[%s3504_s11 + $0x98] sm:$0xff]  ;;  %v1530_v30 = vld [vmem:[%s3504_s11 + $0x8] sm:$0xff] }
 0x80e   :  { %v1207_v36 = vmul.f32 %v1976_v33, %v1199_v34  ;;  %v1532_v34 = vld [vmem:[%s3504_s11 + $0x18] sm:$0xff] }
 0x80f   :  { %v2342_v37 = vpop.eup %2341 }
 0x810   :  { %v1215_v38 = vadd.f32 %v1977_v35, %v1207_v36  ;;  %v1200_v39 = vmul.f32 %v2342_v37, %v3009_v31  ;;  %v1544_v31 = vld [vmem:[%s3504_s11 + $0x78] sm:$0xff]  ;;  %v1547_v36 = vld [vmem:[%s3504_s11 + $0x90] sm:$0xff] }
 0x811   :  { %v1579_v37 = vld [vmem:[%s3504_s11 + $0x190] sm:$0xff] }
 0x812   :  { %1368 = vmatmul.mubr.f32.vlgmr.msra.gmra.mxu0 %v1215_v38  ;;  %1445 = vmatmul.mubr.f32.vlgmr.msra.gmra.mxu1 %v1215_v38  ;;  %v1208_v40 = vmul.f32 %v1976_v33, %v1200_v39  ;;  %v1580_v33 = vld [vmem:[%s3504_s11 + $0x198] sm:$0xff]  ;;  %v1531_v38 = vld [vmem:[%s3504_s11 + $0x10] sm:$0xff] }
 0x813   :  { %1373 = vmatprep.mubr.f32.mxu0 %v2537_v56  ;;  %1450 = vmatprep.mubr.f32.mxu1 %v2537_v56  ;;  %v1576_v56 = vld [vmem:[%s3504_s11 + $0x178] sm:$0xff]  ;;  %v1563_v39 = vld [vmem:[%s3504_s11 + $0x110] sm:$0xff] }
 0x814   :  { %v1216_v41 = vadd.f32 %v1977_v35, %v1208_v40  ;;  %2036 = vmatpush3.msra.mxu0 %v1544_v31  ;;  %2074 = vmatpush3.msra.mxu1 %v1576_v56  ;;  %v1564_v35 = vld [vmem:[%s3504_s11 + $0x118] sm:$0xff]  ;;  %v1546_v40 = vld [vmem:[%s3504_s11 + $0x88] sm:$0xff]  ;;  %v1545_v31 = vld [vmem:[%s3504_s11 + $0x80] sm:$0xff] }
 0x815   :  { %2037 = vmatprep.subr.mxu0 %v1559_v43  ;;  %2075 = vmatprep.subr.mxu1 %v1591_v44  ;;  %v1577_v56 = vld [vmem:[%s3504_s11 + $0x180] sm:$0xff] }
 0x816   :  { %1374 = vmatmul.mubr.f32.gmra.mxu0 %v1216_v41  ;;  %1451 = vmatmul.mubr.f32.gmra.mxu1 %v1216_v41  ;;  %v1578_v41 = vld [vmem:[%s3504_s11 + $0x188] sm:$0xff]  ;;  %v1529_v43 = vld [vmem:[%s3504_s11] sm:$0xff] }
 0x817   :  { %2038 = vmatpush3.msra.mxu0 %v1543_v45  ;;  %2076 = vmatpush3.msra.mxu1 %v1575_v46  ;;  %v1561_v44 = vld [vmem:[%s3504_s11 + $0x100] sm:$0xff]  ;;  %v3358_v45 = vld [vmem:[%s3506_s13 + $0x78] sm:$0xff] }
 0x818   :  { %2039 = vmatprep.subr.mxu0 %v1558_v47  ;;  %2077 = vmatprep.subr.mxu1 %v1590_v48  ;;  %v1281_v46 = vld [vmem:[%s3503_s10] sm:$0xf]  ;;  %v1297_v47 = vsub.s32 3, %v2830_v14 }
 0x819   :  { %2040 = vmatpush3.msra.mxu0 %v1542_v49  ;;  %2078 = vmatpush3.msra.mxu1 %v1574_v50  ;;  %v1286_v48 = vrot.slane %v1281_v46, %v244_v15  ;;  %v1294_v49 = vrot.slane %v1281_v46, %v252_v19 }
 0x81a   :  { %2041 = vmatprep.subr.mxu0 %v1557_v51  ;;  %2079 = vmatprep.subr.mxu1 %v1589_v52  ;;  %v1290_v52 = vrot.slane %v1281_v46, %v248_v17 }
 0x81b   :  { %2042 = vmatpush3.msra.mxu0 %v1541_v53  ;;  %2080 = vmatpush3.msra.mxu1 %v1573_v54  ;;  %v1298_v53 = vrot.slane %v1281_v46, %v1297_v47 }
 0x81c   :  { %2043 = vmatprep.subr.mxu0 %v1556_v55  ;;  %2081 = vmatprep.subr.mxu1 %v1588_v57 }
 0x81d   :  { %2044 = vmatpush3.msra.mxu0 %v1540_v58  ;;  %2082 = vmatpush3.msra.mxu1 %v1572_v59 }
 0x81e   :  { %2045 = vmatprep.subr.mxu0 %v1555_v60  ;;  %2083 = vmatprep.subr.mxu1 %v1587_v61 }
 0x81f   :  { %2046 = vmatpush3.msra.mxu0 %v1539_v62  ;;  %2084 = vmatpush3.msra.mxu1 %v1571_v63 }
 0x820   :  { %2047 = vmatprep.subr.mxu0 %v1554_v2  ;;  %2085 = vmatprep.subr.mxu1 %v1586_v3 }
 0x821   :  { %2048 = vmatpush3.msra.mxu0 %v1538_v5  ;;  %2086 = vmatpush3.msra.mxu1 %v1570_v7 }
 0x822   :  { %2049 = vmatprep.subr.mxu0 %v1553_v8  ;;  %2087 = vmatprep.subr.mxu1 %v1585_v1 }
 0x823   :  { %2050 = vmatpush3.msra.mxu0 %v1537_v0  ;;  %2088 = vmatpush3.msra.mxu1 %v1569_v9 }
 0x824   :  { %2051 = vmatprep.subr.mxu0 %v1552_v10  ;;  %2089 = vmatprep.subr.mxu1 %v1584_v11 }
 0x825   :  { %2052 = vmatpush3.msra.mxu0 %v1536_v12  ;;  %2090 = vmatpush3.msra.mxu1 %v1568_v13 }
 0x826   :  { %2053 = vmatprep.subr.mxu0 %v1551_v16  ;;  %2091 = vmatprep.subr.mxu1 %v1583_v18 }
 0x827   :  { %2054 = vmatpush3.msra.mxu0 %v1535_v20  ;;  %2092 = vmatpush3.msra.mxu1 %v1567_v21 }
 0x828   :  { %2055 = vmatprep.subr.mxu0 %v1550_v22  ;;  %2093 = vmatprep.subr.mxu1 %v1582_v23 }
 0x829   :  { %2056 = vmatpush3.msra.mxu0 %v1534_v24  ;;  %2094 = vmatpush3.msra.mxu1 %v1566_v25 }
 0x82a   :  { %2057 = vmatprep.subr.mxu0 %v1549_v26  ;;  %2095 = vmatprep.subr.mxu1 %v1581_v27 }
 0x82b   :  { %2058 = vmatpush3.msra.mxu0 %v1533_v29  ;;  %2096 = vmatpush3.msra.mxu1 %v1565_v28 }
 0x82c   :  { %2059 = vmatprep.subr.mxu0 %v1548_v32  ;;  %2097 = vmatprep.subr.mxu1 %v1580_v33 }
 0x82d   :  { %2060 = vmatpush3.msra.mxu0 %v1532_v34  ;;  %2098 = vmatpush3.msra.mxu1 %v1564_v35 }
 0x82e   :  { %2061 = vmatprep.subr.mxu0 %v1547_v36  ;;  %2099 = vmatprep.subr.mxu1 %v1579_v37 }
 0x82f   :  { %2062 = vmatpush3.msra.mxu0 %v1531_v38  ;;  %2100 = vmatpush3.msra.mxu1 %v1563_v39 }
 0x830   :  { %2063 = vmatprep.subr.mxu0 %v1546_v40  ;;  %2101 = vmatprep.subr.mxu1 %v1578_v41 }
 0x831   :  { %2064 = vmatpush3.msra.mxu0 %v1530_v30  ;;  %2102 = vmatpush3.msra.mxu1 %v1562_v42 }
 0x832   :  { %2065 = vmatprep.subr.mxu0 %v1545_v31  ;;  %2103 = vmatprep.subr.mxu1 %v1577_v56 }
 0x833   :  { %2066 = vmatpush3.msra.mxu0 %v1529_v43  ;;  %2104 = vmatpush3.msra.mxu1 %v1561_v44 }
 0x834   :  { %2249 = vmatprep.subr.mxu0 %v3358_v45 }
 0x8d2   :  { %v1369_v50 = vpop.f32.mrf.mxu0  ;;  %v1446_v51 = vpop.f32.mrf.mxu1 }
 0x8d3   :  { %v3371_v54 = vadd.f32 %v1369_v50, %v1286_v48  ;;  %v3373_v55 = vadd.f32 %v1446_v51, %v1294_v49 }
 0x8d4   :  { %v1371_v57 = vpop.f32.mrf.mxu0  ;;  %v1448_v58 = vpop.f32.mrf.mxu1 }
 0x8d5   :  { %v1465_v59 = vmul.f32 0.044715, %v3371_v54  ;;  %v1467_v60 = vmul.f32 0.044715, %v3373_v55  ;;  %v1372_v15 = vadd.f32 %v1371_v57, %v1290_v52  ;;  %v3377_v61 = vadd.f32 %v1448_v58, %v1298_v53 }
 0x8d6   :  { %v1375_v19 = vpop.f32.mrf.mxu0  ;;  %v1452_v62 = vpop.f32.mrf.mxu1  ;;  %v1457_v58 = vmul.f32 0.5, %v3371_v54 }
 0x8d7   :  { %v1473_v63 = vmul.f32 %v1465_v59, %v3371_v54  ;;  %v1475_v14 = vmul.f32 %v1467_v60, %v3373_v55  ;;  %v3381_v17 = vadd.f32 %v1375_v19, %v1286_v48  ;;  %v3383_v2 = vadd.f32 %v1452_v62, %v1294_v49 }
 0x8d8   :  { %v1466_v3 = vmul.f32 0.044715, %v1372_v15  ;;  %v1468_v5 = vmul.f32 0.044715, %v3377_v61  ;;  %v1377_v7 = vpop.f32.mrf.mxu0  ;;  %v1454_v8 = vpop.f32.mrf.mxu1  ;;  %v1460_v59 = vmul.f32 0.5, %v3377_v61  ;;  %v1459_v62 = vmul.f32 0.5, %v3373_v55 }
 0x8d9   :  { %v1481_v1 = vmul.f32 %v1473_v63, %v3371_v54  ;;  %v1483_v0 = vmul.f32 %v1475_v14, %v3373_v55  ;;  %v1469_v9 = vmul.f32 0.044715, %v3381_v17  ;;  %v1471_v10 = vmul.f32 0.044715, %v3383_v2 }
 0x8da   :  { %v1474_v11 = vmul.f32 %v1466_v3, %v1372_v15  ;;  %v1476_v12 = vmul.f32 %v1468_v5, %v3377_v61  ;;  %v1378_v13 = vadd.f32 %v1377_v7, %v1290_v52  ;;  %v3391_v16 = vadd.f32 %v1454_v8, %v1298_v53 }
 0x8db   :  { %v1489_v18 = vadd.f32 %v1481_v1, %v3371_v54  ;;  %v1491_v20 = vadd.f32 %v1483_v0, %v3373_v55  ;;  %v1477_v21 = vmul.f32 %v1469_v9, %v3381_v17  ;;  %v1479_v29 = vmul.f32 %v1471_v10, %v3383_v2  ;;  %v1764_v54 = vld [vmem:[%s3506_s13 + $0x70] sm:$0xff] }
 0x8dc   :  { %v1470_v22 = vmul.f32 0.044715, %v1378_v13  ;;  %v1472_v23 = vmul.f32 0.044715, %v3391_v16  ;;  %v1482_v24 = vmul.f32 %v1474_v11, %v1372_v15  ;;  %v1484_v25 = vmul.f32 %v1476_v12, %v3377_v61 }
 0x8dd   :  { %v1497_v26 = vmul.f32 0.7978846, %v1489_v18  ;;  %v1499_v27 = vmul.f32 0.7978846, %v1491_v20  ;;  %v1485_v35 = vmul.f32 %v1477_v21, %v3381_v17  ;;  %v1487_v41 = vmul.f32 %v1479_v29, %v3383_v2  ;;  %v1763_v21 = vld [vmem:[%s3506_s13 + $0x68] sm:$0xff]  ;;  %v1753_v29 = vld [vmem:[%s3506_s13 + $0x18] sm:$0xff] }
 0x8de   :  { %v1478_v28 = vmul.f32 %v1470_v22, %v1378_v13  ;;  %v1480_v32 = vmul.f32 %v1472_v23, %v3391_v16  ;;  %v1490_v33 = vadd.f32 %v1482_v24, %v1372_v15  ;;  %v1492_v34 = vadd.f32 %v1484_v25, %v3377_v61  ;;  %v1758_v23 = vld [vmem:[%s3506_s13 + $0x40] sm:$0xff]  ;;  %v1757_v24 = vld [vmem:[%s3506_s13 + $0x38] sm:$0xff]  ;;  %v1756_v25 = vld [vmem:[%s3506_s13 + $0x30] sm:$0xff] }
 0x8df   :  { %2343 = vtanh.f32 %v1497_v26  ;;  %v1493_v40 = vadd.f32 %v1485_v35, %v3381_v17  ;;  %v1495_v56 = vadd.f32 %v1487_v41, %v3383_v2  ;;  %v1458_v52 = vmul.f32 0.5, %v1372_v15  ;;  %v1755_v26 = vld [vmem:[%s3506_s13 + $0x28] sm:$0xff]  ;;  %v1856_v35 = vld [vmem:[%s3508_s15 + $0x30] sm:$0xff] }
 0x8e0   :  { %2345 = vtanh.f32 %v1499_v27  ;;  %v1498_v36 = vmul.f32 0.7978846, %v1490_v33  ;;  %v1500_v37 = vmul.f32 0.7978846, %v1492_v34  ;;  %v1486_v38 = vmul.f32 %v1478_v28, %v1378_v13  ;;  %v1754_v27 = vld [vmem:[%s3506_s13 + $0x20] sm:$0xff]  ;;  %v1752_v28 = vld [vmem:[%s3506_s13 + $0x10] sm:$0xff] }
 0x8e1   :  { %v1488_v39 = vmul.f32 %v1480_v32, %v3391_v16  ;;  %v1501_v31 = vmul.f32 0.7978846, %v1493_v40  ;;  %v1503_v46 = vmul.f32 0.7978846, %v1495_v56  ;;  %v1462_v0 = vmul.f32 0.5, %v1378_v13  ;;  %v1751_v32 = vld [vmem:[%s3506_s13 + $0x8] sm:$0xff] }
 0x8e2   :  { %2347 = vtanh.f32 %v1498_v36  ;;  %v1494_v30 = vadd.f32 %v1486_v38, %v1378_v13  ;;  %v1464_v61 = vmul.f32 0.5, %v3391_v16  ;;  %v1461_v10 = vmul.f32 0.5, %v3381_v17  ;;  %v1762_v17 = vld [vmem:[%s3506_s13 + $0x60] sm:$0xff]  ;;  %v1857_v34 = vld [vmem:[%s3508_s15 + $0x38] sm:$0xff]  ;;  %v1855_v36 = vld [vmem:[%s3508_s15 + $0x28] sm:$0xff] }
 0x8e3   :  { %2349 = vtanh.f32 %v1500_v37  ;;  %v1496_v42 = vadd.f32 %v1488_v39, %v3391_v16  ;;  %v1463_v12 = vmul.f32 0.5, %v3383_v2  ;;  %v1760_v2 = vld [vmem:[%s3506_s13 + $0x50] sm:$0xff]  ;;  %v1759_v16 = vld [vmem:[%s3506_s13 + $0x48] sm:$0xff]  ;;  %v1750_v33 = vld [vmem:[%s3506_s13] sm:$0xff]  ;;  %2284 = vmatprep.subr.mxu1 %v1857_v34 }
 0x8e4   :  { %v1502_v43 = vmul.f32 0.7978846, %v1494_v30  ;;  %2351 = vtanh.f32 %v1501_v31  ;;  %v1854_v37 = vld [vmem:[%s3508_s15 + $0x20] sm:$0xff]  ;;  %v1978_v40 = vld [vmem:[#allocation10] ss:$0 sm:$0xff] }
 0x8e5   :  { %v1504_v44 = vmul.f32 0.7978846, %v1496_v42 }
 0x8e6   :  { %2353 = vtanh.f32 %v1502_v43 }
 0x8e7   :  { %2355 = vtanh.f32 %v1504_v44 }
 0x8e8   :  { %2357 = vtanh.f32 %v1503_v46 }
 0x8ec   :  { %v2344_v47 = vpop.eup %2343 }
 0x8ed   :  { %v2346_v48 = vpop.eup %2345  ;;  %v1513_v50 = vadd.f32 1.0, %v2344_v47 }
 0x8ee   :  { %v1515_v57 = vadd.f32 1.0, %v2346_v48 }
 0x8ef   :  { %v2348_v49 = vpop.eup %2347  ;;  %v1521_v5 = vmul.f32 %v1513_v50, %v1457_v58  ;;  %v1851_v58 = vld [vmem:[%s3508_s15 + $0x8] sm:$0xff] }
 0x8f0   :  { %v2350_v51 = vpop.eup %2349  ;;  %v1514_v53 = vadd.f32 1.0, %v2348_v49  ;;  %v1523_v1 = vmul.f32 %v1515_v57, %v1459_v62  ;;  %v1852_v57 = vld [vmem:[%s3508_s15 + $0x10] sm:$0xff] }
 0x8f1   :  { %v1516_v60 = vadd.f32 1.0, %v2350_v51  ;;  %v2352_v19 = vpop.eup %2351 }
 0x8f2   :  { %v1522_v63 = vmul.f32 %v1514_v53, %v1458_v52  ;;  %v1517_v7 = vadd.f32 1.0, %v2352_v19  ;;  %v1853_v53 = vld [vmem:[%s3508_s15 + $0x18] sm:$0xff] }
 0x8f3   :  { %v2354_v14 = vpop.eup %2353  ;;  %v1524_v3 = vmul.f32 %v1516_v60, %v1460_v59  ;;  %v1850_v59 = vld [vmem:[%s3508_s15] sm:$0xff]  ;;  %v1979_v60 = vld [vmem:[#allocation12] ss:$0 sm:$0xff] }
 0x8f4   :  { %v2356_v8 = vpop.eup %2355  ;;  %1664 = vmatprep.mubr.f32.mxu0 %v1522_v63  ;;  %v1518_v15 = vadd.f32 1.0, %v2354_v14  ;;  %v1525_v20 = vmul.f32 %v1517_v7, %v1461_v10  ;;  %v1980_v7 = vld [vmem:[#allocation13] ss:$0 sm:$0xff] }
 0x8f5   :  { %v2358_v9 = vpop.eup %2357  ;;  %1739 = vmatprep.mubr.f32.mxu1 %v1524_v3  ;;  %1665 = vmatmul.mubr.f32.vlgmr.msra.gmra.mxu0 %v1521_v5  ;;  %v1520_v55 = vadd.f32 1.0, %v2356_v8 }
 0x8f6   :  { %1740 = vmatmul.mubr.f32.vlgmr.msra.gmra.mxu1 %v1523_v1  ;;  %v1526_v11 = vmul.f32 %v1518_v15, %v1462_v0  ;;  %v1519_v18 = vadd.f32 1.0, %v2358_v9  ;;  %2250 = vmatpush3.msra.mxu0 %v3358_v45  ;;  %v1761_v45 = vld [vmem:[%s3506_s13 + $0x58] sm:$0xff] }
 0x8f7   :  { %v1528_v13 = vmul.f32 %v1520_v55, %v1464_v61  ;;  %2251 = vmatprep.subr.mxu0 %v1764_v54  ;;  %2285 = vmatpush3.msra.mxu1 %v1857_v34 }
 0x8f8   :  { %1669 = vmatprep.mubr.f32.mxu0 %v1526_v11  ;;  %v1527_v22 = vmul.f32 %v1519_v18, %v1463_v12  ;;  %2252 = vmatpush3.msra.mxu0 %v1764_v54 }
 0x8f9   :  { %1744 = vmatprep.mubr.f32.mxu1 %v1528_v13  ;;  %1670 = vmatmul.mubr.f32.gmra.mxu0 %v1525_v20 }
 0x8fa   :  { %1745 = vmatmul.mubr.f32.gmra.mxu1 %v1527_v22  ;;  %2253 = vmatprep.subr.mxu0 %v1763_v21 }
 0x8fb   :  { %2254 = vmatpush3.msra.mxu0 %v1763_v21  ;;  %2286 = vmatprep.subr.mxu1 %v1856_v35 }
 0x8fc   :  { %2255 = vmatprep.subr.mxu0 %v1762_v17  ;;  %2287 = vmatpush3.msra.mxu1 %v1856_v35 }
 0x8fd   :  { %2256 = vmatpush3.msra.mxu0 %v1762_v17  ;;  %2288 = vmatprep.subr.mxu1 %v1855_v36 }
 0x8fe   :  { %2257 = vmatprep.subr.mxu0 %v1761_v45  ;;  %2289 = vmatpush3.msra.mxu1 %v1855_v36 }
 0x8ff   :  { %2258 = vmatpush3.msra.mxu0 %v1761_v45  ;;  %2290 = vmatprep.subr.mxu1 %v1854_v37 }
 0x900   :  { %2259 = vmatprep.subr.mxu0 %v1760_v2  ;;  %2291 = vmatpush3.msra.mxu1 %v1854_v37 }
 0x901   :  { %2260 = vmatpush3.msra.mxu0 %v1760_v2  ;;  %2292 = vmatprep.subr.mxu1 %v1853_v53 }
 0x902   :  { %2261 = vmatprep.subr.mxu0 %v1759_v16  ;;  %2293 = vmatpush3.msra.mxu1 %v1853_v53 }
 0x903   :  { %2262 = vmatpush3.msra.mxu0 %v1759_v16  ;;  %2294 = vmatprep.subr.mxu1 %v1852_v57 }
 0x904   :  { %2263 = vmatprep.subr.mxu0 %v1758_v23  ;;  %2295 = vmatpush3.msra.mxu1 %v1852_v57 }
 0x905   :  { %2264 = vmatpush3.msra.mxu0 %v1758_v23  ;;  %2296 = vmatprep.subr.mxu1 %v1851_v58 }
 0x906   :  { %2265 = vmatprep.subr.mxu0 %v1757_v24  ;;  %2297 = vmatpush3.msra.mxu1 %v1851_v58 }
 0x907   :  { %2266 = vmatpush3.msra.mxu0 %v1757_v24  ;;  %2298 = vmatprep.subr.mxu1 %v1850_v59 }
 0x908   :  { %2267 = vmatprep.subr.mxu0 %v1756_v25  ;;  %2299 = vmatpush3.msra.mxu1 %v1850_v59 }
 0x909   :  { %2268 = vmatpush3.msra.mxu0 %v1756_v25 }
 0x90a   :  { %2269 = vmatprep.subr.mxu0 %v1755_v26 }
 0x90b   :  { %2270 = vmatpush3.msra.mxu0 %v1755_v26 }
 0x90c   :  { %2271 = vmatprep.subr.mxu0 %v1754_v27 }
 0x90d   :  { %2272 = vmatpush3.msra.mxu0 %v1754_v27 }
 0x90e   :  { %2273 = vmatprep.subr.mxu0 %v1753_v29 }
 0x90f   :  { %2274 = vmatpush3.msra.mxu0 %v1753_v29 }
 0x910   :  { %2275 = vmatprep.subr.mxu0 %v1752_v28 }
 0x911   :  { %2276 = vmatpush3.msra.mxu0 %v1752_v28 }
 0x912   :  { %2277 = vmatprep.subr.mxu0 %v1751_v32 }
 0x913   :  { %2278 = vmatpush3.msra.mxu0 %v1751_v32 }
 0x914   :  { %2279 = vmatprep.subr.mxu0 %v1750_v33 }
 0x915   :  { %2280 = vmatpush3.msra.mxu0 %v1750_v33 }
 0x9b5   :  { %v2067_v38 = vpop.f32.mrf.mxu0 }
 0x9b6   :  { %v2105_v39 = vpop.f32.mrf.mxu1 }
 0x9b7   :  { %v2068_v41 = vpop.f32.mrf.mxu0 }
 0x9b8   :  { %v2069_v30 = vadd.f32 %v2068_v41, %v2067_v38  ;;  %v2106_v42 = vpop.f32.mrf.mxu1 }
 0x9b9   :  { %v2070_v31 = vpop.f32.mrf.mxu0  ;;  %v2107_v43 = vadd.f32 %v2106_v42, %v2105_v39 }
 0x9ba   :  { %v1667_v56 = vadd.f32 %v2069_v30, %v1978_v40  ;;  %v2108_v44 = vpop.f32.mrf.mxu1 }
 0x9bb   :  { %v2071_v46 = vpop.f32.mrf.mxu0 }
 0x9bc   :  { %v1742_v47 = vadd.f32 %v2107_v43, %v1667_v56  ;;  %v2072_v48 = vadd.f32 %v2071_v46, %v2070_v31  ;;  %v2109_v49 = vpop.f32.mrf.mxu1 }
 0x9bd   :  { %v2110_v51 = vadd.f32 %v2109_v49, %v2108_v44 }
 0x9be   :  { %v1672_v50 = vadd.f32 %v2072_v48, %v1978_v40  ;;  %2281 = vmatprep.mubr.f32.mxu0 %v1742_v47 }
 0x9c0   :  { %v1747_v52 = vadd.f32 %v2110_v51, %v1672_v50 }
 0x9c2   :  { %2282 = vmatmul.mubr.f32.vlgmr.msra.gmra.mxu0 %v1747_v52 }
 0xa82   :  { %v2283_v19 = vpop.f32.mrf.mxu0 }
 0xa83   :  { %v1845_v62 = vadd.f32 %v2283_v19, %v1979_v60 }
 0xa84   :  { %v1839_v63 = vpop.f32.mrf.mxu0 }
 0xa85   :  { %v1840_v14 = vadd.f32 %v1979_v60, %v1839_v63  ;;  %v1849_v5 = vmax.f32 %v1845_v62, 0.0 }
 0xa87   :  { %v1848_v3 = vmax.f32 %v1840_v14, 0.0 }
 0xa89   :  { %2300 = vmatprep.mubr.msk.f32.mxu1 %vm409_vm1, %v1848_v3 }
 0xa8a   :  { %2301 = vmatmul.mubr.msk.f32.vlgmr.msra.gmra.mxu1 %vm409_vm1, %v1849_v5 }
 0xb4a   :  { %v2302_v8 = vpop.f32.mrf.mxu1 }
 0xb4b   :  { %v1943_v1 = vadd.f32 %v2302_v8, %v1980_v7 }
 0xb4c   :  { %v1937_v0 = vpop.f32.mrf.mxu1 }
 0xb4d   :  { %v1947_v15 = vadd.f32 %v1943_v1, %v1747_v52  ;;  %v1938_v54 = vadd.f32 %v1980_v7, %v1937_v0 }
 0xb4f   :  { %v1949_v9 = vadd.f32 %v1947_v15, %v2950_v4  ;;  %v1946_v61 = vadd.f32 %v1938_v54, %v1742_v47 }
 0xb51   :  { %1951 = vst [vmem:[%s3510_s17 + $0x8] sm:$0xff] %v1949_v9  ;;  %v1948_v55 = vadd.f32 %v1946_v61, %v2953_v6 }
 0xb53   :  { %1950 = vst [vmem:[%s3510_s17] sm:$0xff] %v1948_v55 }
 0xb54   :  { %1956 = vsyncpa [#allocation3], 1 }
 0xb55   :  { %1957 = vsyncpa [#allocation5], 1 }
 0xb56   :  { %1958 = vsyncpa [#allocation8], 1 }
 0xb57   :  { %1959 = vsyncpa [#allocation11], 1 }
 0xb58   :  { %1960 = vsyncpa [#allocation14], 1 }

</bundles_post_ra>
